<compile_context>
chip_gen: v5e
topology: v5e:2x2
jax: 0.10.0
libtpu: 0.0.40
codegen_flags: <defaults>
</compile_context>

<pallas_src>
import functools

import jax
import jax.numpy as jnp
from jax.experimental import pallas as pl
from jax.experimental.pallas import tpu as pltpu

BN_EPS = 1e-5
_BN_SCALE = (1.0 + BN_EPS) ** -0.5


def _pick_tile(n):
    # Largest point tile (<=512, multiple of 8) dividing N. At N=20480 -> 512 points/tile;
    # all per-kernel VMEM (weights + double-buffered tiles + temps) stays well under the
    # scoped-VMEM defaults of every generation (v5e 16MiB / v6e 32MiB / v7x 32MiB).
    for t in (512, 256, 128, 64, 32, 16, 8):
        if n % t == 0:
            return t
    return n


# ---------------------------------------------------------------------------
# K1: T-Net conv1->conv2->conv3 (+ReLU, BN folded) fused with global max over N
# ---------------------------------------------------------------------------
def _tnet_conv_pool_kernel(x_ref, w1_ref, b1_ref, w2_ref, b2_ref, w3_ref, b3_ref, mx_ref):
    @pl.when(pl.program_id(1) == 0)
    def _():
        mx_ref[...] = jnp.full(mx_ref.shape, -jnp.inf, jnp.float32)

    x = x_ref[0]                                                     # (TN, dim)
    h = jnp.maximum(jnp.dot(x, w1_ref[...], preferred_element_type=jnp.float32) + b1_ref[...], 0.0)
    h = jnp.maximum(jnp.dot(h, w2_ref[...], preferred_element_type=jnp.float32) + b2_ref[...], 0.0)
    h = jnp.maximum(jnp.dot(h, w3_ref[...], preferred_element_type=jnp.float32) + b3_ref[...], 0.0)
    mx_ref[0] = jnp.maximum(mx_ref[0], jnp.max(h, axis=0, keepdims=True))


def tnet_conv_pool(xp, w1, b1, w2, b2, w3, b3):
    """xp: (B, N, dim) -> pooled features (B, C) with C = w3.shape[1]."""
    B, N, dim = xp.shape
    c1, c2, C = w1.shape[1], w2.shape[1], w3.shape[1]
    TN = _pick_tile(N)
    out = pl.pallas_call(
        _tnet_conv_pool_kernel,
        out_shape=jax.ShapeDtypeStruct((B, 1, C), jnp.float32),
        grid=(B, N // TN),
        in_specs=[
            pl.BlockSpec((1, TN, dim), lambda b, n: (b, n, 0)),
            pl.BlockSpec((dim, c1), lambda b, n: (0, 0)),
            pl.BlockSpec((1, c1), lambda b, n: (0, 0)),
            pl.BlockSpec((c1, c2), lambda b, n: (0, 0)),
            pl.BlockSpec((1, c2), lambda b, n: (0, 0)),
            pl.BlockSpec((c2, C), lambda b, n: (0, 0)),
            pl.BlockSpec((1, C), lambda b, n: (0, 0)),
        ],
        out_specs=pl.BlockSpec((1, 1, C), lambda b, n: (b, 0, 0)),
        compiler_params=pltpu.CompilerParams(
            dimension_semantics=("parallel", "arbitrary")),
    )(xp, w1, b1.reshape(1, -1), w2, b2.reshape(1, -1), w3, b3.reshape(1, -1))
    return out.reshape(B, C)


# ---------------------------------------------------------------------------
# K2: bmm(x, A_input) folded into conv1 (per-batch A@W1) + conv2  ->  h3
# ---------------------------------------------------------------------------
def _stage1_kernel(x_ref, w1_ref, b1_ref, w2_ref, b2_ref, o_ref):
    x = x_ref[0]                                                     # (TN, dim)
    h = jnp.maximum(jnp.dot(x, w1_ref[0], preferred_element_type=jnp.float32) + b1_ref[...], 0.0)
    o_ref[0] = jnp.maximum(
        jnp.dot(h, w2_ref[...], preferred_element_type=jnp.float32) + b2_ref[...], 0.0)


def stage1(xp, w1p, b1, w2, b2):
    """xp: (B, N, dim), w1p: (B, dim, 64) per-batch (A_input @ W1) -> (B, N, 64)."""
    B, N, dim = xp.shape
    c1, c2 = w1p.shape[2], w2.shape[1]
    TN = _pick_tile(N)
    return pl.pallas_call(
        _stage1_kernel,
        out_shape=jax.ShapeDtypeStruct((B, N, c2), jnp.float32),
        grid=(B, N // TN),
        in_specs=[
            pl.BlockSpec((1, TN, dim), lambda b, n: (b, n, 0)),
            pl.BlockSpec((1, dim, c1), lambda b, n: (b, 0, 0)),
            pl.BlockSpec((1, c1), lambda b, n: (0, 0)),
            pl.BlockSpec((c1, c2), lambda b, n: (0, 0)),
            pl.BlockSpec((1, c2), lambda b, n: (0, 0)),
        ],
        out_specs=pl.BlockSpec((1, TN, c2), lambda b, n: (b, n, 0)),
        compiler_params=pltpu.CompilerParams(
            dimension_semantics=("parallel", "parallel")),
    )(xp, w1p, b1.reshape(1, -1), w2, b2.reshape(1, -1))


# ---------------------------------------------------------------------------
# K3: bmm(h3, A_feat) folded into conv3 + conv4 + conv5, fused with max-pool + argmax
# ---------------------------------------------------------------------------
def _conv345_pool_kernel(x_ref, w3_ref, b3_ref, w4_ref, b4_ref, w5_ref, b5_ref,
                         mx_ref, idx_ref, *, tile_n):
    nt = pl.program_id(1)

    @pl.when(nt == 0)
    def _():
        mx_ref[...] = jnp.full(mx_ref.shape, -jnp.inf, jnp.float32)
        idx_ref[...] = jnp.zeros(idx_ref.shape, jnp.int32)

    x = x_ref[0]                                                     # (TN, 64)
    h = jnp.maximum(jnp.dot(x, w3_ref[0], preferred_element_type=jnp.float32) + b3_ref[...], 0.0)
    h = jnp.maximum(jnp.dot(h, w4_ref[...], preferred_element_type=jnp.float32) + b4_ref[...], 0.0)
    h = jnp.maximum(jnp.dot(h, w5_ref[...], preferred_element_type=jnp.float32) + b5_ref[...], 0.0)

    tile_max = jnp.max(h, axis=0, keepdims=True)                     # (1, C)
    iota = jax.lax.broadcasted_iota(jnp.int32, h.shape, 0) + nt * tile_n
    big = jnp.int32(2**31 - 1)
    # First index achieving the tile max (torch tie-break on max-pool indices is unspecified).
    tile_idx = jnp.min(jnp.where(h == tile_max, iota, big), axis=0, keepdims=True)

    run_max = mx_ref[0]
    better = tile_max > run_max                                      # strict -> keep earliest
    idx_ref[0] = jnp.where(better, tile_idx, idx_ref[0])
    mx_ref[0] = jnp.where(better, tile_max, run_max)


def conv345_pool(h3, w3p, b3, w4, b4, w5, b5):
    """h3: (B, N, 64), w3p: (B, 64, 64) per-batch (A_feat @ W3) -> (g (B,C), crit_idx (B,C))."""
    B, N, cin = h3.shape
    c3, c4, C = w3p.shape[2], w4.shape[1], w5.shape[1]
    TN = _pick_tile(N)
    mx, idx = pl.pallas_call(
        functools.partial(_conv345_pool_kernel, tile_n=TN),
        out_shape=(jax.ShapeDtypeStruct((B, 1, C), jnp.float32),
                   jax.ShapeDtypeStruct((B, 1, C), jnp.int32)),
        grid=(B, N // TN),
        in_specs=[
            pl.BlockSpec((1, TN, cin), lambda b, n: (b, n, 0)),
            pl.BlockSpec((1, cin, c3), lambda b, n: (b, 0, 0)),
            pl.BlockSpec((1, c3), lambda b, n: (0, 0)),
            pl.BlockSpec((c3, c4), lambda b, n: (0, 0)),
            pl.BlockSpec((1, c4), lambda b, n: (0, 0)),
            pl.BlockSpec((c4, C), lambda b, n: (0, 0)),
            pl.BlockSpec((1, C), lambda b, n: (0, 0)),
        ],
        out_specs=(pl.BlockSpec((1, 1, C), lambda b, n: (b, 0, 0)),
                   pl.BlockSpec((1, 1, C), lambda b, n: (b, 0, 0))),
        compiler_params=pltpu.CompilerParams(
            dimension_semantics=("parallel", "arbitrary")),
    )(h3, w3p, b3.reshape(1, -1), w4, b4.reshape(1, -1), w5, b5.reshape(1, -1))
    return mx.reshape(B, C), idx.reshape(B, C)


# ---------------------------------------------------------------------------
# K4: seg head. conv1 is split into local (64->512, per-batch A_feat@Wl) and global branch
# (g@Wg + b, precomputed per batch), then conv2 -> conv3 -> conv4.
# ---------------------------------------------------------------------------
def _seg_head_kernel(x_ref, wl_ref, g_ref, w2_ref, b2_ref, w3_ref, b3_ref,
                     w4_ref, b4_ref, o_ref):
    x = x_ref[0]                                                     # (TN, 64)
    h = jnp.maximum(jnp.dot(x, wl_ref[0], preferred_element_type=jnp.float32) + g_ref[0], 0.0)
    h = jnp.maximum(jnp.dot(h, w2_ref[...], preferred_element_type=jnp.float32) + b2_ref[...], 0.0)
    h = jnp.maximum(jnp.dot(h, w3_ref[...], preferred_element_type=jnp.float32) + b3_ref[...], 0.0)
    o_ref[0] = jnp.dot(h, w4_ref[...], preferred_element_type=jnp.float32) + b4_ref[...]


def seg_head_mlp(h3, wlp, g_contrib, w2, b2, w3, b3, w4, b4):
    """h3: (B, N, 64), wlp: (B, 64, 512), g_contrib: (B, 512) -> logits (B, N, m)."""
    B, N, cin = h3.shape
    c1, c2, c3, m = wlp.shape[2], w2.shape[1], w3.shape[1], w4.shape[1]
    TN = _pick_tile(N)
    return pl.pallas_call(
        _seg_head_kernel,
        out_shape=jax.ShapeDtypeStruct((B, N, m), jnp.float32),
        grid=(B, N // TN),
        in_specs=[
            pl.BlockSpec((1, TN, cin), lambda b, n: (b, n, 0)),
            pl.BlockSpec((1, cin, c1), lambda b, n: (b, 0, 0)),
            pl.BlockSpec((1, 1, c1), lambda b, n: (b, 0, 0)),
            pl.BlockSpec((c1, c2), lambda b, n: (0, 0)),
            pl.BlockSpec((1, c2), lambda b, n: (0, 0)),
            pl.BlockSpec((c2, c3), lambda b, n: (0, 0)),
            pl.BlockSpec((1, c3), lambda b, n: (0, 0)),
            pl.BlockSpec((c3, m), lambda b, n: (0, 0)),
            pl.BlockSpec((1, m), lambda b, n: (0, 0)),
        ],
        out_specs=pl.BlockSpec((1, TN, m), lambda b, n: (b, n, 0)),
        compiler_params=pltpu.CompilerParams(
            dimension_semantics=("parallel", "parallel")),
    )(h3, wlp, g_contrib.reshape(B, 1, c1), w2, b2.reshape(1, -1),
      w3, b3.reshape(1, -1), w4, b4.reshape(1, -1))


# ---------------------------------------------------------------------------
# Deterministic parameter init (PyTorch-style uniform(-1/sqrt(fan_in), 1/sqrt(fan_in)))
# ---------------------------------------------------------------------------
def _init_linear(key, c_in, c_out):
    kw, kb = jax.random.split(key)
    lim = 1.0 / float(c_in) ** 0.5
    w = jax.random.uniform(kw, (c_in, c_out), jnp.float32, -lim, lim)
    b = jax.random.uniform(kb, (c_out,), jnp.float32, -lim, lim)
    return w, b


def init_tnet(key, dim):
    ks = jax.random.split(key, 6)
    return dict(
        conv1=_init_linear(ks[0], dim, 64),
        conv2=_init_linear(ks[1], 64, 128),
        conv3=_init_linear(ks[2], 128, 1024),
        lin1=_init_linear(ks[3], 1024, 512),
        lin2=_init_linear(ks[4], 512, 256),
        lin3=_init_linear(ks[5], 256, dim * dim),
    )


def init_backbone(key, num_global_feats=1024):
    ks = jax.random.split(key, 7)
    return dict(
        tnet1=init_tnet(ks[0], 6),
        tnet2=init_tnet(ks[1], 64),
        conv1=_init_linear(ks[2], 6, 64),
        conv2=_init_linear(ks[3], 64, 64),
        conv3=_init_linear(ks[4], 64, 64),
        conv4=_init_linear(ks[5], 64, 128),
        conv5=_init_linear(ks[6], 128, num_global_feats),
    )


def init_seg_head(key, num_global_feats=1024, m=2):
    ks = jax.random.split(key, 5)
    nf = num_global_feats + 64
    return dict(
        backbone=init_backbone(ks[0], num_global_feats),
        conv1=_init_linear(ks[1], nf, 512),
        conv2=_init_linear(ks[2], 512, 256),
        conv3=_init_linear(ks[3], 256, 128),
        conv4=_init_linear(ks[4], 128, m),
    )


def fold_params(raw):
    """Fold eval-mode BN (scale = 1/sqrt(1+eps), shift = 0) into W, b; split seg conv1."""
    def fold(wb):
        w, b = wb
        return w * _BN_SCALE, b * _BN_SCALE

    def fold_tnet(t):
        return dict(conv1=fold(t["conv1"]), conv2=fold(t["conv2"]), conv3=fold(t["conv3"]),
                    lin1=fold(t["lin1"]), lin2=fold(t["lin2"]), lin3=t["lin3"])

    bb = raw["backbone"]
    backbone = dict(
        tnet1=fold_tnet(bb["tnet1"]), tnet2=fold_tnet(bb["tnet2"]),
        conv1=fold(bb["conv1"]), conv2=fold(bb["conv2"]), conv3=fold(bb["conv3"]),
        conv4=fold(bb["conv4"]), conv5=fold(bb["conv5"]),
    )
    w1, b1 = fold(raw["conv1"])
    return dict(
        backbone=backbone,
        conv1_local=w1[:64], conv1_global=w1[64:], conv1_bias=b1,   # concat order: local first
        conv2=fold(raw["conv2"]), conv3=fold(raw["conv3"]), conv4=raw["conv4"],
    )


# ---------------------------------------------------------------------------
# Forward pass (glue is plain JAX; all per-point work is in the 4 fused Pallas kernels)
# ---------------------------------------------------------------------------
def tnet_forward(p, xp, dim):
    B = xp.shape[0]
    pooled = tnet_conv_pool(xp, *p["conv1"], *p["conv2"], *p["conv3"])   # (B, 1024)
    # Tiny FC stack (only M = batch rows): left to XLA per perf review.
    h = jnp.maximum(pooled @ p["lin1"][0] + p["lin1"][1], 0.0)
    h = jnp.maximum(h @ p["lin2"][0] + p["lin2"][1], 0.0)
    t = h @ p["lin3"][0] + p["lin3"][1]
    return t.reshape(B, dim, dim) + jnp.eye(dim, dtype=jnp.float32)


def seg_head_forward(p, x_ncw):
    # x_ncw: (B, 6, N) PyTorch NCW input -> (logits (B,N,m), crit_idx (B,G), A_feat (B,64,64))
    xp = jnp.transpose(x_ncw, (0, 2, 1)).astype(jnp.float32)             # (B, N, 6)
    bb = p["backbone"]

    A_input = tnet_forward(bb["tnet1"], xp, 6)                            # (B, 6, 6)

    # bmm(xp, A_input) folded into conv1: per-batch effective weight A_input @ W1 (tiny XLA op).
    w1, b1 = bb["conv1"]
    w1p = jnp.einsum("bij,jk->bik", A_input, w1)                          # (B, 6, 64)
    h3 = stage1(xp, w1p, b1, *bb["conv2"])                                # (B, N, 64)

    A_feat = tnet_forward(bb["tnet2"], h3, 64)                            # (B, 64, 64)

    # bmm(h3, A_feat) folded into conv3 and into the seg-head local branch (A_feat @ W).
    w3, b3 = bb["conv3"]
    w3p = jnp.einsum("bij,jk->bik", A_feat, w3)                           # (B, 64, 64)
    g, crit_idx = conv345_pool(h3, w3p, b3, *bb["conv4"], *bb["conv5"])   # (B,G), (B,G)

    wlp = jnp.einsum("bij,jk->bik", A_feat, p["conv1_local"])             # (B, 64, 512)
    g_contrib = g @ p["conv1_global"] + p["conv1_bias"]                   # (B, 512)
    logits = seg_head_mlp(h3, wlp, g_contrib, *p["conv2"], *p["conv3"], *p["conv4"])
    return logits, crit_idx, A_feat


# ---------------------------------------------------------------------------
# Pure-JAX reference mirroring the original torch forward (eval-mode BN, unfused)
# ---------------------------------------------------------------------------
def _bn_ref(x):
    return x * _BN_SCALE


def _tnet_reference(p, x, dim):
    B = x.shape[0]
    h = _bn_ref(jnp.maximum(x @ p["conv1"][0] + p["conv1"][1], 0.0))
    h = _bn_ref(jnp.maximum(h @ p["conv2"][0] + p["conv2"][1], 0.0))
    h = _bn_ref(jnp.maximum(h @ p["conv3"][0] + p["conv3"][1], 0.0))
    g = jnp.max(h, axis=1)
    g = _bn_ref(jnp.maximum(g @ p["lin1"][0] + p["lin1"][1], 0.0))
    g = _bn_ref(jnp.maximum(g @ p["lin2"][0] + p["lin2"][1], 0.0))
    t = g @ p["lin3"][0] + p["lin3"][1]
    return t.reshape(B, dim, dim) + jnp.eye(dim, dtype=jnp.float32)


def seg_head_reference(raw, x_ncw):
    xp = jnp.transpose(x_ncw, (0, 2, 1)).astype(jnp.float32)
    B, N, _ = xp.shape
    bb = raw["backbone"]
    A_in = _tnet_reference(bb["tnet1"], xp, 6)
    x = jnp.einsum("bnd,bde->bne", xp, A_in)
    h = _bn_ref(jnp.maximum(x @ bb["conv1"][0] + bb["conv1"][1], 0.0))
    h = _bn_ref(jnp.maximum(h @ bb["conv2"][0] + bb["conv2"][1], 0.0))
    A_feat = _tnet_reference(bb["tnet2"], h, 64)
    local = jnp.einsum("bnd,bde->bne", h, A_feat)
    h = _bn_ref(jnp.maximum(local @ bb["conv3"][0] + bb["conv3"][1], 0.0))
    h = _bn_ref(jnp.maximum(h @ bb["conv4"][0] + bb["conv4"][1], 0.0))
    h = _bn_ref(jnp.maximum(h @ bb["conv5"][0] + bb["conv5"][1], 0.0))
    g = jnp.max(h, axis=1)
    feats = jnp.concatenate(
        [local, jnp.broadcast_to(g[:, None, :], (B, N, g.shape[-1]))], axis=-1)
    h = _bn_ref(jnp.maximum(feats @ raw["conv1"][0] + raw["conv1"][1], 0.0))
    h = _bn_ref(jnp.maximum(h @ raw["conv2"][0] + raw["conv2"][1], 0.0))
    h = _bn_ref(jnp.maximum(h @ raw["conv3"][0] + raw["conv3"][1], 0.0))
    logits = h @ raw["conv4"][0] + raw["conv4"][1]
    return logits, A_feat


# ---------------------------------------------------------------------------
if __name__ == "__main__":
    B, N, m, G = 2, 128, 2, 1024     # small point count; real module uses N=20480
    key = jax.random.PRNGKey(0)
    k_params, k_x = jax.random.split(key)

    raw = init_seg_head(k_params, num_global_feats=G, m=m)
    params = fold_params(raw)
    x = jax.random.normal(k_x, (B, 6, N), jnp.float32)   # PyTorch NCW input

    fwd = jax.jit(functools.partial(seg_head_forward, params))
    logits, crit_idx, A_feat = fwd(x)
    jax.block_until_ready((logits, crit_idx, A_feat))

    assert logits.shape == (B, N, m)
    assert crit_idx.shape == (B, G) and crit_idx.dtype == jnp.int32
    assert A_feat.shape == (B, 64, 64)
    assert bool(jnp.all(jnp.isfinite(logits)))
    assert bool(jnp.all((crit_idx >= 0) & (crit_idx < N)))

    # Correctness against an unfused pure-JAX reference of the original torch forward.
    ref_logits, ref_A_feat = jax.jit(functools.partial(seg_head_reference, raw))(x)
    assert bool(jnp.allclose(A_feat, ref_A_feat, rtol=1e-3, atol=1e-3))
    assert bool(jnp.allclose(logits, ref_logits, rtol=1e-3, atol=1e-3))

    print("KERNEL_OK")
</pallas_src>

<mosaic_0001>
module attributes {stable_mosaic.version = 11 : i64} {
  func.func @_tnet_conv_pool_kernel(%arg0: i32, %arg1: i32, %arg2: memref<1x128x6xf32, #tpu.memory_space<vmem>>, %arg3: memref<6x64xf32, #tpu.memory_space<vmem>>, %arg4: memref<1x64xf32, #tpu.memory_space<vmem>>, %arg5: memref<64x128xf32, #tpu.memory_space<vmem>>, %arg6: memref<1x128xf32, #tpu.memory_space<vmem>>, %arg7: memref<128x1024xf32, #tpu.memory_space<vmem>>, %arg8: memref<1x1024xf32, #tpu.memory_space<vmem>>, %arg9: memref<1x1x1024xf32, #tpu.memory_space<vmem>>) attributes {dimension_semantics = [#tpu.dimension_semantics<parallel>, #tpu.dimension_semantics<arbitrary>], iteration_bounds = array<i64: 2, 1>, scalar_prefetch = 0 : i64, scratch_operands = 0 : i64, tpu.core_type = #tpu.core_type<tc>, window_params = [{transform_indices = @transform_0, window_bounds = array<i64: 1, 128, 6>}, {pipeline_mode = #tpu.pipeline_mode<synchronous>, transform_indices = @transform_1, window_bounds = array<i64: 6, 64>}, {pipeline_mode = #tpu.pipeline_mode<synchronous>, transform_indices = @transform_2, window_bounds = array<i64: 1, 64>}, {pipeline_mode = #tpu.pipeline_mode<synchronous>, transform_indices = @transform_3, window_bounds = array<i64: 64, 128>}, {pipeline_mode = #tpu.pipeline_mode<synchronous>, transform_indices = @transform_4, window_bounds = array<i64: 1, 128>}, {pipeline_mode = #tpu.pipeline_mode<synchronous>, transform_indices = @transform_5, window_bounds = array<i64: 128, 1024>}, {pipeline_mode = #tpu.pipeline_mode<synchronous>, transform_indices = @transform_6, window_bounds = array<i64: 1, 1024>}, {transform_indices = @transform_7, window_bounds = array<i64: 1, 1, 1024>}]} {
    %c0_i32 = arith.constant 0 : i32
    %0 = arith.cmpi eq, %arg1, %c0_i32 : i32
    %1 = arith.extui %0 : i1 to i32
    %c0_i32_0 = arith.constant 0 : i32
    %2 = arith.cmpi ne, %1, %c0_i32_0 : i32
    scf.if %2 {
      %cst_27 = arith.constant 0xFF800000 : f32
      %34 = vector.broadcast %cst_27 : f32 to vector<1x1x1024xf32>
      %c0_28 = arith.constant 0 : index
      %c0_29 = arith.constant 0 : index
      %c0_30 = arith.constant 0 : index
      %35 = vector.load %arg9[%c0_28, %c0_29, %c0_30] : memref<1x1x1024xf32, #tpu.memory_space<vmem>>, vector<1x1x1024xf32>
      tpu.vector_store %arg9[%c0_28, %c0_29, %c0_30], %34 {strides = array<i32>} : memref<1x1x1024xf32, #tpu.memory_space<vmem>>, vector<1x1x1024xf32>,
    } else {
    }
    %c0 = arith.constant 0 : index
    %c0_1 = arith.constant 0 : index
    %c0_2 = arith.constant 0 : index
    %3 = vector.load %arg2[%c0, %c0_1, %c0_2] : memref<1x128x6xf32, #tpu.memory_space<vmem>>, vector<1x128x6xf32>
    %4 = vector.shape_cast %3 : vector<1x128x6xf32> to vector<128x6xf32>
    %c0_3 = arith.constant 0 : index
    %c0_4 = arith.constant 0 : index
    %5 = vector.load %arg3[%c0_3, %c0_4] : memref<6x64xf32, #tpu.memory_space<vmem>>, vector<6x64xf32>
    %cst = arith.constant dense<0.000000e+00> : vector<128x64xf32>
    %6 = tpu.matmul %4, %5, %cst {dimension_numbers = #tpu.dot_dimension_numbers<[1], [0], [0], [1], [0, 0, 1, 1], [], []>} : vector<128x6xf32>, vector<6x64xf32>, vector<128x64xf32> -> vector<128x64xf32>
    %c0_5 = arith.constant 0 : index
    %c0_6 = arith.constant 0 : index
    %7 = vector.load %arg4[%c0_5, %c0_6] : memref<1x64xf32, #tpu.memory_space<vmem>>, vector<1x64xf32>
    %8 = vector.broadcast %7 : vector<1x64xf32> to vector<128x64xf32>
    %9 = arith.addf %6, %8 : vector<128x64xf32>
    %cst_7 = arith.constant 0.000000e+00 : f32
    %10 = vector.broadcast %cst_7 : f32 to vector<128x64xf32>
    %11 = arith.maximumf %9, %10 : vector<128x64xf32>
    %c0_8 = arith.constant 0 : index
    %c0_9 = arith.constant 0 : index
    %12 = vector.load %arg5[%c0_8, %c0_9] : memref<64x128xf32, #tpu.memory_space<vmem>>, vector<64x128xf32>
    %cst_10 = arith.constant dense<0.000000e+00> : vector<128x128xf32>
    %13 = tpu.matmul %11, %12, %cst_10 {dimension_numbers = #tpu.dot_dimension_numbers<[1], [0], [0], [1], [0, 0, 1, 1], [], []>} : vector<128x64xf32>, vector<64x128xf32>, vector<128x128xf32> -> vector<128x128xf32>
    %c0_11 = arith.constant 0 : index
    %c0_12 = arith.constant 0 : index
    %14 = vector.load %arg6[%c0_11, %c0_12] : memref<1x128xf32, #tpu.memory_space<vmem>>, vector<1x128xf32>
    %15 = vector.broadcast %14 : vector<1x128xf32> to vector<128x128xf32>
    %16 = arith.addf %13, %15 : vector<128x128xf32>
    %cst_13 = arith.constant 0.000000e+00 : f32
    %17 = vector.broadcast %cst_13 : f32 to vector<128x128xf32>
    %18 = arith.maximumf %16, %17 : vector<128x128xf32>
    %c0_14 = arith.constant 0 : index
    %c0_15 = arith.constant 0 : index
    %19 = vector.load %arg7[%c0_14, %c0_15] : memref<128x1024xf32, #tpu.memory_space<vmem>>, vector<128x1024xf32>
    %cst_16 = arith.constant dense<0.000000e+00> : vector<128x1024xf32>
    %20 = tpu.matmul %18, %19, %cst_16 {dimension_numbers = #tpu.dot_dimension_numbers<[1], [0], [0], [1], [0, 0, 1, 1], [], []>} : vector<128x128xf32>, vector<128x1024xf32>, vector<128x1024xf32> -> vector<128x1024xf32>
    %c0_17 = arith.constant 0 : index
    %c0_18 = arith.constant 0 : index
    %21 = vector.load %arg8[%c0_17, %c0_18] : memref<1x1024xf32, #tpu.memory_space<vmem>>, vector<1x1024xf32>
    %22 = vector.broadcast %21 : vector<1x1024xf32> to vector<128x1024xf32>
    %23 = arith.addf %20, %22 : vector<128x1024xf32>
    %cst_19 = arith.constant 0.000000e+00 : f32
    %24 = vector.broadcast %cst_19 : f32 to vector<128x1024xf32>
    %25 = arith.maximumf %23, %24 : vector<128x1024xf32>
    %c0_20 = arith.constant 0 : index
    %c0_21 = arith.constant 0 : index
    %c0_22 = arith.constant 0 : index
    %26 = vector.load %arg9[%c0_20, %c0_21, %c0_22] : memref<1x1x1024xf32, #tpu.memory_space<vmem>>, vector<1x1x1024xf32>
    %27 = vector.shape_cast %26 : vector<1x1x1024xf32> to vector<1x1024xf32>
    %cst_23 = arith.constant dense<0xFF800000> : vector<1024xf32>
    %28 = vector.multi_reduction <maximumf>, %25, %cst_23 [0] : vector<128x1024xf32> to vector<1024xf32>
    %29 = vector.shape_cast %28 : vector<1024xf32> to vector<1x1024xf32>
    %30 = arith.maximumf %27, %29 : vector<1x1024xf32>
    %c0_24 = arith.constant 0 : index
    %c0_25 = arith.constant 0 : index
    %c0_26 = arith.constant 0 : index
    %31 = vector.load %arg9[%c0_24, %c0_25, %c0_26] : memref<1x1x1024xf32, #tpu.memory_space<vmem>>, vector<1x1x1024xf32>
    %32 = vector.shape_cast %31 : vector<1x1x1024xf32> to vector<1x1024xf32>
    %33 = vector.shape_cast %30 : vector<1x1024xf32> to vector<1x1x1024xf32>
    tpu.vector_store %arg9[%c0_24, %c0_25, %c0_26], %33 {strides = array<i32>} : memref<1x1x1024xf32, #tpu.memory_space<vmem>>, vector<1x1x1024xf32>,
    return
  }
  func.func @transform_0(%arg0: i32, %arg1: i32) -> (i32, i32, i32) {
    %c0_i32 = arith.constant 0 : i32
    %c0_i32_0 = arith.constant 0 : i32
    return %arg0, %arg1, %c0_i32 : i32, i32, i32
  }
  func.func @transform_1(%arg0: i32, %arg1: i32) -> (i32, i32) {
    %c0_i32 = arith.constant 0 : i32
    %c0_i32_0 = arith.constant 0 : i32
    %c0_i32_1 = arith.constant 0 : i32
    return %c0_i32, %c0_i32_0 : i32, i32
  }
  func.func @transform_2(%arg0: i32, %arg1: i32) -> (i32, i32) {
    %c0_i32 = arith.constant 0 : i32
    %c0_i32_0 = arith.constant 0 : i32
    %c0_i32_1 = arith.constant 0 : i32
    return %c0_i32, %c0_i32_0 : i32, i32
  }
  func.func @transform_3(%arg0: i32, %arg1: i32) -> (i32, i32) {
    %c0_i32 = arith.constant 0 : i32
    %c0_i32_0 = arith.constant 0 : i32
    %c0_i32_1 = arith.constant 0 : i32
    return %c0_i32, %c0_i32_0 : i32, i32
  }
  func.func @transform_4(%arg0: i32, %arg1: i32) -> (i32, i32) {
    %c0_i32 = arith.constant 0 : i32
    %c0_i32_0 = arith.constant 0 : i32
    %c0_i32_1 = arith.constant 0 : i32
    return %c0_i32, %c0_i32_0 : i32, i32
  }
  func.func @transform_5(%arg0: i32, %arg1: i32) -> (i32, i32) {
    %c0_i32 = arith.constant 0 : i32
    %c0_i32_0 = arith.constant 0 : i32
    %c0_i32_1 = arith.constant 0 : i32
    return %c0_i32, %c0_i32_0 : i32, i32
  }
  func.func @transform_6(%arg0: i32, %arg1: i32) -> (i32, i32) {
    %c0_i32 = arith.constant 0 : i32
    %c0_i32_0 = arith.constant 0 : i32
    %c0_i32_1 = arith.constant 0 : i32
    return %c0_i32, %c0_i32_0 : i32, i32
  }
  func.func @transform_7(%arg0: i32, %arg1: i32) -> (i32, i32, i32) {
    %c0_i32 = arith.constant 0 : i32
    %c0_i32_0 = arith.constant 0 : i32
    %c0_i32_1 = arith.constant 0 : i32
    return %arg0, %c0_i32, %c0_i32_0 : i32, i32, i32
  }
}

module attributes {stable_mosaic.version = 11 : i64} {
  func.func @_stage1_kernel(%arg0: i32, %arg1: i32, %arg2: memref<1x128x6xf32, #tpu.memory_space<vmem>>, %arg3: memref<1x6x64xf32, #tpu.memory_space<vmem>>, %arg4: memref<1x64xf32, #tpu.memory_space<vmem>>, %arg5: memref<64x64xf32, #tpu.memory_space<vmem>>, %arg6: memref<1x64xf32, #tpu.memory_space<vmem>>, %arg7: memref<1x128x64xf32, #tpu.memory_space<vmem>>) attributes {dimension_semantics = [#tpu.dimension_semantics<parallel>, #tpu.dimension_semantics<parallel>], iteration_bounds = array<i64: 2, 1>, scalar_prefetch = 0 : i64, scratch_operands = 0 : i64, tpu.core_type = #tpu.core_type<tc>, window_params = [{transform_indices = @transform_0, window_bounds = array<i64: 1, 128, 6>}, {transform_indices = @transform_1, window_bounds = array<i64: 1, 6, 64>}, {pipeline_mode = #tpu.pipeline_mode<synchronous>, transform_indices = @transform_2, window_bounds = array<i64: 1, 64>}, {pipeline_mode = #tpu.pipeline_mode<synchronous>, transform_indices = @transform_3, window_bounds = array<i64: 64, 64>}, {pipeline_mode = #tpu.pipeline_mode<synchronous>, transform_indices = @transform_4, window_bounds = array<i64: 1, 64>}, {transform_indices = @transform_5, window_bounds = array<i64: 1, 128, 64>}]} {
    %c0 = arith.constant 0 : index
    %c0_0 = arith.constant 0 : index
    %c0_1 = arith.constant 0 : index
    %0 = vector.load %arg2[%c0, %c0_0, %c0_1] : memref<1x128x6xf32, #tpu.memory_space<vmem>>, vector<1x128x6xf32>
    %1 = vector.shape_cast %0 : vector<1x128x6xf32> to vector<128x6xf32>
    %c0_2 = arith.constant 0 : index
    %c0_3 = arith.constant 0 : index
    %c0_4 = arith.constant 0 : index
    %2 = vector.load %arg3[%c0_2, %c0_3, %c0_4] : memref<1x6x64xf32, #tpu.memory_space<vmem>>, vector<1x6x64xf32>
    %3 = vector.shape_cast %2 : vector<1x6x64xf32> to vector<6x64xf32>
    %cst = arith.constant dense<0.000000e+00> : vector<128x64xf32>
    %4 = tpu.matmul %1, %3, %cst {dimension_numbers = #tpu.dot_dimension_numbers<[1], [0], [0], [1], [0, 0, 1, 1], [], []>} : vector<128x6xf32>, vector<6x64xf32>, vector<128x64xf32> -> vector<128x64xf32>
    %c0_5 = arith.constant 0 : index
    %c0_6 = arith.constant 0 : index
    %5 = vector.load %arg4[%c0_5, %c0_6] : memref<1x64xf32, #tpu.memory_space<vmem>>, vector<1x64xf32>
    %6 = vector.broadcast %5 : vector<1x64xf32> to vector<128x64xf32>
    %7 = arith.addf %4, %6 : vector<128x64xf32>
    %cst_7 = arith.constant 0.000000e+00 : f32
    %8 = vector.broadcast %cst_7 : f32 to vector<128x64xf32>
    %9 = arith.maximumf %7, %8 : vector<128x64xf32>
    %c0_8 = arith.constant 0 : index
    %c0_9 = arith.constant 0 : index
    %10 = vector.load %arg5[%c0_8, %c0_9] : memref<64x64xf32, #tpu.memory_space<vmem>>, vector<64x64xf32>
    %cst_10 = arith.constant dense<0.000000e+00> : vector<128x64xf32>
    %11 = tpu.matmul %9, %10, %cst_10 {dimension_numbers = #tpu.dot_dimension_numbers<[1], [0], [0], [1], [0, 0, 1, 1], [], []>} : vector<128x64xf32>, vector<64x64xf32>, vector<128x64xf32> -> vector<128x64xf32>
    %c0_11 = arith.constant 0 : index
    %c0_12 = arith.constant 0 : index
    %12 = vector.load %arg6[%c0_11, %c0_12] : memref<1x64xf32, #tpu.memory_space<vmem>>, vector<1x64xf32>
    %13 = vector.broadcast %12 : vector<1x64xf32> to vector<128x64xf32>
    %14 = arith.addf %11, %13 : vector<128x64xf32>
    %cst_13 = arith.constant 0.000000e+00 : f32
    %15 = vector.broadcast %cst_13 : f32 to vector<128x64xf32>
    %16 = arith.maximumf %14, %15 : vector<128x64xf32>
    %c0_14 = arith.constant 0 : index
    %c0_15 = arith.constant 0 : index
    %c0_16 = arith.constant 0 : index
    %17 = vector.load %arg7[%c0_14, %c0_15, %c0_16] : memref<1x128x64xf32, #tpu.memory_space<vmem>>, vector<1x128x64xf32>
    %18 = vector.shape_cast %17 : vector<1x128x64xf32> to vector<128x64xf32>
    %19 = vector.shape_cast %16 : vector<128x64xf32> to vector<1x128x64xf32>
    tpu.vector_store %arg7[%c0_14, %c0_15, %c0_16], %19 {strides = array<i32>} : memref<1x128x64xf32, #tpu.memory_space<vmem>>, vector<1x128x64xf32>,
    return
  }
  func.func @transform_0(%arg0: i32, %arg1: i32) -> (i32, i32, i32) {
    %c0_i32 = arith.constant 0 : i32
    %c0_i32_0 = arith.constant 0 : i32
    return %arg0, %arg1, %c0_i32 : i32, i32, i32
  }
  func.func @transform_1(%arg0: i32, %arg1: i32) -> (i32, i32, i32) {
    %c0_i32 = arith.constant 0 : i32
    %c0_i32_0 = arith.constant 0 : i32
    %c0_i32_1 = arith.constant 0 : i32
    return %arg0, %c0_i32, %c0_i32_0 : i32, i32, i32
  }
  func.func @transform_2(%arg0: i32, %arg1: i32) -> (i32, i32) {
    %c0_i32 = arith.constant 0 : i32
    %c0_i32_0 = arith.constant 0 : i32
    %c0_i32_1 = arith.constant 0 : i32
    return %c0_i32, %c0_i32_0 : i32, i32
  }
  func.func @transform_3(%arg0: i32, %arg1: i32) -> (i32, i32) {
    %c0_i32 = arith.constant 0 : i32
    %c0_i32_0 = arith.constant 0 : i32
    %c0_i32_1 = arith.constant 0 : i32
    return %c0_i32, %c0_i32_0 : i32, i32
  }
  func.func @transform_4(%arg0: i32, %arg1: i32) -> (i32, i32) {
    %c0_i32 = arith.constant 0 : i32
    %c0_i32_0 = arith.constant 0 : i32
    %c0_i32_1 = arith.constant 0 : i32
    return %c0_i32, %c0_i32_0 : i32, i32
  }
  func.func @transform_5(%arg0: i32, %arg1: i32) -> (i32, i32, i32) {
    %c0_i32 = arith.constant 0 : i32
    %c0_i32_0 = arith.constant 0 : i32
    return %arg0, %arg1, %c0_i32 : i32, i32, i32
  }
}

module attributes {stable_mosaic.version = 11 : i64} {
  func.func @_tnet_conv_pool_kernel(%arg0: i32, %arg1: i32, %arg2: memref<1x128x64xf32, #tpu.memory_space<vmem>>, %arg3: memref<64x64xf32, #tpu.memory_space<vmem>>, %arg4: memref<1x64xf32, #tpu.memory_space<vmem>>, %arg5: memref<64x128xf32, #tpu.memory_space<vmem>>, %arg6: memref<1x128xf32, #tpu.memory_space<vmem>>, %arg7: memref<128x1024xf32, #tpu.memory_space<vmem>>, %arg8: memref<1x1024xf32, #tpu.memory_space<vmem>>, %arg9: memref<1x1x1024xf32, #tpu.memory_space<vmem>>) attributes {dimension_semantics = [#tpu.dimension_semantics<parallel>, #tpu.dimension_semantics<arbitrary>], iteration_bounds = array<i64: 2, 1>, scalar_prefetch = 0 : i64, scratch_operands = 0 : i64, tpu.core_type = #tpu.core_type<tc>, window_params = [{transform_indices = @transform_0, window_bounds = array<i64: 1, 128, 64>}, {pipeline_mode = #tpu.pipeline_mode<synchronous>, transform_indices = @transform_1, window_bounds = array<i64: 64, 64>}, {pipeline_mode = #tpu.pipeline_mode<synchronous>, transform_indices = @transform_2, window_bounds = array<i64: 1, 64>}, {pipeline_mode = #tpu.pipeline_mode<synchronous>, transform_indices = @transform_3, window_bounds = array<i64: 64, 128>}, {pipeline_mode = #tpu.pipeline_mode<synchronous>, transform_indices = @transform_4, window_bounds = array<i64: 1, 128>}, {pipeline_mode = #tpu.pipeline_mode<synchronous>, transform_indices = @transform_5, window_bounds = array<i64: 128, 1024>}, {pipeline_mode = #tpu.pipeline_mode<synchronous>, transform_indices = @transform_6, window_bounds = array<i64: 1, 1024>}, {transform_indices = @transform_7, window_bounds = array<i64: 1, 1, 1024>}]} {
    %c0_i32 = arith.constant 0 : i32
    %0 = arith.cmpi eq, %arg1, %c0_i32 : i32
    %1 = arith.extui %0 : i1 to i32
    %c0_i32_0 = arith.constant 0 : i32
    %2 = arith.cmpi ne, %1, %c0_i32_0 : i32
    scf.if %2 {
      %cst_27 = arith.constant 0xFF800000 : f32
      %34 = vector.broadcast %cst_27 : f32 to vector<1x1x1024xf32>
      %c0_28 = arith.constant 0 : index
      %c0_29 = arith.constant 0 : index
      %c0_30 = arith.constant 0 : index
      %35 = vector.load %arg9[%c0_28, %c0_29, %c0_30] : memref<1x1x1024xf32, #tpu.memory_space<vmem>>, vector<1x1x1024xf32>
      tpu.vector_store %arg9[%c0_28, %c0_29, %c0_30], %34 {strides = array<i32>} : memref<1x1x1024xf32, #tpu.memory_space<vmem>>, vector<1x1x1024xf32>,
    } else {
    }
    %c0 = arith.constant 0 : index
    %c0_1 = arith.constant 0 : index
    %c0_2 = arith.constant 0 : index
    %3 = vector.load %arg2[%c0, %c0_1, %c0_2] : memref<1x128x64xf32, #tpu.memory_space<vmem>>, vector<1x128x64xf32>
    %4 = vector.shape_cast %3 : vector<1x128x64xf32> to vector<128x64xf32>
    %c0_3 = arith.constant 0 : index
    %c0_4 = arith.constant 0 : index
    %5 = vector.load %arg3[%c0_3, %c0_4] : memref<64x64xf32, #tpu.memory_space<vmem>>, vector<64x64xf32>
    %cst = arith.constant dense<0.000000e+00> : vector<128x64xf32>
    %6 = tpu.matmul %4, %5, %cst {dimension_numbers = #tpu.dot_dimension_numbers<[1], [0], [0], [1], [0, 0, 1, 1], [], []>} : vector<128x64xf32>, vector<64x64xf32>, vector<128x64xf32> -> vector<128x64xf32>
    %c0_5 = arith.constant 0 : index
    %c0_6 = arith.constant 0 : index
    %7 = vector.load %arg4[%c0_5, %c0_6] : memref<1x64xf32, #tpu.memory_space<vmem>>, vector<1x64xf32>
    %8 = vector.broadcast %7 : vector<1x64xf32> to vector<128x64xf32>
    %9 = arith.addf %6, %8 : vector<128x64xf32>
    %cst_7 = arith.constant 0.000000e+00 : f32
    %10 = vector.broadcast %cst_7 : f32 to vector<128x64xf32>
    %11 = arith.maximumf %9, %10 : vector<128x64xf32>
    %c0_8 = arith.constant 0 : index
    %c0_9 = arith.constant 0 : index
    %12 = vector.load %arg5[%c0_8, %c0_9] : memref<64x128xf32, #tpu.memory_space<vmem>>, vector<64x128xf32>
    %cst_10 = arith.constant dense<0.000000e+00> : vector<128x128xf32>
    %13 = tpu.matmul %11, %12, %cst_10 {dimension_numbers = #tpu.dot_dimension_numbers<[1], [0], [0], [1], [0, 0, 1, 1], [], []>} : vector<128x64xf32>, vector<64x128xf32>, vector<128x128xf32> -> vector<128x128xf32>
    %c0_11 = arith.constant 0 : index
    %c0_12 = arith.constant 0 : index
    %14 = vector.load %arg6[%c0_11, %c0_12] : memref<1x128xf32, #tpu.memory_space<vmem>>, vector<1x128xf32>
    %15 = vector.broadcast %14 : vector<1x128xf32> to vector<128x128xf32>
    %16 = arith.addf %13, %15 : vector<128x128xf32>
    %cst_13 = arith.constant 0.000000e+00 : f32
    %17 = vector.broadcast %cst_13 : f32 to vector<128x128xf32>
    %18 = arith.maximumf %16, %17 : vector<128x128xf32>
    %c0_14 = arith.constant 0 : index
    %c0_15 = arith.constant 0 : index
    %19 = vector.load %arg7[%c0_14, %c0_15] : memref<128x1024xf32, #tpu.memory_space<vmem>>, vector<128x1024xf32>
    %cst_16 = arith.constant dense<0.000000e+00> : vector<128x1024xf32>
    %20 = tpu.matmul %18, %19, %cst_16 {dimension_numbers = #tpu.dot_dimension_numbers<[1], [0], [0], [1], [0, 0, 1, 1], [], []>} : vector<128x128xf32>, vector<128x1024xf32>, vector<128x1024xf32> -> vector<128x1024xf32>
    %c0_17 = arith.constant 0 : index
    %c0_18 = arith.constant 0 : index
    %21 = vector.load %arg8[%c0_17, %c0_18] : memref<1x1024xf32, #tpu.memory_space<vmem>>, vector<1x1024xf32>
    %22 = vector.broadcast %21 : vector<1x1024xf32> to vector<128x1024xf32>
    %23 = arith.addf %20, %22 : vector<128x1024xf32>
    %cst_19 = arith.constant 0.000000e+00 : f32
    %24 = vector.broadcast %cst_19 : f32 to vector<128x1024xf32>
    %25 = arith.maximumf %23, %24 : vector<128x1024xf32>
    %c0_20 = arith.constant 0 : index
    %c0_21 = arith.constant 0 : index
    %c0_22 = arith.constant 0 : index
    %26 = vector.load %arg9[%c0_20, %c0_21, %c0_22] : memref<1x1x1024xf32, #tpu.memory_space<vmem>>, vector<1x1x1024xf32>
    %27 = vector.shape_cast %26 : vector<1x1x1024xf32> to vector<1x1024xf32>
    %cst_23 = arith.constant dense<0xFF800000> : vector<1024xf32>
    %28 = vector.multi_reduction <maximumf>, %25, %cst_23 [0] : vector<128x1024xf32> to vector<1024xf32>
    %29 = vector.shape_cast %28 : vector<1024xf32> to vector<1x1024xf32>
    %30 = arith.maximumf %27, %29 : vector<1x1024xf32>
    %c0_24 = arith.constant 0 : index
    %c0_25 = arith.constant 0 : index
    %c0_26 = arith.constant 0 : index
    %31 = vector.load %arg9[%c0_24, %c0_25, %c0_26] : memref<1x1x1024xf32, #tpu.memory_space<vmem>>, vector<1x1x1024xf32>
    %32 = vector.shape_cast %31 : vector<1x1x1024xf32> to vector<1x1024xf32>
    %33 = vector.shape_cast %30 : vector<1x1024xf32> to vector<1x1x1024xf32>
    tpu.vector_store %arg9[%c0_24, %c0_25, %c0_26], %33 {strides = array<i32>} : memref<1x1x1024xf32, #tpu.memory_space<vmem>>, vector<1x1x1024xf32>,
    return
  }
  func.func @transform_0(%arg0: i32, %arg1: i32) -> (i32, i32, i32) {
    %c0_i32 = arith.constant 0 : i32
    %c0_i32_0 = arith.constant 0 : i32
    return %arg0, %arg1, %c0_i32 : i32, i32, i32
  }
  func.func @transform_1(%arg0: i32, %arg1: i32) -> (i32, i32) {
    %c0_i32 = arith.constant 0 : i32
    %c0_i32_0 = arith.constant 0 : i32
    %c0_i32_1 = arith.constant 0 : i32
    return %c0_i32, %c0_i32_0 : i32, i32
  }
  func.func @transform_2(%arg0: i32, %arg1: i32) -> (i32, i32) {
    %c0_i32 = arith.constant 0 : i32
    %c0_i32_0 = arith.constant 0 : i32
    %c0_i32_1 = arith.constant 0 : i32
    return %c0_i32, %c0_i32_0 : i32, i32
  }
  func.func @transform_3(%arg0: i32, %arg1: i32) -> (i32, i32) {
    %c0_i32 = arith.constant 0 : i32
    %c0_i32_0 = arith.constant 0 : i32
    %c0_i32_1 = arith.constant 0 : i32
    return %c0_i32, %c0_i32_0 : i32, i32
  }
  func.func @transform_4(%arg0: i32, %arg1: i32) -> (i32, i32) {
    %c0_i32 = arith.constant 0 : i32
    %c0_i32_0 = arith.constant 0 : i32
    %c0_i32_1 = arith.constant 0 : i32
    return %c0_i32, %c0_i32_0 : i32, i32
  }
  func.func @transform_5(%arg0: i32, %arg1: i32) -> (i32, i32) {
    %c0_i32 = arith.constant 0 : i32
    %c0_i32_0 = arith.constant 0 : i32
    %c0_i32_1 = arith.constant 0 : i32
    return %c0_i32, %c0_i32_0 : i32, i32
  }
  func.func @transform_6(%arg0: i32, %arg1: i32) -> (i32, i32) {
    %c0_i32 = arith.constant 0 : i32
    %c0_i32_0 = arith.constant 0 : i32
    %c0_i32_1 = arith.constant 0 : i32
    return %c0_i32, %c0_i32_0 : i32, i32
  }
  func.func @transform_7(%arg0: i32, %arg1: i32) -> (i32, i32, i32) {
    %c0_i32 = arith.constant 0 : i32
    %c0_i32_0 = arith.constant 0 : i32
    %c0_i32_1 = arith.constant 0 : i32
    return %arg0, %c0_i32, %c0_i32_0 : i32, i32, i32
  }
}

module attributes {stable_mosaic.version = 11 : i64} {
  func.func @_conv345_pool_kernel(%arg0: i32, %arg1: i32, %arg2: memref<1x128x64xf32, #tpu.memory_space<vmem>>, %arg3: memref<1x64x64xf32, #tpu.memory_space<vmem>>, %arg4: memref<1x64xf32, #tpu.memory_space<vmem>>, %arg5: memref<64x128xf32, #tpu.memory_space<vmem>>, %arg6: memref<1x128xf32, #tpu.memory_space<vmem>>, %arg7: memref<128x1024xf32, #tpu.memory_space<vmem>>, %arg8: memref<1x1024xf32, #tpu.memory_space<vmem>>, %arg9: memref<1x1x1024xf32, #tpu.memory_space<vmem>>, %arg10: memref<1x1x1024xi32, #tpu.memory_space<vmem>>) attributes {dimension_semantics = [#tpu.dimension_semantics<parallel>, #tpu.dimension_semantics<arbitrary>], iteration_bounds = array<i64: 2, 1>, scalar_prefetch = 0 : i64, scratch_operands = 0 : i64, tpu.core_type = #tpu.core_type<tc>, window_params = [{transform_indices = @transform_0, window_bounds = array<i64: 1, 128, 64>}, {transform_indices = @transform_1, window_bounds = array<i64: 1, 64, 64>}, {pipeline_mode = #tpu.pipeline_mode<synchronous>, transform_indices = @transform_2, window_bounds = array<i64: 1, 64>}, {pipeline_mode = #tpu.pipeline_mode<synchronous>, transform_indices = @transform_3, window_bounds = array<i64: 64, 128>}, {pipeline_mode = #tpu.pipeline_mode<synchronous>, transform_indices = @transform_4, window_bounds = array<i64: 1, 128>}, {pipeline_mode = #tpu.pipeline_mode<synchronous>, transform_indices = @transform_5, window_bounds = array<i64: 128, 1024>}, {pipeline_mode = #tpu.pipeline_mode<synchronous>, transform_indices = @transform_6, window_bounds = array<i64: 1, 1024>}, {transform_indices = @transform_7, window_bounds = array<i64: 1, 1, 1024>}, {transform_indices = @transform_8, window_bounds = array<i64: 1, 1, 1024>}]} {
    %c0_i32 = arith.constant 0 : i32
    %0 = arith.cmpi eq, %arg1, %c0_i32 : i32
    %1 = arith.extui %0 : i1 to i32
    %c0_i32_0 = arith.constant 0 : i32
    %2 = arith.cmpi ne, %1, %c0_i32_0 : i32
    scf.if %2 {
      %cst_35 = arith.constant 0xFF800000 : f32
      %52 = vector.broadcast %cst_35 : f32 to vector<1x1x1024xf32>
      %c0_36 = arith.constant 0 : index
      %c0_37 = arith.constant 0 : index
      %c0_38 = arith.constant 0 : index
      %53 = vector.load %arg9[%c0_36, %c0_37, %c0_38] : memref<1x1x1024xf32, #tpu.memory_space<vmem>>, vector<1x1x1024xf32>
      tpu.vector_store %arg9[%c0_36, %c0_37, %c0_38], %52 {strides = array<i32>} : memref<1x1x1024xf32, #tpu.memory_space<vmem>>, vector<1x1x1024xf32>,
      %c0_i32_39 = arith.constant 0 : i32
      %54 = vector.broadcast %c0_i32_39 : i32 to vector<1x1x1024xi32>
      %c0_40 = arith.constant 0 : index
      %c0_41 = arith.constant 0 : index
      %c0_42 = arith.constant 0 : index
      %55 = vector.load %arg10[%c0_40, %c0_41, %c0_42] : memref<1x1x1024xi32, #tpu.memory_space<vmem>>, vector<1x1x1024xi32>
      tpu.vector_store %arg10[%c0_40, %c0_41, %c0_42], %54 {strides = array<i32>} : memref<1x1x1024xi32, #tpu.memory_space<vmem>>, vector<1x1x1024xi32>,
    } else {
    }
    %c0 = arith.constant 0 : index
    %c0_1 = arith.constant 0 : index
    %c0_2 = arith.constant 0 : index
    %3 = vector.load %arg2[%c0, %c0_1, %c0_2] : memref<1x128x64xf32, #tpu.memory_space<vmem>>, vector<1x128x64xf32>
    %4 = vector.shape_cast %3 : vector<1x128x64xf32> to vector<128x64xf32>
    %c0_3 = arith.constant 0 : index
    %c0_4 = arith.constant 0 : index
    %c0_5 = arith.constant 0 : index
    %5 = vector.load %arg3[%c0_3, %c0_4, %c0_5] : memref<1x64x64xf32, #tpu.memory_space<vmem>>, vector<1x64x64xf32>
    %6 = vector.shape_cast %5 : vector<1x64x64xf32> to vector<64x64xf32>
    %cst = arith.constant dense<0.000000e+00> : vector<128x64xf32>
    %7 = tpu.matmul %4, %6, %cst {dimension_numbers = #tpu.dot_dimension_numbers<[1], [0], [0], [1], [0, 0, 1, 1], [], []>} : vector<128x64xf32>, vector<64x64xf32>, vector<128x64xf32> -> vector<128x64xf32>
    %c0_6 = arith.constant 0 : index
    %c0_7 = arith.constant 0 : index
    %8 = vector.load %arg4[%c0_6, %c0_7] : memref<1x64xf32, #tpu.memory_space<vmem>>, vector<1x64xf32>
    %9 = vector.broadcast %8 : vector<1x64xf32> to vector<128x64xf32>
    %10 = arith.addf %7, %9 : vector<128x64xf32>
    %cst_8 = arith.constant 0.000000e+00 : f32
    %11 = vector.broadcast %cst_8 : f32 to vector<128x64xf32>
    %12 = arith.maximumf %10, %11 : vector<128x64xf32>
    %c0_9 = arith.constant 0 : index
    %c0_10 = arith.constant 0 : index
    %13 = vector.load %arg5[%c0_9, %c0_10] : memref<64x128xf32, #tpu.memory_space<vmem>>, vector<64x128xf32>
    %cst_11 = arith.constant dense<0.000000e+00> : vector<128x128xf32>
    %14 = tpu.matmul %12, %13, %cst_11 {dimension_numbers = #tpu.dot_dimension_numbers<[1], [0], [0], [1], [0, 0, 1, 1], [], []>} : vector<128x64xf32>, vector<64x128xf32>, vector<128x128xf32> -> vector<128x128xf32>
    %c0_12 = arith.constant 0 : index
    %c0_13 = arith.constant 0 : index
    %15 = vector.load %arg6[%c0_12, %c0_13] : memref<1x128xf32, #tpu.memory_space<vmem>>, vector<1x128xf32>
    %16 = vector.broadcast %15 : vector<1x128xf32> to vector<128x128xf32>
    %17 = arith.addf %14, %16 : vector<128x128xf32>
    %cst_14 = arith.constant 0.000000e+00 : f32
    %18 = vector.broadcast %cst_14 : f32 to vector<128x128xf32>
    %19 = arith.maximumf %17, %18 : vector<128x128xf32>
    %c0_15 = arith.constant 0 : index
    %c0_16 = arith.constant 0 : index
    %20 = vector.load %arg7[%c0_15, %c0_16] : memref<128x1024xf32, #tpu.memory_space<vmem>>, vector<128x1024xf32>
    %cst_17 = arith.constant dense<0.000000e+00> : vector<128x1024xf32>
    %21 = tpu.matmul %19, %20, %cst_17 {dimension_numbers = #tpu.dot_dimension_numbers<[1], [0], [0], [1], [0, 0, 1, 1], [], []>} : vector<128x128xf32>, vector<128x1024xf32>, vector<128x1024xf32> -> vector<128x1024xf32>
    %c0_18 = arith.constant 0 : index
    %c0_19 = arith.constant 0 : index
    %22 = vector.load %arg8[%c0_18, %c0_19] : memref<1x1024xf32, #tpu.memory_space<vmem>>, vector<1x1024xf32>
    %23 = vector.broadcast %22 : vector<1x1024xf32> to vector<128x1024xf32>
    %24 = arith.addf %21, %23 : vector<128x1024xf32>
    %cst_20 = arith.constant 0.000000e+00 : f32
    %25 = vector.broadcast %cst_20 : f32 to vector<128x1024xf32>
    %26 = arith.maximumf %24, %25 : vector<128x1024xf32>
    %cst_21 = arith.constant dense<0xFF800000> : vector<1024xf32>
    %27 = vector.multi_reduction <maximumf>, %26, %cst_21 [0] : vector<128x1024xf32> to vector<1024xf32>
    %28 = vector.shape_cast %27 : vector<1024xf32> to vector<1x1024xf32>
    %29 = tpu.iota {dimensions = array<i32: 0>} : vector<128x1024xi32>
    %c128_i32 = arith.constant 128 : i32
    %30 = arith.muli %arg1, %c128_i32 : i32
    %31 = vector.broadcast %30 : i32 to vector<128x1024xi32>
    %32 = arith.addi %29, %31 : vector<128x1024xi32>
    %33 = vector.broadcast %28 : vector<1x1024xf32> to vector<128x1024xf32>
    %34 = arith.cmpf oeq, %26, %33 : vector<128x1024xf32>
    %c2147483647_i32 = arith.constant 2147483647 : i32
    %35 = vector.broadcast %c2147483647_i32 : i32 to vector<128x1024xi32>
    %36 = arith.select %34, %32, %35 : vector<128x1024xi1>, vector<128x1024xi32>
    %cst_22 = arith.constant dense<2147483647> : vector<1024xi32>
    %37 = vector.multi_reduction <minsi>, %36, %cst_22 [0] : vector<128x1024xi32> to vector<1024xi32>
    %38 = vector.shape_cast %37 : vector<1024xi32> to vector<1x1024xi32>
    %c0_23 = arith.constant 0 : index
    %c0_24 = arith.constant 0 : index
    %c0_25 = arith.constant 0 : index
    %39 = vector.load %arg9[%c0_23, %c0_24, %c0_25] : memref<1x1x1024xf32, #tpu.memory_space<vmem>>, vector<1x1x1024xf32>
    %40 = vector.shape_cast %39 : vector<1x1x1024xf32> to vector<1x1024xf32>
    %41 = arith.cmpf ogt, %28, %40 : vector<1x1024xf32>
    %c0_26 = arith.constant 0 : index
    %c0_27 = arith.constant 0 : index
    %c0_28 = arith.constant 0 : index
    %42 = vector.load %arg10[%c0_26, %c0_27, %c0_28] : memref<1x1x1024xi32, #tpu.memory_space<vmem>>, vector<1x1x1024xi32>
    %43 = vector.shape_cast %42 : vector<1x1x1024xi32> to vector<1x1024xi32>
    %44 = arith.select %41, %38, %43 : vector<1x1024xi1>, vector<1x1024xi32>
    %c0_29 = arith.constant 0 : index
    %c0_30 = arith.constant 0 : index
    %c0_31 = arith.constant 0 : index
    %45 = vector.load %arg10[%c0_29, %c0_30, %c0_31] : memref<1x1x1024xi32, #tpu.memory_space<vmem>>, vector<1x1x1024xi32>
    %46 = vector.shape_cast %45 : vector<1x1x1024xi32> to vector<1x1024xi32>
    %47 = vector.shape_cast %44 : vector<1x1024xi32> to vector<1x1x1024xi32>
    tpu.vector_store %arg10[%c0_29, %c0_30, %c0_31], %47 {strides = array<i32>} : memref<1x1x1024xi32, #tpu.memory_space<vmem>>, vector<1x1x1024xi32>,
    %48 = arith.select %41, %28, %40 : vector<1x1024xi1>, vector<1x1024xf32>
    %c0_32 = arith.constant 0 : index
    %c0_33 = arith.constant 0 : index
    %c0_34 = arith.constant 0 : index
    %49 = vector.load %arg9[%c0_32, %c0_33, %c0_34] : memref<1x1x1024xf32, #tpu.memory_space<vmem>>, vector<1x1x1024xf32>
    %50 = vector.shape_cast %49 : vector<1x1x1024xf32> to vector<1x1024xf32>
    %51 = vector.shape_cast %48 : vector<1x1024xf32> to vector<1x1x1024xf32>
    tpu.vector_store %arg9[%c0_32, %c0_33, %c0_34], %51 {strides = array<i32>} : memref<1x1x1024xf32, #tpu.memory_space<vmem>>, vector<1x1x1024xf32>,
    return
  }
  func.func @transform_0(%arg0: i32, %arg1: i32) -> (i32, i32, i32) {
    %c0_i32 = arith.constant 0 : i32
    %c0_i32_0 = arith.constant 0 : i32
    return %arg0, %arg1, %c0_i32 : i32, i32, i32
  }
  func.func @transform_1(%arg0: i32, %arg1: i32) -> (i32, i32, i32) {
    %c0_i32 = arith.constant 0 : i32
    %c0_i32_0 = arith.constant 0 : i32
    %c0_i32_1 = arith.constant 0 : i32
    return %arg0, %c0_i32, %c0_i32_0 : i32, i32, i32
  }
  func.func @transform_2(%arg0: i32, %arg1: i32) -> (i32, i32) {
    %c0_i32 = arith.constant 0 : i32
    %c0_i32_0 = arith.constant 0 : i32
    %c0_i32_1 = arith.constant 0 : i32
    return %c0_i32, %c0_i32_0 : i32, i32
  }
  func.func @transform_3(%arg0: i32, %arg1: i32) -> (i32, i32) {
    %c0_i32 = arith.constant 0 : i32
    %c0_i32_0 = arith.constant 0 : i32
    %c0_i32_1 = arith.constant 0 : i32
    return %c0_i32, %c0_i32_0 : i32, i32
  }
  func.func @transform_4(%arg0: i32, %arg1: i32) -> (i32, i32) {
    %c0_i32 = arith.constant 0 : i32
    %c0_i32_0 = arith.constant 0 : i32
    %c0_i32_1 = arith.constant 0 : i32
    return %c0_i32, %c0_i32_0 : i32, i32
  }
  func.func @transform_5(%arg0: i32, %arg1: i32) -> (i32, i32) {
    %c0_i32 = arith.constant 0 : i32
    %c0_i32_0 = arith.constant 0 : i32
    %c0_i32_1 = arith.constant 0 : i32
    return %c0_i32, %c0_i32_0 : i32, i32
  }
  func.func @transform_6(%arg0: i32, %arg1: i32) -> (i32, i32) {
    %c0_i32 = arith.constant 0 : i32
    %c0_i32_0 = arith.constant 0 : i32
    %c0_i32_1 = arith.constant 0 : i32
    return %c0_i32, %c0_i32_0 : i32, i32
  }
  func.func @transform_7(%arg0: i32, %arg1: i32) -> (i32, i32, i32) {
    %c0_i32 = arith.constant 0 : i32
    %c0_i32_0 = arith.constant 0 : i32
    %c0_i32_1 = arith.constant 0 : i32
    return %arg0, %c0_i32, %c0_i32_0 : i32, i32, i32
  }
  func.func @transform_8(%arg0: i32, %arg1: i32) -> (i32, i32, i32) {
    %c0_i32 = arith.constant 0 : i32
    %c0_i32_0 = arith.constant 0 : i32
    %c0_i32_1 = arith.constant 0 : i32
    return %arg0, %c0_i32, %c0_i32_0 : i32, i32, i32
  }
}

module attributes {stable_mosaic.version = 11 : i64} {
  func.func @_seg_head_kernel(%arg0: i32, %arg1: i32, %arg2: memref<1x128x64xf32, #tpu.memory_space<vmem>>, %arg3: memref<1x64x512xf32, #tpu.memory_space<vmem>>, %arg4: memref<1x1x512xf32, #tpu.memory_space<vmem>>, %arg5: memref<512x256xf32, #tpu.memory_space<vmem>>, %arg6: memref<1x256xf32, #tpu.memory_space<vmem>>, %arg7: memref<256x128xf32, #tpu.memory_space<vmem>>, %arg8: memref<1x128xf32, #tpu.memory_space<vmem>>, %arg9: memref<128x2xf32, #tpu.memory_space<vmem>>, %arg10: memref<1x2xf32, #tpu.memory_space<vmem>>, %arg11: memref<1x128x2xf32, #tpu.memory_space<vmem>>) attributes {dimension_semantics = [#tpu.dimension_semantics<parallel>, #tpu.dimension_semantics<parallel>], iteration_bounds = array<i64: 2, 1>, scalar_prefetch = 0 : i64, scratch_operands = 0 : i64, tpu.core_type = #tpu.core_type<tc>, window_params = [{transform_indices = @transform_0, window_bounds = array<i64: 1, 128, 64>}, {transform_indices = @transform_1, window_bounds = array<i64: 1, 64, 512>}, {transform_indices = @transform_2, window_bounds = array<i64: 1, 1, 512>}, {pipeline_mode = #tpu.pipeline_mode<synchronous>, transform_indices = @transform_3, window_bounds = array<i64: 512, 256>}, {pipeline_mode = #tpu.pipeline_mode<synchronous>, transform_indices = @transform_4, window_bounds = array<i64: 1, 256>}, {pipeline_mode = #tpu.pipeline_mode<synchronous>, transform_indices = @transform_5, window_bounds = array<i64: 256, 128>}, {pipeline_mode = #tpu.pipeline_mode<synchronous>, transform_indices = @transform_6, window_bounds = array<i64: 1, 128>}, {pipeline_mode = #tpu.pipeline_mode<synchronous>, transform_indices = @transform_7, window_bounds = array<i64: 128, 2>}, {pipeline_mode = #tpu.pipeline_mode<synchronous>, transform_indices = @transform_8, window_bounds = array<i64: 1, 2>}, {transform_indices = @transform_9, window_bounds = array<i64: 1, 128, 2>}]} {
    %c0 = arith.constant 0 : index
    %c0_0 = arith.constant 0 : index
    %c0_1 = arith.constant 0 : index
    %0 = vector.load %arg2[%c0, %c0_0, %c0_1] : memref<1x128x64xf32, #tpu.memory_space<vmem>>, vector<1x128x64xf32>
    %1 = vector.shape_cast %0 : vector<1x128x64xf32> to vector<128x64xf32>
    %c0_2 = arith.constant 0 : index
    %c0_3 = arith.constant 0 : index
    %c0_4 = arith.constant 0 : index
    %2 = vector.load %arg3[%c0_2, %c0_3, %c0_4] : memref<1x64x512xf32, #tpu.memory_space<vmem>>, vector<1x64x512xf32>
    %3 = vector.shape_cast %2 : vector<1x64x512xf32> to vector<64x512xf32>
    %cst = arith.constant dense<0.000000e+00> : vector<128x512xf32>
    %4 = tpu.matmul %1, %3, %cst {dimension_numbers = #tpu.dot_dimension_numbers<[1], [0], [0], [1], [0, 0, 1, 1], [], []>} : vector<128x64xf32>, vector<64x512xf32>, vector<128x512xf32> -> vector<128x512xf32>
    %c0_5 = arith.constant 0 : index
    %c0_6 = arith.constant 0 : index
    %c0_7 = arith.constant 0 : index
    %5 = vector.load %arg4[%c0_5, %c0_6, %c0_7] : memref<1x1x512xf32, #tpu.memory_space<vmem>>, vector<1x1x512xf32>
    %6 = vector.shape_cast %5 : vector<1x1x512xf32> to vector<1x512xf32>
    %7 = vector.broadcast %6 : vector<1x512xf32> to vector<128x512xf32>
    %8 = arith.addf %4, %7 : vector<128x512xf32>
    %cst_8 = arith.constant 0.000000e+00 : f32
    %9 = vector.broadcast %cst_8 : f32 to vector<128x512xf32>
    %10 = arith.maximumf %8, %9 : vector<128x512xf32>
    %c0_9 = arith.constant 0 : index
    %c0_10 = arith.constant 0 : index
    %11 = vector.load %arg5[%c0_9, %c0_10] : memref<512x256xf32, #tpu.memory_space<vmem>>, vector<512x256xf32>
    %cst_11 = arith.constant dense<0.000000e+00> : vector<128x256xf32>
    %12 = tpu.matmul %10, %11, %cst_11 {dimension_numbers = #tpu.dot_dimension_numbers<[1], [0], [0], [1], [0, 0, 1, 1], [], []>} : vector<128x512xf32>, vector<512x256xf32>, vector<128x256xf32> -> vector<128x256xf32>
    %c0_12 = arith.constant 0 : index
    %c0_13 = arith.constant 0 : index
    %13 = vector.load %arg6[%c0_12, %c0_13] : memref<1x256xf32, #tpu.memory_space<vmem>>, vector<1x256xf32>
    %14 = vector.broadcast %13 : vector<1x256xf32> to vector<128x256xf32>
    %15 = arith.addf %12, %14 : vector<128x256xf32>
    %cst_14 = arith.constant 0.000000e+00 : f32
    %16 = vector.broadcast %cst_14 : f32 to vector<128x256xf32>
    %17 = arith.maximumf %15, %16 : vector<128x256xf32>
    %c0_15 = arith.constant 0 : index
    %c0_16 = arith.constant 0 : index
    %18 = vector.load %arg7[%c0_15, %c0_16] : memref<256x128xf32, #tpu.memory_space<vmem>>, vector<256x128xf32>
    %cst_17 = arith.constant dense<0.000000e+00> : vector<128x128xf32>
    %19 = tpu.matmul %17, %18, %cst_17 {dimension_numbers = #tpu.dot_dimension_numbers<[1], [0], [0], [1], [0, 0, 1, 1], [], []>} : vector<128x256xf32>, vector<256x128xf32>, vector<128x128xf32> -> vector<128x128xf32>
    %c0_18 = arith.constant 0 : index
    %c0_19 = arith.constant 0 : index
    %20 = vector.load %arg8[%c0_18, %c0_19] : memref<1x128xf32, #tpu.memory_space<vmem>>, vector<1x128xf32>
    %21 = vector.broadcast %20 : vector<1x128xf32> to vector<128x128xf32>
    %22 = arith.addf %19, %21 : vector<128x128xf32>
    %cst_20 = arith.constant 0.000000e+00 : f32
    %23 = vector.broadcast %cst_20 : f32 to vector<128x128xf32>
    %24 = arith.maximumf %22, %23 : vector<128x128xf32>
    %c0_21 = arith.constant 0 : index
    %c0_22 = arith.constant 0 : index
    %25 = vector.load %arg9[%c0_21, %c0_22] : memref<128x2xf32, #tpu.memory_space<vmem>>, vector<128x2xf32>
    %cst_23 = arith.constant dense<0.000000e+00> : vector<128x2xf32>
    %26 = tpu.matmul %24, %25, %cst_23 {dimension_numbers = #tpu.dot_dimension_numbers<[1], [0], [0], [1], [0, 0, 1, 1], [], []>} : vector<128x128xf32>, vector<128x2xf32>, vector<128x2xf32> -> vector<128x2xf32>
    %c0_24 = arith.constant 0 : index
    %c0_25 = arith.constant 0 : index
    %27 = vector.load %arg10[%c0_24, %c0_25] : memref<1x2xf32, #tpu.memory_space<vmem>>, vector<1x2xf32>
    %28 = vector.broadcast %27 : vector<1x2xf32> to vector<128x2xf32>
    %29 = arith.addf %26, %28 : vector<128x2xf32>
    %c0_26 = arith.constant 0 : index
    %c0_27 = arith.constant 0 : index
    %c0_28 = arith.constant 0 : index
    %30 = vector.load %arg11[%c0_26, %c0_27, %c0_28] : memref<1x128x2xf32, #tpu.memory_space<vmem>>, vector<1x128x2xf32>
    %31 = vector.shape_cast %30 : vector<1x128x2xf32> to vector<128x2xf32>
    %32 = vector.shape_cast %29 : vector<128x2xf32> to vector<1x128x2xf32>
    tpu.vector_store %arg11[%c0_26, %c0_27, %c0_28], %32 {strides = array<i32>} : memref<1x128x2xf32, #tpu.memory_space<vmem>>, vector<1x128x2xf32>,
    return
  }
  func.func @transform_0(%arg0: i32, %arg1: i32) -> (i32, i32, i32) {
    %c0_i32 = arith.constant 0 : i32
    %c0_i32_0 = arith.constant 0 : i32
    return %arg0, %arg1, %c0_i32 : i32, i32, i32
  }
  func.func @transform_1(%arg0: i32, %arg1: i32) -> (i32, i32, i32) {
    %c0_i32 = arith.constant 0 : i32
    %c0_i32_0 = arith.constant 0 : i32
    %c0_i32_1 = arith.constant 0 : i32
    return %arg0, %c0_i32, %c0_i32_0 : i32, i32, i32
  }
  func.func @transform_2(%arg0: i32, %arg1: i32) -> (i32, i32, i32) {
    %c0_i32 = arith.constant 0 : i32
    %c0_i32_0 = arith.constant 0 : i32
    %c0_i32_1 = arith.constant 0 : i32
    return %arg0, %c0_i32, %c0_i32_0 : i32, i32, i32
  }
  func.func @transform_3(%arg0: i32, %arg1: i32) -> (i32, i32) {
    %c0_i32 = arith.constant 0 : i32
    %c0_i32_0 = arith.constant 0 : i32
    %c0_i32_1 = arith.constant 0 : i32
    return %c0_i32, %c0_i32_0 : i32, i32
  }
  func.func @transform_4(%arg0: i32, %arg1: i32) -> (i32, i32) {
    %c0_i32 = arith.constant 0 : i32
    %c0_i32_0 = arith.constant 0 : i32
    %c0_i32_1 = arith.constant 0 : i32
    return %c0_i32, %c0_i32_0 : i32, i32
  }
  func.func @transform_5(%arg0: i32, %arg1: i32) -> (i32, i32) {
    %c0_i32 = arith.constant 0 : i32
    %c0_i32_0 = arith.constant 0 : i32
    %c0_i32_1 = arith.constant 0 : i32
    return %c0_i32, %c0_i32_0 : i32, i32
  }
  func.func @transform_6(%arg0: i32, %arg1: i32) -> (i32, i32) {
    %c0_i32 = arith.constant 0 : i32
    %c0_i32_0 = arith.constant 0 : i32
    %c0_i32_1 = arith.constant 0 : i32
    return %c0_i32, %c0_i32_0 : i32, i32
  }
  func.func @transform_7(%arg0: i32, %arg1: i32) -> (i32, i32) {
    %c0_i32 = arith.constant 0 : i32
    %c0_i32_0 = arith.constant 0 : i32
    %c0_i32_1 = arith.constant 0 : i32
    return %c0_i32, %c0_i32_0 : i32, i32
  }
  func.func @transform_8(%arg0: i32, %arg1: i32) -> (i32, i32) {
    %c0_i32 = arith.constant 0 : i32
    %c0_i32_0 = arith.constant 0 : i32
    %c0_i32_1 = arith.constant 0 : i32
    return %c0_i32, %c0_i32_0 : i32, i32
  }
  func.func @transform_9(%arg0: i32, %arg1: i32) -> (i32, i32, i32) {
    %c0_i32 = arith.constant 0 : i32
    %c0_i32_0 = arith.constant 0 : i32
    return %arg0, %arg1, %c0_i32 : i32, i32, i32
  }
}

</mosaic_0001>

<bundles_post_ra>
// kernel: seg_head_forward.6
= control target key start
LH: loop header
LB: loop body
LE: loop exit
PB: predicated region body
PF: predicated region fallthrough
CT: control target
= control target key end

     0   :  { %10 = vsyncpa [#allocation3], 0  ;;  %s1266_s0 = inlined_call_operand.vmem [shape: f32[2,128,6], index: 0, kind: input, shape index: {}]   ;;  %s1267_s1 = inlined_call_operand.vmem [shape: f32[2,6,64], index: 1, kind: input, shape index: {}]   ;;  %s1268_s2 = inlined_call_operand.hbm [shape: f32[1,64], index: 2, kind: input, shape index: {}]   ;;  %s1269_s3 = inlined_call_operand.hbm [shape: f32[64,64], index: 3, kind: input, shape index: {}]   ;;  %s1270_s4 = inlined_call_operand.hbm [shape: f32[1,64], index: 4, kind: input, shape index: {}]   ;;  %s1271_s5 = inlined_call_operand.vmem [shape: f32[2,128,64], index: 5, kind: output, shape index: {}]  }
   0x1   :  { %11 = vsyncpa [#allocation5], 0  ;;  %s1056_s18 = smov 0   ;;  %s1058_s19 = smov 0  }
   0x2   :  { %s1060_s20 = smov 0  }
   0x3 LB: > { %s202_s23 = sshll.u32 %s1269_s3, 4  ;;  %s770_s24 = sadd.s32 4294967295, %s1019_s20   ;;  %s1019_s20 = sphi %s1060_s20, %s17_s20   ;;  %s1015_s19 = sphi %s1058_s19, %s1276_s19   ;;  %s1011_s18 = sphi %s1056_s18, %s1275_s18   ;;  %s203_s23 = int_to_ptr.hbm [resolvable:$true] %s202_s23 }
   0x4   : > { %p772_p0 = scmp.ge.s32.totalorder %s1019_s20, 1  ;;  %p179_p1 = scmp.lt.s32.totalorder %s1019_s20, 3 }
   0x5   : > { %p1077_p2 = scmp.eq.s32.totalorder %s770_s24, 0  ;;  %s1021_s27 = smov [#allocation4]  }
   0x6   : > { %p1081_p3 = pnand %p772_p0, %p179_p1  ;;  %s204_s28 = sshll.u32 %s1021_s27, 4  ;;  %s205_s28 = int_to_ptr.vmem [resolvable:$true] %s204_s28 }
   0x7   : > { %s29_s30 = sadd.s32 1, %s1015_s19  ;;  %s1022_s6 = smov 128  }
   0x8   : > { %p852_p4 = pneg %p1081_p3  ;;  %p31_p6 = scmp.ge.s32.totalorder %s29_s30, 2 }
   0x9   : > { %s1023_s7 = smov 8   ;;  %s191_s10 = sshll.u32 %s1268_s2, 4  ;;  %s192_s10 = int_to_ptr.hbm [resolvable:$true] %s191_s10 }
   0xa   : > { %p1089_p5 = pnand %p1077_p2, %p852_p4  ;;  %s1278_s30 = smov (%p31_p6, %s29_s30), 0 }
   0xb   : > { %s1024_s11 = smov [#allocation2]   ;;  %s217_s15 = sshll.u32 %s1270_s4, 4  ;;  %s218_s15 = int_to_ptr.hbm [resolvable:$true] %s217_s15 }
   0xc   : > { %858 = dma.hbm_to_vmem [thread:$0]  (!%p1089_p5), %s203_s23, 1024, %s205_s28, [#allocation5], %s1022_s6, %s1022_s6, %s1023_s7  }
   0xd   : > { %s193_s12 = sshll.u32 %s1024_s11, 4  ;;  %s1025_s16 = smov [#allocation6]   ;;  %s194_s12 = int_to_ptr.vmem [resolvable:$true] %s193_s12 }
   0xe   : > { %855 = dma.hbm_to_vmem [thread:$0]  (!%p1089_p5), %s192_s10, 16, %s194_s12, [#allocation3]  }
   0xf   : > { %s219_s17 = sshll.u32 %s1025_s16, 4  ;;  %252 = sbr.rel (%p1081_p3) target bundleno = 409 (0x199), region = 40  ;;  %s220_s17 = int_to_ptr.vmem [resolvable:$true] %s219_s17 }
  0x10   : > { %861 = dma.hbm_to_vmem [thread:$0]  (!%p1089_p5), %s218_s15, 16, %s220_s17, [#allocation5]  }
  0x14   : > { %1002 = dma.done.wait (%p1077_p2), [#allocation3], 16  }
  0x15   : > { %1004 = vsyncadd (%p1077_p2), [#allocation3], 4294967280 }
  0x16   : > { %1006 = dma.done.wait (%p1077_p2), [#allocation5], 1040  }
  0x17   : > { %1008 = vsyncadd (%p1077_p2), [#allocation5], 4294966256  ;;  %p304_p7 = scmp.lt.s32.totalorder %s1011_s18, 1  ;;  %vm397_vm0 = vcmask 1045504   ;;  %vm348_vm1 = vcmask 48128   ;;  %v489_v10 = vld [vmem:[#allocation4 + $0x38] sm:$0xff] }
  0x18   : > { %v488_v11 = vld [vmem:[#allocation4 + $0x30] sm:$0xff]  ;;  %551 = vmatpush.msra.mxu1 %v489_v10  ;;  %824 = vmatpush.msra.mxu2 %v489_v10  ;;  %v487_v12 = vld [vmem:[#allocation4 + $0x28] sm:$0xff]  ;;  %v486_v14 = vld [vmem:[#allocation4 + $0x20] sm:$0xff]  ;;  %vm494_vm2 = vcmask 523264  }
  0x19   : > { %s1280_s18 = smov (!%p304_p7, %s1011_s18), 1  ;;  %v485_v16 = vld [vmem:[#allocation4 + $0x18] sm:$0xff]  ;;  %v484_v22 = vld [vmem:[#allocation4 + $0x10] sm:$0xff]  ;;  %v483_v23 = vld [vmem:[#allocation4 + $0x8] sm:$0xff] }
  0x1a   : > { %s821_s21 = sshll.u32 %s1280_s18, 7  ;;  %s783_s22 = sshll.u32 %s1280_s18, 3  ;;  %552 = vmatpush.msra.mxu1 %v488_v11  ;;  %826 = vmatpush.msra.mxu2 %v488_v11  ;;  %v482_v24 = vld [vmem:[#allocation4] sm:$0xff]  ;;  %v1166_v25 = vld [vmem:[#allocation2] ss:$0 sm:$0xff] }
  0x1b   : > { %s1129_s26 = scalar_lea.vmem %s1266_s0, %s821_s21  ;;  %s316_s25 = scalar_lea.vmem %s1267_s1, %s783_s22 }
  0x1c   : > { %v343_v0 = vld [vmem:[%s316_s25] sm:$0x3f]  ;;  %v328_v2 = vld [vmem:[%s1129_s26 + $0x8] sm:$0xff]  ;;  %v329_v3 = vld [vmem:[%s1129_s26 + $0x10] sm:$0xff]  ;;  %553 = vmatpush.msra.mxu1 %v487_v12  ;;  %828 = vmatpush.msra.mxu2 %v487_v12  ;;  %s1208_s7 = scalar_lea.vmem %s1271_s5, %s821_s21 }
  0x1d   : > { %v327_v1 = vld [vmem:[%s1129_s26] sm:$0xff]  ;;  %786 = vmatpush.msk.msra.mxu0 %vm397_vm0, %v343_v0  ;;  %823 = vmatpush.msk.msra.mxu3 %vm397_vm0, %v343_v0  ;;  %v330_v4 = vld [vmem:[%s1129_s26 + $0x18] sm:$0xff]  ;;  %v336_v5 = vld [vmem:[%s1129_s26 + $0x48] sm:$0xff] }
  0x1e   : > { %787 = vmatmul.msk.f32.vlgmr.msra.gmra.mxu0 %vm348_vm1, %v327_v1  ;;  %796 = vmatmul.msk.f32.vlgmr.msra.gmra.mxu3 %vm348_vm1, %v336_v5  ;;  %v331_v6 = vld [vmem:[%s1129_s26 + $0x20] sm:$0xff]  ;;  %v337_v7 = vld [vmem:[%s1129_s26 + $0x50] sm:$0xff]  ;;  %v332_v8 = vld [vmem:[%s1129_s26 + $0x28] sm:$0xff] }
  0x1f   : > { %v338_v9 = vld [vmem:[%s1129_s26 + $0x58] sm:$0xff]  ;;  %825 = vmatpush.msrb.mxu3 %v489_v10  ;;  %v333_v13 = vld [vmem:[%s1129_s26 + $0x30] sm:$0xff]  ;;  %v339_v15 = vld [vmem:[%s1129_s26 + $0x60] sm:$0xff]  ;;  %554 = vmatpush.msra.mxu1 %v486_v14 }
  0x20   : > { %830 = vmatpush.msra.mxu2 %v486_v14  ;;  %v334_v17 = vld [vmem:[%s1129_s26 + $0x38] sm:$0xff]  ;;  %v340_v18 = vld [vmem:[%s1129_s26 + $0x68] sm:$0xff]  ;;  %v335_v19 = vld [vmem:[%s1129_s26 + $0x40] sm:$0xff] }
  0x21   : > { %827 = vmatpush.msrb.mxu3 %v488_v11  ;;  %555 = vmatpush.msra.mxu1 %v485_v16  ;;  %v341_v20 = vld [vmem:[%s1129_s26 + $0x70] sm:$0xff]  ;;  %v342_v21 = vld [vmem:[%s1129_s26 + $0x78] sm:$0xff]  ;;  %v1200_v10 = vld [vmem:[#allocation6] ss:$0 sm:$0xff] }
  0x22   : > { %832 = vmatpush.msra.mxu2 %v485_v16 }
  0x23   : > { %829 = vmatpush.msrb.mxu3 %v487_v12  ;;  %556 = vmatpush.msra.mxu1 %v484_v22 }
  0x24   : > { %834 = vmatpush.msra.mxu2 %v484_v22 }
  0x25   : > { %831 = vmatpush.msrb.mxu3 %v486_v14  ;;  %557 = vmatpush.msra.mxu1 %v483_v23 }
  0x26   : > { %788 = vmatmul.msk.f32.gmra.mxu0 %vm348_vm1, %v328_v2  ;;  %797 = vmatmul.msk.f32.gmra.mxu3 %vm348_vm1, %v337_v7 }
  0x27   : > { %833 = vmatpush.msrb.mxu3 %v485_v16  ;;  %836 = vmatpush.msra.mxu2 %v483_v23 }
  0x28   : > { %558 = vmatpush.msra.mxu1 %v482_v24 }
  0x29   : > { %835 = vmatpush.msrb.mxu3 %v484_v22  ;;  %838 = vmatpush.msra.mxu2 %v482_v24 }
  0x2b   : > { %837 = vmatpush.msrb.mxu3 %v483_v23 }
  0x2d   : > { %839 = vmatpush.msrb.mxu3 %v482_v24 }
  0x2e   : > { %789 = vmatmul.msk.f32.gmra.mxu0 %vm348_vm1, %v329_v3  ;;  %798 = vmatmul.msk.f32.gmra.mxu3 %vm348_vm1, %v338_v9 }
  0x36   : > { %790 = vmatmul.msk.f32.gmra.mxu0 %vm348_vm1, %v330_v4  ;;  %799 = vmatmul.msk.f32.gmra.mxu3 %vm348_vm1, %v339_v15 }
  0x3e   : > { %791 = vmatmul.msk.f32.gmra.mxu0 %vm348_vm1, %v331_v6  ;;  %800 = vmatmul.msk.f32.gmra.mxu3 %vm348_vm1, %v340_v18 }
  0x46   : > { %792 = vmatmul.msk.f32.gmra.mxu0 %vm348_vm1, %v332_v8  ;;  %801 = vmatmul.msk.f32.gmra.mxu3 %vm348_vm1, %v341_v20 }
  0x4e   : > { %793 = vmatmul.msk.f32.gmra.mxu0 %vm348_vm1, %v333_v13  ;;  %802 = vmatmul.msk.f32.gmra.mxu3 %vm348_vm1, %v342_v21 }
  0x56   : > { %794 = vmatmul.msk.f32.gmra.mxu0 %vm348_vm1, %v334_v17 }
  0x5e   : > { %795 = vmatmul.msk.f32.gmra.mxu0 %vm348_vm1, %v335_v19 }
  0x9b   : > { %v418_v26 = vpop.f32.mrf.mxu0 }
  0x9c   : > { %v419_v27 = vadd.f32 %v1166_v25, %v418_v26 }
  0x9e   : > { %v466_v28 = vmax.f32 %v419_v27, 0.0 }
  0xa0   : > { %803 = vmatmul.msk.f32.vlgmr.msra.gmra.mxu1 %vm494_vm2, %v466_v28 }
  0xa1   : > { %v445_v39 = vpop.f32.mrf.mxu3 }
  0xa2   : > { %v446_v58 = vadd.f32 %v1166_v25, %v445_v39 }
  0xa3   : > { %v421_v29 = vpop.f32.mrf.mxu0 }
  0xa4   : > { %v422_v30 = vadd.f32 %v1166_v25, %v421_v29  ;;  %v475_v60 = vmax.f32 %v446_v58, 0.0 }
  0xa6   : > { %v467_v31 = vmax.f32 %v422_v30, 0.0 }
  0xa8   : > { %804 = vmatmul.msk.f32.gmra.mxu1 %vm494_vm2, %v467_v31 }
  0xa9   : > { %v448_v43 = vpop.f32.mrf.mxu3 }
  0xaa   : > { %v449_v61 = vadd.f32 %v1166_v25, %v448_v43 }
  0xab   : > { %v424_v32 = vpop.f32.mrf.mxu0 }
  0xac   : > { %v425_v33 = vadd.f32 %v1166_v25, %v424_v32  ;;  %v476_v0 = vmax.f32 %v449_v61, 0.0 }
  0xae   : > { %v468_v34 = vmax.f32 %v425_v33, 0.0 }
  0xb0   : > { %805 = vmatmul.msk.f32.gmra.mxu1 %vm494_vm2, %v468_v34 }
  0xb1   : > { %v451_v47 = vpop.f32.mrf.mxu3 }
  0xb2   : > { %v452_v2 = vadd.f32 %v1166_v25, %v451_v47 }
  0xb3   : > { %v427_v35 = vpop.f32.mrf.mxu0 }
  0xb4   : > { %v428_v36 = vadd.f32 %v1166_v25, %v427_v35  ;;  %v477_v3 = vmax.f32 %v452_v2, 0.0 }
  0xb6   : > { %v469_v37 = vmax.f32 %v428_v36, 0.0 }
  0xb8   : > { %806 = vmatmul.msk.f32.gmra.mxu1 %vm494_vm2, %v469_v37 }
  0xb9   : > { %v454_v51 = vpop.f32.mrf.mxu3 }
  0xba   : > { %v455_v4 = vadd.f32 %v1166_v25, %v454_v51 }
  0xbb   : > { %v430_v38 = vpop.f32.mrf.mxu0 }
  0xbc   : > { %v431_v40 = vadd.f32 %v1166_v25, %v430_v38  ;;  %v478_v5 = vmax.f32 %v455_v4, 0.0 }
  0xbe   : > { %v470_v41 = vmax.f32 %v431_v40, 0.0 }
  0xc0   : > { %807 = vmatmul.msk.f32.gmra.mxu1 %vm494_vm2, %v470_v41 }
  0xc1   : > { %v457_v55 = vpop.f32.mrf.mxu3 }
  0xc2   : > { %v458_v6 = vadd.f32 %v1166_v25, %v457_v55 }
  0xc3   : > { %v433_v42 = vpop.f32.mrf.mxu0 }
  0xc4   : > { %v434_v44 = vadd.f32 %v1166_v25, %v433_v42  ;;  %v479_v7 = vmax.f32 %v458_v6, 0.0 }
  0xc6   : > { %v471_v45 = vmax.f32 %v434_v44, 0.0 }
  0xc8   : > { %808 = vmatmul.msk.f32.gmra.mxu1 %vm494_vm2, %v471_v45 }
  0xc9   : > { %v460_v59 = vpop.f32.mrf.mxu3 }
  0xca   : > { %v461_v8 = vadd.f32 %v1166_v25, %v460_v59 }
  0xcb   : > { %v436_v46 = vpop.f32.mrf.mxu0 }
  0xcc   : > { %v437_v48 = vadd.f32 %v1166_v25, %v436_v46  ;;  %v480_v9 = vmax.f32 %v461_v8, 0.0 }
  0xce   : > { %v472_v49 = vmax.f32 %v437_v48, 0.0 }
  0xd0   : > { %809 = vmatmul.msk.f32.gmra.mxu1 %vm494_vm2, %v472_v49 }
  0xd1   : > { %v463_v62 = vpop.f32.mrf.mxu3 }
  0xd2   : > { %v464_v63 = vadd.f32 %v1166_v25, %v463_v62 }
  0xd3   : > { %v439_v50 = vpop.f32.mrf.mxu0 }
  0xd4   : > { %v440_v52 = vadd.f32 %v1166_v25, %v439_v50  ;;  %v481_v1 = vmax.f32 %v464_v63, 0.0 }
  0xd6   : > { %v473_v53 = vmax.f32 %v440_v52, 0.0  ;;  %818 = vmatmul.msk.f32.vlgmr.msrb.gmra.mxu3 %vm494_vm2, %v481_v1 }
  0xd8   : > { %810 = vmatmul.msk.f32.vlgmr.msra.gmra.mxu2 %vm494_vm2, %v473_v53 }
  0xdb   : > { %v442_v54 = vpop.f32.mrf.mxu0 }
  0xdc   : > { %v443_v56 = vadd.f32 %v1166_v25, %v442_v54 }
  0xde   : > { %v474_v57 = vmax.f32 %v443_v56, 0.0 }
  0xe0   : > { %811 = vmatmul.msk.f32.gmra.mxu2 %vm494_vm2, %v474_v57 }
  0xe8   : > { %812 = vmatmul.msk.f32.gmra.mxu2 %vm494_vm2, %v475_v60 }
  0xf0   : > { %813 = vmatmul.msk.f32.gmra.mxu2 %vm494_vm2, %v476_v0 }
  0xf8   : > { %814 = vmatmul.msk.f32.gmra.mxu2 %vm494_vm2, %v477_v3 }
 0x100   : > { %815 = vmatmul.msk.f32.gmra.mxu2 %vm494_vm2, %v478_v5 }
 0x108   : > { %816 = vmatmul.msk.f32.gmra.mxu2 %vm494_vm2, %v479_v7 }
 0x110   : > { %817 = vmatmul.msk.f32.gmra.mxu2 %vm494_vm2, %v480_v9 }
 0x11d   : > { %v560_v11 = vpop.f32.mrf.mxu1 }
 0x11e   : > { %v561_v12 = vadd.f32 %v1200_v10, %v560_v11 }
 0x120   : > { %v608_v13 = vmax.f32 %v561_v12, 0.0 }
 0x122   : > { %624 = vst.msk [vmem:[%s1208_s7] sm:$0xff] %vm494_vm2, %v608_v13 }
 0x125   : > { %v563_v14 = vpop.f32.mrf.mxu1 }
 0x126   : > { %v564_v15 = vadd.f32 %v1200_v10, %v563_v14 }
 0x128   : > { %v609_v16 = vmax.f32 %v564_v15, 0.0 }
 0x12a   : > { %625 = vst.msk [vmem:[%s1208_s7 + $0x8] sm:$0xff] %vm494_vm2, %v609_v16 }
 0x12d   : > { %v566_v17 = vpop.f32.mrf.mxu1 }
 0x12e   : > { %v567_v18 = vadd.f32 %v1200_v10, %v566_v17 }
 0x130   : > { %v610_v19 = vmax.f32 %v567_v18, 0.0 }
 0x132   : > { %626 = vst.msk [vmem:[%s1208_s7 + $0x10] sm:$0xff] %vm494_vm2, %v610_v19 }
 0x135   : > { %v569_v20 = vpop.f32.mrf.mxu1 }
 0x136   : > { %v570_v21 = vadd.f32 %v1200_v10, %v569_v20 }
 0x138   : > { %v611_v22 = vmax.f32 %v570_v21, 0.0 }
 0x13a   : > { %627 = vst.msk [vmem:[%s1208_s7 + $0x18] sm:$0xff] %vm494_vm2, %v611_v22 }
 0x13d   : > { %v572_v23 = vpop.f32.mrf.mxu1 }
 0x13e   : > { %v573_v24 = vadd.f32 %v1200_v10, %v572_v23 }
 0x140   : > { %v612_v25 = vmax.f32 %v573_v24, 0.0 }
 0x142   : > { %628 = vst.msk [vmem:[%s1208_s7 + $0x20] sm:$0xff] %vm494_vm2, %v612_v25 }
 0x145   : > { %v575_v26 = vpop.f32.mrf.mxu1 }
 0x146   : > { %v576_v27 = vadd.f32 %v1200_v10, %v575_v26 }
 0x148   : > { %v613_v28 = vmax.f32 %v576_v27, 0.0 }
 0x14a   : > { %629 = vst.msk [vmem:[%s1208_s7 + $0x28] sm:$0xff] %vm494_vm2, %v613_v28 }
 0x14d   : > { %v578_v29 = vpop.f32.mrf.mxu1 }
 0x14e   : > { %v579_v30 = vadd.f32 %v1200_v10, %v578_v29 }
 0x150   : > { %v614_v31 = vmax.f32 %v579_v30, 0.0 }
 0x152   : > { %630 = vst.msk [vmem:[%s1208_s7 + $0x30] sm:$0xff] %vm494_vm2, %v614_v31 }
 0x159   : > { %v605_v42 = vpop.f32.mrf.mxu3 }
 0x15a   : > { %v606_v44 = vadd.f32 %v1200_v10, %v605_v42 }
 0x15b   : > { %v581_v32 = vpop.f32.mrf.mxu2 }
 0x15c   : > { %v582_v33 = vadd.f32 %v1200_v10, %v581_v32  ;;  %v623_v46 = vmax.f32 %v606_v44, 0.0 }
 0x15e   : > { %v615_v34 = vmax.f32 %v582_v33, 0.0  ;;  %639 = vst.msk [vmem:[%s1208_s7 + $0x78] sm:$0xff] %vm494_vm2, %v623_v46 }
 0x160   : > { %631 = vst.msk [vmem:[%s1208_s7 + $0x38] sm:$0xff] %vm494_vm2, %v615_v34 }
 0x163   : > { %v584_v35 = vpop.f32.mrf.mxu2 }
 0x164   : > { %v585_v36 = vadd.f32 %v1200_v10, %v584_v35 }
 0x166   : > { %v616_v37 = vmax.f32 %v585_v36, 0.0 }
 0x168   : > { %632 = vst.msk [vmem:[%s1208_s7 + $0x40] sm:$0xff] %vm494_vm2, %v616_v37 }
 0x16b   : > { %v587_v38 = vpop.f32.mrf.mxu2 }
 0x16c   : > { %v588_v39 = vadd.f32 %v1200_v10, %v587_v38 }
 0x16e   : > { %v617_v40 = vmax.f32 %v588_v39, 0.0 }
 0x170   : > { %633 = vst.msk [vmem:[%s1208_s7 + $0x48] sm:$0xff] %vm494_vm2, %v617_v40 }
 0x173   : > { %v590_v41 = vpop.f32.mrf.mxu2 }
 0x174   : > { %v591_v43 = vadd.f32 %v1200_v10, %v590_v41 }
 0x176   : > { %v618_v45 = vmax.f32 %v591_v43, 0.0 }
 0x178   : > { %634 = vst.msk [vmem:[%s1208_s7 + $0x50] sm:$0xff] %vm494_vm2, %v618_v45 }
 0x17b   : > { %v593_v47 = vpop.f32.mrf.mxu2 }
 0x17c   : > { %v594_v48 = vadd.f32 %v1200_v10, %v593_v47 }
 0x17e   : > { %v619_v49 = vmax.f32 %v594_v48, 0.0 }
 0x180   : > { %635 = vst.msk [vmem:[%s1208_s7 + $0x58] sm:$0xff] %vm494_vm2, %v619_v49 }
 0x183   : > { %v596_v50 = vpop.f32.mrf.mxu2 }
 0x184   : > { %v597_v51 = vadd.f32 %v1200_v10, %v596_v50 }
 0x186   : > { %v620_v52 = vmax.f32 %v597_v51, 0.0 }
 0x188   : > { %636 = vst.msk [vmem:[%s1208_s7 + $0x60] sm:$0xff] %vm494_vm2, %v620_v52 }
 0x18b   : > { %v599_v53 = vpop.f32.mrf.mxu2 }
 0x18c   : > { %v600_v54 = vadd.f32 %v1200_v10, %v599_v53 }
 0x18e   : > { %v621_v55 = vmax.f32 %v600_v54, 0.0 }
 0x190   : > { %637 = vst.msk [vmem:[%s1208_s7 + $0x68] sm:$0xff] %vm494_vm2, %v621_v55 }
 0x193   : > { %v602_v56 = vpop.f32.mrf.mxu2 }
 0x194   : > { %v603_v57 = vadd.f32 %v1200_v10, %v602_v56 }
 0x196   : > { %v622_v58 = vmax.f32 %v603_v57, 0.0 }
 0x198   : > { %638 = vst.msk [vmem:[%s1208_s7 + $0x70] sm:$0xff] %vm494_vm2, %v622_v58 }
 0x199 PF: > { %s17_s20 = sadd.s32 1, %s1019_s20   ;;  %s1275_s18 = smov %s1015_s19 }
 0x19a   : > { %p14_p8 = scmp.ge.s32.totalorder %s17_s20, 4   ;;  %s1276_s19 = smov %s1278_s30 }
 0x19c   :  { %16 = sbr.rel (!%p14_p8) target bundleno = 3 (0x3), region = 86 }
 0x1a1   :  { %670 = vsyncpa [#allocation3], 1 }
 0x1a2   :  { %672 = vsyncpa [#allocation3 + $0x1], 1 }
 0x1a3   :  { %673 = vsyncpa [#allocation5], 1 }

// kernel: seg_head_forward.5
= control target key start
LH: loop header
LB: loop body
LE: loop exit
PB: predicated region body
PF: predicated region fallthrough
CT: control target
= control target key end

     0   :  { %12 = vsyncpa [#allocation3], 0  ;;  %s2822_s0 = inlined_call_operand.vmem [shape: f32[2,128,6], index: 0, kind: input, shape index: {}]   ;;  %s2823_s1 = inlined_call_operand.hbm [shape: f32[6,64], index: 1, kind: input, shape index: {}]   ;;  %s2824_s2 = inlined_call_operand.hbm [shape: f32[1,64], index: 2, kind: input, shape index: {}]   ;;  %s2825_s3 = inlined_call_operand.hbm [shape: f32[64,128], index: 3, kind: input, shape index: {}]   ;;  %s2826_s4 = inlined_call_operand.hbm [shape: f32[1,128], index: 4, kind: input, shape index: {}]   ;;  %s2827_s5 = inlined_call_operand.hbm [shape: f32[128,1024], index: 5, kind: input, shape index: {}]   ;;  %s2828_s6 = inlined_call_operand.hbm [shape: f32[1,1024], index: 6, kind: input, shape index: {}]   ;;  %s2829_s7 = inlined_call_operand.vmem [shape: f32[2,1,1024], index: 7, kind: output, shape index: {}]  }
   0x1   :  { %13 = vsyncpa [#allocation5], 0 }
   0x2   :  { %14 = vsyncpa [#allocation8], 0 }
   0x3   :  { %15 = vsyncpa [#allocation11], 0  ;;  %s2249_s24 = smov 0   ;;  %s2251_s25 = smov 0  }
   0x4   :  { %s2253_s26 = smov 0  }
   0x5 LB: > { %s242_s29 = sshll.u32 %s2824_s2, 4  ;;  %s1822_s30 = sadd.s32 4294967295, %s2197_s26   ;;  %s2197_s26 = sphi %s2253_s26, %s21_s26   ;;  %s2193_s25 = sphi %s2251_s25, %s2834_s25   ;;  %s2189_s24 = sphi %s2249_s24, %s2833_s24   ;;  %s243_s29 = int_to_ptr.hbm [resolvable:$true] %s242_s29 }
   0x6   : > { %p1824_p0 = scmp.ge.s32.totalorder %s2197_s26, 1  ;;  %p218_p1 = scmp.lt.s32.totalorder %s2197_s26, 3 }
   0x7   : > { %p2270_p2 = scmp.eq.s32.totalorder %s1822_s30, 0  ;;  %s2199_s10 = smov [#allocation4]  }
   0x8   : > { %p2274_p3 = pnand %p1824_p0, %p218_p1  ;;  %s244_s11 = sshll.u32 %s2199_s10, 4  ;;  %s245_s11 = int_to_ptr.vmem [resolvable:$true] %s244_s11 }
   0x9   : > { %s268_s14 = sshll.u32 %s2826_s4, 4  ;;  %s2200_s16 = smov [#allocation7]   ;;  %s269_s14 = int_to_ptr.hbm [resolvable:$true] %s268_s14 }
   0xa   : > { %p1911_p4 = pneg %p2274_p3  ;;  %s270_s17 = sshll.u32 %s2200_s16, 4  ;;  %s271_s17 = int_to_ptr.vmem [resolvable:$true] %s270_s17 }
   0xb   : > { %s33_s18 = sadd.s32 1, %s2193_s25  ;;  %s230_s21 = sshll.u32 %s2823_s1, 4  ;;  %s231_s21 = int_to_ptr.hbm [resolvable:$true] %s230_s21 }
   0xc   : > { %p2285_p5 = pnand %p2270_p2, %p1911_p4  ;;  %p35_p6 = scmp.ge.s32.totalorder %s33_s18, 2 }
   0xd   : > { %s2201_s22 = smov [#allocation2]   ;;  %s253_s30 = sshll.u32 %s2825_s3, 4  ;;  %s254_s30 = int_to_ptr.hbm [resolvable:$true] %s253_s30 }
   0xe   : > { %1917 = dma.hbm_to_vmem [thread:$0]  (!%p2285_p5), %s243_s29, 16, %s245_s11, [#allocation5]  }
   0xf   : > { %1923 = dma.hbm_to_vmem [thread:$0]  (!%p2285_p5), %s269_s14, 16, %s271_s17, [#allocation8]  }
  0x10   : > { %s2836_s18 = smov (%p35_p6, %s33_s18), 0  ;;  %s232_s23 = sshll.u32 %s2201_s22, 4  ;;  %s233_s23 = int_to_ptr.vmem [resolvable:$true] %s232_s23 }
  0x11   : > { %1914 = dma.hbm_to_vmem [thread:$0]  (!%p2285_p5), %s231_s21, 128, %s233_s23, [#allocation3]  }
  0x12   : > { %s2202_s29 = smov [#allocation6]   ;;  %s279_s13 = sshll.u32 %s2827_s5, 4  ;;  %s280_s13 = int_to_ptr.hbm [resolvable:$true] %s279_s13 }
  0x13   : > { %s255_s10 = sshll.u32 %s2202_s29, 4  ;;  %s2203_s14 = smov 128   ;;  %s256_s10 = int_to_ptr.vmem [resolvable:$true] %s255_s10 }
  0x14   : > { %s2204_s16 = smov 8   ;;  %s2205_s17 = smov [#allocation9]  }
  0x15   : > { %1920 = dma.hbm_to_vmem [thread:$0]  (!%p2285_p5), %s254_s30, 1024, %s256_s10, [#allocation5], %s2203_s14, %s2203_s14, %s2204_s16  }
  0x16   : > { %s281_s19 = sshll.u32 %s2205_s17, 4  ;;  %s2206_s20 = smov 1024   ;;  %s282_s19 = int_to_ptr.vmem [resolvable:$true] %s281_s19 }
  0x17   : > { %s2207_s22 = smov 64   ;;  %s294_s27 = sshll.u32 %s2828_s6, 4  ;;  %s295_s27 = int_to_ptr.hbm [resolvable:$true] %s294_s27 }
  0x18   : > { %1926 = dma.hbm_to_vmem [thread:$0]  (!%p2285_p5), %s280_s13, 16384, %s282_s19, [#allocation8], %s2206_s20, %s2206_s20, %s2207_s22  }
  0x19   : > { %s2208_s28 = smov [#allocation10]   ;;  %322 = sbr.rel (%p2274_p3) target bundleno = 713 (0x2c9), region = 48 }
  0x1a   : > { %s296_s29 = sshll.u32 %s2208_s28, 4  ;;  %s297_s29 = int_to_ptr.vmem [resolvable:$true] %s296_s29 }
  0x1b   : > { %1929 = dma.hbm_to_vmem [thread:$0]  (!%p2285_p5), %s295_s27, 128, %s297_s29, [#allocation11]  }
  0x1e   : > { %2172 = dma.done.wait (%p2270_p2), [#allocation3], 128  }
  0x1f   : > { %2174 = vsyncadd (%p2270_p2), [#allocation3], 4294967168 }
  0x20   : > { %2176 = dma.done.wait (%p2270_p2), [#allocation5], 1040  }
  0x21   : > { %2178 = vsyncadd (%p2270_p2), [#allocation5], 4294966256 }
  0x22   : > { %2180 = dma.done.wait (%p2270_p2), [#allocation8], 16400  }
  0x23   : > { %2182 = vsyncadd (%p2270_p2), [#allocation8], 4294950896 }
  0x24   : > { %2184 = dma.done.wait (%p2270_p2), [#allocation11], 128  }
  0x25   : > { %2186 = vsyncadd (%p2270_p2), [#allocation11], 4294967168  ;;  %p384_p7 = scmp.lt.s32.totalorder %s2189_s24, 1  ;;  %vm472_vm0 = vcmask 1045504   ;;  %vm423_vm1 = vcmask 48128   ;;  %v564_v11 = vld [vmem:[#allocation6 + $0x38] sm:$0xff] }
  0x26   : > { %v418_v0 = vld [vmem:[#allocation2] sm:$0x3f]  ;;  %626 = vmatpush.msra.mxu1 %v564_v11  ;;  %1879 = vmatpush.msra.mxu2 %v564_v11  ;;  %v562_v13 = vld [vmem:[#allocation6 + $0x28] sm:$0xff]  ;;  %v561_v15 = vld [vmem:[#allocation6 + $0x20] sm:$0xff]  ;;  %vm569_vm2 = vcmask 523264   ;;  %vm1679_vm3 = vcmask 1042434  }
  0x27   : > { %s2838_s24 = smov (!%p384_p7, %s2189_s24), 1  ;;  %1842 = vmatpush.msk.msra.mxu0 %vm472_vm0, %v418_v0  ;;  %1878 = vmatpush.msk.msra.mxu3 %vm472_vm0, %v418_v0  ;;  %v563_v12 = vld [vmem:[#allocation6 + $0x30] sm:$0xff]  ;;  %v560_v17 = vld [vmem:[#allocation6 + $0x18] sm:$0xff]  ;;  %v558_v23 = vld [vmem:[#allocation6 + $0x8] sm:$0xff]  ;;  %vm1677_vm4 = vcmask 1040384   ;;  %vm1681_vm5 = vcmask 1041408  }
  0x28   : > { %s1877_s9 = sshll.u32 %s2838_s24, 7  ;;  %627 = vmatpush.msra.mxu1 %v563_v12  ;;  %1880 = vmatpush.msra.mxu2 %v563_v12  ;;  %v559_v22 = vld [vmem:[#allocation6 + $0x10] sm:$0xff]  ;;  %v557_v24 = vld [vmem:[#allocation6] sm:$0xff]  ;;  %v2376_v25 = vld [vmem:[#allocation4] ss:$0 sm:$0xff]  ;;  %vm1685_vm6 = vcmask 1046534  }
  0x29   : > { %s2342_s10 = scalar_lea.vmem %s2822_s0, %s1877_s9  ;;  %v821_v41 = vld [vmem:[#allocation9 + $0x3d0] sm:$0xff]  ;;  %v819_v45 = vld [vmem:[#allocation9 + $0x3c0] sm:$0xff]  ;;  %v822_v48 = vld [vmem:[#allocation9 + $0x3d8] sm:$0xff]  ;;  %vm1683_vm7 = vcmask 1044484   ;;  %vm1687_vm8 = vcmask 1045508   ;;  %s1841_s8 = sshll.u32 %s2838_s24, 3 }
  0x2a   : > { %v402_v1 = vld [vmem:[%s2342_s10] sm:$0xff]  ;;  %v403_v2 = vld [vmem:[%s2342_s10 + $0x8] sm:$0xff]  ;;  %v404_v3 = vld [vmem:[%s2342_s10 + $0x10] sm:$0xff]  ;;  %628 = vmatpush.msra.mxu1 %v562_v13  ;;  %1881 = vmatpush.msra.mxu2 %v562_v13  ;;  %vm1689_vm9 = vcmask 1043456   ;;  %s396_s13 = scalar_lea.vmem %s2829_s7, %s1841_s8 }
  0x2b   : > { %1843 = vmatmul.msk.f32.vlgmr.msra.gmra.mxu0 %vm423_vm1, %v402_v1  ;;  %v405_v4 = vld [vmem:[%s2342_s10 + $0x18] sm:$0xff]  ;;  %v406_v5 = vld [vmem:[%s2342_s10 + $0x20] sm:$0xff]  ;;  %v411_v6 = vld [vmem:[%s2342_s10 + $0x48] sm:$0xff] }
  0x2c   : > { %1852 = vmatmul.msk.f32.vlgmr.msra.gmra.mxu3 %vm423_vm1, %v411_v6  ;;  %v407_v7 = vld [vmem:[%s2342_s10 + $0x28] sm:$0xff]  ;;  %v412_v8 = vld [vmem:[%s2342_s10 + $0x50] sm:$0xff]  ;;  %v413_v10 = vld [vmem:[%s2342_s10 + $0x58] sm:$0xff]  ;;  %629 = vmatpush.msra.mxu1 %v561_v15 }
  0x2d   : > { %v408_v9 = vld [vmem:[%s2342_s10 + $0x30] sm:$0xff]  ;;  %v409_v14 = vld [vmem:[%s2342_s10 + $0x38] sm:$0xff]  ;;  %v414_v16 = vld [vmem:[%s2342_s10 + $0x60] sm:$0xff]  ;;  %1882 = vmatpush.msra.mxu2 %v561_v15  ;;  %975 = vmatpush.msrb.mxu0 %v821_v41 }
  0x2e   : > { %630 = vmatpush.msra.mxu1 %v560_v17  ;;  %v410_v18 = vld [vmem:[%s2342_s10 + $0x40] sm:$0xff]  ;;  %v415_v19 = vld [vmem:[%s2342_s10 + $0x68] sm:$0xff]  ;;  %v416_v20 = vld [vmem:[%s2342_s10 + $0x70] sm:$0xff] }
  0x2f   : > { %1883 = vmatpush.msra.mxu2 %v560_v17  ;;  %v417_v21 = vld [vmem:[%s2342_s10 + $0x78] sm:$0xff]  ;;  %v811_v47 = vld [vmem:[#allocation9 + $0x380] sm:$0xff]  ;;  %v814_v55 = vld [vmem:[#allocation9 + $0x398] sm:$0xff] }
  0x30   : > { %631 = vmatpush.msra.mxu1 %v559_v22  ;;  %v813_v46 = vld [vmem:[#allocation9 + $0x390] sm:$0xff]  ;;  %v803_v53 = vld [vmem:[#allocation9 + $0x340] sm:$0xff]  ;;  %v820_v54 = vld [vmem:[#allocation9 + $0x3c8] sm:$0xff] }
  0x31   : > { %1884 = vmatpush.msra.mxu2 %v559_v22  ;;  %976 = vmatpush.msrb.mxu0 %v813_v46  ;;  %v805_v49 = vld [vmem:[#allocation9 + $0x350] sm:$0xff]  ;;  %v795_v57 = vld [vmem:[#allocation9 + $0x300] sm:$0xff]  ;;  %v812_v58 = vld [vmem:[#allocation9 + $0x388] sm:$0xff] }
  0x32   : > { %632 = vmatpush.msra.mxu1 %v558_v23  ;;  %910 = vmatpush.msrb.mxu3 %v820_v54  ;;  %v797_v59 = vld [vmem:[#allocation9 + $0x310] sm:$0xff]  ;;  %v806_v60 = vld [vmem:[#allocation9 + $0x358] sm:$0xff]  ;;  %v804_v61 = vld [vmem:[#allocation9 + $0x348] sm:$0xff] }
  0x33   : > { %1844 = vmatmul.msk.f32.gmra.mxu0 %vm423_vm1, %v403_v2  ;;  %1885 = vmatpush.msra.mxu2 %v558_v23  ;;  %v787_v1 = vld [vmem:[#allocation9 + $0x2c0] sm:$0xff]  ;;  %v789_v2 = vld [vmem:[#allocation9 + $0x2d0] sm:$0xff]  ;;  %v782_v17 = vld [vmem:[#allocation9 + $0x298] sm:$0xff] }
  0x34   : > { %1853 = vmatmul.msk.f32.gmra.mxu3 %vm423_vm1, %v412_v8  ;;  %633 = vmatpush.msra.mxu1 %v557_v24  ;;  %v781_v6 = vld [vmem:[#allocation9 + $0x290] sm:$0xff]  ;;  %v790_v8 = vld [vmem:[#allocation9 + $0x2d8] sm:$0xff]  ;;  %v715_v54 = vld [vmem:[#allocation9 + $0x80] sm:$0xff] }
  0x35   : > { %1886 = vmatpush.msra.mxu2 %v557_v24  ;;  %977 = vmatpush.msrb.mxu0 %v805_v49  ;;  %v773_v15 = vld [vmem:[#allocation9 + $0x250] sm:$0xff]  ;;  %v734_v49 = vld [vmem:[#allocation9 + $0x118] sm:$0xff] }
  0x36   : > { %1040 = vmatpush.msrb.mxu1 %v822_v48  ;;  %911 = vmatpush.msrb.mxu3 %v812_v58  ;;  %v741_v41 = vld [vmem:[#allocation9 + $0x150] sm:$0xff]  ;;  %v718_v58 = vld [vmem:[#allocation9 + $0x98] sm:$0xff] }
  0x37   : > { %845 = vmatpush.msrb.mxu2 %v819_v45  ;;  %978 = vmatpush.msrb.mxu0 %v797_v59  ;;  %v733_v48 = vld [vmem:[#allocation9 + $0x110] sm:$0xff]  ;;  %v707_v59 = vld [vmem:[#allocation9 + $0x40] sm:$0xff] }
  0x38   : > { %1041 = vmatpush.msrb.mxu1 %v814_v55  ;;  %912 = vmatpush.msrb.mxu3 %v804_v61  ;;  %v709_v61 = vld [vmem:[#allocation9 + $0x50] sm:$0xff] }
  0x39   : > { %846 = vmatpush.msrb.mxu2 %v811_v47  ;;  %979 = vmatpush.msrb.mxu0 %v789_v2  ;;  %v723_v47 = vld [vmem:[#allocation9 + $0xc0] sm:$0xff]  ;;  %v701_v2 = vld [vmem:[#allocation9 + $0x10] sm:$0xff] }
  0x3a   : > { %1042 = vmatpush.msrb.mxu1 %v806_v60  ;;  %v708_v60 = vld [vmem:[#allocation9 + $0x48] sm:$0xff] }
  0x3b   : > { %1845 = vmatmul.msk.f32.gmra.mxu0 %vm423_vm1, %v404_v3  ;;  %847 = vmatpush.msrb.mxu2 %v803_v53  ;;  %v798_v3 = vld [vmem:[#allocation9 + $0x318] sm:$0xff] }
  0x3c   : > { %1854 = vmatmul.msk.f32.gmra.mxu3 %vm423_vm1, %v413_v10  ;;  %1043 = vmatpush.msrb.mxu1 %v798_v3  ;;  %v726_v53 = vld [vmem:[#allocation9 + $0xd8] sm:$0xff] }
  0x3d   : > { %848 = vmatpush.msrb.mxu2 %v795_v57  ;;  %980 = vmatpush.msrb.mxu0 %v781_v6  ;;  %v717_v57 = vld [vmem:[#allocation9 + $0x90] sm:$0xff]  ;;  %v702_v3 = vld [vmem:[#allocation9 + $0x18] sm:$0xff] }
  0x3e   : > { %1044 = vmatpush.msrb.mxu1 %v790_v8  ;;  %v824_v8 = vld [vmem:[#allocation9 + $0x3e8] sm:$0xff] }
  0x3f   : > { %849 = vmatpush.msrb.mxu2 %v787_v1  ;;  %981 = vmatpush.msrb.mxu0 %v773_v15  ;;  %v700_v1 = vld [vmem:[#allocation9 + $0x8] sm:$0xff] }
  0x40   : > { %1045 = vmatpush.msrb.mxu1 %v782_v17  ;;  %v816_v15 = vld [vmem:[#allocation9 + $0x3a8] sm:$0xff]  ;;  %v817_v17 = vld [vmem:[#allocation9 + $0x3b0] sm:$0xff] }
  0x43   : > { %1846 = vmatmul.msk.f32.gmra.mxu0 %vm423_vm1, %v405_v4  ;;  %v796_v4 = vld [vmem:[#allocation9 + $0x308] sm:$0xff] }
  0x44   : > { %1855 = vmatmul.msk.f32.gmra.mxu3 %vm423_vm1, %v414_v16  ;;  %v780_v16 = vld [vmem:[#allocation9 + $0x288] sm:$0xff] }
  0x45   : > { %913 = vmatpush.msrb.mxu3 %v796_v4 }
  0x4b   : > { %1847 = vmatmul.msk.f32.gmra.mxu0 %vm423_vm1, %v406_v5  ;;  %v779_v5 = vld [vmem:[#allocation9 + $0x280] sm:$0xff] }
  0x4c   : > { %1856 = vmatmul.msk.f32.gmra.mxu3 %vm423_vm1, %v415_v19  ;;  %850 = vmatpush.msrb.mxu2 %v779_v5  ;;  %v772_v19 = vld [vmem:[#allocation9 + $0x248] sm:$0xff] }
  0x53   : > { %1848 = vmatmul.msk.f32.gmra.mxu0 %vm423_vm1, %v407_v7  ;;  %v788_v7 = vld [vmem:[#allocation9 + $0x2c8] sm:$0xff] }
  0x54   : > { %1857 = vmatmul.msk.f32.gmra.mxu3 %vm423_vm1, %v416_v20  ;;  %v765_v20 = vld [vmem:[#allocation9 + $0x210] sm:$0xff] }
  0x55   : > { %914 = vmatpush.msrb.mxu3 %v788_v7  ;;  %982 = vmatpush.msrb.mxu0 %v765_v20  ;;  %v823_v7 = vld [vmem:[#allocation9 + $0x3e0] sm:$0xff]  ;;  %v808_v20 = vld [vmem:[#allocation9 + $0x368] sm:$0xff] }
  0x57   : > { %915 = vmatpush.msrb.mxu3 %v780_v16 }
  0x59   : > { %916 = vmatpush.msrb.mxu3 %v772_v19  ;;  %v807_v19 = vld [vmem:[#allocation9 + $0x360] sm:$0xff] }
  0x5b   : > { %1849 = vmatmul.msk.f32.gmra.mxu0 %vm423_vm1, %v408_v9 }
  0x5c   : > { %1858 = vmatmul.msk.f32.gmra.mxu3 %vm423_vm1, %v417_v21  ;;  %v774_v21 = vld [vmem:[#allocation9 + $0x258] sm:$0xff] }
  0x5d   : > { %1046 = vmatpush.msrb.mxu1 %v774_v21  ;;  %v2410_v21 = vld [vmem:[#allocation7] ss:$0 sm:$0xff] }
  0x63   : > { %1850 = vmatmul.msk.f32.gmra.mxu0 %vm423_vm1, %v409_v14  ;;  %v771_v14 = vld [vmem:[#allocation9 + $0x240] sm:$0xff] }
  0x64   : > { %851 = vmatpush.msrb.mxu2 %v771_v14  ;;  %v815_v14 = vld [vmem:[#allocation9 + $0x3a0] sm:$0xff] }
  0x6b   : > { %1851 = vmatmul.msk.f32.gmra.mxu0 %vm423_vm1, %v410_v18  ;;  %v763_v18 = vld [vmem:[#allocation9 + $0x200] sm:$0xff] }
  0x6c   : > { %852 = vmatpush.msrb.mxu2 %v763_v18  ;;  %v818_v18 = vld [vmem:[#allocation9 + $0x3b8] sm:$0xff] }
  0xa8   : > { %v493_v26 = vpop.f32.mrf.mxu0 }
  0xa9   : > { %v494_v27 = vadd.f32 %v2376_v25, %v493_v26  ;;  %v755_v26 = vld [vmem:[#allocation9 + $0x1c0] sm:$0xff] }
  0xaa   : > { %853 = vmatpush.msrb.mxu2 %v755_v26  ;;  %v810_v26 = vld [vmem:[#allocation9 + $0x378] sm:$0xff] }
  0xab   : > { %v541_v28 = vmax.f32 %v494_v27, 0.0  ;;  %v764_v27 = vld [vmem:[#allocation9 + $0x208] sm:$0xff] }
  0xac   : > { %917 = vmatpush.msrb.mxu3 %v764_v27  ;;  %v799_v27 = vld [vmem:[#allocation9 + $0x320] sm:$0xff] }
  0xad   : > { %1859 = vmatmul.msk.f32.vlgmr.msra.gmra.mxu1 %vm569_vm2, %v541_v28  ;;  %v757_v28 = vld [vmem:[#allocation9 + $0x1d0] sm:$0xff] }
  0xae   : > { %983 = vmatpush.msrb.mxu0 %v757_v28  ;;  %v800_v28 = vld [vmem:[#allocation9 + $0x328] sm:$0xff] }
  0xaf   : > { %v520_v56 = vpop.f32.mrf.mxu3 }
  0xb0   : > { %v496_v29 = vpop.f32.mrf.mxu0  ;;  %v521_v13 = vadd.f32 %v2376_v25, %v520_v56  ;;  %v716_v56 = vld [vmem:[#allocation9 + $0x88] sm:$0xff] }
  0xb1   : > { %v497_v30 = vadd.f32 %v2376_v25, %v496_v29  ;;  %v766_v29 = vld [vmem:[#allocation9 + $0x218] sm:$0xff] }
  0xb2   : > { %v550_v22 = vmax.f32 %v521_v13, 0.0  ;;  %1047 = vmatpush.msrb.mxu1 %v766_v29  ;;  %v826_v13 = vld [vmem:[#allocation9 + $0x3f8] sm:$0xff] }
  0xb3   : > { %v542_v31 = vmax.f32 %v497_v30, 0.0  ;;  %v747_v30 = vld [vmem:[#allocation9 + $0x180] sm:$0xff] }
  0xb4   : > { %854 = vmatpush.msrb.mxu2 %v747_v30 }
  0xb5   : > { %1860 = vmatmul.msk.f32.gmra.mxu1 %vm569_vm2, %v542_v31  ;;  %v756_v31 = vld [vmem:[#allocation9 + $0x1c8] sm:$0xff] }
  0xb6   : > { %918 = vmatpush.msrb.mxu3 %v756_v31 }
  0xb7   : > { %v523_v10 = vpop.f32.mrf.mxu3 }
  0xb8   : > { %v499_v32 = vpop.f32.mrf.mxu0  ;;  %v524_v24 = vadd.f32 %v2376_v25, %v523_v10 }
  0xb9   : > { %v500_v33 = vadd.f32 %v2376_v25, %v499_v32  ;;  %v758_v32 = vld [vmem:[#allocation9 + $0x1d8] sm:$0xff] }
  0xba   : > { %1048 = vmatpush.msrb.mxu1 %v758_v32  ;;  %v801_v32 = vld [vmem:[#allocation9 + $0x330] sm:$0xff] }
  0xbb   : > { %v543_v34 = vmax.f32 %v500_v33, 0.0  ;;  %v749_v33 = vld [vmem:[#allocation9 + $0x190] sm:$0xff] }
  0xbc   : > { %984 = vmatpush.msrb.mxu0 %v749_v33  ;;  %v802_v33 = vld [vmem:[#allocation9 + $0x338] sm:$0xff] }
  0xbd   : > { %1861 = vmatmul.msk.f32.gmra.mxu1 %vm569_vm2, %v543_v34  ;;  %v551_v34 = vmax.f32 %v524_v24, 0.0  ;;  %v809_v24 = vld [vmem:[#allocation9 + $0x370] sm:$0xff] }
  0xbe   : > { %985 = vmatpush.msrb.mxu0 %v741_v41  ;;  %v783_v41 = vld [vmem:[#allocation9 + $0x2a0] sm:$0xff] }
  0xbf   : > { %v526_v23 = vpop.f32.mrf.mxu3 }
  0xc0   : > { %v502_v35 = vpop.f32.mrf.mxu0  ;;  %986 = vmatpush.msrb.mxu0 %v733_v48  ;;  %v775_v48 = vld [vmem:[#allocation9 + $0x260] sm:$0xff] }
  0xc1   : > { %v503_v36 = vadd.f32 %v2376_v25, %v502_v35 }
  0xc3   : > { %v544_v37 = vmax.f32 %v503_v36, 0.0  ;;  %v527_v36 = vadd.f32 %v2376_v25, %v526_v23 }
  0xc5   : > { %1862 = vmatmul.msk.f32.gmra.mxu1 %vm569_vm2, %v544_v37  ;;  %v739_v37 = vld [vmem:[#allocation9 + $0x140] sm:$0xff]  ;;  %v552_v45 = vmax.f32 %v527_v36, 0.0 }
  0xc6   : > { %855 = vmatpush.msrb.mxu2 %v739_v37 }
  0xc7   : > { %v529_v35 = vpop.f32.mrf.mxu3 }
  0xc8   : > { %v505_v38 = vpop.f32.mrf.mxu0  ;;  %v530_v46 = vadd.f32 %v2376_v25, %v529_v35  ;;  %v792_v35 = vld [vmem:[#allocation9 + $0x2e8] sm:$0xff] }
  0xc9   : > { %v506_v39 = vadd.f32 %v2376_v25, %v505_v38  ;;  %v748_v38 = vld [vmem:[#allocation9 + $0x188] sm:$0xff] }
  0xca   : > { %919 = vmatpush.msrb.mxu3 %v748_v38  ;;  %v553_v55 = vmax.f32 %v530_v46, 0.0  ;;  %v785_v46 = vld [vmem:[#allocation9 + $0x2b0] sm:$0xff] }
  0xcb   : > { %v545_v40 = vmax.f32 %v506_v39, 0.0  ;;  %v750_v39 = vld [vmem:[#allocation9 + $0x198] sm:$0xff] }
  0xcc   : > { %1049 = vmatpush.msrb.mxu1 %v750_v39  ;;  %v793_v39 = vld [vmem:[#allocation9 + $0x2f0] sm:$0xff] }
  0xcd   : > { %1863 = vmatmul.msk.f32.gmra.mxu1 %vm569_vm2, %v545_v40  ;;  %v740_v40 = vld [vmem:[#allocation9 + $0x148] sm:$0xff] }
  0xce   : > { %920 = vmatpush.msrb.mxu3 %v740_v40  ;;  %v794_v40 = vld [vmem:[#allocation9 + $0x2f8] sm:$0xff] }
  0xd0   : > { %v508_v42 = vpop.f32.mrf.mxu0 }
  0xd1   : > { %v509_v43 = vadd.f32 %v2376_v25, %v508_v42  ;;  %v731_v42 = vld [vmem:[#allocation9 + $0x100] sm:$0xff] }
  0xd2   : > { %856 = vmatpush.msrb.mxu2 %v731_v42  ;;  %v784_v42 = vld [vmem:[#allocation9 + $0x2a8] sm:$0xff] }
  0xd3   : > { %v546_v44 = vmax.f32 %v509_v43, 0.0  ;;  %v742_v43 = vld [vmem:[#allocation9 + $0x158] sm:$0xff] }
  0xd4   : > { %1050 = vmatpush.msrb.mxu1 %v742_v43  ;;  %857 = vmatpush.msrb.mxu2 %v723_v47  ;;  %v786_v47 = vld [vmem:[#allocation9 + $0x2b8] sm:$0xff] }
  0xd5   : > { %1864 = vmatmul.msk.f32.gmra.mxu1 %vm569_vm2, %v546_v44  ;;  %v732_v44 = vld [vmem:[#allocation9 + $0x108] sm:$0xff] }
  0xd6   : > { %921 = vmatpush.msrb.mxu3 %v732_v44  ;;  %1051 = vmatpush.msrb.mxu1 %v734_v49  ;;  %v776_v49 = vld [vmem:[#allocation9 + $0x268] sm:$0xff] }
  0xd7   : > { %858 = vmatpush.msrb.mxu2 %v715_v54 }
  0xd8   : > { %v511_v50 = vpop.f32.mrf.mxu0  ;;  %1052 = vmatpush.msrb.mxu1 %v726_v53  ;;  %v768_v53 = vld [vmem:[#allocation9 + $0x228] sm:$0xff] }
  0xd9   : > { %v512_v51 = vadd.f32 %v2376_v25, %v511_v50  ;;  %v532_v50 = vpop.f32.mrf.mxu3  ;;  %859 = vmatpush.msrb.mxu2 %v707_v59  ;;  %v769_v59 = vld [vmem:[#allocation9 + $0x230] sm:$0xff] }
  0xda   : > { %1053 = vmatpush.msrb.mxu1 %v718_v58 }
  0xdb   : > { %v547_v52 = vmax.f32 %v512_v51, 0.0  ;;  %v724_v51 = vld [vmem:[#allocation9 + $0xc8] sm:$0xff] }
  0xdc   : > { %922 = vmatpush.msrb.mxu3 %v724_v51  ;;  %v778_v51 = vld [vmem:[#allocation9 + $0x278] sm:$0xff] }
  0xdd   : > { %1865 = vmatmul.msk.f32.gmra.mxu1 %vm569_vm2, %v547_v52  ;;  %v725_v52 = vld [vmem:[#allocation9 + $0xd0] sm:$0xff] }
  0xde   : > { %987 = vmatpush.msrb.mxu0 %v725_v52  ;;  %923 = vmatpush.msrb.mxu3 %v716_v56  ;;  %v767_v52 = vld [vmem:[#allocation9 + $0x220] sm:$0xff] }
  0xe0   : > { %v514_v62 = vpop.f32.mrf.mxu0  ;;  %988 = vmatpush.msrb.mxu0 %v717_v57  ;;  %924 = vmatpush.msrb.mxu3 %v708_v60  ;;  %v770_v60 = vld [vmem:[#allocation9 + $0x238] sm:$0xff] }
  0xe1   : > { %v515_v63 = vadd.f32 %v2376_v25, %v514_v62  ;;  %v710_v62 = vld [vmem:[#allocation9 + $0x58] sm:$0xff]  ;;  %v535_v4 = vpop.f32.mrf.mxu3 }
  0xe2   : > { %989 = vmatpush.msrb.mxu0 %v709_v61  ;;  %1054 = vmatpush.msrb.mxu1 %v710_v62  ;;  %v536_v6 = vadd.f32 %v2376_v25, %v535_v4  ;;  %v759_v62 = vld [vmem:[#allocation9 + $0x1e0] sm:$0xff] }
  0xe3   : > { %v548_v0 = vmax.f32 %v515_v63, 0.0  ;;  %v533_v63 = vadd.f32 %v2376_v25, %v532_v50  ;;  %925 = vmatpush.msrb.mxu3 %v700_v1  ;;  %v777_v50 = vld [vmem:[#allocation9 + $0x270] sm:$0xff] }
  0xe4   : > { %990 = vmatpush.msrb.mxu0 %v701_v2  ;;  %1055 = vmatpush.msrb.mxu1 %v702_v3  ;;  %v761_v2 = vld [vmem:[#allocation9 + $0x1f0] sm:$0xff]  ;;  %v762_v3 = vld [vmem:[#allocation9 + $0x1f8] sm:$0xff] }
  0xe5   : > { %1866 = vmatmul.msk.f32.gmra.mxu1 %vm569_vm2, %v548_v0  ;;  %v699_v0 = vld [vmem:[#allocation9] sm:$0xff]  ;;  %v554_v5 = vmax.f32 %v533_v63, 0.0  ;;  %1170 = vmatpush.msra.mxu3 %v824_v8  ;;  %v760_v63 = vld [vmem:[#allocation9 + $0x1e8] sm:$0xff] }
  0xe6   : > { %860 = vmatpush.msrb.mxu2 %v699_v0  ;;  %1300 = vmatpush.msra.mxu1 %v826_v13  ;;  %v744_v13 = vld [vmem:[#allocation9 + $0x168] sm:$0xff] }
  0xe7   : > { %1171 = vmatpush.msra.mxu3 %v816_v15  ;;  %v746_v15 = vld [vmem:[#allocation9 + $0x178] sm:$0xff] }
  0xe8   : > { %v517_v9 = vpop.f32.mrf.mxu0  ;;  %1301 = vmatpush.msra.mxu1 %v818_v18 }
  0xe9   : > { %v518_v11 = vadd.f32 %v2376_v25, %v517_v9  ;;  %v555_v9 = vmax.f32 %v536_v6, 0.0  ;;  %v538_v10 = vpop.f32.mrf.mxu3  ;;  %1172 = vmatpush.msra.mxu3 %v808_v20  ;;  %v752_v6 = vld [vmem:[#allocation9 + $0x1a8] sm:$0xff] }
  0xea   : > { %1302 = vmatpush.msra.mxu1 %v810_v26  ;;  %v728_v26 = vld [vmem:[#allocation9 + $0xe8] sm:$0xff] }
  0xeb   : > { %v549_v12 = vmax.f32 %v518_v11, 0.0  ;;  %v539_v11 = vadd.f32 %v2376_v25, %v538_v10  ;;  %1173 = vmatpush.msra.mxu3 %v800_v28  ;;  %v754_v10 = vld [vmem:[#allocation9 + $0x1b8] sm:$0xff] }
  0xec   : > { %1303 = vmatpush.msra.mxu1 %v802_v33  ;;  %v719_v33 = vld [vmem:[#allocation9 + $0xa0] sm:$0xff] }
  0xed   : > { %1867 = vmatmul.msk.f32.vlgmr.msra.gmra.mxu2 %vm569_vm2, %v549_v12  ;;  %v825_v12 = vld [vmem:[#allocation9 + $0x3f0] sm:$0xff]  ;;  %v556_v16 = vmax.f32 %v539_v11, 0.0  ;;  %1174 = vmatpush.msra.mxu3 %v792_v35 }
  0xee   : > { %1105 = vmatpush.msra.mxu2 %v823_v7  ;;  %1235 = vmatpush.msra.mxu0 %v825_v12  ;;  %v743_v12 = vld [vmem:[#allocation9 + $0x160] sm:$0xff] }
  0xef   : > { %1304 = vmatpush.msra.mxu1 %v794_v40  ;;  %1175 = vmatpush.msra.mxu3 %v784_v42  ;;  %v722_v40 = vld [vmem:[#allocation9 + $0xb8] sm:$0xff]  ;;  %v712_v42 = vld [vmem:[#allocation9 + $0x68] sm:$0xff] }
  0xf0   : > { %1106 = vmatpush.msra.mxu2 %v815_v14  ;;  %1236 = vmatpush.msra.mxu0 %v817_v17  ;;  %v745_v14 = vld [vmem:[#allocation9 + $0x170] sm:$0xff]  ;;  %v736_v17 = vld [vmem:[#allocation9 + $0x128] sm:$0xff] }
  0xf1   : > { %1305 = vmatpush.msra.mxu1 %v786_v47  ;;  %1176 = vmatpush.msra.mxu3 %v776_v49  ;;  %v713_v47 = vld [vmem:[#allocation9 + $0x70] sm:$0xff] }
  0xf2   : > { %1107 = vmatpush.msra.mxu2 %v807_v19  ;;  %1237 = vmatpush.msra.mxu0 %v809_v24  ;;  %v727_v24 = vld [vmem:[#allocation9 + $0xe0] sm:$0xff] }
  0xf3   : > { %1306 = vmatpush.msra.mxu1 %v778_v51  ;;  %1177 = vmatpush.msra.mxu3 %v768_v53  ;;  %v704_v51 = vld [vmem:[#allocation9 + $0x28] sm:$0xff] }
  0xf4   : > { %1108 = vmatpush.msra.mxu2 %v799_v27  ;;  %1238 = vmatpush.msra.mxu0 %v801_v32  ;;  %v730_v32 = vld [vmem:[#allocation9 + $0xf8] sm:$0xff] }
  0xf5   : > { %1868 = vmatmul.msk.f32.gmra.mxu2 %vm569_vm2, %v550_v22  ;;  %1307 = vmatpush.msra.mxu1 %v770_v60 }
  0xf6   : > { %1239 = vmatpush.msra.mxu0 %v793_v39  ;;  %1178 = vmatpush.msra.mxu3 %v760_v63  ;;  %v721_v39 = vld [vmem:[#allocation9 + $0xb0] sm:$0xff] }
  0xf7   : > { %1308 = vmatpush.msra.mxu1 %v762_v3 }
  0xf8   : > { %1240 = vmatpush.msra.mxu0 %v785_v46  ;;  %1179 = vmatpush.msra.mxu3 %v752_v6 }
  0xf9   : > { %1309 = vmatpush.msra.mxu1 %v754_v10 }
  0xfa   : > { %1241 = vmatpush.msra.mxu0 %v777_v50  ;;  %1180 = vmatpush.msra.mxu3 %v744_v13  ;;  %v703_v50 = vld [vmem:[#allocation9 + $0x20] sm:$0xff] }
  0xfb   : > { %1310 = vmatpush.msra.mxu1 %v746_v15 }
  0xfc   : > { %1242 = vmatpush.msra.mxu0 %v769_v59  ;;  %1181 = vmatpush.msra.mxu3 %v736_v17 }
  0xfd   : > { %1869 = vmatmul.msk.f32.gmra.mxu2 %vm569_vm2, %v551_v34  ;;  %v791_v34 = vld [vmem:[#allocation9 + $0x2e0] sm:$0xff] }
  0xfe   : > { %1109 = vmatpush.msra.mxu2 %v791_v34  ;;  %1243 = vmatpush.msra.mxu0 %v761_v2  ;;  %v720_v34 = vld [vmem:[#allocation9 + $0xa8] sm:$0xff] }
  0xff   : > { %1182 = vmatpush.msra.mxu3 %v728_v26  ;;  %v2558_v26 = vld [vmem:[#allocation10] sm:$0xff] }
 0x100   : > { %1110 = vmatpush.msra.mxu2 %v783_v41  ;;  %v711_v41 = vld [vmem:[#allocation9 + $0x60] sm:$0xff] }
 0x101   : > { %1183 = vmatpush.msra.mxu3 %v720_v34  ;;  %v2580_v34 = vperm.slane %v2558_v26, 0 }
 0x102   : > { %1111 = vmatpush.msra.mxu2 %v775_v48  ;;  %v714_v48 = vld [vmem:[#allocation9 + $0x78] sm:$0xff] }
 0x103   : > { %1184 = vmatpush.msra.mxu3 %v712_v42 }
 0x104   : > { %1112 = vmatpush.msra.mxu2 %v767_v52 }
 0x105   : > { %1870 = vmatmul.msk.f32.gmra.mxu2 %vm569_vm2, %v552_v45  ;;  %1185 = vmatpush.msra.mxu3 %v704_v51 }
 0x106   : > { %1113 = vmatpush.msra.mxu2 %v759_v62 }
 0x10d   : > { %1871 = vmatmul.msk.f32.gmra.mxu2 %vm569_vm2, %v553_v55 }
 0x115   : > { %1872 = vmatmul.msk.f32.gmra.mxu2 %vm569_vm2, %v554_v5  ;;  %v751_v5 = vld [vmem:[#allocation9 + $0x1a0] sm:$0xff] }
 0x116   : > { %1114 = vmatpush.msra.mxu2 %v751_v5 }
 0x118   : > { %1115 = vmatpush.msra.mxu2 %v743_v12 }
 0x11d   : > { %1873 = vmatmul.msk.f32.gmra.mxu2 %vm569_vm2, %v555_v9  ;;  %v753_v9 = vld [vmem:[#allocation9 + $0x1b0] sm:$0xff] }
 0x11e   : > { %1244 = vmatpush.msra.mxu0 %v753_v9 }
 0x120   : > { %1245 = vmatpush.msra.mxu0 %v745_v14 }
 0x125   : > { %1874 = vmatmul.msk.f32.gmra.mxu2 %vm569_vm2, %v556_v16  ;;  %v735_v16 = vld [vmem:[#allocation9 + $0x120] sm:$0xff] }
 0x126   : > { %1116 = vmatpush.msra.mxu2 %v735_v16 }
 0x128   : > { %1117 = vmatpush.msra.mxu2 %v727_v24 }
 0x12a   : > { %v635_v25 = vpop.f32.mrf.mxu1  ;;  %1118 = vmatpush.msra.mxu2 %v719_v33 }
 0x12b   : > { %v636_v22 = vadd.f32 %v2410_v21, %v635_v25  ;;  %v737_v25 = vld [vmem:[#allocation9 + $0x130] sm:$0xff] }
 0x12c   : > { %1246 = vmatpush.msra.mxu0 %v737_v25  ;;  %1119 = vmatpush.msra.mxu2 %v711_v41 }
 0x12d   : > { %v2413_v23 = vmax.f32 %v636_v22, 0.0  ;;  %v738_v22 = vld [vmem:[#allocation9 + $0x138] sm:$0xff] }
 0x12e   : > { %1311 = vmatpush.msra.mxu1 %v738_v22  ;;  %1120 = vmatpush.msra.mxu2 %v703_v50 }
 0x12f   : > { %861 = vmatmul.f32.vlgmr.msrb.gmra.mxu2 %v2413_v23  ;;  %926 = vmatmul.f32.vlgmr.msrb.gmra.mxu3 %v2413_v23 }
 0x130   : > { %991 = vmatmul.f32.vlgmr.msrb.gmra.mxu0 %v2413_v23  ;;  %1056 = vmatmul.f32.vlgmr.msrb.gmra.mxu1 %v2413_v23 }
 0x131   : > { %1312 = vmatpush.msra.mxu1 %v730_v32 }
 0x132   : > { %v638_v29 = vpop.f32.mrf.mxu1 }
 0x133   : > { %v639_v30 = vadd.f32 %v2410_v21, %v638_v29  ;;  %1313 = vmatpush.msra.mxu1 %v722_v40 }
 0x135   : > { %v2420_v31 = vmax.f32 %v639_v30, 0.0  ;;  %v729_v30 = vld [vmem:[#allocation9 + $0xf0] sm:$0xff]  ;;  %1314 = vmatpush.msra.mxu1 %v714_v48 }
 0x136   : > { %1247 = vmatpush.msra.mxu0 %v729_v30 }
 0x137   : > { %864 = vmatmul.f32.gmra.mxu2 %v2420_v31  ;;  %929 = vmatmul.f32.gmra.mxu3 %v2420_v31 }
 0x138   : > { %994 = vmatmul.f32.gmra.mxu0 %v2420_v31  ;;  %1059 = vmatmul.f32.gmra.mxu1 %v2420_v31 }
 0x139   : > { %1248 = vmatpush.msra.mxu0 %v721_v39 }
 0x13a   : > { %v641_v36 = vpop.f32.mrf.mxu1 }
 0x13b   : > { %v642_v37 = vadd.f32 %v2410_v21, %v641_v36  ;;  %1249 = vmatpush.msra.mxu0 %v713_v47 }
 0x13d   : > { %v2427_v38 = vmax.f32 %v642_v37, 0.0 }
 0x13f   : > { %867 = vmatmul.f32.gmra.mxu2 %v2427_v38  ;;  %932 = vmatmul.f32.gmra.mxu3 %v2427_v38 }
 0x140   : > { %997 = vmatmul.f32.gmra.mxu0 %v2427_v38  ;;  %1062 = vmatmul.f32.gmra.mxu1 %v2427_v38 }
 0x142   : > { %v644_v43 = vpop.f32.mrf.mxu1 }
 0x143   : > { %v645_v44 = vadd.f32 %v2410_v21, %v644_v43 }
 0x145   : > { %v2434_v45 = vmax.f32 %v645_v44, 0.0 }
 0x147   : > { %870 = vmatmul.f32.gmra.mxu2 %v2434_v45  ;;  %935 = vmatmul.f32.gmra.mxu3 %v2434_v45 }
 0x148   : > { %1000 = vmatmul.f32.gmra.mxu0 %v2434_v45  ;;  %1065 = vmatmul.f32.gmra.mxu1 %v2434_v45 }
 0x14a   : > { %v647_v54 = vpop.f32.mrf.mxu1 }
 0x14b   : > { %v648_v55 = vadd.f32 %v2410_v21, %v647_v54  ;;  %v705_v54 = vld [vmem:[#allocation9 + $0x30] sm:$0xff] }
 0x14c   : > { %1250 = vmatpush.msra.mxu0 %v705_v54 }
 0x14d   : > { %v2441_v56 = vmax.f32 %v648_v55, 0.0  ;;  %v706_v55 = vld [vmem:[#allocation9 + $0x38] sm:$0xff] }
 0x14e   : > { %1315 = vmatpush.msra.mxu1 %v706_v55 }
 0x14f   : > { %873 = vmatmul.f32.gmra.mxu2 %v2441_v56  ;;  %938 = vmatmul.f32.gmra.mxu3 %v2441_v56 }
 0x150   : > { %1003 = vmatmul.f32.gmra.mxu0 %v2441_v56  ;;  %1068 = vmatmul.f32.gmra.mxu1 %v2441_v56 }
 0x152   : > { %v650_v57 = vpop.f32.mrf.mxu1 }
 0x153   : > { %v651_v58 = vadd.f32 %v2410_v21, %v650_v57 }
 0x155   : > { %v2448_v61 = vmax.f32 %v651_v58, 0.0 }
 0x157   : > { %876 = vmatmul.f32.gmra.mxu2 %v2448_v61  ;;  %941 = vmatmul.f32.gmra.mxu3 %v2448_v61 }
 0x158   : > { %1006 = vmatmul.f32.gmra.mxu0 %v2448_v61  ;;  %1071 = vmatmul.f32.gmra.mxu1 %v2448_v61 }
 0x15a   : > { %v653_v0 = vpop.f32.mrf.mxu1 }
 0x15b   : > { %v654_v1 = vadd.f32 %v2410_v21, %v653_v0 }
 0x15d   : > { %v2455_v4 = vmax.f32 %v654_v1, 0.0 }
 0x15f   : > { %879 = vmatmul.f32.gmra.mxu2 %v2455_v4  ;;  %944 = vmatmul.f32.gmra.mxu3 %v2455_v4 }
 0x160   : > { %1009 = vmatmul.f32.gmra.mxu0 %v2455_v4  ;;  %1074 = vmatmul.f32.gmra.mxu1 %v2455_v4 }
 0x162   : > { %v656_v7 = vpop.f32.mrf.mxu1 }
 0x163   : > { %v657_v8 = vadd.f32 %v2410_v21, %v656_v7 }
 0x165   : > { %v2462_v11 = vmax.f32 %v657_v8, 0.0 }
 0x167   : > { %882 = vmatmul.f32.gmra.mxu2 %v2462_v11  ;;  %947 = vmatmul.f32.gmra.mxu3 %v2462_v11 }
 0x168   : > { %1012 = vmatmul.f32.gmra.mxu0 %v2462_v11  ;;  %1077 = vmatmul.f32.gmra.mxu1 %v2462_v11 }
 0x170   : > { %v659_v18 = vpop.f32.mrf.mxu2 }
 0x171   : > { %v660_v19 = vadd.f32 %v2410_v21, %v659_v18 }
 0x173   : > { %v2469_v20 = vmax.f32 %v660_v19, 0.0 }
 0x175   : > { %885 = vmatmul.f32.gmra.mxu2 %v2469_v20  ;;  %950 = vmatmul.f32.gmra.mxu3 %v2469_v20 }
 0x176   : > { %1015 = vmatmul.f32.gmra.mxu0 %v2469_v20  ;;  %1080 = vmatmul.f32.gmra.mxu1 %v2469_v20 }
 0x178   : > { %v662_v27 = vpop.f32.mrf.mxu2 }
 0x179   : > { %v663_v28 = vadd.f32 %v2410_v21, %v662_v27 }
 0x17b   : > { %v2476_v29 = vmax.f32 %v663_v28, 0.0  ;;  %v2572_v28 = vperm.slane %v2558_v26, 3 }
 0x17d   : > { %888 = vmatmul.f32.gmra.mxu2 %v2476_v29  ;;  %953 = vmatmul.f32.gmra.mxu3 %v2476_v29 }
 0x17e   : > { %1018 = vmatmul.f32.gmra.mxu0 %v2476_v29  ;;  %1083 = vmatmul.f32.gmra.mxu1 %v2476_v29 }
 0x180   : > { %v665_v35 = vpop.f32.mrf.mxu2 }
 0x181   : > { %v666_v36 = vadd.f32 %v2410_v21, %v665_v35  ;;  %v2583_v35 = vperm.slane %v2558_v26, 1 }
 0x183   : > { %v2483_v37 = vmax.f32 %v666_v36, 0.0 }
 0x185   : > { %891 = vmatmul.f32.gmra.mxu2 %v2483_v37  ;;  %956 = vmatmul.f32.gmra.mxu3 %v2483_v37 }
 0x186   : > { %1021 = vmatmul.f32.gmra.mxu0 %v2483_v37  ;;  %1086 = vmatmul.f32.gmra.mxu1 %v2483_v37 }
 0x188   : > { %v668_v43 = vpop.f32.mrf.mxu2 }
 0x189   : > { %v669_v44 = vadd.f32 %v2410_v21, %v668_v43 }
 0x18b   : > { %v2490_v46 = vmax.f32 %v669_v44, 0.0 }
 0x18d   : > { %894 = vmatmul.f32.gmra.mxu2 %v2490_v46  ;;  %959 = vmatmul.f32.gmra.mxu3 %v2490_v46 }
 0x18e   : > { %1024 = vmatmul.f32.gmra.mxu0 %v2490_v46  ;;  %1089 = vmatmul.f32.gmra.mxu1 %v2490_v46 }
 0x190   : > { %v671_v49 = vpop.f32.mrf.mxu2 }
 0x191   : > { %v672_v52 = vadd.f32 %v2410_v21, %v671_v49 }
 0x193   : > { %v2497_v53 = vmax.f32 %v672_v52, 0.0 }
 0x195   : > { %897 = vmatmul.f32.gmra.mxu2 %v2497_v53  ;;  %962 = vmatmul.f32.gmra.mxu3 %v2497_v53 }
 0x196   : > { %1027 = vmatmul.f32.gmra.mxu0 %v2497_v53  ;;  %1092 = vmatmul.f32.gmra.mxu1 %v2497_v53 }
 0x198   : > { %v674_v57 = vpop.f32.mrf.mxu2 }
 0x199   : > { %v675_v58 = vadd.f32 %v2410_v21, %v674_v57 }
 0x19b   : > { %v2504_v59 = vmax.f32 %v675_v58, 0.0 }
 0x19d   : > { %900 = vmatmul.f32.gmra.mxu2 %v2504_v59  ;;  %965 = vmatmul.f32.gmra.mxu3 %v2504_v59 }
 0x19e   : > { %1030 = vmatmul.f32.gmra.mxu0 %v2504_v59  ;;  %1095 = vmatmul.f32.gmra.mxu1 %v2504_v59 }
 0x1a0   : > { %v677_v60 = vpop.f32.mrf.mxu2 }
 0x1a1   : > { %v678_v62 = vadd.f32 %v2410_v21, %v677_v60 }
 0x1a3   : > { %v2511_v63 = vmax.f32 %v678_v62, 0.0 }
 0x1a5   : > { %903 = vmatmul.f32.gmra.mxu2 %v2511_v63  ;;  %968 = vmatmul.f32.gmra.mxu3 %v2511_v63 }
 0x1a6   : > { %1033 = vmatmul.f32.gmra.mxu0 %v2511_v63  ;;  %1098 = vmatmul.f32.gmra.mxu1 %v2511_v63 }
 0x1a8   : > { %v680_v0 = vpop.f32.mrf.mxu2 }
 0x1a9   : > { %v681_v1 = vadd.f32 %v2410_v21, %v680_v0 }
 0x1ab   : > { %v2518_v2 = vmax.f32 %v681_v1, 0.0 }
 0x1ad   : > { %v992_v3 = vpop.f32.mrf.mxu0  ;;  %v1057_v5 = vpop.f32.mrf.mxu1  ;;  %906 = vmatmul.f32.gmra.mxu2 %v2518_v2  ;;  %971 = vmatmul.f32.gmra.mxu3 %v2518_v2 }
 0x1ae   : > { %1036 = vmatmul.f32.gmra.mxu0 %v2518_v2  ;;  %1101 = vmatmul.f32.gmra.mxu1 %v2518_v2  ;;  %v1058_v39 = vadd.f32 %v1057_v5, %v2572_v28 }
 0x1b0   : > { %v1368_v55 = vmax.f32 %v1058_v39, 0.0 }
 0x1b2   : > { %v2524_v6 = vpop.f32.mrf.mxu2  ;;  %v2526_v7 = vpop.f32.mrf.mxu3 }
 0x1b3   : > { %v863_v48 = vadd.f32 %v2524_v6, %v2580_v34  ;;  %v928_v49 = vadd.f32 %v2526_v7, %v2583_v35 }
 0x1b5   : > { %v995_v8 = vpop.f32.mrf.mxu0  ;;  %v1060_v9 = vpop.f32.mrf.mxu1  ;;  %1121 = vmatmul.f32.vlgmr.msra.gmra.mxu2 %v2413_v23  ;;  %1186 = vmatmul.f32.vlgmr.msra.gmra.mxu3 %v2413_v23  ;;  %v1366_v5 = vmax.f32 %v928_v49, 0.0 }
 0x1b6   : > { %1251 = vmatmul.f32.vlgmr.msra.gmra.mxu0 %v2413_v23  ;;  %1316 = vmatmul.f32.vlgmr.msra.gmra.mxu1 %v2413_v23  ;;  %v1061_v36 = vadd.f32 %v1060_v9, %v2572_v28 }
 0x1b8   : > { %v1376_v51 = vmax.f32 %v1061_v36, 0.0 }
 0x1ba   : > { %v865_v21 = vpop.f32.mrf.mxu2  ;;  %v930_v10 = vpop.f32.mrf.mxu3 }
 0x1bb   : > { %v866_v40 = vadd.f32 %v865_v21, %v2580_v34  ;;  %v931_v41 = vadd.f32 %v930_v10, %v2583_v35  ;;  %v1557_v10 = vmax.f32 %v1368_v55, %v1376_v51 }
 0x1bd   : > { %v998_v12 = vpop.f32.mrf.mxu0  ;;  %v1063_v13 = vpop.f32.mrf.mxu1  ;;  %1124 = vmatmul.f32.gmra.mxu2 %v2420_v31  ;;  %1189 = vmatmul.f32.gmra.mxu3 %v2420_v31  ;;  %v1373_v57 = vmax.f32 %v866_v40, 0.0 }
 0x1be   : > { %1254 = vmatmul.f32.gmra.mxu0 %v2420_v31  ;;  %1319 = vmatmul.f32.gmra.mxu1 %v2420_v31  ;;  %v1064_v52 = vadd.f32 %v1063_v13, %v2572_v28 }
 0x1c2   : > { %v868_v14 = vpop.f32.mrf.mxu2  ;;  %v933_v15 = vpop.f32.mrf.mxu3 }
 0x1c3   : > { %v869_v54 = vadd.f32 %v868_v14, %v2580_v34  ;;  %v934_v58 = vadd.f32 %v933_v15, %v2583_v35 }
 0x1c5   : > { %v1001_v16 = vpop.f32.mrf.mxu0  ;;  %v1066_v17 = vpop.f32.mrf.mxu1  ;;  %1127 = vmatmul.f32.gmra.mxu2 %v2427_v38  ;;  %1192 = vmatmul.f32.gmra.mxu3 %v2427_v38  ;;  %v1381_v13 = vmax.f32 %v869_v54, 0.0  ;;  %v1382_v15 = vmax.f32 %v934_v58, 0.0 }
 0x1c6   : > { %1257 = vmatmul.f32.gmra.mxu0 %v2427_v38  ;;  %1322 = vmatmul.f32.gmra.mxu1 %v2427_v38  ;;  %v1067_v0 = vadd.f32 %v1066_v17, %v2572_v28 }
 0x1ca   : > { %v871_v23 = vpop.f32.mrf.mxu2  ;;  %v936_v18 = vpop.f32.mrf.mxu3 }
 0x1cb   : > { %v872_v1 = vadd.f32 %v871_v23, %v2580_v34  ;;  %v937_v6 = vadd.f32 %v936_v18, %v2583_v35 }
 0x1cd   : > { %v1004_v19 = vpop.f32.mrf.mxu0  ;;  %v2540_v25 = vpop.f32.mrf.mxu1  ;;  %1130 = vmatmul.f32.gmra.mxu2 %v2434_v45  ;;  %1195 = vmatmul.f32.gmra.mxu3 %v2434_v45 }
 0x1ce   : > { %1260 = vmatmul.f32.gmra.mxu0 %v2434_v45  ;;  %1325 = vmatmul.f32.gmra.mxu1 %v2434_v45  ;;  %v1070_v17 = vadd.f32 %v2540_v25, %v2572_v28 }
 0x1d0   : > { %v1400_v51 = vmax.f32 %v1070_v17, 0.0 }
 0x1d2   : > { %v2546_v31 = vpop.f32.mrf.mxu2  ;;  %v2548_v22 = vpop.f32.mrf.mxu3 }
 0x1d3   : > { %v875_v39 = vadd.f32 %v2546_v31, %v2580_v34  ;;  %v940_v25 = vadd.f32 %v2548_v22, %v2583_v35 }
 0x1d5   : > { %1133 = vmatmul.f32.gmra.mxu2 %v2441_v56  ;;  %1198 = vmatmul.f32.gmra.mxu3 %v2441_v56  ;;  %v2554_v38 = vpop.f32.mrf.mxu0  ;;  %v2556_v24 = vpop.f32.mrf.mxu1  ;;  %v1397_v58 = vmax.f32 %v875_v39, 0.0 }
 0x1d6   : > { %1263 = vmatmul.f32.gmra.mxu0 %v2441_v56  ;;  %1328 = vmatmul.f32.gmra.mxu1 %v2441_v56  ;;  %v2569_v56 = vperm.slane %v2558_v26, 2 }
 0x1d8   : > { %v993_v33 = vadd.f32 %v992_v3, %v2569_v56  ;;  %v999_v42 = vadd.f32 %v998_v12, %v2569_v56  ;;  %v1002_v60 = vadd.f32 %v1001_v16, %v2569_v56  ;;  %v1365_v3 = vmax.f32 %v863_v48, 0.0 }
 0x1d9   : > { %v1005_v7 = vadd.f32 %v1004_v19, %v2569_v56  ;;  %v1384_v12 = vmax.f32 %v1064_v52, 0.0  ;;  %v1389_v19 = vmax.f32 %v872_v1, 0.0 }
 0x1da   : > { %v2560_v27 = vpop.f32.mrf.mxu2  ;;  %v2562_v45 = vpop.f32.mrf.mxu3  ;;  %v1367_v47 = vmax.f32 %v993_v33, 0.0  ;;  %v1383_v62 = vmax.f32 %v999_v42, 0.0  ;;  %v1494_v14 = vmax.f32 %v1365_v3, %v1373_v57  ;;  %v1391_v16 = vmax.f32 %v1002_v60, 0.0 }
 0x1db   : > { %v1392_v33 = vmax.f32 %v1067_v0, 0.0  ;;  %v1399_v36 = vmax.f32 %v1005_v7, 0.0  ;;  %v1558_v40 = vmax.f32 %v1557_v10, %v1384_v12  ;;  %v1008_v42 = vadd.f32 %v2554_v38, %v2569_v56 }
 0x1dc   : > { %v1398_v38 = vmax.f32 %v940_v25, 0.0 }
 0x1dd   : > { %1136 = vmatmul.f32.gmra.mxu2 %v2448_v61  ;;  %1201 = vmatmul.f32.gmra.mxu3 %v2448_v61  ;;  %v2574_v30 = vpop.f32.mrf.mxu0  ;;  %v2576_v32 = vpop.f32.mrf.mxu1  ;;  %v1559_v52 = vmax.f32 %v1558_v40, %v1392_v33 }
 0x1de   : > { %1266 = vmatmul.f32.gmra.mxu0 %v2448_v61  ;;  %1331 = vmatmul.f32.gmra.mxu1 %v2448_v61  ;;  %v996_v61 = vadd.f32 %v995_v8, %v2569_v56  ;;  %v1011_v31 = vadd.f32 %v2574_v30, %v2569_v56  ;;  %v1076_v22 = vadd.f32 %v2576_v32, %v2572_v28 }
 0x1df   : > { %v1560_v3 = vmax.f32 %v1559_v52, %v1400_v51  ;;  %v943_v30 = vadd.f32 %v2562_v45, %v2583_v35 }
 0x1e0   : > { %v1375_v50 = vmax.f32 %v996_v61, 0.0  ;;  %v1390_v61 = vmax.f32 %v937_v6, 0.0  ;;  %v1415_v32 = vmax.f32 %v1011_v31, 0.0  ;;  %v1416_v6 = vmax.f32 %v1076_v22, 0.0 }
 0x1e2   : > { %v2593_v43 = vpop.f32.mrf.mxu2  ;;  %v2595_v44 = vpop.f32.mrf.mxu3  ;;  %v1536_v21 = vmax.f32 %v1367_v47, %v1375_v50  ;;  %v1073_v47 = vadd.f32 %v2556_v24, %v2572_v28  ;;  %v1407_v24 = vmax.f32 %v1008_v42, 0.0 }
 0x1e3   : > { %v946_v45 = vadd.f32 %v2595_v44, %v2583_v35 }
 0x1e4   : > { %v1537_v18 = vmax.f32 %v1536_v21, %v1383_v62  ;;  %v1408_v62 = vmax.f32 %v1073_v47, 0.0 }
 0x1e5   : > { %1139 = vmatmul.f32.gmra.mxu2 %v2455_v4  ;;  %1204 = vmatmul.f32.gmra.mxu3 %v2455_v4  ;;  %v1013_v8 = vpop.f32.mrf.mxu0  ;;  %v1078_v9 = vpop.f32.mrf.mxu1  ;;  %v1414_v39 = vmax.f32 %v946_v45, 0.0 }
 0x1e6   : > { %1269 = vmatmul.f32.gmra.mxu0 %v2455_v4  ;;  %1334 = vmatmul.f32.gmra.mxu1 %v2455_v4  ;;  %v1374_v4 = vmax.f32 %v931_v41, 0.0  ;;  %v1495_v41 = vmax.f32 %v1494_v14, %v1381_v13  ;;  %v1014_v0 = vadd.f32 %v1013_v8, %v2569_v56  ;;  %v1079_v1 = vadd.f32 %v1078_v9, %v2572_v28 }
 0x1e7   : > { %v1561_v12 = vmax.f32 %v1560_v3, %v1408_v62 }
 0x1e8   : > { %v1515_v23 = vmax.f32 %v1366_v5, %v1374_v4  ;;  %v1496_v54 = vmax.f32 %v1495_v41, %v1389_v19  ;;  %v878_v5 = vadd.f32 %v2560_v27, %v2580_v34  ;;  %v881_v27 = vadd.f32 %v2593_v43, %v2580_v34 }
 0x1e9   : > { %v1423_v13 = vmax.f32 %v1014_v0, 0.0  ;;  %v1424_v14 = vmax.f32 %v1079_v1, 0.0  ;;  %v1562_v19 = vmax.f32 %v1561_v12, %v1416_v6 }
 0x1ea   : > { %v883_v48 = vpop.f32.mrf.mxu2  ;;  %v948_v49 = vpop.f32.mrf.mxu3  ;;  %v1516_v50 = vmax.f32 %v1515_v23, %v1382_v15  ;;  %v1497_v8 = vmax.f32 %v1496_v54, %v1397_v58  ;;  %v1405_v17 = vmax.f32 %v878_v5, 0.0  ;;  %v1406_v23 = vmax.f32 %v943_v30, 0.0 }
 0x1eb   : > { %v1413_v43 = vmax.f32 %v881_v27, 0.0  ;;  %v1563_v47 = vmax.f32 %v1562_v19, %v1424_v14 }
 0x1ec   : > { %v1517_v55 = vmax.f32 %v1516_v50, %v1390_v61 }
 0x1ed   : > { %1142 = vmatmul.f32.gmra.mxu2 %v2462_v11  ;;  %1207 = vmatmul.f32.gmra.mxu3 %v2462_v11 }
 0x1ee   : > { %1272 = vmatmul.f32.gmra.mxu0 %v2462_v11  ;;  %1337 = vmatmul.f32.gmra.mxu1 %v2462_v11  ;;  %v1538_v11 = vmax.f32 %v1537_v18, %v1391_v16  ;;  %v1518_v9 = vmax.f32 %v1517_v55, %v1398_v38  ;;  %v884_v18 = vadd.f32 %v883_v48, %v2580_v34 }
 0x1f0   : > { %v1539_v57 = vmax.f32 %v1538_v11, %v1399_v36  ;;  %v1498_v11 = vmax.f32 %v1497_v8, %v1405_v17  ;;  %v1421_v51 = vmax.f32 %v884_v18, 0.0 }
 0x1f2   : > { %v1540_v10 = vmax.f32 %v1539_v57, %v1407_v24  ;;  %v1499_v57 = vmax.f32 %v1498_v11, %v1413_v43 }
 0x1f3   : > { %v1016_v60 = vpop.f32.mrf.mxu0  ;;  %v1081_v4 = vpop.f32.mrf.mxu1 }
 0x1f4   : > { %v1017_v7 = vadd.f32 %v1016_v60, %v2569_v56  ;;  %v1082_v21 = vadd.f32 %v1081_v4, %v2572_v28  ;;  %v1541_v33 = vmax.f32 %v1540_v10, %v1415_v32  ;;  %v1500_v1 = vmax.f32 %v1499_v57, %v1421_v51 }
 0x1f5   : > { %1145 = vmatmul.f32.gmra.mxu2 %v2469_v20  ;;  %1210 = vmatmul.f32.gmra.mxu3 %v2469_v20 }
 0x1f6   : > { %1275 = vmatmul.f32.gmra.mxu0 %v2469_v20  ;;  %1340 = vmatmul.f32.gmra.mxu1 %v2469_v20  ;;  %v949_v20 = vadd.f32 %v948_v49, %v2583_v35  ;;  %v1431_v61 = vmax.f32 %v1017_v7, 0.0  ;;  %v1432_v36 = vmax.f32 %v1082_v21, 0.0  ;;  %v1542_v42 = vmax.f32 %v1541_v33, %v1423_v13 }
 0x1f7   : > { %v1519_v49 = vmax.f32 %v1518_v9, %v1406_v23 }
 0x1f8   : > { %v886_v15 = vpop.f32.mrf.mxu2  ;;  %v951_v16 = vpop.f32.mrf.mxu3  ;;  %v1422_v52 = vmax.f32 %v949_v20, 0.0  ;;  %v1543_v54 = vmax.f32 %v1542_v42, %v1431_v61  ;;  %v1564_v31 = vmax.f32 %v1563_v47, %v1432_v36 }
 0x1f9   : > { %v887_v44 = vadd.f32 %v886_v15, %v2580_v34  ;;  %v952_v25 = vadd.f32 %v951_v16, %v2583_v35  ;;  %v1520_v58 = vmax.f32 %v1519_v49, %v1414_v39 }
 0x1fb   : > { %v1019_v40 = vpop.f32.mrf.mxu0  ;;  %v1084_v41 = vpop.f32.mrf.mxu1  ;;  %v1429_v38 = vmax.f32 %v887_v44, 0.0  ;;  %v1430_v60 = vmax.f32 %v952_v25, 0.0  ;;  %v1521_v3 = vmax.f32 %v1520_v58, %v1422_v52 }
 0x1fc   : > { %v1020_v50 = vadd.f32 %v1019_v40, %v2569_v56  ;;  %v1085_v48 = vadd.f32 %v1084_v41, %v2572_v28 }
 0x1fd   : > { %1148 = vmatmul.f32.gmra.mxu2 %v2476_v29  ;;  %1213 = vmatmul.f32.gmra.mxu3 %v2476_v29  ;;  %v1501_v32 = vmax.f32 %v1500_v1, %v1429_v38  ;;  %v1522_v6 = vmax.f32 %v1521_v3, %v1430_v60 }
 0x1fe   : > { %v1439_v22 = vmax.f32 %v1020_v50, 0.0  ;;  %v1440_v55 = vmax.f32 %v1085_v48, 0.0  ;;  %1278 = vmatmul.f32.gmra.mxu0 %v2476_v29  ;;  %1343 = vmatmul.f32.gmra.mxu1 %v2476_v29 }
 0x200   : > { %v1544_v4 = vmax.f32 %v1543_v54, %v1439_v22  ;;  %v1565_v24 = vmax.f32 %v1564_v31, %v1440_v55  ;;  %v889_v62 = vpop.f32.mrf.mxu2  ;;  %v954_v0 = vpop.f32.mrf.mxu3 }
 0x201   : > { %v890_v5 = vadd.f32 %v889_v62, %v2580_v34  ;;  %v955_v30 = vadd.f32 %v954_v0, %v2583_v35 }
 0x203   : > { %v1437_v7 = vmax.f32 %v890_v5, 0.0  ;;  %v1438_v21 = vmax.f32 %v955_v30, 0.0  ;;  %v1022_v8 = vpop.f32.mrf.mxu0  ;;  %v1087_v29 = vpop.f32.mrf.mxu1 }
 0x204   : > { %v1023_v9 = vadd.f32 %v1022_v8, %v2569_v56  ;;  %v1088_v27 = vadd.f32 %v1087_v29, %v2572_v28 }
 0x205   : > { %v1502_v45 = vmax.f32 %v1501_v32, %v1437_v7  ;;  %v1523_v10 = vmax.f32 %v1522_v6, %v1438_v21  ;;  %1151 = vmatmul.f32.gmra.mxu2 %v2483_v37  ;;  %1216 = vmatmul.f32.gmra.mxu3 %v2483_v37 }
 0x206   : > { %v1447_v12 = vmax.f32 %v1023_v9, 0.0  ;;  %v1448_v13 = vmax.f32 %v1088_v27, 0.0  ;;  %1281 = vmatmul.f32.gmra.mxu0 %v2483_v37  ;;  %1346 = vmatmul.f32.gmra.mxu1 %v2483_v37 }
 0x208   : > { %v1545_v14 = vmax.f32 %v1544_v4, %v1447_v12  ;;  %v1566_v15 = vmax.f32 %v1565_v24, %v1448_v13  ;;  %v892_v16 = vpop.f32.mrf.mxu2  ;;  %v957_v17 = vpop.f32.mrf.mxu3 }
 0x209   : > { %v893_v23 = vadd.f32 %v892_v16, %v2580_v34  ;;  %v958_v18 = vadd.f32 %v957_v17, %v2583_v35 }
 0x20b   : > { %v1445_v20 = vmax.f32 %v893_v23, 0.0  ;;  %v1446_v33 = vmax.f32 %v958_v18, 0.0  ;;  %v1025_v19 = vpop.f32.mrf.mxu0  ;;  %v1090_v61 = vpop.f32.mrf.mxu1 }
 0x20c   : > { %v1026_v36 = vadd.f32 %v1025_v19, %v2569_v56  ;;  %v1091_v43 = vadd.f32 %v1090_v61, %v2572_v28 }
 0x20d   : > { %v1503_v39 = vmax.f32 %v1502_v45, %v1445_v20  ;;  %v1524_v44 = vmax.f32 %v1523_v10, %v1446_v33  ;;  %1154 = vmatmul.f32.gmra.mxu2 %v2490_v46  ;;  %1219 = vmatmul.f32.gmra.mxu3 %v2490_v46 }
 0x20e   : > { %v1455_v37 = vmax.f32 %v1026_v36, 0.0  ;;  %v1456_v25 = vmax.f32 %v1091_v43, 0.0  ;;  %1284 = vmatmul.f32.gmra.mxu0 %v2490_v46  ;;  %1349 = vmatmul.f32.gmra.mxu1 %v2490_v46 }
 0x210   : > { %v1546_v40 = vmax.f32 %v1545_v14, %v1455_v37  ;;  %v1567_v41 = vmax.f32 %v1566_v15, %v1456_v25  ;;  %v895_v42 = vpop.f32.mrf.mxu2  ;;  %v960_v47 = vpop.f32.mrf.mxu3 }
 0x211   : > { %v896_v50 = vadd.f32 %v895_v42, %v2580_v34  ;;  %v961_v48 = vadd.f32 %v960_v47, %v2583_v35 }
 0x213   : > { %v1453_v11 = vmax.f32 %v896_v50, 0.0  ;;  %v1454_v49 = vmax.f32 %v961_v48, 0.0  ;;  %v1028_v51 = vpop.f32.mrf.mxu0  ;;  %v1093_v52 = vpop.f32.mrf.mxu1 }
 0x214   : > { %v1029_v54 = vadd.f32 %v1028_v51, %v2569_v56  ;;  %v1094_v31 = vadd.f32 %v1093_v52, %v2572_v28 }
 0x215   : > { %v1504_v22 = vmax.f32 %v1503_v39, %v1453_v11  ;;  %v1525_v55 = vmax.f32 %v1524_v44, %v1454_v49  ;;  %1157 = vmatmul.f32.gmra.mxu2 %v2497_v53  ;;  %1222 = vmatmul.f32.gmra.mxu3 %v2497_v53 }
 0x216   : > { %v1463_v46 = vmax.f32 %v1029_v54, 0.0  ;;  %v1464_v57 = vmax.f32 %v1094_v31, 0.0  ;;  %1287 = vmatmul.f32.gmra.mxu0 %v2497_v53  ;;  %1352 = vmatmul.f32.gmra.mxu1 %v2497_v53 }
 0x218   : > { %v1547_v58 = vmax.f32 %v1546_v40, %v1463_v46  ;;  %v1568_v38 = vmax.f32 %v1567_v41, %v1464_v57  ;;  %v898_v60 = vpop.f32.mrf.mxu2  ;;  %v963_v4 = vpop.f32.mrf.mxu3  ;;  %v2706_v46 = vperm.slane %v2558_v26, 6 }
 0x219   : > { %v899_v24 = vadd.f32 %v898_v60, %v2580_v34  ;;  %v964_v62 = vadd.f32 %v963_v4, %v2583_v35 }
 0x21b   : > { %v1461_v0 = vmax.f32 %v899_v24, 0.0  ;;  %v1462_v1 = vmax.f32 %v964_v62, 0.0  ;;  %v1031_v3 = vpop.f32.mrf.mxu0  ;;  %v1096_v5 = vpop.f32.mrf.mxu1 }
 0x21c   : > { %v1032_v30 = vadd.f32 %v1031_v3, %v2569_v56  ;;  %v1097_v32 = vadd.f32 %v1096_v5, %v2572_v28 }
 0x21d   : > { %v1505_v6 = vmax.f32 %v1504_v22, %v1461_v0  ;;  %v1526_v7 = vmax.f32 %v1525_v55, %v1462_v1  ;;  %1160 = vmatmul.f32.gmra.mxu2 %v2504_v59  ;;  %1225 = vmatmul.f32.gmra.mxu3 %v2504_v59 }
 0x21e   : > { %v1471_v53 = vmax.f32 %v1032_v30, 0.0  ;;  %v1472_v21 = vmax.f32 %v1097_v32, 0.0  ;;  %1290 = vmatmul.f32.gmra.mxu0 %v2504_v59  ;;  %1355 = vmatmul.f32.gmra.mxu1 %v2504_v59 }
 0x220   : > { %v1548_v8 = vmax.f32 %v1547_v58, %v1471_v53  ;;  %v1569_v29 = vmax.f32 %v1568_v38, %v1472_v21  ;;  %v901_v9 = vpop.f32.mrf.mxu2  ;;  %v966_v27 = vpop.f32.mrf.mxu3  ;;  %v2709_v58 = vperm.slane %v2558_v26, 7  ;;  %v2714_v21 = vperm.slane %v2558_v26, 4 }
 0x221   : > { %v902_v45 = vadd.f32 %v901_v9, %v2580_v34  ;;  %v967_v10 = vadd.f32 %v966_v27, %v2583_v35 }
 0x223   : > { %v1469_v12 = vmax.f32 %v902_v45, 0.0  ;;  %v1470_v13 = vmax.f32 %v967_v10, 0.0  ;;  %v1034_v14 = vpop.f32.mrf.mxu0  ;;  %v1099_v15 = vpop.f32.mrf.mxu1 }
 0x224   : > { %v1035_v16 = vadd.f32 %v1034_v14, %v2569_v56  ;;  %v1100_v17 = vadd.f32 %v1099_v15, %v2572_v28 }
 0x225   : > { %v1506_v23 = vmax.f32 %v1505_v6, %v1469_v12  ;;  %v1527_v18 = vmax.f32 %v1526_v7, %v1470_v13  ;;  %1163 = vmatmul.f32.gmra.mxu2 %v2511_v63  ;;  %1228 = vmatmul.f32.gmra.mxu3 %v2511_v63 }
 0x226   : > { %v1479_v59 = vmax.f32 %v1035_v16, 0.0  ;;  %v1480_v20 = vmax.f32 %v1100_v17, 0.0  ;;  %1293 = vmatmul.f32.gmra.mxu0 %v2511_v63  ;;  %1358 = vmatmul.f32.gmra.mxu1 %v2511_v63 }
 0x228   : > { %v1549_v33 = vmax.f32 %v1548_v8, %v1479_v59  ;;  %v1570_v19 = vmax.f32 %v1569_v29, %v1480_v20  ;;  %v904_v61 = vpop.f32.mrf.mxu2  ;;  %v969_v36 = vpop.f32.mrf.mxu3  ;;  %v2717_v8 = vperm.slane %v2558_v26, 5 }
 0x229   : > { %v905_v43 = vadd.f32 %v904_v61, %v2580_v34  ;;  %v970_v39 = vadd.f32 %v969_v36, %v2583_v35 }
 0x22b   : > { %v1477_v44 = vmax.f32 %v905_v43, 0.0  ;;  %v1478_v37 = vmax.f32 %v970_v39, 0.0  ;;  %v1037_v25 = vpop.f32.mrf.mxu0  ;;  %v1102_v40 = vpop.f32.mrf.mxu1 }
 0x22c   : > { %v1038_v41 = vadd.f32 %v1037_v25, %v2569_v56  ;;  %v1103_v42 = vadd.f32 %v1102_v40, %v2572_v28 }
 0x22d   : > { %v1507_v47 = vmax.f32 %v1506_v23, %v1477_v44  ;;  %v1528_v50 = vmax.f32 %v1527_v18, %v1478_v37  ;;  %1166 = vmatmul.f32.gmra.mxu2 %v2518_v2  ;;  %1231 = vmatmul.f32.gmra.mxu3 %v2518_v2 }
 0x22e   : > { %v1487_v63 = vmax.f32 %v1038_v41, 0.0  ;;  %v1488_v48 = vmax.f32 %v1103_v42, 0.0  ;;  %1296 = vmatmul.f32.gmra.mxu0 %v2518_v2  ;;  %1361 = vmatmul.f32.gmra.mxu1 %v2518_v2 }
 0x230   : > { %v1550_v11 = vmax.f32 %v1549_v33, %v1487_v63  ;;  %v1571_v49 = vmax.f32 %v1570_v19, %v1488_v48  ;;  %v907_v51 = vpop.f32.mrf.mxu2  ;;  %v972_v52 = vpop.f32.mrf.mxu3 }
 0x231   : > { %v908_v56 = vadd.f32 %v907_v51, %v2580_v34  ;;  %v973_v28 = vadd.f32 %v972_v52, %v2583_v35 }
 0x232   : > { %v1551_v54 = vrot.slane %v1550_v11, 4  ;;  %v1572_v31 = vrot.slane %v1571_v49, 4 }
 0x233   : > { %v1485_v22 = vmax.f32 %v908_v56, 0.0  ;;  %v1486_v55 = vmax.f32 %v973_v28, 0.0  ;;  %v1252_v57 = vpop.f32.mrf.mxu0  ;;  %v1317_v2 = vpop.f32.mrf.mxu1 }
 0x234   : > { %v1552_v38 = vmax.f32 %v1550_v11, %v1551_v54  ;;  %v1573_v60 = vmax.f32 %v1571_v49, %v1572_v31  ;;  %v1253_v1 = vadd.f32 %v1252_v57, %v2706_v46  ;;  %v1318_v3 = vadd.f32 %v1317_v2, %v2709_v58 }
 0x235   : > { %v1508_v4 = vmax.f32 %v1507_v47, %v1485_v22  ;;  %v1529_v24 = vmax.f32 %v1528_v50, %v1486_v55 }
 0x236   : > { %v1553_v62 = vrot.slane %v1552_v38, 2  ;;  %v1574_v34 = vrot.slane %v1573_v60, 2  ;;  %v1371_v10 = vmax.f32 %v1253_v1, 0.0  ;;  %v1372_v12 = vmax.f32 %v1318_v3, 0.0 }
 0x237   : > { %v1509_v0 = vrot.slane %v1508_v4, 4  ;;  %v1530_v35 = vrot.slane %v1529_v24, 4 }
 0x238   : > { %v1554_v5 = vmax.f32 %v1552_v38, %v1553_v62  ;;  %v1575_v30 = vmax.f32 %v1573_v60, %v1574_v34  ;;  %v1122_v32 = vpop.f32.mrf.mxu2  ;;  %v1187_v6 = vpop.f32.mrf.mxu3 }
 0x239   : > { %v1510_v7 = vmax.f32 %v1508_v4, %v1509_v0  ;;  %v1531_v53 = vmax.f32 %v1529_v24, %v1530_v35  ;;  %v1123_v26 = vadd.f32 %v1122_v32, %v2714_v21  ;;  %v1188_v20 = vadd.f32 %v1187_v6, %v2717_v8 }
 0x23a   : > { %v1555_v29 = vrot.slane %v1554_v5, 1  ;;  %v1576_v9 = vrot.slane %v1575_v30, 1 }
 0x23b   : > { %v1511_v27 = vrot.slane %v1510_v7, 2  ;;  %v1532_v45 = vrot.slane %v1531_v53, 2  ;;  %v1255_v13 = vpop.f32.mrf.mxu0  ;;  %v1320_v14 = vpop.f32.mrf.mxu1  ;;  %v1369_v63 = vmax.f32 %v1123_v26, 0.0  ;;  %v1370_v48 = vmax.f32 %v1188_v20, 0.0 }
 0x23c   : > { %v1556_v15 = vmax.f32 %v1554_v5, %v1555_v29  ;;  %v1577_v16 = vmax.f32 %v1575_v30, %v1576_v9  ;;  %v1256_v17 = vadd.f32 %v1255_v13, %v2706_v46  ;;  %v1321_v23 = vadd.f32 %v1320_v14, %v2709_v58 }
 0x23d   : > { %v1512_v18 = vmax.f32 %v1510_v7, %v1511_v27  ;;  %v1533_v59 = vmax.f32 %v1531_v53, %v1532_v45 }
 0x23e   : > { %v1671_v33 = vrot.slane %v1556_v15, 6  ;;  %v1672_v19 = vrot.slane %v1577_v16, 5  ;;  %v1379_v61 = vmax.f32 %v1256_v17, 0.0  ;;  %v1380_v36 = vmax.f32 %v1321_v23, 0.0 }
 0x23f   : > { %v1513_v43 = vrot.slane %v1512_v18, 1  ;;  %v1534_v39 = vrot.slane %v1533_v59, 1 }
 0x240   : > { %v1680_v44 = vsel %vm1679_vm3, %v1671_v33, %v1672_v19  ;;  %v1620_v37 = vmax.f32 %v1371_v10, %v1379_v61  ;;  %v1641_v25 = vmax.f32 %v1372_v12, %v1380_v36  ;;  %v1125_v40 = vpop.f32.mrf.mxu2  ;;  %v1190_v41 = vpop.f32.mrf.mxu3 }
 0x241   : > { %v1535_v42 = vmax.f32 %v1533_v59, %v1534_v39  ;;  %v1126_v47 = vadd.f32 %v1125_v40, %v2714_v21  ;;  %v1191_v50 = vadd.f32 %v1190_v41, %v2717_v8  ;;  %v1514_v11 = vmax.f32 %v1512_v18, %v1513_v43 }
 0x243   : > { %v1670_v49 = vrot.slane %v1535_v42, 7  ;;  %v1377_v51 = vmax.f32 %v1126_v47, 0.0  ;;  %v1378_v52 = vmax.f32 %v1191_v50, 0.0  ;;  %v1258_v56 = vpop.f32.mrf.mxu0  ;;  %v1323_v28 = vpop.f32.mrf.mxu1 }
 0x244   : > { %v1259_v54 = vadd.f32 %v1258_v56, %v2706_v46  ;;  %v1324_v31 = vadd.f32 %v1323_v28, %v2709_v58 }
 0x245   : > { %v1678_v22 = vsel %vm1677_vm4, %v1514_v11, %v1670_v49  ;;  %v1578_v55 = vmax.f32 %v1369_v63, %v1377_v51  ;;  %v1599_v57 = vmax.f32 %v1370_v48, %v1378_v52 }
 0x246   : > { %v2728_v2 = vsel %vm1681_vm5, %v1678_v22, %v1680_v44  ;;  %v1387_v38 = vmax.f32 %v1259_v54, 0.0  ;;  %v1388_v60 = vmax.f32 %v1324_v31, 0.0 }
 0x248   : > { %v1621_v4 = vmax.f32 %v1620_v37, %v1387_v38  ;;  %v1642_v24 = vmax.f32 %v1641_v25, %v1388_v60  ;;  %v1128_v62 = vpop.f32.mrf.mxu2  ;;  %v1193_v34 = vpop.f32.mrf.mxu3 }
 0x249   : > { %v1129_v0 = vadd.f32 %v1128_v62, %v2714_v21  ;;  %v1194_v35 = vadd.f32 %v1193_v34, %v2717_v8 }
 0x24b   : > { %v1385_v1 = vmax.f32 %v1129_v0, 0.0  ;;  %v1386_v3 = vmax.f32 %v1194_v35, 0.0  ;;  %v1261_v5 = vpop.f32.mrf.mxu0  ;;  %v1326_v30 = vpop.f32.mrf.mxu1 }
 0x24c   : > { %v1262_v32 = vadd.f32 %v1261_v5, %v2706_v46  ;;  %v1327_v6 = vadd.f32 %v1326_v30, %v2709_v58 }
 0x24d   : > { %v1579_v7 = vmax.f32 %v1578_v55, %v1385_v1  ;;  %v1600_v53 = vmax.f32 %v1599_v57, %v1386_v3 }
 0x24e   : > { %v1395_v29 = vmax.f32 %v1262_v32, 0.0  ;;  %v1396_v9 = vmax.f32 %v1327_v6, 0.0 }
 0x250   : > { %v1622_v27 = vmax.f32 %v1621_v4, %v1395_v29  ;;  %v1643_v45 = vmax.f32 %v1642_v24, %v1396_v9  ;;  %v1131_v10 = vpop.f32.mrf.mxu2  ;;  %v1196_v12 = vpop.f32.mrf.mxu3 }
 0x251   : > { %v1132_v13 = vadd.f32 %v1131_v10, %v2714_v21  ;;  %v1197_v14 = vadd.f32 %v1196_v12, %v2717_v8 }
 0x253   : > { %v1393_v15 = vmax.f32 %v1132_v13, 0.0  ;;  %v1394_v16 = vmax.f32 %v1197_v14, 0.0  ;;  %v1264_v17 = vpop.f32.mrf.mxu0  ;;  %v1329_v23 = vpop.f32.mrf.mxu1 }
 0x254   : > { %v1265_v18 = vadd.f32 %v1264_v17, %v2706_v46  ;;  %v1330_v59 = vadd.f32 %v1329_v23, %v2709_v58 }
 0x255   : > { %v1580_v26 = vmax.f32 %v1579_v7, %v1393_v15  ;;  %v1601_v20 = vmax.f32 %v1600_v53, %v1394_v16 }
 0x256   : > { %v1403_v33 = vmax.f32 %v1265_v18, 0.0  ;;  %v1404_v19 = vmax.f32 %v1330_v59, 0.0 }
 0x258   : > { %v1623_v61 = vmax.f32 %v1622_v27, %v1403_v33  ;;  %v1644_v36 = vmax.f32 %v1643_v45, %v1404_v19  ;;  %v1134_v43 = vpop.f32.mrf.mxu2  ;;  %v1199_v39 = vpop.f32.mrf.mxu3 }
 0x259   : > { %v1135_v44 = vadd.f32 %v1134_v43, %v2714_v21  ;;  %v1200_v37 = vadd.f32 %v1199_v39, %v2717_v8 }
 0x25b   : > { %v1401_v25 = vmax.f32 %v1135_v44, 0.0  ;;  %v1402_v40 = vmax.f32 %v1200_v37, 0.0  ;;  %v1267_v41 = vpop.f32.mrf.mxu0  ;;  %v1332_v42 = vpop.f32.mrf.mxu1 }
 0x25c   : > { %v1268_v30 = vadd.f32 %v1267_v41, %v2706_v46  ;;  %v1333_v32 = vadd.f32 %v1332_v42, %v2709_v58 }
 0x25d   : > { %v1581_v47 = vmax.f32 %v1580_v26, %v1401_v25  ;;  %v1602_v50 = vmax.f32 %v1601_v20, %v1402_v40 }
 0x25e   : > { %v1411_v45 = vmax.f32 %v1268_v30, 0.0  ;;  %v1412_v10 = vmax.f32 %v1333_v32, 0.0 }
 0x260   : > { %v1137_v63 = vpop.f32.mrf.mxu2  ;;  %v1202_v48 = vpop.f32.mrf.mxu3  ;;  %v1624_v20 = vmax.f32 %v1623_v61, %v1411_v45  ;;  %v1645_v33 = vmax.f32 %v1644_v36, %v1412_v10 }
 0x261   : > { %v1138_v6 = vadd.f32 %v1137_v63, %v2714_v21  ;;  %v1203_v7 = vadd.f32 %v1202_v48, %v2717_v8 }
 0x263   : > { %v1270_v11 = vpop.f32.mrf.mxu0  ;;  %v1335_v49 = vpop.f32.mrf.mxu1  ;;  %v1409_v12 = vmax.f32 %v1138_v6, 0.0  ;;  %v1410_v13 = vmax.f32 %v1203_v7, 0.0 }
 0x264   : > { %v1271_v9 = vadd.f32 %v1270_v11, %v2706_v46  ;;  %v1336_v27 = vadd.f32 %v1335_v49, %v2709_v58 }
 0x265   : > { %v1582_v39 = vmax.f32 %v1581_v47, %v1409_v12  ;;  %v1603_v44 = vmax.f32 %v1602_v50, %v1410_v13 }
 0x266   : > { %v1419_v59 = vmax.f32 %v1271_v9, 0.0  ;;  %v1420_v26 = vmax.f32 %v1336_v27, 0.0 }
 0x268   : > { %v1140_v51 = vpop.f32.mrf.mxu2  ;;  %v1205_v52 = vpop.f32.mrf.mxu3  ;;  %v1625_v61 = vmax.f32 %v1624_v20, %v1419_v59  ;;  %v1646_v36 = vmax.f32 %v1645_v33, %v1420_v26 }
 0x269   : > { %v1141_v14 = vadd.f32 %v1140_v51, %v2714_v21  ;;  %v1206_v15 = vadd.f32 %v1205_v52, %v2717_v8 }
 0x26b   : > { %v1273_v56 = vpop.f32.mrf.mxu0  ;;  %v1338_v28 = vpop.f32.mrf.mxu1  ;;  %v1417_v37 = vmax.f32 %v1141_v14, 0.0  ;;  %v1418_v25 = vmax.f32 %v1206_v15, 0.0 }
 0x26c   : > { %v1274_v23 = vadd.f32 %v1273_v56, %v2706_v46  ;;  %v1339_v18 = vadd.f32 %v1338_v28, %v2709_v58 }
 0x26d   : > { %v1583_v28 = vmax.f32 %v1582_v39, %v1417_v37 }
 0x26e   : > { %v1427_v40 = vmax.f32 %v1274_v23, 0.0  ;;  %v1428_v41 = vmax.f32 %v1339_v18, 0.0 }
 0x270   : > { %v1143_v54 = vpop.f32.mrf.mxu2  ;;  %v1208_v31 = vpop.f32.mrf.mxu3  ;;  %v1626_v32 = vmax.f32 %v1625_v61, %v1427_v40  ;;  %v1647_v6 = vmax.f32 %v1646_v36, %v1428_v41 }
 0x271   : > { %v1144_v19 = vadd.f32 %v1143_v54, %v2714_v21  ;;  %v1209_v43 = vadd.f32 %v1208_v31, %v2717_v8  ;;  %v1604_v54 = vmax.f32 %v1603_v44, %v1418_v25 }
 0x273   : > { %v1276_v22 = vpop.f32.mrf.mxu0  ;;  %v1341_v55 = vpop.f32.mrf.mxu1  ;;  %v1425_v47 = vmax.f32 %v1144_v19, 0.0  ;;  %v1426_v50 = vmax.f32 %v1209_v43, 0.0 }
 0x274   : > { %v1277_v42 = vadd.f32 %v1276_v22, %v2706_v46  ;;  %v1342_v63 = vadd.f32 %v1341_v55, %v2709_v58 }
 0x275   : > { %v1584_v45 = vmax.f32 %v1583_v28, %v1425_v47 }
 0x276   : > { %v1435_v7 = vmax.f32 %v1277_v42, 0.0 }
 0x278   : > { %v1146_v57 = vpop.f32.mrf.mxu2  ;;  %v1211_v38 = vpop.f32.mrf.mxu3  ;;  %v1627_v15 = vmax.f32 %v1626_v32, %v1435_v7 }
 0x279   : > { %v1147_v49 = vadd.f32 %v1146_v57, %v2714_v21  ;;  %v1212_v51 = vadd.f32 %v1211_v38, %v2717_v8  ;;  %v1436_v57 = vmax.f32 %v1342_v63, 0.0 }
 0x27b   : > { %v1279_v60 = vpop.f32.mrf.mxu0  ;;  %v1344_v4 = vpop.f32.mrf.mxu1  ;;  %v1433_v9 = vmax.f32 %v1147_v49, 0.0  ;;  %v1434_v38 = vmax.f32 %v1212_v51, 0.0  ;;  %v1648_v23 = vmax.f32 %v1647_v6, %v1436_v57 }
 0x27c   : > { %v1280_v52 = vadd.f32 %v1279_v60, %v2706_v46  ;;  %v1345_v56 = vadd.f32 %v1344_v4, %v2709_v58  ;;  %v1605_v4 = vmax.f32 %v1604_v54, %v1426_v50 }
 0x27d   : > { %v1585_v26 = vmax.f32 %v1584_v45, %v1433_v9 }
 0x27e   : > { %v1443_v10 = vmax.f32 %v1280_v52, 0.0  ;;  %v1444_v12 = vmax.f32 %v1345_v56, 0.0  ;;  %v1606_v20 = vmax.f32 %v1605_v4, %v1434_v38 }
 0x280   : > { %v1149_v24 = vpop.f32.mrf.mxu2  ;;  %v1214_v62 = vpop.f32.mrf.mxu3  ;;  %v1628_v43 = vmax.f32 %v1627_v15, %v1443_v10  ;;  %v1649_v39 = vmax.f32 %v1648_v23, %v1444_v12 }
 0x281   : > { %v1150_v31 = vadd.f32 %v1149_v24, %v2714_v21  ;;  %v1215_v22 = vadd.f32 %v1214_v62, %v2717_v8 }
 0x283   : > { %v1282_v34 = vpop.f32.mrf.mxu0  ;;  %v1347_v0 = vpop.f32.mrf.mxu1  ;;  %v1441_v13 = vmax.f32 %v1150_v31, 0.0  ;;  %v1442_v24 = vmax.f32 %v1215_v22, 0.0 }
 0x284   : > { %v1283_v27 = vadd.f32 %v1282_v34, %v2706_v46  ;;  %v1348_v60 = vadd.f32 %v1347_v0, %v2709_v58 }
 0x285   : > { %v1586_v44 = vmax.f32 %v1585_v26, %v1441_v13  ;;  %v1607_v37 = vmax.f32 %v1606_v20, %v1442_v24 }
 0x286   : > { %v1451_v33 = vmax.f32 %v1283_v27, 0.0  ;;  %v1452_v19 = vmax.f32 %v1348_v60, 0.0 }
 0x288   : > { %v2740_v35 = vpop.f32.mrf.mxu2  ;;  %v2742_v1 = vpop.f32.mrf.mxu3  ;;  %v1629_v36 = vmax.f32 %v1628_v43, %v1451_v33  ;;  %v1650_v49 = vmax.f32 %v1649_v39, %v1452_v19 }
 0x289   : > { %v1153_v62 = vadd.f32 %v2740_v35, %v2714_v21  ;;  %v1218_v14 = vadd.f32 %v2742_v1, %v2717_v8 }
 0x28b   : > { %v2744_v3 = vpop.f32.mrf.mxu0  ;;  %v2746_v5 = vpop.f32.mrf.mxu1  ;;  %v1449_v25 = vmax.f32 %v1153_v62, 0.0  ;;  %v1450_v40 = vmax.f32 %v1218_v14, 0.0 }
 0x28c   : > { %v1286_v18 = vadd.f32 %v2744_v3, %v2706_v46  ;;  %v1351_v34 = vadd.f32 %v2746_v5, %v2709_v58 }
 0x28d   : > { %v1587_v56 = vmax.f32 %v1586_v44, %v1449_v25  ;;  %v1608_v28 = vmax.f32 %v1607_v37, %v1450_v40 }
 0x28e   : > { %v1459_v42 = vmax.f32 %v1286_v18, 0.0  ;;  %v1460_v5 = vmax.f32 %v1351_v34, 0.0 }
 0x290   : > { %v2752_v53 = vpop.f32.mrf.mxu2  ;;  %v2754_v29 = vpop.f32.mrf.mxu3  ;;  %v1630_v22 = vmax.f32 %v1629_v36, %v1459_v42 }
 0x291   : > { %v1156_v51 = vadd.f32 %v2752_v53, %v2714_v21 }
 0x293   : > { %v1288_v16 = vpop.f32.mrf.mxu0  ;;  %v1353_v17 = vpop.f32.mrf.mxu1  ;;  %v1457_v6 = vmax.f32 %v1156_v51, 0.0 }
 0x294   : > { %v1289_v35 = vadd.f32 %v1288_v16, %v2706_v46  ;;  %v1354_v1 = vadd.f32 %v1353_v17, %v2709_v58  ;;  %v1221_v16 = vadd.f32 %v2754_v29, %v2717_v8 }
 0x295   : > { %v1588_v23 = vmax.f32 %v1587_v56, %v1457_v6 }
 0x296   : > { %v1467_v17 = vmax.f32 %v1289_v35, 0.0  ;;  %v1468_v47 = vmax.f32 %v1354_v1, 0.0  ;;  %v1458_v7 = vmax.f32 %v1221_v16, 0.0 }
 0x298   : > { %v2766_v48 = vpop.f32.mrf.mxu2  ;;  %v2768_v11 = vpop.f32.mrf.mxu3  ;;  %v1631_v38 = vmax.f32 %v1630_v22, %v1467_v17  ;;  %v1609_v18 = vmax.f32 %v1608_v28, %v1458_v7 }
 0x299   : > { %v1159_v54 = vadd.f32 %v2766_v48, %v2714_v21  ;;  %v1224_v31 = vadd.f32 %v2768_v11, %v2717_v8 }
 0x29b   : > { %v1291_v55 = vpop.f32.mrf.mxu0  ;;  %v1356_v30 = vpop.f32.mrf.mxu1  ;;  %v1465_v48 = vmax.f32 %v1159_v54, 0.0  ;;  %v1466_v4 = vmax.f32 %v1224_v31, 0.0 }
 0x29c   : > { %v1292_v63 = vadd.f32 %v1291_v55, %v2706_v46  ;;  %v1357_v61 = vadd.f32 %v1356_v30, %v2709_v58  ;;  %v1651_v55 = vmax.f32 %v1650_v49, %v1460_v5 }
 0x29d   : > { %v1589_v19 = vmax.f32 %v1588_v23, %v1465_v48  ;;  %v1610_v43 = vmax.f32 %v1609_v18, %v1466_v4 }
 0x29e   : > { %v1475_v53 = vmax.f32 %v1292_v63, 0.0  ;;  %v1476_v30 = vmax.f32 %v1357_v61, 0.0  ;;  %v1652_v27 = vmax.f32 %v1651_v55, %v1468_v47 }
 0x2a0   : > { %v1161_v0 = vpop.f32.mrf.mxu2  ;;  %v1226_v59 = vpop.f32.mrf.mxu3  ;;  %v1632_v24 = vmax.f32 %v1631_v38, %v1475_v53  ;;  %v1653_v62 = vmax.f32 %v1652_v27, %v1476_v30 }
 0x2a1   : > { %v1162_v57 = vadd.f32 %v1161_v0, %v2714_v21  ;;  %v1227_v9 = vadd.f32 %v1226_v59, %v2717_v8 }
 0x2a3   : > { %v1294_v3 = vpop.f32.mrf.mxu0  ;;  %v1359_v41 = vpop.f32.mrf.mxu1  ;;  %v1473_v34 = vmax.f32 %v1162_v57, 0.0  ;;  %v1474_v0 = vmax.f32 %v1227_v9, 0.0 }
 0x2a4   : > { %v1295_v50 = vadd.f32 %v1294_v3, %v2706_v46  ;;  %v1360_v52 = vadd.f32 %v1359_v41, %v2709_v58 }
 0x2a5   : > { %v1590_v40 = vmax.f32 %v1589_v19, %v1473_v34 }
 0x2a6   : > { %v1483_v60 = vmax.f32 %v1295_v50, 0.0  ;;  %v1484_v45 = vmax.f32 %v1360_v52, 0.0 }
 0x2a8   : > { %v1164_v32 = vpop.f32.mrf.mxu2  ;;  %v1229_v29 = vpop.f32.mrf.mxu3  ;;  %v1633_v59 = vmax.f32 %v1632_v24, %v1483_v60  ;;  %v1654_v26 = vmax.f32 %v1653_v62, %v1484_v45 }
 0x2a9   : > { %v1165_v11 = vadd.f32 %v1164_v32, %v2714_v21  ;;  %v1230_v10 = vadd.f32 %v1229_v29, %v2717_v8 }
 0x2ab   : > { %v1297_v12 = vpop.f32.mrf.mxu0  ;;  %v1362_v13 = vpop.f32.mrf.mxu1  ;;  %v1481_v39 = vmax.f32 %v1165_v11, 0.0  ;;  %v1482_v35 = vmax.f32 %v1230_v10, 0.0 }
 0x2ac   : > { %v1298_v14 = vadd.f32 %v1297_v12, %v2706_v46  ;;  %v1363_v15 = vadd.f32 %v1362_v13, %v2709_v58  ;;  %v1611_v46 = vmax.f32 %v1610_v43, %v1474_v0 }
 0x2ad   : > { %v1591_v5 = vmax.f32 %v1590_v40, %v1481_v39 }
 0x2ae   : > { %v1491_v20 = vmax.f32 %v1298_v14, 0.0  ;;  %v1492_v33 = vmax.f32 %v1363_v15, 0.0  ;;  %v1612_v63 = vmax.f32 %v1611_v46, %v1482_v35 }
 0x2b0   : > { %v1634_v1 = vmax.f32 %v1633_v59, %v1491_v20  ;;  %v1655_v44 = vmax.f32 %v1654_v26, %v1492_v33  ;;  %v1167_v37 = vpop.f32.mrf.mxu2  ;;  %v1232_v25 = vpop.f32.mrf.mxu3 }
 0x2b1   : > { %v1168_v58 = vadd.f32 %v1167_v37, %v2714_v21  ;;  %v1233_v3 = vadd.f32 %v1232_v25, %v2717_v8 }
 0x2b2   : > { %v1635_v41 = vrot.slane %v1634_v1, 4  ;;  %v1656_v42 = vrot.slane %v1655_v44, 4 }
 0x2b3   : > { %v1489_v61 = vmax.f32 %v1168_v58, 0.0  ;;  %v1490_v36 = vmax.f32 %v1233_v3, 0.0 }
 0x2b4   : > { %v1636_v49 = vmax.f32 %v1634_v1, %v1635_v41  ;;  %v1657_v51 = vmax.f32 %v1655_v44, %v1656_v42 }
 0x2b5   : > { %v1592_v16 = vmax.f32 %v1591_v5, %v1489_v61  ;;  %v1613_v17 = vmax.f32 %v1612_v63, %v1490_v36 }
 0x2b6   : > { %v1637_v47 = vrot.slane %v1636_v49, 2  ;;  %v1658_v50 = vrot.slane %v1657_v51, 2 }
 0x2b7   : > { %v1593_v52 = vrot.slane %v1592_v16, 4  ;;  %v1614_v56 = vrot.slane %v1613_v17, 4 }
 0x2b8   : > { %v1638_v28 = vmax.f32 %v1636_v49, %v1637_v47  ;;  %v1659_v54 = vmax.f32 %v1657_v51, %v1658_v50 }
 0x2b9   : > { %v1594_v31 = vmax.f32 %v1592_v16, %v1593_v52  ;;  %v1615_v21 = vmax.f32 %v1613_v17, %v1614_v56 }
 0x2ba   : > { %v1639_v22 = vrot.slane %v1638_v28, 1  ;;  %v1660_v8 = vrot.slane %v1659_v54, 1 }
 0x2bb   : > { %v1595_v55 = vrot.slane %v1594_v31, 2  ;;  %v1616_v53 = vrot.slane %v1615_v21, 2 }
 0x2bc   : > { %v1640_v30 = vmax.f32 %v1638_v28, %v1639_v22  ;;  %v1661_v32 = vmax.f32 %v1659_v54, %v1660_v8 }
 0x2bd   : > { %v1596_v29 = vmax.f32 %v1594_v31, %v1595_v55  ;;  %v1617_v6 = vmax.f32 %v1615_v21, %v1616_v53 }
 0x2be   : > { %v1675_v7 = vrot.slane %v1640_v30, 2  ;;  %v1676_v57 = vrot.slane %v1661_v32, 1 }
 0x2bf   : > { %v1597_v9 = vrot.slane %v1596_v29, 1  ;;  %v1618_v38 = vrot.slane %v1617_v6, 1 }
 0x2c0   : > { %v1686_v27 = vsel %vm1685_vm6, %v1675_v7, %v1676_v57 }
 0x2c1   : > { %v1598_v60 = vmax.f32 %v1596_v29, %v1597_v9  ;;  %v1619_v45 = vmax.f32 %v1617_v6, %v1618_v38 }
 0x2c3   : > { %v1673_v48 = vrot.slane %v1598_v60, 4  ;;  %v1674_v4 = vrot.slane %v1619_v45, 3 }
 0x2c5   : > { %v1684_v11 = vsel %vm1683_vm7, %v1673_v48, %v1674_v4 }
 0x2c6   : > { %v1688_v10 = vsel %vm1687_vm8, %v1684_v11, %v1686_v27 }
 0x2c7   : > { %v1690_v12 = vsel %vm1689_vm9, %v2728_v2, %v1688_v10 }
 0x2c8   : > { %1693 = vst [vmem:[%s396_s13] sm:$0xff] %v1690_v12 }
 0x2c9 PF: > { %s21_s26 = sadd.s32 1, %s2197_s26   ;;  %s2833_s24 = smov %s2193_s25 }
 0x2ca   : > { %p18_p8 = scmp.ge.s32.totalorder %s21_s26, 4   ;;  %s2834_s25 = smov %s2836_s18 }
 0x2cc   :  { %20 = sbr.rel (!%p18_p8) target bundleno = 5 (0x5), region = 107 }
 0x2d1   :  { %1713 = vsyncpa [#allocation3], 1 }
 0x2d2   :  { %1715 = vsyncpa [#allocation3 + $0x1], 1 }
 0x2d3   :  { %1716 = vsyncpa [#allocation5], 1 }
 0x2d4   :  { %1717 = vsyncpa [#allocation8], 1 }
 0x2d5   :  { %1718 = vsyncpa [#allocation11], 1 }

// kernel: seg_head_forward.7
= control target key start
LH: loop header
LB: loop body
LE: loop exit
PB: predicated region body
PF: predicated region fallthrough
CT: control target
= control target key end

     0   :  { %12 = vsyncpa [#allocation3], 0  ;;  %s2930_s0 = inlined_call_operand.vmem [shape: f32[2,128,64], index: 0, kind: input, shape index: {}]   ;;  %s2931_s1 = inlined_call_operand.hbm [shape: f32[64,64], index: 1, kind: input, shape index: {}]   ;;  %s2932_s2 = inlined_call_operand.hbm [shape: f32[1,64], index: 2, kind: input, shape index: {}]   ;;  %s2933_s3 = inlined_call_operand.hbm [shape: f32[64,128], index: 3, kind: input, shape index: {}]   ;;  %s2934_s4 = inlined_call_operand.hbm [shape: f32[1,128], index: 4, kind: input, shape index: {}]   ;;  %s2935_s5 = inlined_call_operand.hbm [shape: f32[128,1024], index: 5, kind: input, shape index: {}]   ;;  %s2936_s6 = inlined_call_operand.hbm [shape: f32[1,1024], index: 6, kind: input, shape index: {}]   ;;  %s2937_s7 = inlined_call_operand.vmem [shape: f32[2,1,1024], index: 7, kind: output, shape index: {}]  }
   0x1   :  { %13 = vsyncpa [#allocation5], 0 }
   0x2   :  { %14 = vsyncpa [#allocation8], 0 }
   0x3   :  { %15 = vsyncpa [#allocation11], 0  ;;  %s2275_s24 = smov 0   ;;  %s2277_s25 = smov 0  }
   0x4   :  { %s2279_s26 = smov 0  }
   0x5 LB: > { %s244_s29 = sshll.u32 %s2932_s2, 4  ;;  %s1826_s30 = sadd.s32 4294967295, %s2223_s26   ;;  %s2223_s26 = sphi %s2279_s26, %s21_s26   ;;  %s2219_s25 = sphi %s2277_s25, %s2942_s25   ;;  %s2215_s24 = sphi %s2275_s24, %s2941_s24   ;;  %s245_s29 = int_to_ptr.hbm [resolvable:$true] %s244_s29 }
   0x6   : > { %p1828_p0 = scmp.ge.s32.totalorder %s2223_s26, 1  ;;  %p218_p1 = scmp.lt.s32.totalorder %s2223_s26, 3 }
   0x7   : > { %p2296_p2 = scmp.eq.s32.totalorder %s1826_s30, 0  ;;  %s2225_s10 = smov [#allocation4]  }
   0x8   : > { %p2300_p3 = pnand %p1828_p0, %p218_p1  ;;  %s246_s11 = sshll.u32 %s2225_s10, 4  ;;  %s247_s11 = int_to_ptr.vmem [resolvable:$true] %s246_s11 }
   0x9   : > { %s270_s14 = sshll.u32 %s2934_s4, 4  ;;  %s2226_s16 = smov [#allocation7]   ;;  %s271_s14 = int_to_ptr.hbm [resolvable:$true] %s270_s14 }
   0xa   : > { %p1937_p4 = pneg %p2300_p3  ;;  %s272_s17 = sshll.u32 %s2226_s16, 4  ;;  %s273_s17 = int_to_ptr.vmem [resolvable:$true] %s272_s17 }
   0xb   : > { %s33_s18 = sadd.s32 1, %s2219_s25  ;;  %s229_s21 = sshll.u32 %s2931_s1, 4  ;;  %s230_s21 = int_to_ptr.hbm [resolvable:$true] %s229_s21 }
   0xc   : > { %p2311_p5 = pnand %p2296_p2, %p1937_p4  ;;  %p35_p6 = scmp.ge.s32.totalorder %s33_s18, 2 }
   0xd   : > { %s2227_s22 = smov [#allocation2]   ;;  %s2228_s27 = smov 128  }
   0xe   : > { %1943 = dma.hbm_to_vmem [thread:$0]  (!%p2311_p5), %s245_s29, 16, %s247_s11, [#allocation5]  }
   0xf   : > { %1949 = dma.hbm_to_vmem [thread:$0]  (!%p2311_p5), %s271_s14, 16, %s273_s17, [#allocation8]  }
  0x10   : > { %s2944_s18 = smov (%p35_p6, %s33_s18), 0  ;;  %s231_s23 = sshll.u32 %s2227_s22, 4  ;;  %s232_s23 = int_to_ptr.vmem [resolvable:$true] %s231_s23 }
  0x11   : > { %s2229_s28 = smov 8   ;;  %s255_s10 = sshll.u32 %s2933_s3, 4  ;;  %s256_s10 = int_to_ptr.hbm [resolvable:$true] %s255_s10 }
  0x12   : > { %1940 = dma.hbm_to_vmem [thread:$0]  (!%p2311_p5), %s230_s21, 1024, %s232_s23, [#allocation3], %s2228_s27, %s2228_s27, %s2229_s28  }
  0x13   : > { %s2230_s11 = smov [#allocation6]   ;;  %s281_s16 = sshll.u32 %s2935_s5, 4  ;;  %s282_s16 = int_to_ptr.hbm [resolvable:$true] %s281_s16 }
  0x14   : > { %s257_s12 = sshll.u32 %s2230_s11, 4  ;;  %s2231_s17 = smov [#allocation9]   ;;  %s258_s12 = int_to_ptr.vmem [resolvable:$true] %s257_s12 }
  0x15   : > { %1946 = dma.hbm_to_vmem [thread:$0]  (!%p2311_p5), %s256_s10, 1024, %s258_s12, [#allocation5], %s2228_s27, %s2228_s27, %s2229_s28  }
  0x16   : > { %s283_s19 = sshll.u32 %s2231_s17, 4  ;;  %s2232_s20 = smov 1024   ;;  %s284_s19 = int_to_ptr.vmem [resolvable:$true] %s283_s19 }
  0x17   : > { %s2233_s21 = smov 64   ;;  %s296_s29 = sshll.u32 %s2936_s6, 4  ;;  %s297_s29 = int_to_ptr.hbm [resolvable:$true] %s296_s29 }
  0x18   : > { %1952 = dma.hbm_to_vmem [thread:$0]  (!%p2311_p5), %s282_s16, 16384, %s284_s19, [#allocation8], %s2232_s20, %s2232_s20, %s2233_s21  }
  0x19   : > { %s2234_s30 = smov [#allocation10]   ;;  %324 = sbr.rel (%p2300_p3) target bundleno = 731 (0x2db), region = 48 }
  0x1a   : > { %s298_s11 = sshll.u32 %s2234_s30, 4  ;;  %s299_s11 = int_to_ptr.vmem [resolvable:$true] %s298_s11 }
  0x1b   : > { %1955 = dma.hbm_to_vmem [thread:$0]  (!%p2311_p5), %s297_s29, 128, %s299_s11, [#allocation11]  }
  0x1e   : > { %2198 = dma.done.wait (%p2296_p2), [#allocation3], 1024  }
  0x1f   : > { %2200 = vsyncadd (%p2296_p2), [#allocation3], 4294966272 }
  0x20   : > { %2202 = dma.done.wait (%p2296_p2), [#allocation5], 1040  }
  0x21   : > { %2204 = vsyncadd (%p2296_p2), [#allocation5], 4294966256 }
  0x22   : > { %2206 = dma.done.wait (%p2296_p2), [#allocation8], 16400  }
  0x23   : > { %2208 = vsyncadd (%p2296_p2), [#allocation8], 4294950896 }
  0x24   : > { %2210 = dma.done.wait (%p2296_p2), [#allocation11], 128  }
  0x25   : > { %2212 = vsyncadd (%p2296_p2), [#allocation11], 4294967168  ;;  %p386_p7 = scmp.lt.s32.totalorder %s2215_s24, 1  ;;  %v427_v0 = vld [vmem:[#allocation2 + $0x38] sm:$0xff]  ;;  %v426_v1 = vld [vmem:[#allocation2 + $0x30] sm:$0xff]  ;;  %vm432_vm0 = vcmask 523264  }
  0x26   : > { %489 = vmatpush.msra.mxu0 %v427_v0  ;;  %1881 = vmatpush.msra.mxu2 %v427_v0  ;;  %v425_v2 = vld [vmem:[#allocation2 + $0x28] sm:$0xff]  ;;  %v424_v3 = vld [vmem:[#allocation2 + $0x20] sm:$0xff]  ;;  %v423_v4 = vld [vmem:[#allocation2 + $0x18] sm:$0xff]  ;;  %vm1683_vm1 = vcmask 1042434   ;;  %vm1681_vm2 = vcmask 1040384   ;;  %vm1685_vm3 = vcmask 1041408  }
  0x27   : > { %s2946_s24 = smov (!%p386_p7, %s2215_s24), 1  ;;  %v422_v5 = vld [vmem:[#allocation2 + $0x10] sm:$0xff]  ;;  %v421_v6 = vld [vmem:[#allocation2 + $0x8] sm:$0xff]  ;;  %v420_v7 = vld [vmem:[#allocation2] sm:$0xff]  ;;  %vm1687_vm4 = vcmask 1044484   ;;  %vm1689_vm5 = vcmask 1046534  }
  0x28   : > { %490 = vmatpush.msra.mxu0 %v426_v1  ;;  %1882 = vmatpush.msra.mxu2 %v426_v1  ;;  %s1880_s8 = sshll.u32 %s2946_s24, 7  ;;  %v569_v18 = vld [vmem:[#allocation6 + $0x38] sm:$0xff]  ;;  %v568_v19 = vld [vmem:[#allocation6 + $0x30] sm:$0xff]  ;;  %v567_v20 = vld [vmem:[#allocation6 + $0x28] sm:$0xff]  ;;  %vm1691_vm6 = vcmask 1045508   ;;  %s1845_s28 = sshll.u32 %s2946_s24, 3 }
  0x29   : > { %s2368_s27 = scalar_lea.vmem %s2930_s0, %s1880_s8  ;;  %630 = vmatpush.msra.mxu1 %v569_v18  ;;  %1889 = vmatpush.msra.mxu3 %v569_v18  ;;  %v566_v22 = vld [vmem:[#allocation6 + $0x20] sm:$0xff]  ;;  %v565_v24 = vld [vmem:[#allocation6 + $0x18] sm:$0xff]  ;;  %v564_v29 = vld [vmem:[#allocation6 + $0x10] sm:$0xff]  ;;  %vm1693_vm7 = vcmask 1043456   ;;  %s398_s13 = scalar_lea.vmem %s2937_s7, %s1845_s28 }
  0x2a   : > { %491 = vmatpush.msra.mxu0 %v425_v2  ;;  %1883 = vmatpush.msra.mxu2 %v425_v2  ;;  %v404_v8 = vld [vmem:[%s2368_s27] sm:$0xff]  ;;  %v405_v9 = vld [vmem:[%s2368_s27 + $0x8] sm:$0xff]  ;;  %v406_v10 = vld [vmem:[%s2368_s27 + $0x10] sm:$0xff] }
  0x2b   : > { %v407_v11 = vld [vmem:[%s2368_s27 + $0x18] sm:$0xff]  ;;  %v408_v12 = vld [vmem:[%s2368_s27 + $0x20] sm:$0xff]  ;;  %v413_v13 = vld [vmem:[%s2368_s27 + $0x48] sm:$0xff]  ;;  %631 = vmatpush.msra.mxu1 %v568_v19  ;;  %1890 = vmatpush.msra.mxu3 %v568_v19 }
  0x2c   : > { %492 = vmatpush.msra.mxu0 %v424_v3  ;;  %1884 = vmatpush.msra.mxu2 %v424_v3  ;;  %v409_v14 = vld [vmem:[%s2368_s27 + $0x28] sm:$0xff]  ;;  %v414_v15 = vld [vmem:[%s2368_s27 + $0x50] sm:$0xff]  ;;  %v415_v17 = vld [vmem:[%s2368_s27 + $0x58] sm:$0xff] }
  0x2d   : > { %v410_v16 = vld [vmem:[%s2368_s27 + $0x30] sm:$0xff]  ;;  %v411_v21 = vld [vmem:[%s2368_s27 + $0x38] sm:$0xff]  ;;  %v416_v23 = vld [vmem:[%s2368_s27 + $0x60] sm:$0xff]  ;;  %632 = vmatpush.msra.mxu1 %v567_v20  ;;  %1891 = vmatpush.msra.mxu3 %v567_v20 }
  0x2e   : > { %493 = vmatpush.msra.mxu0 %v423_v4  ;;  %1885 = vmatpush.msra.mxu2 %v423_v4  ;;  %v412_v25 = vld [vmem:[%s2368_s27 + $0x40] sm:$0xff]  ;;  %v417_v26 = vld [vmem:[%s2368_s27 + $0x68] sm:$0xff]  ;;  %v418_v27 = vld [vmem:[%s2368_s27 + $0x70] sm:$0xff] }
  0x2f   : > { %633 = vmatpush.msra.mxu1 %v566_v22  ;;  %1892 = vmatpush.msra.mxu3 %v566_v22  ;;  %v419_v28 = vld [vmem:[%s2368_s27 + $0x78] sm:$0xff]  ;;  %v563_v30 = vld [vmem:[#allocation6 + $0x8] sm:$0xff]  ;;  %v562_v31 = vld [vmem:[#allocation6] sm:$0xff] }
  0x30   : > { %494 = vmatpush.msra.mxu0 %v422_v5  ;;  %1886 = vmatpush.msra.mxu2 %v422_v5  ;;  %v2402_v32 = vld [vmem:[#allocation4] ss:$0 sm:$0xff]  ;;  %v823_v54 = vld [vmem:[#allocation9 + $0x3c0] sm:$0xff]  ;;  %v824_v55 = vld [vmem:[#allocation9 + $0x3c8] sm:$0xff] }
  0x31   : > { %634 = vmatpush.msra.mxu1 %v565_v24  ;;  %1893 = vmatpush.msra.mxu3 %v565_v24  ;;  %v815_v56 = vld [vmem:[#allocation9 + $0x380] sm:$0xff]  ;;  %v816_v58 = vld [vmem:[#allocation9 + $0x388] sm:$0xff]  ;;  %v825_v59 = vld [vmem:[#allocation9 + $0x3d0] sm:$0xff] }
  0x32   : > { %495 = vmatpush.msra.mxu0 %v421_v6  ;;  %1887 = vmatpush.msra.mxu2 %v421_v6  ;;  %v826_v60 = vld [vmem:[#allocation9 + $0x3d8] sm:$0xff]  ;;  %v807_v61 = vld [vmem:[#allocation9 + $0x340] sm:$0xff]  ;;  %v808_v1 = vld [vmem:[#allocation9 + $0x348] sm:$0xff] }
  0x33   : > { %635 = vmatpush.msra.mxu1 %v564_v29  ;;  %1894 = vmatpush.msra.mxu3 %v564_v29  ;;  %v817_v2 = vld [vmem:[#allocation9 + $0x390] sm:$0xff]  ;;  %v818_v3 = vld [vmem:[#allocation9 + $0x398] sm:$0xff]  ;;  %v799_v4 = vld [vmem:[#allocation9 + $0x300] sm:$0xff] }
  0x34   : > { %496 = vmatpush.msra.mxu0 %v420_v7  ;;  %1888 = vmatpush.msra.mxu2 %v420_v7  ;;  %v800_v5 = vld [vmem:[#allocation9 + $0x308] sm:$0xff]  ;;  %v809_v6 = vld [vmem:[#allocation9 + $0x350] sm:$0xff]  ;;  %v791_v7 = vld [vmem:[#allocation9 + $0x2c0] sm:$0xff] }
  0x35   : > { %1846 = vmatmul.msk.f32.vlgmr.msra.gmra.mxu0 %vm432_vm0, %v404_v8  ;;  %1855 = vmatmul.msk.f32.vlgmr.msra.gmra.mxu2 %vm432_vm0, %v413_v13  ;;  %v810_v8 = vld [vmem:[#allocation9 + $0x358] sm:$0xff]  ;;  %v784_v18 = vld [vmem:[#allocation9 + $0x288] sm:$0xff]  ;;  %v775_v19 = vld [vmem:[#allocation9 + $0x240] sm:$0xff] }
  0x36   : > { %636 = vmatpush.msra.mxu1 %v563_v30  ;;  %1895 = vmatpush.msra.mxu3 %v563_v30  ;;  %v793_v20 = vld [vmem:[#allocation9 + $0x2d0] sm:$0xff]  ;;  %v759_v29 = vld [vmem:[#allocation9 + $0x1c0] sm:$0xff]  ;;  %v768_v30 = vld [vmem:[#allocation9 + $0x208] sm:$0xff] }
  0x37   : > { %849 = vmatpush.msrb.mxu2 %v823_v54  ;;  %979 = vmatpush.msrb.mxu0 %v825_v59  ;;  %v737_v54 = vld [vmem:[#allocation9 + $0x110] sm:$0xff] }
  0x38   : > { %637 = vmatpush.msra.mxu1 %v562_v31  ;;  %1896 = vmatpush.msra.mxu3 %v562_v31  ;;  %v778_v31 = vld [vmem:[#allocation9 + $0x258] sm:$0xff]  ;;  %v729_v59 = vld [vmem:[#allocation9 + $0xd0] sm:$0xff] }
  0x39   : > { %850 = vmatpush.msrb.mxu2 %v815_v56  ;;  %980 = vmatpush.msrb.mxu0 %v817_v2  ;;  %v711_v2 = vld [vmem:[#allocation9 + $0x40] sm:$0xff] }
  0x3a   : > { %914 = vmatpush.msrb.mxu3 %v824_v55  ;;  %1044 = vmatpush.msrb.mxu1 %v826_v60  ;;  %v738_v55 = vld [vmem:[#allocation9 + $0x118] sm:$0xff] }
  0x3b   : > { %851 = vmatpush.msrb.mxu2 %v807_v61  ;;  %981 = vmatpush.msrb.mxu0 %v809_v6  ;;  %v730_v60 = vld [vmem:[#allocation9 + $0xd8] sm:$0xff] }
  0x3c   : > { %915 = vmatpush.msrb.mxu3 %v816_v58  ;;  %1045 = vmatpush.msrb.mxu1 %v818_v3  ;;  %v728_v58 = vld [vmem:[#allocation9 + $0xc8] sm:$0xff] }
  0x3d   : > { %1847 = vmatmul.msk.f32.gmra.mxu0 %vm432_vm0, %v405_v9  ;;  %1856 = vmatmul.msk.f32.gmra.mxu2 %vm432_vm0, %v414_v15  ;;  %v783_v15 = vld [vmem:[#allocation9 + $0x280] sm:$0xff]  ;;  %v712_v3 = vld [vmem:[#allocation9 + $0x48] sm:$0xff] }
  0x3e   : > { %916 = vmatpush.msrb.mxu3 %v808_v1  ;;  %852 = vmatpush.msrb.mxu2 %v799_v4  ;;  %v722_v1 = vld [vmem:[#allocation9 + $0x98] sm:$0xff]  ;;  %v713_v4 = vld [vmem:[#allocation9 + $0x50] sm:$0xff] }
  0x3f   : > { %1046 = vmatpush.msrb.mxu1 %v810_v8  ;;  %v704_v8 = vld [vmem:[#allocation9 + $0x8] sm:$0xff] }
  0x40   : > { %917 = vmatpush.msrb.mxu3 %v800_v5  ;;  %853 = vmatpush.msrb.mxu2 %v791_v7  ;;  %v714_v5 = vld [vmem:[#allocation9 + $0x58] sm:$0xff]  ;;  %v703_v7 = vld [vmem:[#allocation9] sm:$0xff] }
  0x42   : > { %854 = vmatpush.msrb.mxu2 %v783_v15 }
  0x44   : > { %855 = vmatpush.msrb.mxu2 %v775_v19  ;;  %v828_v19 = vld [vmem:[#allocation9 + $0x3e8] sm:$0xff] }
  0x45   : > { %1848 = vmatmul.msk.f32.gmra.mxu0 %vm432_vm0, %v406_v10  ;;  %1857 = vmatmul.msk.f32.gmra.mxu2 %vm432_vm0, %v415_v17  ;;  %v802_v17 = vld [vmem:[#allocation9 + $0x318] sm:$0xff] }
  0x46   : > { %1047 = vmatpush.msrb.mxu1 %v802_v17 }
  0x4d   : > { %1849 = vmatmul.msk.f32.gmra.mxu0 %vm432_vm0, %v407_v11  ;;  %1858 = vmatmul.msk.f32.gmra.mxu2 %vm432_vm0, %v416_v23 }
  0x55   : > { %1850 = vmatmul.msk.f32.gmra.mxu0 %vm432_vm0, %v408_v12  ;;  %1859 = vmatmul.msk.f32.gmra.mxu2 %vm432_vm0, %v417_v26  ;;  %v767_v26 = vld [vmem:[#allocation9 + $0x200] sm:$0xff] }
  0x56   : > { %856 = vmatpush.msrb.mxu2 %v767_v26 }
  0x58   : > { %857 = vmatpush.msrb.mxu2 %v759_v29  ;;  %v803_v29 = vld [vmem:[#allocation9 + $0x320] sm:$0xff] }
  0x5d   : > { %1851 = vmatmul.msk.f32.gmra.mxu0 %vm432_vm0, %v409_v14  ;;  %1860 = vmatmul.msk.f32.gmra.mxu2 %vm432_vm0, %v418_v27  ;;  %v792_v14 = vld [vmem:[#allocation9 + $0x2c8] sm:$0xff]  ;;  %v786_v27 = vld [vmem:[#allocation9 + $0x298] sm:$0xff] }
  0x5e   : > { %918 = vmatpush.msrb.mxu3 %v792_v14  ;;  %v827_v14 = vld [vmem:[#allocation9 + $0x3e0] sm:$0xff] }
  0x60   : > { %919 = vmatpush.msrb.mxu3 %v784_v18  ;;  %v819_v18 = vld [vmem:[#allocation9 + $0x3a0] sm:$0xff] }
  0x65   : > { %1852 = vmatmul.msk.f32.gmra.mxu0 %vm432_vm0, %v410_v16  ;;  %1861 = vmatmul.msk.f32.gmra.mxu2 %vm432_vm0, %v419_v28  ;;  %v801_v16 = vld [vmem:[#allocation9 + $0x310] sm:$0xff] }
  0x66   : > { %982 = vmatpush.msrb.mxu0 %v801_v16  ;;  %v785_v28 = vld [vmem:[#allocation9 + $0x290] sm:$0xff] }
  0x68   : > { %983 = vmatpush.msrb.mxu0 %v793_v20 }
  0x6a   : > { %984 = vmatpush.msrb.mxu0 %v785_v28  ;;  %v822_v28 = vld [vmem:[#allocation9 + $0x3b8] sm:$0xff] }
  0x6d   : > { %1853 = vmatmul.msk.f32.gmra.mxu0 %vm432_vm0, %v411_v21  ;;  %v794_v21 = vld [vmem:[#allocation9 + $0x2d8] sm:$0xff] }
  0x6e   : > { %1048 = vmatpush.msrb.mxu1 %v794_v21  ;;  %v830_v21 = vld [vmem:[#allocation9 + $0x3f8] sm:$0xff] }
  0x70   : > { %1049 = vmatpush.msrb.mxu1 %v786_v27 }
  0x72   : > { %1050 = vmatpush.msrb.mxu1 %v778_v31  ;;  %v2448_v31 = vld [vmem:[#allocation9 + $0x3b0] sm:$0xff] }
  0x75   : > { %1854 = vmatmul.msk.f32.gmra.mxu0 %vm432_vm0, %v412_v25  ;;  %v776_v25 = vld [vmem:[#allocation9 + $0x248] sm:$0xff] }
  0x76   : > { %920 = vmatpush.msrb.mxu3 %v776_v25  ;;  %v2438_v25 = vld [vmem:[#allocation9 + $0x3f0] sm:$0xff] }
  0x78   : > { %921 = vmatpush.msrb.mxu3 %v768_v30  ;;  %v812_v30 = vld [vmem:[#allocation9 + $0x368] sm:$0xff] }
  0xb2   : > { %v498_v33 = vpop.f32.mrf.mxu0 }
  0xb3   : > { %v499_v34 = vadd.f32 %v2402_v32, %v498_v33  ;;  %v777_v33 = vld [vmem:[#allocation9 + $0x250] sm:$0xff] }
  0xb4   : > { %985 = vmatpush.msrb.mxu0 %v777_v33 }
  0xb5   : > { %v546_v35 = vmax.f32 %v499_v34, 0.0 }
  0xb7   : > { %1862 = vmatmul.msk.f32.vlgmr.msra.gmra.mxu1 %vm432_vm0, %v546_v35 }
  0xb8   : > { %v525_v57 = vpop.f32.mrf.mxu2 }
  0xb9   : > { %v526_v13 = vadd.f32 %v2402_v32, %v525_v57  ;;  %v727_v57 = vld [vmem:[#allocation9 + $0xc0] sm:$0xff] }
  0xba   : > { %v501_v36 = vpop.f32.mrf.mxu0 }
  0xbb   : > { %v502_v37 = vadd.f32 %v2402_v32, %v501_v36  ;;  %v555_v22 = vmax.f32 %v526_v13, 0.0 }
  0xbd   : > { %v547_v38 = vmax.f32 %v502_v37, 0.0  ;;  %v751_v37 = vld [vmem:[#allocation9 + $0x180] sm:$0xff] }
  0xbe   : > { %858 = vmatpush.msrb.mxu2 %v751_v37  ;;  %v795_v37 = vld [vmem:[#allocation9 + $0x2e0] sm:$0xff] }
  0xbf   : > { %1863 = vmatmul.msk.f32.gmra.mxu1 %vm432_vm0, %v547_v38  ;;  %v760_v38 = vld [vmem:[#allocation9 + $0x1c8] sm:$0xff] }
  0xc0   : > { %v528_v10 = vpop.f32.mrf.mxu2  ;;  %922 = vmatpush.msrb.mxu3 %v760_v38  ;;  %v804_v38 = vld [vmem:[#allocation9 + $0x328] sm:$0xff] }
  0xc1   : > { %v529_v24 = vadd.f32 %v2402_v32, %v528_v10  ;;  %v706_v10 = vld [vmem:[#allocation9 + $0x18] sm:$0xff] }
  0xc2   : > { %v504_v39 = vpop.f32.mrf.mxu0 }
  0xc3   : > { %v505_v40 = vadd.f32 %v2402_v32, %v504_v39  ;;  %v556_v34 = vmax.f32 %v529_v24, 0.0  ;;  %v769_v39 = vld [vmem:[#allocation9 + $0x210] sm:$0xff]  ;;  %v2436_v24 = vld [vmem:[#allocation7] ss:$0 sm:$0xff] }
  0xc4   : > { %986 = vmatpush.msrb.mxu0 %v769_v39  ;;  %v2458_v39 = vld [vmem:[#allocation9 + $0x370] sm:$0xff] }
  0xc5   : > { %v548_v41 = vmax.f32 %v505_v40, 0.0  ;;  %v770_v40 = vld [vmem:[#allocation9 + $0x218] sm:$0xff] }
  0xc6   : > { %1051 = vmatpush.msrb.mxu1 %v770_v40 }
  0xc7   : > { %1864 = vmatmul.msk.f32.gmra.mxu1 %vm432_vm0, %v548_v41  ;;  %v743_v41 = vld [vmem:[#allocation9 + $0x140] sm:$0xff] }
  0xc8   : > { %v531_v23 = vpop.f32.mrf.mxu2  ;;  %859 = vmatpush.msrb.mxu2 %v743_v41 }
  0xc9   : > { %v532_v36 = vadd.f32 %v2402_v32, %v531_v23  ;;  %v820_v23 = vld [vmem:[#allocation9 + $0x3a8] sm:$0xff] }
  0xca   : > { %v507_v42 = vpop.f32.mrf.mxu0 }
  0xcb   : > { %v508_v43 = vadd.f32 %v2402_v32, %v507_v42  ;;  %v761_v42 = vld [vmem:[#allocation9 + $0x1d0] sm:$0xff] }
  0xcc   : > { %987 = vmatpush.msrb.mxu0 %v761_v42 }
  0xcd   : > { %v549_v44 = vmax.f32 %v508_v43, 0.0  ;;  %v762_v43 = vld [vmem:[#allocation9 + $0x1d8] sm:$0xff] }
  0xce   : > { %1052 = vmatpush.msrb.mxu1 %v762_v43  ;;  %v806_v43 = vld [vmem:[#allocation9 + $0x338] sm:$0xff] }
  0xcf   : > { %1865 = vmatmul.msk.f32.gmra.mxu1 %vm432_vm0, %v549_v44  ;;  %v752_v44 = vld [vmem:[#allocation9 + $0x188] sm:$0xff] }
  0xd0   : > { %v534_v35 = vpop.f32.mrf.mxu2  ;;  %923 = vmatpush.msrb.mxu3 %v752_v44  ;;  %v787_v44 = vld [vmem:[#allocation9 + $0x2a0] sm:$0xff] }
  0xd2   : > { %v510_v45 = vpop.f32.mrf.mxu0 }
  0xd3   : > { %v511_v46 = vadd.f32 %v2402_v32, %v510_v45  ;;  %v753_v45 = vld [vmem:[#allocation9 + $0x190] sm:$0xff] }
  0xd4   : > { %988 = vmatpush.msrb.mxu0 %v753_v45  ;;  %v796_v45 = vld [vmem:[#allocation9 + $0x2e8] sm:$0xff] }
  0xd5   : > { %v550_v47 = vmax.f32 %v511_v46, 0.0  ;;  %v754_v46 = vld [vmem:[#allocation9 + $0x198] sm:$0xff] }
  0xd6   : > { %1053 = vmatpush.msrb.mxu1 %v754_v46  ;;  %v2468_v46 = vld [vmem:[#allocation9 + $0x330] sm:$0xff] }
  0xd7   : > { %1866 = vmatmul.msk.f32.gmra.mxu1 %vm432_vm0, %v550_v47  ;;  %v735_v47 = vld [vmem:[#allocation9 + $0x100] sm:$0xff] }
  0xd8   : > { %860 = vmatpush.msrb.mxu2 %v735_v47  ;;  %v537_v56 = vpop.f32.mrf.mxu2 }
  0xd9   : > { %v538_v6 = vadd.f32 %v2402_v32, %v537_v56  ;;  %v780_v56 = vld [vmem:[#allocation9 + $0x268] sm:$0xff] }
  0xda   : > { %v513_v48 = vpop.f32.mrf.mxu0  ;;  %861 = vmatpush.msrb.mxu2 %v727_v57 }
  0xdb   : > { %v514_v49 = vadd.f32 %v2402_v32, %v513_v48  ;;  %v744_v48 = vld [vmem:[#allocation9 + $0x148] sm:$0xff] }
  0xdc   : > { %924 = vmatpush.msrb.mxu3 %v744_v48 }
  0xdd   : > { %v551_v50 = vmax.f32 %v514_v49, 0.0  ;;  %v557_v49 = vmax.f32 %v532_v36, 0.0  ;;  %v814_v36 = vld [vmem:[#allocation9 + $0x378] sm:$0xff] }
  0xdf   : > { %1867 = vmatmul.msk.f32.gmra.mxu1 %vm432_vm0, %v551_v50  ;;  %v745_v50 = vld [vmem:[#allocation9 + $0x150] sm:$0xff] }
  0xe0   : > { %989 = vmatpush.msrb.mxu0 %v745_v50  ;;  %v798_v50 = vld [vmem:[#allocation9 + $0x2f8] sm:$0xff] }
  0xe2   : > { %v516_v51 = vpop.f32.mrf.mxu0  ;;  %990 = vmatpush.msrb.mxu0 %v737_v54  ;;  %v790_v54 = vld [vmem:[#allocation9 + $0x2b8] sm:$0xff] }
  0xe3   : > { %v517_v52 = vadd.f32 %v2402_v32, %v516_v51  ;;  %v746_v51 = vld [vmem:[#allocation9 + $0x158] sm:$0xff] }
  0xe4   : > { %1054 = vmatpush.msrb.mxu1 %v746_v51  ;;  %991 = vmatpush.msrb.mxu0 %v729_v59  ;;  %v779_v51 = vld [vmem:[#allocation9 + $0x260] sm:$0xff] }
  0xe5   : > { %v552_v53 = vmax.f32 %v517_v52, 0.0  ;;  %v535_v52 = vadd.f32 %v2402_v32, %v534_v35 }
  0xe6   : > { %1055 = vmatpush.msrb.mxu1 %v738_v55  ;;  %v771_v55 = vld [vmem:[#allocation9 + $0x220] sm:$0xff] }
  0xe7   : > { %1868 = vmatmul.msk.f32.gmra.mxu1 %vm432_vm0, %v552_v53  ;;  %v736_v53 = vld [vmem:[#allocation9 + $0x108] sm:$0xff]  ;;  %v558_v61 = vmax.f32 %v535_v52, 0.0 }
  0xe8   : > { %925 = vmatpush.msrb.mxu3 %v736_v53  ;;  %1056 = vmatpush.msrb.mxu1 %v730_v60  ;;  %v788_v52 = vld [vmem:[#allocation9 + $0x2a8] sm:$0xff]  ;;  %v2478_v53 = vld [vmem:[#allocation9 + $0x2f0] sm:$0xff] }
  0xea   : > { %v519_v62 = vpop.f32.mrf.mxu0  ;;  %926 = vmatpush.msrb.mxu3 %v728_v58  ;;  %1057 = vmatpush.msrb.mxu1 %v722_v1  ;;  %v763_v1 = vld [vmem:[#allocation9 + $0x1e0] sm:$0xff] }
  0xeb   : > { %v520_v63 = vadd.f32 %v2402_v32, %v519_v62  ;;  %v719_v62 = vld [vmem:[#allocation9 + $0x80] sm:$0xff] }
  0xec   : > { %862 = vmatpush.msrb.mxu2 %v719_v62  ;;  %1058 = vmatpush.msrb.mxu1 %v714_v5  ;;  %v2489_v62 = vld [vmem:[#allocation9 + $0x2b0] sm:$0xff] }
  0xed   : > { %v553_v0 = vmax.f32 %v520_v63, 0.0  ;;  %v720_v63 = vld [vmem:[#allocation9 + $0x88] sm:$0xff]  ;;  %v2499_v5 = vld [vmem:[#allocation9 + $0x270] sm:$0xff] }
  0xee   : > { %927 = vmatpush.msrb.mxu3 %v720_v63  ;;  %863 = vmatpush.msrb.mxu2 %v711_v2  ;;  %v782_v63 = vld [vmem:[#allocation9 + $0x278] sm:$0xff]  ;;  %v772_v2 = vld [vmem:[#allocation9 + $0x228] sm:$0xff] }
  0xef   : > { %1869 = vmatmul.msk.f32.gmra.mxu1 %vm432_vm0, %v553_v0  ;;  %v721_v0 = vld [vmem:[#allocation9 + $0x90] sm:$0xff] }
  0xf0   : > { %992 = vmatpush.msrb.mxu0 %v721_v0  ;;  %928 = vmatpush.msrb.mxu3 %v712_v3 }
  0xf1   : > { %864 = vmatpush.msrb.mxu2 %v703_v7  ;;  %1059 = vmatpush.msrb.mxu1 %v706_v10 }
  0xf2   : > { %v522_v9 = vpop.f32.mrf.mxu0  ;;  %993 = vmatpush.msrb.mxu0 %v713_v4  ;;  %929 = vmatpush.msrb.mxu3 %v704_v8  ;;  %v755_v8 = vld [vmem:[#allocation9 + $0x1a0] sm:$0xff] }
  0xf3   : > { %v523_v11 = vadd.f32 %v2402_v32, %v522_v9  ;;  %v705_v9 = vld [vmem:[#allocation9 + $0x10] sm:$0xff]  ;;  %1109 = vmatpush.msra.mxu2 %v827_v14  ;;  %1304 = vmatpush.msra.mxu1 %v830_v21 }
  0xf4   : > { %994 = vmatpush.msrb.mxu0 %v705_v9  ;;  %v764_v9 = vld [vmem:[#allocation9 + $0x1e8] sm:$0xff] }
  0xf5   : > { %v554_v12 = vmax.f32 %v523_v11, 0.0  ;;  %v540_v11 = vpop.f32.mrf.mxu2  ;;  %1110 = vmatpush.msra.mxu2 %v819_v18  ;;  %1305 = vmatpush.msra.mxu1 %v822_v28  ;;  %v758_v18 = vld [vmem:[#allocation9 + $0x1b8] sm:$0xff]  ;;  %v731_v28 = vld [vmem:[#allocation9 + $0xe0] sm:$0xff] }
  0xf6   : > { %v541_v13 = vadd.f32 %v2402_v32, %v540_v11  ;;  %1239 = vmatpush.msra.mxu0 %v2438_v25 }
  0xf7   : > { %1870 = vmatmul.msk.f32.vlgmr.msra.gmra.mxu3 %vm432_vm0, %v554_v12  ;;  %v559_v12 = vmax.f32 %v538_v6, 0.0  ;;  %1306 = vmatpush.msra.mxu1 %v814_v36  ;;  %v774_v6 = vld [vmem:[#allocation9 + $0x238] sm:$0xff]  ;;  %v2534_v36 = vld [vmem:[#allocation9 + $0x170] sm:$0xff] }
  0xf8   : > { %v560_v15 = vmax.f32 %v541_v13, 0.0  ;;  %1174 = vmatpush.msra.mxu3 %v828_v19  ;;  %1240 = vmatpush.msra.mxu0 %v2448_v31  ;;  %v766_v13 = vld [vmem:[#allocation9 + $0x1f8] sm:$0xff]  ;;  %v739_v19 = vld [vmem:[#allocation9 + $0x120] sm:$0xff] }
  0xf9   : > { %1307 = vmatpush.msra.mxu1 %v806_v43 }
  0xfa   : > { %1175 = vmatpush.msra.mxu3 %v820_v23  ;;  %1241 = vmatpush.msra.mxu0 %v2458_v39 }
  0xfb   : > { %1308 = vmatpush.msra.mxu1 %v798_v50  ;;  %v724_v50 = vld [vmem:[#allocation9 + $0xa8] sm:$0xff] }
  0xfc   : > { %1176 = vmatpush.msra.mxu3 %v812_v30  ;;  %1242 = vmatpush.msra.mxu0 %v2468_v46 }
  0xfd   : > { %v543_v16 = vpop.f32.mrf.mxu2  ;;  %1309 = vmatpush.msra.mxu1 %v790_v54 }
  0xfe   : > { %v544_v17 = vadd.f32 %v2402_v32, %v543_v16  ;;  %1177 = vmatpush.msra.mxu3 %v804_v38  ;;  %1243 = vmatpush.msra.mxu0 %v2478_v53  ;;  %v756_v16 = vld [vmem:[#allocation9 + $0x1a8] sm:$0xff]  ;;  %v723_v38 = vld [vmem:[#allocation9 + $0xa0] sm:$0xff] }
  0xff   : > { %1871 = vmatmul.msk.f32.gmra.mxu3 %vm432_vm0, %v555_v22  ;;  %v811_v22 = vld [vmem:[#allocation9 + $0x360] sm:$0xff]  ;;  %1310 = vmatpush.msra.mxu1 %v782_v63 }
 0x100   : > { %v561_v20 = vmax.f32 %v544_v17, 0.0  ;;  %1111 = vmatpush.msra.mxu2 %v811_v22  ;;  %1178 = vmatpush.msra.mxu3 %v796_v45  ;;  %v2518_v17 = vld [vmem:[#allocation9 + $0x1f0] sm:$0xff] }
 0x101   : > { %1244 = vmatpush.msra.mxu0 %v2489_v62  ;;  %1311 = vmatpush.msra.mxu1 %v774_v6  ;;  %v2544_v45 = vld [vmem:[#allocation9 + $0x130] sm:$0xff] }
 0x102   : > { %1112 = vmatpush.msra.mxu2 %v803_v29  ;;  %1179 = vmatpush.msra.mxu3 %v788_v52  ;;  %v740_v29 = vld [vmem:[#allocation9 + $0x128] sm:$0xff]  ;;  %v709_v6 = vld [vmem:[#allocation9 + $0x30] sm:$0xff] }
 0x103   : > { %1245 = vmatpush.msra.mxu0 %v2499_v5  ;;  %1312 = vmatpush.msra.mxu1 %v766_v13 }
 0x104   : > { %1113 = vmatpush.msra.mxu2 %v795_v37  ;;  %1180 = vmatpush.msra.mxu3 %v780_v56  ;;  %v742_v37 = vld [vmem:[#allocation9 + $0x138] sm:$0xff] }
 0x105   : > { %1313 = vmatpush.msra.mxu1 %v758_v18  ;;  %v726_v56 = vld [vmem:[#allocation9 + $0xb8] sm:$0xff] }
 0x106   : > { %1114 = vmatpush.msra.mxu2 %v787_v44  ;;  %1181 = vmatpush.msra.mxu3 %v772_v2  ;;  %v718_v2 = vld [vmem:[#allocation9 + $0x78] sm:$0xff] }
 0x107   : > { %1872 = vmatmul.msk.f32.gmra.mxu3 %vm432_vm0, %v556_v34 }
 0x108   : > { %1115 = vmatpush.msra.mxu2 %v779_v51  ;;  %1182 = vmatpush.msra.mxu3 %v764_v9 }
 0x10a   : > { %1116 = vmatpush.msra.mxu2 %v771_v55  ;;  %1183 = vmatpush.msra.mxu3 %v756_v16  ;;  %v2554_v55 = vld [vmem:[#allocation9 + $0xf0] sm:$0xff] }
 0x10c   : > { %1117 = vmatpush.msra.mxu2 %v763_v1  ;;  %v717_v1 = vld [vmem:[#allocation9 + $0x70] sm:$0xff] }
 0x10e   : > { %1118 = vmatpush.msra.mxu2 %v755_v8  ;;  %v710_v8 = vld [vmem:[#allocation9 + $0x38] sm:$0xff] }
 0x10f   : > { %1873 = vmatmul.msk.f32.gmra.mxu3 %vm432_vm0, %v557_v49 }
 0x117   : > { %1874 = vmatmul.msk.f32.gmra.mxu3 %vm432_vm0, %v558_v61 }
 0x11f   : > { %1875 = vmatmul.msk.f32.gmra.mxu3 %vm432_vm0, %v559_v12  ;;  %v2509_v12 = vld [vmem:[#allocation9 + $0x230] sm:$0xff] }
 0x120   : > { %1246 = vmatpush.msra.mxu0 %v2509_v12 }
 0x122   : > { %1247 = vmatpush.msra.mxu0 %v2518_v17 }
 0x127   : > { %1876 = vmatmul.msk.f32.gmra.mxu3 %vm432_vm0, %v560_v15  ;;  %v747_v15 = vld [vmem:[#allocation9 + $0x160] sm:$0xff] }
 0x128   : > { %1119 = vmatpush.msra.mxu2 %v747_v15 }
 0x12a   : > { %1120 = vmatpush.msra.mxu2 %v739_v19 }
 0x12c   : > { %1121 = vmatpush.msra.mxu2 %v731_v28 }
 0x12e   : > { %1122 = vmatpush.msra.mxu2 %v723_v38 }
 0x12f   : > { %1877 = vmatmul.msk.f32.gmra.mxu3 %vm432_vm0, %v561_v20  ;;  %v748_v20 = vld [vmem:[#allocation9 + $0x168] sm:$0xff] }
 0x130   : > { %1184 = vmatpush.msra.mxu3 %v748_v20 }
 0x132   : > { %1185 = vmatpush.msra.mxu3 %v740_v29 }
 0x134   : > { %v639_v32 = vpop.f32.mrf.mxu1 }
 0x135   : > { %v640_v26 = vadd.f32 %v2436_v24, %v639_v32  ;;  %v2524_v32 = vld [vmem:[#allocation9 + $0x1b0] sm:$0xff] }
 0x136   : > { %1248 = vmatpush.msra.mxu0 %v2524_v32 }
 0x137   : > { %v2442_v27 = vmax.f32 %v640_v26, 0.0  ;;  %v750_v26 = vld [vmem:[#allocation9 + $0x178] sm:$0xff] }
 0x138   : > { %1314 = vmatpush.msra.mxu1 %v750_v26  ;;  %1249 = vmatpush.msra.mxu0 %v2534_v36 }
 0x139   : > { %865 = vmatmul.f32.vlgmr.msrb.gmra.mxu2 %v2442_v27  ;;  %930 = vmatmul.f32.vlgmr.msrb.gmra.mxu3 %v2442_v27 }
 0x13a   : > { %995 = vmatmul.f32.vlgmr.msrb.gmra.mxu0 %v2442_v27  ;;  %1060 = vmatmul.f32.vlgmr.msrb.gmra.mxu1 %v2442_v27 }
 0x13b   : > { %1315 = vmatpush.msra.mxu1 %v742_v37  ;;  %1250 = vmatpush.msra.mxu0 %v2544_v45  ;;  %v2648_v37 = vld [vmem:[#allocation10] sm:$0xff] }
 0x13c   : > { %v642_v33 = vpop.f32.mrf.mxu1 }
 0x13d   : > { %v643_v34 = vadd.f32 %v2436_v24, %v642_v33  ;;  %1251 = vmatpush.msra.mxu0 %v2554_v55 }
 0x13f   : > { %v2452_v35 = vmax.f32 %v643_v34, 0.0 }
 0x141   : > { %868 = vmatmul.f32.gmra.mxu2 %v2452_v35  ;;  %933 = vmatmul.f32.gmra.mxu3 %v2452_v35 }
 0x142   : > { %998 = vmatmul.f32.gmra.mxu0 %v2452_v35  ;;  %1063 = vmatmul.f32.gmra.mxu1 %v2452_v35 }
 0x144   : > { %v645_v40 = vpop.f32.mrf.mxu1 }
 0x145   : > { %v646_v41 = vadd.f32 %v2436_v24, %v645_v40  ;;  %v732_v40 = vld [vmem:[#allocation9 + $0xe8] sm:$0xff] }
 0x146   : > { %1186 = vmatpush.msra.mxu3 %v732_v40  ;;  %v2659_v40 = vperm.slane %v2648_v37, 2 }
 0x147   : > { %v2462_v42 = vmax.f32 %v646_v41, 0.0 }
 0x148   : > { %1187 = vmatpush.msra.mxu3 %v724_v50 }
 0x149   : > { %871 = vmatmul.f32.gmra.mxu2 %v2462_v42  ;;  %936 = vmatmul.f32.gmra.mxu3 %v2462_v42 }
 0x14a   : > { %1001 = vmatmul.f32.gmra.mxu0 %v2462_v42  ;;  %1066 = vmatmul.f32.gmra.mxu1 %v2462_v42 }
 0x14c   : > { %v648_v47 = vpop.f32.mrf.mxu1 }
 0x14d   : > { %v649_v48 = vadd.f32 %v2436_v24, %v648_v47  ;;  %v734_v47 = vld [vmem:[#allocation9 + $0xf8] sm:$0xff] }
 0x14e   : > { %1316 = vmatpush.msra.mxu1 %v734_v47 }
 0x14f   : > { %v2472_v49 = vmax.f32 %v649_v48, 0.0  ;;  %v715_v48 = vld [vmem:[#allocation9 + $0x60] sm:$0xff] }
 0x150   : > { %1123 = vmatpush.msra.mxu2 %v715_v48  ;;  %1317 = vmatpush.msra.mxu1 %v726_v56  ;;  %v2670_v48 = vperm.slane %v2648_v37, 0 }
 0x151   : > { %874 = vmatmul.f32.gmra.mxu2 %v2472_v49  ;;  %939 = vmatmul.f32.gmra.mxu3 %v2472_v49 }
 0x152   : > { %1004 = vmatmul.f32.gmra.mxu0 %v2472_v49  ;;  %1069 = vmatmul.f32.gmra.mxu1 %v2472_v49 }
 0x153   : > { %1318 = vmatpush.msra.mxu1 %v718_v2 }
 0x154   : > { %v651_v57 = vpop.f32.mrf.mxu1 }
 0x155   : > { %v652_v58 = vadd.f32 %v2436_v24, %v651_v57  ;;  %1319 = vmatpush.msra.mxu1 %v710_v8 }
 0x157   : > { %v2482_v59 = vmax.f32 %v652_v58, 0.0  ;;  %v707_v58 = vld [vmem:[#allocation9 + $0x20] sm:$0xff] }
 0x158   : > { %1124 = vmatpush.msra.mxu2 %v707_v58 }
 0x159   : > { %877 = vmatmul.f32.gmra.mxu2 %v2482_v59  ;;  %942 = vmatmul.f32.gmra.mxu3 %v2482_v59 }
 0x15a   : > { %1007 = vmatmul.f32.gmra.mxu0 %v2482_v59  ;;  %1072 = vmatmul.f32.gmra.mxu1 %v2482_v59 }
 0x15b   : > { %1897 = vmatpush.msrb.mxu2 %v2438_v25 }
 0x15c   : > { %v654_v60 = vpop.f32.mrf.mxu1 }
 0x15d   : > { %v655_v61 = vadd.f32 %v2436_v24, %v654_v60  ;;  %v716_v60 = vld [vmem:[#allocation9 + $0x68] sm:$0xff]  ;;  %1898 = vmatpush.msrb.mxu2 %v2448_v31 }
 0x15e   : > { %1188 = vmatpush.msra.mxu3 %v716_v60 }
 0x15f   : > { %v2492_v0 = vmax.f32 %v655_v61, 0.0  ;;  %v725_v61 = vld [vmem:[#allocation9 + $0xb0] sm:$0xff]  ;;  %1899 = vmatpush.msrb.mxu2 %v2458_v39 }
 0x160   : > { %1252 = vmatpush.msra.mxu0 %v725_v61 }
 0x161   : > { %880 = vmatmul.f32.gmra.mxu2 %v2492_v0  ;;  %945 = vmatmul.f32.gmra.mxu3 %v2492_v0 }
 0x162   : > { %1010 = vmatmul.f32.gmra.mxu0 %v2492_v0  ;;  %1075 = vmatmul.f32.gmra.mxu1 %v2492_v0 }
 0x163   : > { %1253 = vmatpush.msra.mxu0 %v717_v1  ;;  %1900 = vmatpush.msrb.mxu2 %v2468_v46 }
 0x164   : > { %v657_v3 = vpop.f32.mrf.mxu1 }
 0x165   : > { %v658_v4 = vadd.f32 %v2436_v24, %v657_v3  ;;  %1254 = vmatpush.msra.mxu0 %v709_v6  ;;  %1901 = vmatpush.msrb.mxu2 %v2478_v53 }
 0x167   : > { %v2502_v7 = vmax.f32 %v658_v4, 0.0  ;;  %v708_v4 = vld [vmem:[#allocation9 + $0x28] sm:$0xff]  ;;  %1902 = vmatpush.msrb.mxu2 %v2489_v62 }
 0x168   : > { %1189 = vmatpush.msra.mxu3 %v708_v4 }
 0x169   : > { %883 = vmatmul.f32.gmra.mxu2 %v2502_v7  ;;  %948 = vmatmul.f32.gmra.mxu3 %v2502_v7 }
 0x16a   : > { %1013 = vmatmul.f32.gmra.mxu0 %v2502_v7  ;;  %1078 = vmatmul.f32.gmra.mxu1 %v2502_v7 }
 0x16b   : > { %1903 = vmatpush.msrb.mxu2 %v2499_v5 }
 0x16c   : > { %v660_v10 = vpop.f32.mrf.mxu1 }
 0x16d   : > { %v661_v11 = vadd.f32 %v2436_v24, %v660_v10  ;;  %1904 = vmatpush.msrb.mxu2 %v2509_v12 }
 0x16f   : > { %v2512_v14 = vmax.f32 %v661_v11, 0.0  ;;  %1905 = vmatpush.msrb.mxu2 %v2518_v17 }
 0x171   : > { %886 = vmatmul.f32.gmra.mxu2 %v2512_v14  ;;  %951 = vmatmul.f32.gmra.mxu3 %v2512_v14 }
 0x172   : > { %1016 = vmatmul.f32.gmra.mxu0 %v2512_v14  ;;  %1081 = vmatmul.f32.gmra.mxu1 %v2512_v14 }
 0x173   : > { %1906 = vmatpush.msrb.mxu2 %v2524_v32 }
 0x175   : > { %1907 = vmatpush.msrb.mxu2 %v2534_v36 }
 0x177   : > { %1908 = vmatpush.msrb.mxu2 %v2544_v45 }
 0x179   : > { %1909 = vmatpush.msrb.mxu2 %v2554_v55 }
 0x17a   : > { %v663_v21 = vpop.f32.mrf.mxu3 }
 0x17b   : > { %v664_v22 = vadd.f32 %v2436_v24, %v663_v21  ;;  %1910 = vmatpush.msrb.mxu2 %v725_v61 }
 0x17d   : > { %v2522_v23 = vmax.f32 %v664_v22, 0.0  ;;  %1911 = vmatpush.msrb.mxu2 %v717_v1 }
 0x17f   : > { %889 = vmatmul.f32.gmra.mxu2 %v2522_v23  ;;  %954 = vmatmul.f32.gmra.mxu3 %v2522_v23 }
 0x180   : > { %1019 = vmatmul.f32.gmra.mxu0 %v2522_v23  ;;  %1084 = vmatmul.f32.gmra.mxu1 %v2522_v23 }
 0x181   : > { %1912 = vmatpush.msrb.mxu2 %v709_v6 }
 0x182   : > { %v666_v30 = vpop.f32.mrf.mxu3 }
 0x183   : > { %v667_v33 = vadd.f32 %v2436_v24, %v666_v30 }
 0x185   : > { %v2532_v34 = vmax.f32 %v667_v33, 0.0 }
 0x187   : > { %892 = vmatmul.f32.gmra.mxu2 %v2532_v34  ;;  %957 = vmatmul.f32.gmra.mxu3 %v2532_v34 }
 0x188   : > { %1022 = vmatmul.f32.gmra.mxu0 %v2532_v34  ;;  %1087 = vmatmul.f32.gmra.mxu1 %v2532_v34 }
 0x18a   : > { %v669_v41 = vpop.f32.mrf.mxu3 }
 0x18b   : > { %v670_v43 = vadd.f32 %v2436_v24, %v669_v41 }
 0x18d   : > { %v2542_v44 = vmax.f32 %v670_v43, 0.0 }
 0x18f   : > { %895 = vmatmul.f32.gmra.mxu2 %v2542_v44  ;;  %960 = vmatmul.f32.gmra.mxu3 %v2542_v44 }
 0x190   : > { %1025 = vmatmul.f32.gmra.mxu0 %v2542_v44  ;;  %1090 = vmatmul.f32.gmra.mxu1 %v2542_v44 }
 0x192   : > { %v672_v51 = vpop.f32.mrf.mxu3 }
 0x193   : > { %v673_v52 = vadd.f32 %v2436_v24, %v672_v51 }
 0x195   : > { %v2552_v54 = vmax.f32 %v673_v52, 0.0  ;;  %v2677_v52 = vperm.slane %v2648_v37, 1 }
 0x197   : > { %898 = vmatmul.f32.gmra.mxu2 %v2552_v54  ;;  %963 = vmatmul.f32.gmra.mxu3 %v2552_v54 }
 0x198   : > { %1028 = vmatmul.f32.gmra.mxu0 %v2552_v54  ;;  %1093 = vmatmul.f32.gmra.mxu1 %v2552_v54 }
 0x19a   : > { %v675_v57 = vpop.f32.mrf.mxu3 }
 0x19b   : > { %v676_v63 = vadd.f32 %v2436_v24, %v675_v57 }
 0x19d   : > { %v2563_v3 = vmax.f32 %v676_v63, 0.0 }
 0x19f   : > { %901 = vmatmul.f32.gmra.mxu2 %v2563_v3  ;;  %966 = vmatmul.f32.gmra.mxu3 %v2563_v3 }
 0x1a0   : > { %1031 = vmatmul.f32.gmra.mxu0 %v2563_v3  ;;  %1096 = vmatmul.f32.gmra.mxu1 %v2563_v3 }
 0x1a2   : > { %v678_v25 = vpop.f32.mrf.mxu3 }
 0x1a3   : > { %v679_v9 = vadd.f32 %v2436_v24, %v678_v25 }
 0x1a5   : > { %v2573_v31 = vmax.f32 %v679_v9, 0.0 }
 0x1a7   : > { %904 = vmatmul.f32.gmra.mxu2 %v2573_v31  ;;  %969 = vmatmul.f32.gmra.mxu3 %v2573_v31 }
 0x1a8   : > { %1034 = vmatmul.f32.gmra.mxu0 %v2573_v31  ;;  %1099 = vmatmul.f32.gmra.mxu1 %v2573_v31 }
 0x1aa   : > { %v681_v10 = vpop.f32.mrf.mxu3 }
 0x1ab   : > { %v682_v39 = vadd.f32 %v2436_v24, %v681_v10 }
 0x1ad   : > { %v2583_v46 = vmax.f32 %v682_v39, 0.0 }
 0x1af   : > { %907 = vmatmul.f32.gmra.mxu2 %v2583_v46  ;;  %972 = vmatmul.f32.gmra.mxu3 %v2583_v46 }
 0x1b0   : > { %1037 = vmatmul.f32.gmra.mxu0 %v2583_v46  ;;  %1102 = vmatmul.f32.gmra.mxu1 %v2583_v46 }
 0x1b2   : > { %v684_v53 = vpop.f32.mrf.mxu3 }
 0x1b3   : > { %v685_v62 = vadd.f32 %v2436_v24, %v684_v53 }
 0x1b5   : > { %v2593_v5 = vmax.f32 %v685_v62, 0.0 }
 0x1b7   : > { %v2596_v11 = vpop.f32.mrf.mxu0  ;;  %v2598_v12 = vpop.f32.mrf.mxu1  ;;  %910 = vmatmul.f32.gmra.mxu2 %v2593_v5  ;;  %975 = vmatmul.f32.gmra.mxu3 %v2593_v5 }
 0x1b8   : > { %1040 = vmatmul.f32.gmra.mxu0 %v2593_v5  ;;  %1105 = vmatmul.f32.gmra.mxu1 %v2593_v5  ;;  %v997_v47 = vadd.f32 %v2596_v11, %v2659_v40 }
 0x1ba   : > { %v1371_v61 = vmax.f32 %v997_v47, 0.0 }
 0x1bc   : > { %v2606_v24 = vpop.f32.mrf.mxu2  ;;  %v2608_v13 = vpop.f32.mrf.mxu3 }
 0x1bd   : > { %v867_v63 = vadd.f32 %v2606_v24, %v2670_v48  ;;  %v932_v25 = vadd.f32 %v2608_v13, %v2677_v52 }
 0x1bf   : > { %v999_v15 = vpop.f32.mrf.mxu0  ;;  %v1064_v16 = vpop.f32.mrf.mxu1  ;;  %1125 = vmatmul.f32.vlgmr.msra.gmra.mxu2 %v2442_v27  ;;  %1190 = vmatmul.f32.vlgmr.msra.gmra.mxu3 %v2442_v27 }
 0x1c0   : > { %1255 = vmatmul.f32.vlgmr.msra.gmra.mxu0 %v2442_v27  ;;  %1320 = vmatmul.f32.vlgmr.msra.gmra.mxu1 %v2442_v27  ;;  %v1000_v45 = vadd.f32 %v999_v15, %v2659_v40 }
 0x1c2   : > { %v1379_v56 = vmax.f32 %v1000_v45, 0.0 }
 0x1c4   : > { %v2614_v17 = vpop.f32.mrf.mxu2  ;;  %v2616_v18 = vpop.f32.mrf.mxu3  ;;  %v1540_v39 = vmax.f32 %v1371_v61, %v1379_v56 }
 0x1c5   : > { %v870_v4 = vadd.f32 %v2614_v17, %v2670_v48  ;;  %v935_v9 = vadd.f32 %v2616_v18, %v2677_v52 }
 0x1c7   : > { %v1002_v19 = vpop.f32.mrf.mxu0  ;;  %v1067_v20 = vpop.f32.mrf.mxu1  ;;  %1128 = vmatmul.f32.gmra.mxu2 %v2452_v35  ;;  %1193 = vmatmul.f32.gmra.mxu3 %v2452_v35  ;;  %v1377_v18 = vmax.f32 %v870_v4, 0.0 }
 0x1c8   : > { %1258 = vmatmul.f32.gmra.mxu0 %v2452_v35  ;;  %1323 = vmatmul.f32.gmra.mxu1 %v2452_v35  ;;  %v1003_v51 = vadd.f32 %v1002_v19, %v2659_v40 }
 0x1ca   : > { %v1387_v6 = vmax.f32 %v1003_v51, 0.0 }
 0x1cc   : > { %v2622_v21 = vpop.f32.mrf.mxu2  ;;  %v2624_v22 = vpop.f32.mrf.mxu3  ;;  %v1541_v19 = vmax.f32 %v1540_v39, %v1387_v6 }
 0x1cd   : > { %v873_v53 = vadd.f32 %v2622_v21, %v2670_v48  ;;  %v938_v15 = vadd.f32 %v2624_v22, %v2677_v52 }
 0x1cf   : > { %v1005_v27 = vpop.f32.mrf.mxu0  ;;  %v1070_v32 = vpop.f32.mrf.mxu1  ;;  %1131 = vmatmul.f32.gmra.mxu2 %v2462_v42  ;;  %1196 = vmatmul.f32.gmra.mxu3 %v2462_v42 }
 0x1d0   : > { %1261 = vmatmul.f32.gmra.mxu0 %v2462_v42  ;;  %1326 = vmatmul.f32.gmra.mxu1 %v2462_v42  ;;  %v1006_v57 = vadd.f32 %v1005_v27, %v2659_v40 }
 0x1d2   : > { %v1395_v62 = vmax.f32 %v1006_v57, 0.0 }
 0x1d4   : > { %v2630_v26 = vpop.f32.mrf.mxu2  ;;  %v2632_v28 = vpop.f32.mrf.mxu3  ;;  %v1542_v47 = vmax.f32 %v1541_v19, %v1395_v62 }
 0x1d7   : > { %v1008_v29 = vpop.f32.mrf.mxu0  ;;  %v1073_v35 = vpop.f32.mrf.mxu1  ;;  %1134 = vmatmul.f32.gmra.mxu2 %v2472_v49  ;;  %1199 = vmatmul.f32.gmra.mxu3 %v2472_v49 }
 0x1d8   : > { %1264 = vmatmul.f32.gmra.mxu0 %v2472_v49  ;;  %1329 = vmatmul.f32.gmra.mxu1 %v2472_v49  ;;  %v1009_v8 = vadd.f32 %v1008_v29, %v2659_v40  ;;  %v1378_v29 = vmax.f32 %v935_v9, 0.0 }
 0x1dc   : > { %v2638_v30 = vpop.f32.mrf.mxu2  ;;  %v2640_v33 = vpop.f32.mrf.mxu3 }
 0x1df   : > { %1137 = vmatmul.f32.gmra.mxu2 %v2482_v59  ;;  %1202 = vmatmul.f32.gmra.mxu3 %v2482_v59  ;;  %v1011_v42 = vpop.f32.mrf.mxu0  ;;  %v2646_v36 = vpop.f32.mrf.mxu1 }
 0x1e0   : > { %1267 = vmatmul.f32.gmra.mxu0 %v2482_v59  ;;  %1332 = vmatmul.f32.gmra.mxu1 %v2482_v59  ;;  %v2662_v59 = vperm.slane %v2648_v37, 3  ;;  %v1012_v11 = vadd.f32 %v1011_v42, %v2659_v40  ;;  %v1385_v42 = vmax.f32 %v873_v53, 0.0 }
 0x1e2   : > { %v1065_v50 = vadd.f32 %v1064_v16, %v2662_v59  ;;  %v1068_v55 = vadd.f32 %v1067_v20, %v2662_v59  ;;  %v1074_v13 = vadd.f32 %v1073_v35, %v2662_v59  ;;  %v1403_v20 = vmax.f32 %v1009_v8, 0.0 }
 0x1e3   : > { %v1411_v22 = vmax.f32 %v1012_v11, 0.0  ;;  %v1077_v57 = vadd.f32 %v2646_v36, %v2662_v59 }
 0x1e4   : > { %v2650_v38 = vpop.f32.mrf.mxu2  ;;  %v2652_v49 = vpop.f32.mrf.mxu3  ;;  %v1380_v1 = vmax.f32 %v1065_v50, 0.0  ;;  %v1388_v10 = vmax.f32 %v1068_v55, 0.0  ;;  %v1386_v50 = vmax.f32 %v938_v15, 0.0  ;;  %v1404_v51 = vmax.f32 %v1074_v13, 0.0 }
 0x1e5   : > { %v1543_v56 = vmax.f32 %v1542_v47, %v1403_v20  ;;  %v1412_v62 = vmax.f32 %v1077_v57, 0.0  ;;  %v882_v15 = vadd.f32 %v2650_v38, %v2670_v48 }
 0x1e7   : > { %1140 = vmatmul.f32.gmra.mxu2 %v2492_v0  ;;  %1205 = vmatmul.f32.gmra.mxu3 %v2492_v0  ;;  %v1014_v41 = vpop.f32.mrf.mxu0  ;;  %v2664_v43 = vpop.f32.mrf.mxu1  ;;  %v1544_v8 = vmax.f32 %v1543_v56, %v1411_v22 }
 0x1e8   : > { %1270 = vmatmul.f32.gmra.mxu0 %v2492_v0  ;;  %1335 = vmatmul.f32.gmra.mxu1 %v2492_v0  ;;  %v1062_v0 = vadd.f32 %v2598_v12, %v2662_v59  ;;  %v1369_v12 = vmax.f32 %v867_v63, 0.0  ;;  %v1015_v27 = vadd.f32 %v1014_v41, %v2659_v40  ;;  %v876_v41 = vadd.f32 %v2630_v26, %v2670_v48 }
 0x1e9   : > { %v944_v26 = vadd.f32 %v2640_v33, %v2677_v52 }
 0x1ea   : > { %v1372_v2 = vmax.f32 %v1062_v0, 0.0  ;;  %v941_v0 = vadd.f32 %v2632_v28, %v2677_v52  ;;  %v1498_v55 = vmax.f32 %v1369_v12, %v1377_v18  ;;  %v1419_v61 = vmax.f32 %v1015_v27, 0.0 }
 0x1eb   : > { %v1080_v28 = vadd.f32 %v2664_v43, %v2662_v59  ;;  %v1402_v33 = vmax.f32 %v944_v26, 0.0  ;;  %v947_v43 = vadd.f32 %v2652_v49, %v2677_v52 }
 0x1ec   : > { %v2683_v58 = vpop.f32.mrf.mxu2  ;;  %v2685_v60 = vpop.f32.mrf.mxu3  ;;  %v1561_v24 = vmax.f32 %v1372_v2, %v1380_v1  ;;  %v1499_v6 = vmax.f32 %v1498_v55, %v1385_v42  ;;  %v1394_v36 = vmax.f32 %v941_v0, 0.0  ;;  %v1545_v11 = vmax.f32 %v1544_v8, %v1419_v61 }
 0x1ed   : > { %v1420_v13 = vmax.f32 %v1080_v28, 0.0  ;;  %v885_v38 = vadd.f32 %v2683_v58, %v2670_v48  ;;  %v950_v49 = vadd.f32 %v2685_v60, %v2677_v52  ;;  %v1409_v42 = vmax.f32 %v882_v15, 0.0 }
 0x1ee   : > { %v1562_v21 = vmax.f32 %v1561_v24, %v1388_v10  ;;  %v1393_v10 = vmax.f32 %v876_v41, 0.0  ;;  %v1410_v47 = vmax.f32 %v947_v43, 0.0 }
 0x1ef   : > { %1143 = vmatmul.f32.gmra.mxu2 %v2502_v7  ;;  %1208 = vmatmul.f32.gmra.mxu3 %v2502_v7  ;;  %v1017_v16 = vpop.f32.mrf.mxu0  ;;  %v1082_v17 = vpop.f32.mrf.mxu1  ;;  %v1417_v58 = vmax.f32 %v885_v38, 0.0 }
 0x1f0   : > { %1273 = vmatmul.f32.gmra.mxu0 %v2502_v7  ;;  %1338 = vmatmul.f32.gmra.mxu1 %v2502_v7  ;;  %v1071_v7 = vadd.f32 %v1070_v32, %v2662_v59  ;;  %v1370_v32 = vmax.f32 %v932_v25, 0.0  ;;  %v1018_v35 = vadd.f32 %v1017_v16, %v2659_v40  ;;  %v1083_v12 = vadd.f32 %v1082_v17, %v2662_v59 }
 0x1f1   : > { %v1500_v17 = vmax.f32 %v1499_v6, %v1393_v10 }
 0x1f2   : > { %v1396_v45 = vmax.f32 %v1071_v7, 0.0  ;;  %v1519_v2 = vmax.f32 %v1370_v32, %v1378_v29  ;;  %v1427_v25 = vmax.f32 %v1018_v35, 0.0  ;;  %v1428_v32 = vmax.f32 %v1083_v12, 0.0 }
 0x1f4   : > { %v887_v63 = vpop.f32.mrf.mxu2  ;;  %v952_v1 = vpop.f32.mrf.mxu3  ;;  %v1563_v4 = vmax.f32 %v1562_v21, %v1396_v45  ;;  %v1520_v9 = vmax.f32 %v1519_v2, %v1386_v50  ;;  %v1546_v16 = vmax.f32 %v1545_v11, %v1427_v25 }
 0x1f5   : > { %v888_v22 = vadd.f32 %v887_v63, %v2670_v48  ;;  %v953_v35 = vadd.f32 %v952_v1, %v2677_v52 }
 0x1f6   : > { %v1564_v7 = vmax.f32 %v1563_v4, %v1404_v51  ;;  %v1521_v20 = vmax.f32 %v1520_v9, %v1394_v36  ;;  %v1418_v51 = vmax.f32 %v950_v49, 0.0 }
 0x1f7   : > { %1146 = vmatmul.f32.gmra.mxu2 %v2512_v14  ;;  %1211 = vmatmul.f32.gmra.mxu3 %v2512_v14  ;;  %v1425_v1 = vmax.f32 %v888_v22, 0.0  ;;  %v1426_v26 = vmax.f32 %v953_v35, 0.0 }
 0x1f8   : > { %1276 = vmatmul.f32.gmra.mxu0 %v2512_v14  ;;  %1341 = vmatmul.f32.gmra.mxu1 %v2512_v14  ;;  %v879_v14 = vadd.f32 %v2638_v30, %v2670_v48  ;;  %v1565_v27 = vmax.f32 %v1564_v7, %v1412_v62  ;;  %v1522_v50 = vmax.f32 %v1521_v20, %v1402_v33 }
 0x1fa   : > { %v1401_v24 = vmax.f32 %v879_v14, 0.0  ;;  %v1566_v41 = vmax.f32 %v1565_v27, %v1420_v13  ;;  %v1523_v14 = vmax.f32 %v1522_v50, %v1410_v47 }
 0x1fc   : > { %v1567_v61 = vmax.f32 %v1566_v41, %v1428_v32  ;;  %v1524_v9 = vmax.f32 %v1523_v14, %v1418_v51 }
 0x1fd   : > { %v1020_v39 = vpop.f32.mrf.mxu0  ;;  %v1085_v53 = vpop.f32.mrf.mxu1 }
 0x1fe   : > { %v1021_v30 = vadd.f32 %v1020_v39, %v2659_v40  ;;  %v1086_v19 = vadd.f32 %v1085_v53, %v2662_v59  ;;  %v1525_v12 = vmax.f32 %v1524_v9, %v1426_v26 }
 0x1ff   : > { %1149 = vmatmul.f32.gmra.mxu2 %v2522_v23  ;;  %1214 = vmatmul.f32.gmra.mxu3 %v2522_v23 }
 0x200   : > { %v1435_v18 = vmax.f32 %v1021_v30, 0.0  ;;  %1279 = vmatmul.f32.gmra.mxu0 %v2522_v23  ;;  %1344 = vmatmul.f32.gmra.mxu1 %v2522_v23  ;;  %v1501_v23 = vmax.f32 %v1500_v17, %v1401_v24  ;;  %v1436_v0 = vmax.f32 %v1086_v19, 0.0 }
 0x202   : > { %v1547_v29 = vmax.f32 %v1546_v16, %v1435_v18  ;;  %v890_v21 = vpop.f32.mrf.mxu2  ;;  %v955_v45 = vpop.f32.mrf.mxu3  ;;  %v1502_v63 = vmax.f32 %v1501_v23, %v1409_v42  ;;  %v1568_v6 = vmax.f32 %v1567_v61, %v1436_v0 }
 0x203   : > { %v891_v60 = vadd.f32 %v890_v21, %v2670_v48  ;;  %v956_v55 = vadd.f32 %v955_v45, %v2677_v52 }
 0x204   : > { %v1503_v25 = vmax.f32 %v1502_v63, %v1417_v58 }
 0x205   : > { %v1023_v56 = vpop.f32.mrf.mxu0  ;;  %v1088_v57 = vpop.f32.mrf.mxu1  ;;  %v1433_v10 = vmax.f32 %v891_v60, 0.0  ;;  %v1434_v36 = vmax.f32 %v956_v55, 0.0 }
 0x206   : > { %v1024_v2 = vadd.f32 %v1023_v56, %v2659_v40  ;;  %v1089_v4 = vadd.f32 %v1088_v57, %v2662_v59  ;;  %v1504_v11 = vmax.f32 %v1503_v25, %v1425_v1 }
 0x207   : > { %1152 = vmatmul.f32.gmra.mxu2 %v2532_v34  ;;  %1217 = vmatmul.f32.gmra.mxu3 %v2532_v34  ;;  %v1526_v15 = vmax.f32 %v1525_v12, %v1434_v36 }
 0x208   : > { %v1443_v8 = vmax.f32 %v1024_v2, 0.0  ;;  %v1444_v28 = vmax.f32 %v1089_v4, 0.0  ;;  %1282 = vmatmul.f32.gmra.mxu0 %v2532_v34  ;;  %1347 = vmatmul.f32.gmra.mxu1 %v2532_v34  ;;  %v1505_v33 = vmax.f32 %v1504_v11, %v1433_v10 }
 0x20a   : > { %v1548_v7 = vmax.f32 %v1547_v29, %v1443_v8  ;;  %v1569_v39 = vmax.f32 %v1568_v6, %v1444_v28  ;;  %v893_v53 = vpop.f32.mrf.mxu2  ;;  %v958_v62 = vpop.f32.mrf.mxu3 }
 0x20b   : > { %v894_v30 = vadd.f32 %v893_v53, %v2670_v48  ;;  %v959_v24 = vadd.f32 %v958_v62, %v2677_v52 }
 0x20d   : > { %v1441_v43 = vmax.f32 %v894_v30, 0.0  ;;  %v1442_v13 = vmax.f32 %v959_v24, 0.0  ;;  %v1026_v16 = vpop.f32.mrf.mxu0  ;;  %v1091_v34 = vpop.f32.mrf.mxu1 }
 0x20e   : > { %v1027_v18 = vadd.f32 %v1026_v16, %v2659_v40  ;;  %v1092_v19 = vadd.f32 %v1091_v34, %v2662_v59 }
 0x20f   : > { %v1506_v17 = vmax.f32 %v1505_v33, %v1441_v43  ;;  %v1527_v38 = vmax.f32 %v1526_v15, %v1442_v13  ;;  %1155 = vmatmul.f32.gmra.mxu2 %v2542_v44  ;;  %1220 = vmatmul.f32.gmra.mxu3 %v2542_v44 }
 0x210   : > { %v1451_v49 = vmax.f32 %v1027_v18, 0.0  ;;  %v1452_v20 = vmax.f32 %v1092_v19, 0.0  ;;  %1285 = vmatmul.f32.gmra.mxu0 %v2542_v44  ;;  %1350 = vmatmul.f32.gmra.mxu1 %v2542_v44 }
 0x212   : > { %v1549_v27 = vmax.f32 %v1548_v7, %v1451_v49  ;;  %v1570_v32 = vmax.f32 %v1569_v39, %v1452_v20  ;;  %v896_v29 = vpop.f32.mrf.mxu2  ;;  %v961_v21 = vpop.f32.mrf.mxu3 }
 0x213   : > { %v897_v45 = vadd.f32 %v896_v29, %v2670_v48  ;;  %v962_v42 = vadd.f32 %v961_v21, %v2677_v52 }
 0x215   : > { %v1449_v47 = vmax.f32 %v897_v45, 0.0  ;;  %v1450_v22 = vmax.f32 %v962_v42, 0.0  ;;  %v1029_v35 = vpop.f32.mrf.mxu0  ;;  %v1094_v23 = vpop.f32.mrf.mxu1 }
 0x216   : > { %v1030_v50 = vadd.f32 %v1029_v35, %v2659_v40  ;;  %v1095_v41 = vadd.f32 %v1094_v23, %v2662_v59 }
 0x217   : > { %v1507_v0 = vmax.f32 %v1506_v17, %v1449_v47  ;;  %v1528_v58 = vmax.f32 %v1527_v38, %v1450_v22  ;;  %1158 = vmatmul.f32.gmra.mxu2 %v2552_v54  ;;  %1223 = vmatmul.f32.gmra.mxu3 %v2552_v54 }
 0x218   : > { %v1459_v44 = vmax.f32 %v1030_v50, 0.0  ;;  %v1460_v51 = vmax.f32 %v1095_v41, 0.0  ;;  %1288 = vmatmul.f32.gmra.mxu0 %v2552_v54  ;;  %1353 = vmatmul.f32.gmra.mxu1 %v2552_v54 }
 0x21a   : > { %v1550_v60 = vmax.f32 %v1549_v27, %v1459_v44  ;;  %v1571_v55 = vmax.f32 %v1570_v32, %v1460_v51  ;;  %v899_v56 = vpop.f32.mrf.mxu2  ;;  %v964_v57 = vpop.f32.mrf.mxu3 }
 0x21b   : > { %v900_v61 = vadd.f32 %v899_v56, %v2670_v48  ;;  %v965_v2 = vadd.f32 %v964_v57, %v2677_v52 }
 0x21d   : > { %v1457_v4 = vmax.f32 %v900_v61, 0.0  ;;  %v1458_v63 = vmax.f32 %v965_v2, 0.0  ;;  %v1032_v14 = vpop.f32.mrf.mxu0  ;;  %v1097_v1 = vpop.f32.mrf.mxu1 }
 0x21e   : > { %v1033_v26 = vadd.f32 %v1032_v14, %v2659_v40  ;;  %v1098_v6 = vadd.f32 %v1097_v1, %v2662_v59 }
 0x21f   : > { %v1508_v8 = vmax.f32 %v1507_v0, %v1457_v4  ;;  %v1529_v28 = vmax.f32 %v1528_v58, %v1458_v63  ;;  %1161 = vmatmul.f32.gmra.mxu2 %v2563_v3  ;;  %1226 = vmatmul.f32.gmra.mxu3 %v2563_v3 }
 0x220   : > { %v1467_v54 = vmax.f32 %v1033_v26, 0.0  ;;  %v1468_v25 = vmax.f32 %v1098_v6, 0.0  ;;  %1291 = vmatmul.f32.gmra.mxu0 %v2563_v3  ;;  %1356 = vmatmul.f32.gmra.mxu1 %v2563_v3 }
 0x222   : > { %v1551_v9 = vmax.f32 %v1550_v60, %v1467_v54  ;;  %v1572_v10 = vmax.f32 %v1571_v55, %v1468_v25  ;;  %v902_v36 = vpop.f32.mrf.mxu2  ;;  %v967_v7 = vpop.f32.mrf.mxu3  ;;  %v2798_v54 = vperm.slane %v2648_v37, 6 }
 0x223   : > { %v903_v39 = vadd.f32 %v902_v36, %v2670_v48  ;;  %v968_v53 = vadd.f32 %v967_v7, %v2677_v52 }
 0x225   : > { %v1465_v62 = vmax.f32 %v903_v39, 0.0  ;;  %v1466_v11 = vmax.f32 %v968_v53, 0.0  ;;  %v1035_v12 = vpop.f32.mrf.mxu0  ;;  %v1100_v30 = vpop.f32.mrf.mxu1 }
 0x226   : > { %v1036_v24 = vadd.f32 %v1035_v12, %v2659_v40  ;;  %v1101_v33 = vadd.f32 %v1100_v30, %v2662_v59 }
 0x227   : > { %v1509_v15 = vmax.f32 %v1508_v8, %v1465_v62  ;;  %v1530_v43 = vmax.f32 %v1529_v28, %v1466_v11  ;;  %1164 = vmatmul.f32.gmra.mxu2 %v2573_v31  ;;  %1229 = vmatmul.f32.gmra.mxu3 %v2573_v31 }
 0x228   : > { %v1475_v3 = vmax.f32 %v1036_v24, 0.0  ;;  %v1476_v13 = vmax.f32 %v1101_v33, 0.0  ;;  %1294 = vmatmul.f32.gmra.mxu0 %v2573_v31  ;;  %1359 = vmatmul.f32.gmra.mxu1 %v2573_v31 }
 0x22a   : > { %v1552_v16 = vmax.f32 %v1551_v9, %v1475_v3  ;;  %v1573_v34 = vmax.f32 %v1572_v10, %v1476_v13  ;;  %v905_v18 = vpop.f32.mrf.mxu2  ;;  %v970_v19 = vpop.f32.mrf.mxu3  ;;  %v2801_v9 = vperm.slane %v2648_v37, 7 }
 0x22b   : > { %v906_v17 = vadd.f32 %v905_v18, %v2670_v48  ;;  %v971_v38 = vadd.f32 %v970_v19, %v2677_v52 }
 0x22d   : > { %v1473_v49 = vmax.f32 %v906_v17, 0.0  ;;  %v1474_v20 = vmax.f32 %v971_v38, 0.0  ;;  %v1038_v27 = vpop.f32.mrf.mxu0  ;;  %v1103_v32 = vpop.f32.mrf.mxu1 }
 0x22e   : > { %v1039_v29 = vadd.f32 %v1038_v27, %v2659_v40  ;;  %v1104_v21 = vadd.f32 %v1103_v32, %v2662_v59 }
 0x22f   : > { %v1510_v45 = vmax.f32 %v1509_v15, %v1473_v49  ;;  %v1531_v42 = vmax.f32 %v1530_v43, %v1474_v20  ;;  %1167 = vmatmul.f32.gmra.mxu2 %v2583_v46  ;;  %1232 = vmatmul.f32.gmra.mxu3 %v2583_v46 }
 0x230   : > { %v1483_v31 = vmax.f32 %v1039_v29, 0.0  ;;  %v1484_v47 = vmax.f32 %v1104_v21, 0.0  ;;  %1297 = vmatmul.f32.gmra.mxu0 %v2583_v46  ;;  %1362 = vmatmul.f32.gmra.mxu1 %v2583_v46 }
 0x232   : > { %v1553_v22 = vmax.f32 %v1552_v16, %v1483_v31  ;;  %v1574_v35 = vmax.f32 %v1573_v34, %v1484_v47  ;;  %v908_v23 = vpop.f32.mrf.mxu2  ;;  %v973_v50 = vpop.f32.mrf.mxu3  ;;  %v2807_v16 = vperm.slane %v2648_v37, 4  ;;  %v2810_v34 = vperm.slane %v2648_v37, 5 }
 0x233   : > { %v909_v41 = vadd.f32 %v908_v23, %v2670_v48  ;;  %v974_v0 = vadd.f32 %v973_v50, %v2677_v52 }
 0x235   : > { %v1481_v58 = vmax.f32 %v909_v41, 0.0  ;;  %v1482_v44 = vmax.f32 %v974_v0, 0.0  ;;  %v1041_v51 = vpop.f32.mrf.mxu0  ;;  %v1106_v60 = vpop.f32.mrf.mxu1 }
 0x236   : > { %v1042_v55 = vadd.f32 %v1041_v51, %v2659_v40  ;;  %v1107_v56 = vadd.f32 %v1106_v60, %v2662_v59 }
 0x237   : > { %v1511_v57 = vmax.f32 %v1510_v45, %v1481_v58  ;;  %v1532_v61 = vmax.f32 %v1531_v42, %v1482_v44  ;;  %1170 = vmatmul.f32.gmra.mxu2 %v2593_v5  ;;  %1235 = vmatmul.f32.gmra.mxu3 %v2593_v5 }
 0x238   : > { %v1491_v46 = vmax.f32 %v1042_v55, 0.0  ;;  %v1492_v2 = vmax.f32 %v1107_v56, 0.0  ;;  %1365 = vmatmul.f32.gmra.mxu1 %v2593_v5 }
 0x23a   : > { %v1554_v4 = vmax.f32 %v1553_v22, %v1491_v46  ;;  %v1575_v63 = vmax.f32 %v1574_v35, %v1492_v2  ;;  %v911_v14 = vpop.f32.mrf.mxu2  ;;  %v976_v1 = vpop.f32.mrf.mxu3 }
 0x23b   : > { %v912_v26 = vadd.f32 %v911_v14, %v2670_v48  ;;  %v977_v40 = vadd.f32 %v976_v1, %v2677_v52 }
 0x23c   : > { %v1555_v6 = vrot.slane %v1554_v4, 4  ;;  %v1576_v59 = vrot.slane %v1575_v63, 4 }
 0x23d   : > { %v1489_v8 = vmax.f32 %v912_v26, 0.0  ;;  %v1490_v28 = vmax.f32 %v977_v40, 0.0  ;;  %v1256_v25 = vpop.f32.mrf.mxu0  ;;  %v1321_v10 = vpop.f32.mrf.mxu1 }
 0x23e   : > { %v1556_v36 = vmax.f32 %v1554_v4, %v1555_v6  ;;  %v1577_v7 = vmax.f32 %v1575_v63, %v1576_v59  ;;  %v1257_v12 = vadd.f32 %v1256_v25, %v2798_v54  ;;  %v1322_v30 = vadd.f32 %v1321_v10, %v2801_v9 }
 0x23f   : > { %v1512_v39 = vmax.f32 %v1511_v57, %v1489_v8  ;;  %v1533_v53 = vmax.f32 %v1532_v61, %v1490_v28  ;;  %1300 = vmatmul.f32.vlgmr.msrb.gmra.mxu2 %v2593_v5 }
 0x240   : > { %v1557_v48 = vrot.slane %v1556_v36, 2  ;;  %v1578_v52 = vrot.slane %v1577_v7, 2  ;;  %v1375_v38 = vmax.f32 %v1257_v12, 0.0  ;;  %v1376_v49 = vmax.f32 %v1322_v30, 0.0 }
 0x241   : > { %v1513_v62 = vrot.slane %v1512_v39, 4  ;;  %v1534_v11 = vrot.slane %v1533_v53, 4 }
 0x242   : > { %v1558_v24 = vmax.f32 %v1556_v36, %v1557_v48  ;;  %v1579_v33 = vmax.f32 %v1577_v7, %v1578_v52  ;;  %v1126_v15 = vpop.f32.mrf.mxu2  ;;  %v1191_v43 = vpop.f32.mrf.mxu3 }
 0x243   : > { %v1514_v3 = vmax.f32 %v1512_v39, %v1513_v62  ;;  %v1535_v13 = vmax.f32 %v1533_v53, %v1534_v11  ;;  %v1127_v37 = vadd.f32 %v1126_v15, %v2807_v16  ;;  %v1192_v47 = vadd.f32 %v1191_v43, %v2810_v34 }
 0x244   : > { %v1559_v5 = vrot.slane %v1558_v24, 1  ;;  %v1580_v18 = vrot.slane %v1579_v33, 1 }
 0x245   : > { %v1515_v19 = vrot.slane %v1514_v3, 2  ;;  %v1536_v17 = vrot.slane %v1535_v13, 2  ;;  %v1259_v20 = vpop.f32.mrf.mxu0  ;;  %v1324_v27 = vpop.f32.mrf.mxu1  ;;  %v1373_v46 = vmax.f32 %v1127_v37, 0.0  ;;  %v1374_v2 = vmax.f32 %v1192_v47, 0.0 }
 0x246   : > { %v1560_v32 = vmax.f32 %v1558_v24, %v1559_v5  ;;  %v1581_v29 = vmax.f32 %v1579_v33, %v1580_v18  ;;  %v1260_v21 = vadd.f32 %v1259_v20, %v2798_v54  ;;  %v1325_v45 = vadd.f32 %v1324_v27, %v2801_v9 }
 0x247   : > { %v1516_v42 = vmax.f32 %v1514_v3, %v1515_v19  ;;  %v1537_v31 = vmax.f32 %v1535_v13, %v1536_v17 }
 0x248   : > { %v1675_v22 = vrot.slane %v1560_v32, 6  ;;  %v1676_v35 = vrot.slane %v1581_v29, 5  ;;  %v1383_v23 = vmax.f32 %v1260_v21, 0.0  ;;  %v1384_v50 = vmax.f32 %v1325_v45, 0.0 }
 0x249   : > { %v1517_v41 = vrot.slane %v1516_v42, 1  ;;  %v1538_v0 = vrot.slane %v1537_v31, 1 }
 0x24a   : > { %v1684_v58 = vsel %vm1683_vm1, %v1675_v22, %v1676_v35  ;;  %v1624_v44 = vmax.f32 %v1375_v38, %v1383_v23  ;;  %v1645_v51 = vmax.f32 %v1376_v49, %v1384_v50  ;;  %v1129_v60 = vpop.f32.mrf.mxu2  ;;  %v1194_v55 = vpop.f32.mrf.mxu3 }
 0x24b   : > { %v1539_v56 = vmax.f32 %v1537_v31, %v1538_v0  ;;  %v1130_v57 = vadd.f32 %v1129_v60, %v2807_v16  ;;  %v1195_v61 = vadd.f32 %v1194_v55, %v2810_v34  ;;  %v1518_v4 = vmax.f32 %v1516_v42, %v1517_v41 }
 0x24d   : > { %v1674_v63 = vrot.slane %v1539_v56, 7  ;;  %v1381_v14 = vmax.f32 %v1130_v57, 0.0  ;;  %v1382_v1 = vmax.f32 %v1195_v61, 0.0  ;;  %v1262_v26 = vpop.f32.mrf.mxu0  ;;  %v1327_v40 = vpop.f32.mrf.mxu1 }
 0x24e   : > { %v1263_v6 = vadd.f32 %v1262_v26, %v2798_v54  ;;  %v1328_v59 = vadd.f32 %v1327_v40, %v2801_v9 }
 0x24f   : > { %v1682_v8 = vsel %vm1681_vm2, %v1518_v4, %v1674_v63  ;;  %v1582_v28 = vmax.f32 %v1373_v46, %v1381_v14  ;;  %v1603_v25 = vmax.f32 %v1374_v2, %v1382_v1 }
 0x250   : > { %v2821_v10 = vsel %vm1685_vm3, %v1682_v8, %v1684_v58  ;;  %v1391_v36 = vmax.f32 %v1263_v6, 0.0  ;;  %v1392_v7 = vmax.f32 %v1328_v59, 0.0 }
 0x252   : > { %v1625_v39 = vmax.f32 %v1624_v44, %v1391_v36  ;;  %v1646_v53 = vmax.f32 %v1645_v51, %v1392_v7  ;;  %v1132_v48 = vpop.f32.mrf.mxu2  ;;  %v1197_v52 = vpop.f32.mrf.mxu3 }
 0x253   : > { %v1133_v62 = vadd.f32 %v1132_v48, %v2807_v16  ;;  %v1198_v11 = vadd.f32 %v1197_v52, %v2810_v34 }
 0x255   : > { %v1389_v12 = vmax.f32 %v1133_v62, 0.0  ;;  %v1390_v30 = vmax.f32 %v1198_v11, 0.0  ;;  %v1265_v24 = vpop.f32.mrf.mxu0  ;;  %v1330_v33 = vpop.f32.mrf.mxu1 }
 0x256   : > { %v1266_v15 = vadd.f32 %v1265_v24, %v2798_v54  ;;  %v1331_v43 = vadd.f32 %v1330_v33, %v2801_v9 }
 0x257   : > { %v1583_v3 = vmax.f32 %v1582_v28, %v1389_v12  ;;  %v1604_v13 = vmax.f32 %v1603_v25, %v1390_v30 }
 0x258   : > { %v1399_v5 = vmax.f32 %v1266_v15, 0.0  ;;  %v1400_v18 = vmax.f32 %v1331_v43, 0.0 }
 0x25a   : > { %v2827_v19 = vmax.f32 %v1625_v39, %v1399_v5  ;;  %v1647_v17 = vmax.f32 %v1646_v53, %v1400_v18  ;;  %v1135_v38 = vpop.f32.mrf.mxu2  ;;  %v1200_v49 = vpop.f32.mrf.mxu3 }
 0x25b   : > { %v1136_v20 = vadd.f32 %v1135_v38, %v2807_v16  ;;  %v1201_v27 = vadd.f32 %v1200_v49, %v2810_v34 }
 0x25d   : > { %v1397_v32 = vmax.f32 %v1136_v20, 0.0  ;;  %v1398_v29 = vmax.f32 %v1201_v27, 0.0  ;;  %v1268_v21 = vpop.f32.mrf.mxu0  ;;  %v1333_v45 = vpop.f32.mrf.mxu1 }
 0x25e   : > { %v1334_v42 = vadd.f32 %v1333_v45, %v2801_v9  ;;  %v1269_v24 = vadd.f32 %v1268_v21, %v2798_v54 }
 0x25f   : > { %v1584_v31 = vmax.f32 %v1583_v3, %v1397_v32  ;;  %v1605_v37 = vmax.f32 %v1604_v13, %v1398_v29 }
 0x260   : > { %v1408_v47 = vmax.f32 %v1334_v42, 0.0  ;;  %v1407_v18 = vmax.f32 %v1269_v24, 0.0 }
 0x262   : > { %v2832_v22 = vmax.f32 %v1647_v17, %v1408_v47  ;;  %v1138_v35 = vpop.f32.mrf.mxu2  ;;  %v1203_v23 = vpop.f32.mrf.mxu3  ;;  %v1627_v45 = vmax.f32 %v2827_v19, %v1407_v18 }
 0x263   : > { %v1139_v50 = vadd.f32 %v1138_v35, %v2807_v16  ;;  %v1204_v41 = vadd.f32 %v1203_v23, %v2810_v34 }
 0x265   : > { %v1405_v0 = vmax.f32 %v1139_v50, 0.0  ;;  %v1406_v58 = vmax.f32 %v1204_v41, 0.0  ;;  %v1271_v44 = vpop.f32.mrf.mxu0  ;;  %v1336_v51 = vpop.f32.mrf.mxu1 }
 0x266   : > { %v1272_v3 = vadd.f32 %v1271_v44, %v2798_v54  ;;  %v1337_v13 = vadd.f32 %v1336_v51, %v2801_v9 }
 0x267   : > { %v1585_v60 = vmax.f32 %v1584_v31, %v1405_v0  ;;  %v2836_v55 = vmax.f32 %v1605_v37, %v1406_v58 }
 0x268   : > { %v1415_v27 = vmax.f32 %v1272_v3, 0.0  ;;  %v1416_v29 = vmax.f32 %v1337_v13, 0.0 }
 0x26a   : > { %v1141_v56 = vpop.f32.mrf.mxu2  ;;  %v1206_v57 = vpop.f32.mrf.mxu3  ;;  %v1628_v58 = vmax.f32 %v1627_v45, %v1415_v27  ;;  %v1649_v19 = vmax.f32 %v2832_v22, %v1416_v29 }
 0x26b   : > { %v1142_v61 = vadd.f32 %v1141_v56, %v2807_v16  ;;  %v1207_v17 = vadd.f32 %v1206_v57, %v2810_v34 }
 0x26d   : > { %v1413_v46 = vmax.f32 %v1142_v61, 0.0  ;;  %v1274_v2 = vpop.f32.mrf.mxu0  ;;  %v1339_v4 = vpop.f32.mrf.mxu1  ;;  %v1414_v42 = vmax.f32 %v1207_v17, 0.0 }
 0x26e   : > { %v1275_v38 = vadd.f32 %v1274_v2, %v2798_v54  ;;  %v1340_v49 = vadd.f32 %v1339_v4, %v2801_v9 }
 0x26f   : > { %v1586_v63 = vmax.f32 %v1585_v60, %v1413_v46  ;;  %v1607_v4 = vmax.f32 %v2836_v55, %v1414_v42 }
 0x270   : > { %v1423_v23 = vmax.f32 %v1275_v38, 0.0  ;;  %v1424_v50 = vmax.f32 %v1340_v49, 0.0 }
 0x272   : > { %v1144_v14 = vpop.f32.mrf.mxu2  ;;  %v1209_v1 = vpop.f32.mrf.mxu3 }
 0x273   : > { %v1145_v20 = vadd.f32 %v1144_v14, %v2807_v16  ;;  %v1210_v32 = vadd.f32 %v1209_v1, %v2810_v34 }
 0x275   : > { %v1277_v26 = vpop.f32.mrf.mxu0  ;;  %v1342_v40 = vpop.f32.mrf.mxu1  ;;  %v1421_v41 = vmax.f32 %v1145_v20, 0.0  ;;  %v1422_v44 = vmax.f32 %v1210_v32, 0.0 }
 0x276   : > { %v1278_v21 = vadd.f32 %v1277_v26, %v2798_v54  ;;  %v1343_v31 = vadd.f32 %v1342_v40, %v2801_v9  ;;  %v1629_v40 = vmax.f32 %v1628_v58, %v1423_v23 }
 0x278   : > { %v1431_v56 = vmax.f32 %v1278_v21, 0.0  ;;  %v1432_v14 = vmax.f32 %v1343_v31, 0.0 }
 0x27a   : > { %v1147_v6 = vpop.f32.mrf.mxu2  ;;  %v1212_v59 = vpop.f32.mrf.mxu3  ;;  %v1630_v3 = vmax.f32 %v1629_v40, %v1431_v56 }
 0x27b   : > { %v1148_v37 = vadd.f32 %v1147_v6, %v2807_v16  ;;  %v1213_v0 = vadd.f32 %v1212_v59, %v2810_v34  ;;  %v1650_v6 = vmax.f32 %v1649_v19, %v1424_v50  ;;  %v1587_v59 = vmax.f32 %v1586_v63, %v1421_v41 }
 0x27d   : > { %v1280_v8 = vpop.f32.mrf.mxu0  ;;  %v1345_v28 = vpop.f32.mrf.mxu1  ;;  %v1429_v1 = vmax.f32 %v1148_v37, 0.0  ;;  %v1651_v17 = vmax.f32 %v1650_v6, %v1432_v14 }
 0x27e   : > { %v1281_v51 = vadd.f32 %v1280_v8, %v2798_v54  ;;  %v1346_v60 = vadd.f32 %v1345_v28, %v2801_v9  ;;  %v1430_v8 = vmax.f32 %v1213_v0, 0.0  ;;  %v1608_v28 = vmax.f32 %v1607_v4, %v1422_v44 }
 0x27f   : > { %v1588_v55 = vmax.f32 %v1587_v59, %v1429_v1 }
 0x280   : > { %v1439_v22 = vmax.f32 %v1281_v51, 0.0  ;;  %v1440_v24 = vmax.f32 %v1346_v60, 0.0  ;;  %v1609_v27 = vmax.f32 %v1608_v28, %v1430_v8 }
 0x282   : > { %v1150_v25 = vpop.f32.mrf.mxu2  ;;  %v1215_v36 = vpop.f32.mrf.mxu3  ;;  %v1631_v29 = vmax.f32 %v1630_v3, %v1439_v22  ;;  %v1652_v21 = vmax.f32 %v1651_v17, %v1440_v24 }
 0x283   : > { %v1151_v57 = vadd.f32 %v1150_v25, %v2807_v16  ;;  %v1216_v61 = vadd.f32 %v1215_v36, %v2810_v34 }
 0x285   : > { %v1348_v7 = vpop.f32.mrf.mxu1  ;;  %v2839_v39 = vpop.f32.mrf.mxu0  ;;  %v1437_v36 = vmax.f32 %v1151_v57, 0.0  ;;  %v1438_v13 = vmax.f32 %v1216_v61, 0.0 }
 0x286   : > { %v1349_v26 = vadd.f32 %v1348_v7, %v2801_v9  ;;  %v1284_v63 = vadd.f32 %v2839_v39, %v2798_v54 }
 0x287   : > { %v1589_v42 = vmax.f32 %v1588_v55, %v1437_v36  ;;  %v1610_v31 = vmax.f32 %v1609_v27, %v1438_v13 }
 0x288   : > { %v1448_v38 = vmax.f32 %v1349_v26, 0.0 }
 0x28a   : > { %v1153_v53 = vpop.f32.mrf.mxu2  ;;  %v2841_v48 = vpop.f32.mrf.mxu3  ;;  %v1653_v50 = vmax.f32 %v1652_v21, %v1448_v38 }
 0x28b   : > { %v1154_v18 = vadd.f32 %v1153_v53, %v2807_v16  ;;  %v1219_v32 = vadd.f32 %v2841_v48, %v2810_v34 }
 0x28d   : > { %v1351_v52 = vpop.f32.mrf.mxu1  ;;  %v2843_v62 = vpop.f32.mrf.mxu0  ;;  %v1446_v0 = vmax.f32 %v1219_v32, 0.0 }
 0x28e   : > { %v1352_v25 = vadd.f32 %v1351_v52, %v2801_v9  ;;  %v1287_v57 = vadd.f32 %v2843_v62, %v2798_v54 }
 0x28f   : > { %v1611_v40 = vmax.f32 %v1610_v31, %v1446_v0 }
 0x290   : > { %v1456_v53 = vmax.f32 %v1352_v25, 0.0  ;;  %v1455_v38 = vmax.f32 %v1287_v57, 0.0 }
 0x292   : > { %v2845_v11 = vpop.f32.mrf.mxu2  ;;  %v2847_v12 = vpop.f32.mrf.mxu3  ;;  %v1654_v51 = vmax.f32 %v1653_v50, %v1456_v53 }
 0x293   : > { %v1157_v52 = vadd.f32 %v2845_v11, %v2807_v16  ;;  %v1222_v37 = vadd.f32 %v2847_v12, %v2810_v34  ;;  %v1447_v11 = vmax.f32 %v1284_v63, 0.0 }
 0x295   : > { %v1354_v30 = vpop.f32.mrf.mxu1  ;;  %v2854_v43 = vpop.f32.mrf.mxu0  ;;  %v1453_v58 = vmax.f32 %v1157_v52, 0.0 }
 0x296   : > { %v1355_v49 = vadd.f32 %v1354_v30, %v2801_v9  ;;  %v1445_v30 = vmax.f32 %v1154_v18, 0.0 }
 0x298   : > { %v1464_v39 = vmax.f32 %v1355_v49, 0.0  ;;  %v1590_v56 = vmax.f32 %v1589_v42, %v1445_v30 }
 0x29a   : > { %v2850_v33 = vpop.f32.mrf.mxu2  ;;  %v2852_v15 = vpop.f32.mrf.mxu3  ;;  %v1591_v6 = vmax.f32 %v1590_v56, %v1453_v58 }
 0x29b   : > { %v1160_v48 = vadd.f32 %v2850_v33, %v2807_v16  ;;  %v1454_v33 = vmax.f32 %v1222_v37, 0.0 }
 0x29d   : > { %v1357_v5 = vpop.f32.mrf.mxu1  ;;  %v2875_v46 = vpop.f32.mrf.mxu0  ;;  %v1461_v4 = vmax.f32 %v1160_v48, 0.0  ;;  %v1612_v24 = vmax.f32 %v1611_v40, %v1454_v33 }
 0x29e   : > { %v1358_v45 = vadd.f32 %v1357_v5, %v2801_v9  ;;  %v1225_v5 = vadd.f32 %v2852_v15, %v2810_v34 }
 0x29f   : > { %v1592_v13 = vmax.f32 %v1591_v6, %v1461_v4 }
 0x2a0   : > { %v1472_v60 = vmax.f32 %v1358_v45, 0.0 }
 0x2a2   : > { %v1162_v47 = vpop.f32.mrf.mxu2  ;;  %v2867_v35 = vpop.f32.mrf.mxu3 }
 0x2a3   : > { %v1163_v19 = vadd.f32 %v1162_v47, %v2807_v16  ;;  %v1228_v61 = vadd.f32 %v2867_v35, %v2810_v34  ;;  %v1462_v47 = vmax.f32 %v1225_v5, 0.0  ;;  %v1290_v35 = vadd.f32 %v2854_v43, %v2798_v54 }
 0x2a4   : > { %v1632_v43 = vmax.f32 %v1631_v29, %v1447_v11 }
 0x2a5   : > { %v1360_v2 = vpop.f32.mrf.mxu1  ;;  %v1295_v44 = vpop.f32.mrf.mxu0  ;;  %v1469_v28 = vmax.f32 %v1163_v19, 0.0  ;;  %v1470_v25 = vmax.f32 %v1228_v61, 0.0  ;;  %v1613_v49 = vmax.f32 %v1612_v24, %v1462_v47  ;;  %v1463_v42 = vmax.f32 %v1290_v35, 0.0 }
 0x2a6   : > { %v1361_v41 = vadd.f32 %v1360_v2, %v2801_v9  ;;  %v1655_v2 = vmax.f32 %v1654_v51, %v1464_v39  ;;  %v1296_v31 = vadd.f32 %v1295_v44, %v2798_v54  ;;  %v1633_v48 = vmax.f32 %v1632_v43, %v1455_v38 }
 0x2a7   : > { %v1593_v27 = vmax.f32 %v1592_v13, %v1469_v28  ;;  %v1614_v21 = vmax.f32 %v1613_v49, %v1470_v25 }
 0x2a8   : > { %v1480_v14 = vmax.f32 %v1361_v41, 0.0  ;;  %v1656_v8 = vmax.f32 %v1655_v2, %v1472_v60  ;;  %v1634_v60 = vmax.f32 %v1633_v48, %v1463_v42  ;;  %v1479_v44 = vmax.f32 %v1296_v31, 0.0 }
 0x2aa   : > { %v1165_v7 = vpop.f32.mrf.mxu2  ;;  %v1230_v20 = vpop.f32.mrf.mxu3  ;;  %v1657_v18 = vmax.f32 %v1656_v8, %v1480_v14 }
 0x2ab   : > { %v1166_v15 = vadd.f32 %v1165_v7, %v2807_v16  ;;  %v1231_v59 = vadd.f32 %v1230_v20, %v2810_v34  ;;  %v1293_v7 = vadd.f32 %v2875_v46, %v2798_v54 }
 0x2ad   : > { %v1363_v23 = vpop.f32.mrf.mxu1  ;;  %v1477_v17 = vmax.f32 %v1166_v15, 0.0  ;;  %v1478_v20 = vmax.f32 %v1231_v59, 0.0  ;;  %v1298_v53 = vpop.f32.mrf.mxu0  ;;  %v1471_v41 = vmax.f32 %v1293_v7, 0.0 }
 0x2ae   : > { %v1364_v12 = vadd.f32 %v1363_v23, %v2801_v9  ;;  %v1299_v0 = vadd.f32 %v1298_v53, %v2798_v54 }
 0x2af   : > { %v1594_v30 = vmax.f32 %v1593_v27, %v1477_v17  ;;  %v1615_v50 = vmax.f32 %v1614_v21, %v1478_v20  ;;  %v1635_v56 = vmax.f32 %v1634_v60, %v1471_v41 }
 0x2b0   : > { %v1488_v22 = vmax.f32 %v1364_v12, 0.0  ;;  %v1487_v57 = vmax.f32 %v1299_v0, 0.0 }
 0x2b1   : > { %v1636_v2 = vmax.f32 %v1635_v56, %v1479_v44 }
 0x2b2   : > { %v1168_v1 = vpop.f32.mrf.mxu2  ;;  %v1233_v26 = vpop.f32.mrf.mxu3  ;;  %v1658_v63 = vmax.f32 %v1657_v18, %v1488_v22 }
 0x2b3   : > { %v1169_v62 = vadd.f32 %v1168_v1, %v2807_v16  ;;  %v1234_v3 = vadd.f32 %v1233_v26, %v2810_v34  ;;  %v1637_v1 = vmax.f32 %v1636_v2, %v1487_v57 }
 0x2b5   : > { %v1366_v36 = vpop.f32.mrf.mxu1  ;;  %v1485_v32 = vmax.f32 %v1169_v62, 0.0  ;;  %v1486_v45 = vmax.f32 %v1234_v3, 0.0 }
 0x2b6   : > { %v1367_v55 = vadd.f32 %v1366_v36, %v2801_v9 }
 0x2b7   : > { %v1595_v29 = vmax.f32 %v1594_v30, %v1485_v32  ;;  %v1616_v11 = vmax.f32 %v1615_v50, %v1486_v45 }
 0x2b8   : > { %v1496_v52 = vmax.f32 %v1367_v55, 0.0 }
 0x2ba   : > { %v1659_v37 = vmax.f32 %v1658_v63, %v1496_v52  ;;  %v1171_v9 = vpop.f32.mrf.mxu2  ;;  %v1236_v23 = vpop.f32.mrf.mxu3 }
 0x2bb   : > { %v1172_v39 = vadd.f32 %v1171_v9, %v2807_v16  ;;  %v1237_v46 = vadd.f32 %v1236_v23, %v2810_v34 }
 0x2bc   : > { %v1660_v58 = vrot.slane %v1659_v37, 4 }
 0x2bd   : > { %v1493_v5 = vmax.f32 %v1172_v39, 0.0  ;;  %v1494_v51 = vmax.f32 %v1237_v46, 0.0 }
 0x2be   : > { %v1661_v33 = vmax.f32 %v1659_v37, %v1660_v58 }
 0x2bf   : > { %v1596_v19 = vmax.f32 %v1595_v29, %v1493_v5  ;;  %v1617_v12 = vmax.f32 %v1616_v11, %v1494_v51 }
 0x2c0   : > { %v1662_v26 = vrot.slane %v1661_v33, 2 }
 0x2c1   : > { %v1597_v61 = vrot.slane %v1596_v19, 4  ;;  %v1618_v16 = vrot.slane %v1617_v12, 4 }
 0x2c2   : > { %v1301_v34 = vpop.f32.mrf.mxu2  ;;  %v1663_v22 = vmax.f32 %v1661_v33, %v1662_v26 }
 0x2c3   : > { %v1598_v4 = vmax.f32 %v1596_v19, %v1597_v61  ;;  %v1619_v14 = vmax.f32 %v1617_v12, %v1618_v16  ;;  %v1302_v15 = vadd.f32 %v1301_v34, %v2798_v54 }
 0x2c4   : > { %v1664_v13 = vrot.slane %v1663_v22, 1 }
 0x2c5   : > { %v1599_v40 = vrot.slane %v1598_v4, 2  ;;  %v1620_v6 = vrot.slane %v1619_v14, 2  ;;  %v1495_v47 = vmax.f32 %v1302_v15, 0.0 }
 0x2c6   : > { %v1665_v49 = vmax.f32 %v1663_v22, %v1664_v13 }
 0x2c7   : > { %v1600_v59 = vmax.f32 %v1598_v4, %v1599_v40  ;;  %v1621_v8 = vmax.f32 %v1619_v14, %v1620_v6  ;;  %v1638_v28 = vmax.f32 %v1637_v1, %v1495_v47 }
 0x2c8   : > { %v1680_v27 = vrot.slane %v1665_v49, 1 }
 0x2c9   : > { %v1601_v62 = vrot.slane %v1600_v59, 1  ;;  %v1622_v24 = vrot.slane %v1621_v8, 1  ;;  %v1639_v35 = vrot.slane %v1638_v28, 4 }
 0x2cb   : > { %v1602_v25 = vmax.f32 %v1600_v59, %v1601_v62  ;;  %v1623_v3 = vmax.f32 %v1621_v8, %v1622_v24  ;;  %v1640_v36 = vmax.f32 %v1638_v28, %v1639_v35 }
 0x2cd   : > { %v1677_v18 = vrot.slane %v1602_v25, 4  ;;  %v1678_v54 = vrot.slane %v1623_v3, 3  ;;  %v1641_v17 = vrot.slane %v1640_v36, 2 }
 0x2cf   : > { %v1688_v55 = vsel %vm1687_vm4, %v1677_v18, %v1678_v54  ;;  %v1642_v38 = vmax.f32 %v1640_v36, %v1641_v17 }
 0x2d1   : > { %v1643_v7 = vrot.slane %v1642_v38, 1 }
 0x2d3   : > { %v1644_v20 = vmax.f32 %v1642_v38, %v1643_v7 }
 0x2d5   : > { %v1679_v63 = vrot.slane %v1644_v20, 2 }
 0x2d7   : > { %v1690_v32 = vsel %vm1689_vm5, %v1679_v63, %v1680_v27 }
 0x2d8   : > { %v1692_v52 = vsel %vm1691_vm6, %v1688_v55, %v1690_v32 }
 0x2d9   : > { %v1694_v43 = vsel %vm1693_vm7, %v2821_v10, %v1692_v52 }
 0x2da   : > { %1697 = vst [vmem:[%s398_s13] sm:$0xff] %v1694_v43 }
 0x2db PF: > { %s21_s26 = sadd.s32 1, %s2223_s26   ;;  %s2941_s24 = smov %s2219_s25 }
 0x2dc   : > { %p18_p8 = scmp.ge.s32.totalorder %s21_s26, 4   ;;  %s2942_s25 = smov %s2944_s18 }
 0x2de   :  { %20 = sbr.rel (!%p18_p8) target bundleno = 5 (0x5), region = 107 }
 0x2e3   :  { %1717 = vsyncpa [#allocation3], 1 }
 0x2e4   :  { %1719 = vsyncpa [#allocation3 + $0x1], 1 }
 0x2e5   :  { %1720 = vsyncpa [#allocation5], 1 }
 0x2e6   :  { %1721 = vsyncpa [#allocation8], 1 }
 0x2e7   :  { %1722 = vsyncpa [#allocation11], 1 }

// kernel: seg_head_forward.8
= control target key start
LH: loop header
LB: loop body
LE: loop exit
PB: predicated region body
PF: predicated region fallthrough
CT: control target
= control target key end

     0   :  { %s2619_s27 = smov 0   ;;  %s2621_s28 = smov 0   ;;  %s5727_s0 = inlined_call_operand.vmem [shape: f32[2,128,64], index: 0, kind: input, shape index: {}]   ;;  %s5728_s1 = inlined_call_operand.vmem [shape: f32[2,64,64], index: 1, kind: input, shape index: {}]   ;;  %s5729_s2 = inlined_call_operand.vmem [shape: f32[1,64], index: 2, kind: input, shape index: {}]   ;;  %s5730_s3 = inlined_call_operand.vmem [shape: f32[64,128], index: 3, kind: input, shape index: {}]   ;;  %s5731_s4 = inlined_call_operand.vmem [shape: f32[1,128], index: 4, kind: input, shape index: {}]   ;;  %s5732_s5 = inlined_call_operand.vmem [shape: f32[128,1024], index: 5, kind: input, shape index: {}]   ;;  %s5733_s6 = inlined_call_operand.vmem [shape: f32[1,1024], index: 6, kind: input, shape index: {}]   ;;  %s5734_s7 = inlined_call_operand.vmem [shape: f32[2,1,1024], index: 7, kind: output, shape index: {0}]   ;;  %s5735_s8 = inlined_call_operand.vmem [shape: s32[2,1,1024], index: 8, kind: output, shape index: {1}]  }
   0x1   :  { %s2623_s29 = smov 0  }
   0x2 LB: > { %s31_s30 = sadd.s32 1, %s2566_s28  ;;  %p2444_p0 = scmp.ge.s32.totalorder %s2570_s29, 1  ;;  %s2570_s29 = sphi %s2623_s29, %s19_s29   ;;  %s2566_s28 = sphi %s2621_s28, %s6442_s28   ;;  %s2562_s27 = sphi %s2619_s27, %s6441_s27  }
   0x3   : > { %p33_p1 = scmp.ge.s32.totalorder %s31_s30, 2  ;;  %p294_p2 = scmp.lt.s32.totalorder %s2570_s29, 3 }
   0x5   : > { %s6444_s30 = smov (%p33_p1, %s31_s30), 0  ;;  %p295_p3 = pnand %p2444_p0, %p294_p2 }
   0x7   : > { %298 = sbr.rel (%p295_p3) target bundleno = 887 (0x377), region = 48 }
   0xc   : > { %p341_p4 = scmp.lt.s32.totalorder %s2562_s27, 1  ;;  %vm397_vm0 = vcmask 523264   ;;  %v534_v18 = vld [vmem:[%s5730_s3 + $0x38] sm:$0xff]  ;;  %v533_v19 = vld [vmem:[%s5730_s3 + $0x30] sm:$0xff]  ;;  %v532_v20 = vld [vmem:[%s5730_s3 + $0x28] sm:$0xff] }
   0xd   : > { %595 = vmatpush.msra.mxu1 %v534_v18  ;;  %2495 = vmatpush.msra.mxu3 %v534_v18  ;;  %v531_v22 = vld [vmem:[%s5730_s3 + $0x20] sm:$0xff]  ;;  %v530_v24 = vld [vmem:[%s5730_s3 + $0x18] sm:$0xff]  ;;  %v529_v29 = vld [vmem:[%s5730_s3 + $0x10] sm:$0xff] }
   0xe   : > { %s6446_s27 = smov (!%p341_p4, %s2562_s27), 1  ;;  %v528_v30 = vld [vmem:[%s5730_s3 + $0x8] sm:$0xff]  ;;  %v527_v31 = vld [vmem:[%s5730_s3] sm:$0xff]  ;;  %v790_v59 = vld [vmem:[%s5732_s5 + $0x3d0] sm:$0xff] }
   0xf   : > { %s2486_s9 = sshll.u32 %s6446_s27, 6  ;;  %s2485_s13 = sshll.u32 %s6446_s27, 7  ;;  %596 = vmatpush.msra.mxu1 %v533_v19  ;;  %2496 = vmatpush.msra.mxu3 %v533_v19  ;;  %v2708_v32 = vld [vmem:[%s5729_s2] ss:$0 sm:$0xff]  ;;  %v789_v55 = vld [vmem:[%s5732_s5 + $0x3c8] sm:$0xff]  ;;  %v791_v60 = vld [vmem:[%s5732_s5 + $0x3d8] sm:$0xff] }
  0x10   : > { %s354_s12 = scalar_lea.vmem %s5728_s1, %s2486_s9  ;;  %s2647_s16 = scalar_lea.vmem %s5727_s0, %s2485_s13  ;;  %v788_v54 = vld [vmem:[%s5732_s5 + $0x3c0] sm:$0xff]  ;;  %v781_v58 = vld [vmem:[%s5732_s5 + $0x388] sm:$0xff] }
  0x11   : > { %v392_v0 = vld [vmem:[%s354_s12 + $0x38] sm:$0xff]  ;;  %v391_v1 = vld [vmem:[%s354_s12 + $0x30] sm:$0xff]  ;;  %v390_v2 = vld [vmem:[%s354_s12 + $0x28] sm:$0xff]  ;;  %597 = vmatpush.msra.mxu1 %v532_v20  ;;  %2497 = vmatpush.msra.mxu3 %v532_v20  ;;  %s2449_s9 = sshll.u32 %s6446_s27, 3 }
  0x12   : > { %454 = vmatpush.msra.mxu0 %v392_v0  ;;  %2487 = vmatpush.msra.mxu2 %v392_v0  ;;  %v389_v3 = vld [vmem:[%s354_s12 + $0x20] sm:$0xff]  ;;  %v388_v4 = vld [vmem:[%s354_s12 + $0x18] sm:$0xff]  ;;  %v387_v5 = vld [vmem:[%s354_s12 + $0x10] sm:$0xff]  ;;  %s362_s15 = scalar_lea.vmem %s5735_s8, %s2449_s9 }
  0x13   : > { %v386_v6 = vld [vmem:[%s354_s12 + $0x8] sm:$0xff]  ;;  %v385_v7 = vld [vmem:[%s354_s12] sm:$0xff]  ;;  %v371_v10 = vld [vmem:[%s2647_s16 + $0x10] sm:$0xff]  ;;  %598 = vmatpush.msra.mxu1 %v531_v22  ;;  %2498 = vmatpush.msra.mxu3 %v531_v22  ;;  %s358_s12 = scalar_lea.vmem %s5734_s7, %s2449_s9 }
  0x14   : > { %455 = vmatpush.msra.mxu0 %v391_v1  ;;  %2488 = vmatpush.msra.mxu2 %v391_v1  ;;  %v369_v8 = vld [vmem:[%s2647_s16] sm:$0xff]  ;;  %v370_v9 = vld [vmem:[%s2647_s16 + $0x8] sm:$0xff]  ;;  %v372_v11 = vld [vmem:[%s2647_s16 + $0x18] sm:$0xff] }
  0x15   : > { %v373_v12 = vld [vmem:[%s2647_s16 + $0x20] sm:$0xff]  ;;  %v378_v13 = vld [vmem:[%s2647_s16 + $0x48] sm:$0xff]  ;;  %v379_v15 = vld [vmem:[%s2647_s16 + $0x50] sm:$0xff]  ;;  %599 = vmatpush.msra.mxu1 %v530_v24  ;;  %2499 = vmatpush.msra.mxu3 %v530_v24 }
  0x16   : > { %456 = vmatpush.msra.mxu0 %v390_v2  ;;  %2489 = vmatpush.msra.mxu2 %v390_v2  ;;  %v374_v14 = vld [vmem:[%s2647_s16 + $0x28] sm:$0xff]  ;;  %v375_v16 = vld [vmem:[%s2647_s16 + $0x30] sm:$0xff]  ;;  %v380_v17 = vld [vmem:[%s2647_s16 + $0x58] sm:$0xff] }
  0x17   : > { %v376_v21 = vld [vmem:[%s2647_s16 + $0x38] sm:$0xff]  ;;  %v381_v23 = vld [vmem:[%s2647_s16 + $0x60] sm:$0xff]  ;;  %v382_v26 = vld [vmem:[%s2647_s16 + $0x68] sm:$0xff]  ;;  %600 = vmatpush.msra.mxu1 %v529_v29  ;;  %2500 = vmatpush.msra.mxu3 %v529_v29 }
  0x18   : > { %457 = vmatpush.msra.mxu0 %v389_v3  ;;  %2490 = vmatpush.msra.mxu2 %v389_v3  ;;  %v377_v25 = vld [vmem:[%s2647_s16 + $0x40] sm:$0xff]  ;;  %v383_v27 = vld [vmem:[%s2647_s16 + $0x70] sm:$0xff]  ;;  %v384_v28 = vld [vmem:[%s2647_s16 + $0x78] sm:$0xff] }
  0x19   : > { %601 = vmatpush.msra.mxu1 %v528_v30  ;;  %2501 = vmatpush.msra.mxu3 %v528_v30  ;;  %v780_v56 = vld [vmem:[%s5732_s5 + $0x380] sm:$0xff]  ;;  %v773_v1 = vld [vmem:[%s5732_s5 + $0x348] sm:$0xff]  ;;  %v782_v2 = vld [vmem:[%s5732_s5 + $0x390] sm:$0xff] }
  0x1a   : > { %458 = vmatpush.msra.mxu0 %v388_v4  ;;  %2491 = vmatpush.msra.mxu2 %v388_v4  ;;  %v772_v61 = vld [vmem:[%s5732_s5 + $0x340] sm:$0xff]  ;;  %v783_v3 = vld [vmem:[%s5732_s5 + $0x398] sm:$0xff]  ;;  %v749_v18 = vld [vmem:[%s5732_s5 + $0x288] sm:$0xff] }
  0x1b   : > { %602 = vmatpush.msra.mxu1 %v527_v31  ;;  %2502 = vmatpush.msra.mxu3 %v527_v31  ;;  %v764_v4 = vld [vmem:[%s5732_s5 + $0x300] sm:$0xff]  ;;  %v758_v20 = vld [vmem:[%s5732_s5 + $0x2d0] sm:$0xff]  ;;  %v733_v30 = vld [vmem:[%s5732_s5 + $0x208] sm:$0xff] }
  0x1c   : > { %459 = vmatpush.msra.mxu0 %v387_v5  ;;  %2492 = vmatpush.msra.mxu2 %v387_v5  ;;  %v765_v5 = vld [vmem:[%s5732_s5 + $0x308] sm:$0xff]  ;;  %v740_v19 = vld [vmem:[%s5732_s5 + $0x240] sm:$0xff]  ;;  %v743_v31 = vld [vmem:[%s5732_s5 + $0x258] sm:$0xff] }
  0x1d   : > { %879 = vmatpush.msrb.mxu3 %v789_v55  ;;  %1009 = vmatpush.msrb.mxu1 %v791_v60  ;;  %v724_v29 = vld [vmem:[%s5732_s5 + $0x1c0] sm:$0xff]  ;;  %v703_v55 = vld [vmem:[%s5732_s5 + $0x118] sm:$0xff] }
  0x1e   : > { %460 = vmatpush.msra.mxu0 %v386_v6  ;;  %2493 = vmatpush.msra.mxu2 %v386_v6  ;;  %v774_v6 = vld [vmem:[%s5732_s5 + $0x350] sm:$0xff]  ;;  %v695_v60 = vld [vmem:[%s5732_s5 + $0xd8] sm:$0xff] }
  0x1f   : > { %880 = vmatpush.msrb.mxu3 %v781_v58  ;;  %1010 = vmatpush.msrb.mxu1 %v783_v3  ;;  %v693_v58 = vld [vmem:[%s5732_s5 + $0xc8] sm:$0xff] }
  0x20   : > { %461 = vmatpush.msra.mxu0 %v385_v7  ;;  %2494 = vmatpush.msra.mxu2 %v385_v7  ;;  %v756_v7 = vld [vmem:[%s5732_s5 + $0x2c0] sm:$0xff]  ;;  %v677_v3 = vld [vmem:[%s5732_s5 + $0x48] sm:$0xff] }
  0x21   : > { %2451 = vmatmul.msk.f32.vlgmr.msra.gmra.mxu0 %vm397_vm0, %v369_v8  ;;  %2460 = vmatmul.msk.f32.vlgmr.msra.gmra.mxu2 %vm397_vm0, %v378_v13  ;;  %v775_v8 = vld [vmem:[%s5732_s5 + $0x358] sm:$0xff] }
  0x22   : > { %814 = vmatpush.msrb.mxu2 %v788_v54  ;;  %944 = vmatpush.msrb.mxu0 %v790_v59  ;;  %v702_v54 = vld [vmem:[%s5732_s5 + $0x110] sm:$0xff] }
  0x23   : > { %881 = vmatpush.msrb.mxu3 %v773_v1  ;;  %1011 = vmatpush.msrb.mxu1 %v775_v8  ;;  %v694_v59 = vld [vmem:[%s5732_s5 + $0xd0] sm:$0xff]  ;;  %v687_v1 = vld [vmem:[%s5732_s5 + $0x98] sm:$0xff]  ;;  %v669_v8 = vld [vmem:[%s5732_s5 + $0x8] sm:$0xff] }
  0x24   : > { %815 = vmatpush.msrb.mxu2 %v780_v56  ;;  %945 = vmatpush.msrb.mxu0 %v782_v2  ;;  %v676_v2 = vld [vmem:[%s5732_s5 + $0x40] sm:$0xff] }
  0x25   : > { %882 = vmatpush.msrb.mxu3 %v765_v5  ;;  %v679_v5 = vld [vmem:[%s5732_s5 + $0x58] sm:$0xff] }
  0x26   : > { %816 = vmatpush.msrb.mxu2 %v772_v61  ;;  %946 = vmatpush.msrb.mxu0 %v774_v6 }
  0x28   : > { %817 = vmatpush.msrb.mxu2 %v764_v4  ;;  %v678_v4 = vld [vmem:[%s5732_s5 + $0x50] sm:$0xff] }
  0x29   : > { %2452 = vmatmul.msk.f32.gmra.mxu0 %vm397_vm0, %v370_v9  ;;  %2461 = vmatmul.msk.f32.gmra.mxu2 %vm397_vm0, %v379_v15  ;;  %v748_v15 = vld [vmem:[%s5732_s5 + $0x280] sm:$0xff] }
  0x2a   : > { %818 = vmatpush.msrb.mxu2 %v756_v7  ;;  %v668_v7 = vld [vmem:[%s5732_s5] sm:$0xff] }
  0x2c   : > { %819 = vmatpush.msrb.mxu2 %v748_v15 }
  0x2e   : > { %820 = vmatpush.msrb.mxu2 %v740_v19  ;;  %v793_v19 = vld [vmem:[%s5732_s5 + $0x3e8] sm:$0xff] }
  0x31   : > { %2453 = vmatmul.msk.f32.gmra.mxu0 %vm397_vm0, %v371_v10  ;;  %2462 = vmatmul.msk.f32.gmra.mxu2 %vm397_vm0, %v380_v17  ;;  %v767_v17 = vld [vmem:[%s5732_s5 + $0x318] sm:$0xff] }
  0x32   : > { %1012 = vmatpush.msrb.mxu1 %v767_v17 }
  0x39   : > { %2454 = vmatmul.msk.f32.gmra.mxu0 %vm397_vm0, %v372_v11  ;;  %2463 = vmatmul.msk.f32.gmra.mxu2 %vm397_vm0, %v381_v23 }
  0x41   : > { %2455 = vmatmul.msk.f32.gmra.mxu0 %vm397_vm0, %v373_v12  ;;  %2464 = vmatmul.msk.f32.gmra.mxu2 %vm397_vm0, %v382_v26  ;;  %v732_v26 = vld [vmem:[%s5732_s5 + $0x200] sm:$0xff] }
  0x42   : > { %821 = vmatpush.msrb.mxu2 %v732_v26 }
  0x44   : > { %822 = vmatpush.msrb.mxu2 %v724_v29  ;;  %v768_v29 = vld [vmem:[%s5732_s5 + $0x320] sm:$0xff] }
  0x49   : > { %2456 = vmatmul.msk.f32.gmra.mxu0 %vm397_vm0, %v374_v14  ;;  %2465 = vmatmul.msk.f32.gmra.mxu2 %vm397_vm0, %v383_v27  ;;  %v757_v14 = vld [vmem:[%s5732_s5 + $0x2c8] sm:$0xff]  ;;  %v751_v27 = vld [vmem:[%s5732_s5 + $0x298] sm:$0xff] }
  0x4a   : > { %883 = vmatpush.msrb.mxu3 %v757_v14  ;;  %v792_v14 = vld [vmem:[%s5732_s5 + $0x3e0] sm:$0xff] }
  0x4c   : > { %884 = vmatpush.msrb.mxu3 %v749_v18  ;;  %v784_v18 = vld [vmem:[%s5732_s5 + $0x3a0] sm:$0xff] }
  0x51   : > { %2457 = vmatmul.msk.f32.gmra.mxu0 %vm397_vm0, %v375_v16  ;;  %2466 = vmatmul.msk.f32.gmra.mxu2 %vm397_vm0, %v384_v28  ;;  %v766_v16 = vld [vmem:[%s5732_s5 + $0x310] sm:$0xff] }
  0x52   : > { %947 = vmatpush.msrb.mxu0 %v766_v16  ;;  %v750_v28 = vld [vmem:[%s5732_s5 + $0x290] sm:$0xff] }
  0x54   : > { %948 = vmatpush.msrb.mxu0 %v758_v20 }
  0x56   : > { %949 = vmatpush.msrb.mxu0 %v750_v28  ;;  %v787_v28 = vld [vmem:[%s5732_s5 + $0x3b8] sm:$0xff] }
  0x59   : > { %2458 = vmatmul.msk.f32.gmra.mxu0 %vm397_vm0, %v376_v21  ;;  %v759_v21 = vld [vmem:[%s5732_s5 + $0x2d8] sm:$0xff] }
  0x5a   : > { %1013 = vmatpush.msrb.mxu1 %v759_v21  ;;  %v795_v21 = vld [vmem:[%s5732_s5 + $0x3f8] sm:$0xff] }
  0x5c   : > { %1014 = vmatpush.msrb.mxu1 %v751_v27 }
  0x5e   : > { %1015 = vmatpush.msrb.mxu1 %v743_v31  ;;  %v2982_v31 = vld [vmem:[%s5732_s5 + $0x3b0] sm:$0xff] }
  0x61   : > { %2459 = vmatmul.msk.f32.gmra.mxu0 %vm397_vm0, %v377_v25  ;;  %v741_v25 = vld [vmem:[%s5732_s5 + $0x248] sm:$0xff] }
  0x62   : > { %885 = vmatpush.msrb.mxu3 %v741_v25 }
  0x64   : > { %886 = vmatpush.msrb.mxu3 %v733_v30  ;;  %v777_v30 = vld [vmem:[%s5732_s5 + $0x368] sm:$0xff] }
  0x9e   : > { %v463_v33 = vpop.f32.mrf.mxu0 }
  0x9f   : > { %v464_v34 = vadd.f32 %v2708_v32, %v463_v33  ;;  %v742_v33 = vld [vmem:[%s5732_s5 + $0x250] sm:$0xff] }
  0xa0   : > { %950 = vmatpush.msrb.mxu0 %v742_v33 }
  0xa1   : > { %v511_v35 = vmax.f32 %v464_v34, 0.0 }
  0xa3   : > { %2467 = vmatmul.msk.f32.vlgmr.msra.gmra.mxu1 %vm397_vm0, %v511_v35 }
  0xa4   : > { %v490_v57 = vpop.f32.mrf.mxu2 }
  0xa5   : > { %v491_v13 = vadd.f32 %v2708_v32, %v490_v57  ;;  %v692_v57 = vld [vmem:[%s5732_s5 + $0xc0] sm:$0xff] }
  0xa6   : > { %v466_v36 = vpop.f32.mrf.mxu0 }
  0xa7   : > { %v467_v37 = vadd.f32 %v2708_v32, %v466_v36  ;;  %v520_v22 = vmax.f32 %v491_v13, 0.0 }
  0xa9   : > { %v512_v38 = vmax.f32 %v467_v37, 0.0  ;;  %v716_v37 = vld [vmem:[%s5732_s5 + $0x180] sm:$0xff] }
  0xaa   : > { %823 = vmatpush.msrb.mxu2 %v716_v37  ;;  %v760_v37 = vld [vmem:[%s5732_s5 + $0x2e0] sm:$0xff] }
  0xab   : > { %2468 = vmatmul.msk.f32.gmra.mxu1 %vm397_vm0, %v512_v38  ;;  %v725_v38 = vld [vmem:[%s5732_s5 + $0x1c8] sm:$0xff] }
  0xac   : > { %v493_v10 = vpop.f32.mrf.mxu2  ;;  %887 = vmatpush.msrb.mxu3 %v725_v38  ;;  %v769_v38 = vld [vmem:[%s5732_s5 + $0x328] sm:$0xff] }
  0xad   : > { %v494_v24 = vadd.f32 %v2708_v32, %v493_v10  ;;  %v671_v10 = vld [vmem:[%s5732_s5 + $0x18] sm:$0xff] }
  0xae   : > { %v469_v39 = vpop.f32.mrf.mxu0 }
  0xaf   : > { %v470_v40 = vadd.f32 %v2708_v32, %v469_v39  ;;  %v521_v34 = vmax.f32 %v494_v24, 0.0  ;;  %v734_v39 = vld [vmem:[%s5732_s5 + $0x210] sm:$0xff] }
  0xb0   : > { %951 = vmatpush.msrb.mxu0 %v734_v39  ;;  %v2960_v24 = vld [vmem:[%s5732_s5 + $0x3f0] sm:$0xff] }
  0xb1   : > { %v513_v41 = vmax.f32 %v470_v40, 0.0  ;;  %v735_v40 = vld [vmem:[%s5732_s5 + $0x218] sm:$0xff]  ;;  %v3004_v39 = vld [vmem:[%s5732_s5 + $0x370] sm:$0xff] }
  0xb2   : > { %1016 = vmatpush.msrb.mxu1 %v735_v40 }
  0xb3   : > { %2469 = vmatmul.msk.f32.gmra.mxu1 %vm397_vm0, %v513_v41  ;;  %v708_v41 = vld [vmem:[%s5732_s5 + $0x140] sm:$0xff] }
  0xb4   : > { %v496_v23 = vpop.f32.mrf.mxu2  ;;  %824 = vmatpush.msrb.mxu2 %v708_v41 }
  0xb5   : > { %v497_v36 = vadd.f32 %v2708_v32, %v496_v23  ;;  %v2955_v23 = vld [vmem:[%s5731_s4] ss:$0 sm:$0xff] }
  0xb6   : > { %v472_v42 = vpop.f32.mrf.mxu0 }
  0xb7   : > { %v473_v43 = vadd.f32 %v2708_v32, %v472_v42  ;;  %v726_v42 = vld [vmem:[%s5732_s5 + $0x1d0] sm:$0xff] }
  0xb8   : > { %952 = vmatpush.msrb.mxu0 %v726_v42 }
  0xb9   : > { %v514_v44 = vmax.f32 %v473_v43, 0.0  ;;  %v727_v43 = vld [vmem:[%s5732_s5 + $0x1d8] sm:$0xff] }
  0xba   : > { %1017 = vmatpush.msrb.mxu1 %v727_v43  ;;  %v771_v43 = vld [vmem:[%s5732_s5 + $0x338] sm:$0xff] }
  0xbb   : > { %2470 = vmatmul.msk.f32.gmra.mxu1 %vm397_vm0, %v514_v44  ;;  %v717_v44 = vld [vmem:[%s5732_s5 + $0x188] sm:$0xff] }
  0xbc   : > { %v499_v35 = vpop.f32.mrf.mxu2  ;;  %888 = vmatpush.msrb.mxu3 %v717_v44  ;;  %v752_v44 = vld [vmem:[%s5732_s5 + $0x2a0] sm:$0xff] }
  0xbe   : > { %v475_v45 = vpop.f32.mrf.mxu0 }
  0xbf   : > { %v476_v46 = vadd.f32 %v2708_v32, %v475_v45  ;;  %v718_v45 = vld [vmem:[%s5732_s5 + $0x190] sm:$0xff] }
  0xc0   : > { %953 = vmatpush.msrb.mxu0 %v718_v45  ;;  %v761_v45 = vld [vmem:[%s5732_s5 + $0x2e8] sm:$0xff] }
  0xc1   : > { %v515_v47 = vmax.f32 %v476_v46, 0.0  ;;  %v719_v46 = vld [vmem:[%s5732_s5 + $0x198] sm:$0xff] }
  0xc2   : > { %1018 = vmatpush.msrb.mxu1 %v719_v46  ;;  %v3026_v46 = vld [vmem:[%s5732_s5 + $0x330] sm:$0xff] }
  0xc3   : > { %2471 = vmatmul.msk.f32.gmra.mxu1 %vm397_vm0, %v515_v47  ;;  %v700_v47 = vld [vmem:[%s5732_s5 + $0x100] sm:$0xff] }
  0xc4   : > { %825 = vmatpush.msrb.mxu2 %v700_v47  ;;  %v502_v56 = vpop.f32.mrf.mxu2 }
  0xc5   : > { %v503_v6 = vadd.f32 %v2708_v32, %v502_v56  ;;  %v745_v56 = vld [vmem:[%s5732_s5 + $0x268] sm:$0xff] }
  0xc6   : > { %v478_v48 = vpop.f32.mrf.mxu0  ;;  %826 = vmatpush.msrb.mxu2 %v692_v57 }
  0xc7   : > { %v479_v49 = vadd.f32 %v2708_v32, %v478_v48  ;;  %v709_v48 = vld [vmem:[%s5732_s5 + $0x148] sm:$0xff] }
  0xc8   : > { %889 = vmatpush.msrb.mxu3 %v709_v48 }
  0xc9   : > { %v516_v50 = vmax.f32 %v479_v49, 0.0  ;;  %v522_v49 = vmax.f32 %v497_v36, 0.0  ;;  %v779_v36 = vld [vmem:[%s5732_s5 + $0x378] sm:$0xff] }
  0xcb   : > { %2472 = vmatmul.msk.f32.gmra.mxu1 %vm397_vm0, %v516_v50  ;;  %v710_v50 = vld [vmem:[%s5732_s5 + $0x150] sm:$0xff] }
  0xcc   : > { %954 = vmatpush.msrb.mxu0 %v710_v50  ;;  %v763_v50 = vld [vmem:[%s5732_s5 + $0x2f8] sm:$0xff] }
  0xce   : > { %v481_v51 = vpop.f32.mrf.mxu0  ;;  %955 = vmatpush.msrb.mxu0 %v702_v54  ;;  %v755_v54 = vld [vmem:[%s5732_s5 + $0x2b8] sm:$0xff] }
  0xcf   : > { %v482_v52 = vadd.f32 %v2708_v32, %v481_v51  ;;  %v711_v51 = vld [vmem:[%s5732_s5 + $0x158] sm:$0xff] }
  0xd0   : > { %1019 = vmatpush.msrb.mxu1 %v711_v51  ;;  %956 = vmatpush.msrb.mxu0 %v694_v59  ;;  %v744_v51 = vld [vmem:[%s5732_s5 + $0x260] sm:$0xff] }
  0xd1   : > { %v517_v53 = vmax.f32 %v482_v52, 0.0  ;;  %v500_v52 = vadd.f32 %v2708_v32, %v499_v35 }
  0xd2   : > { %1020 = vmatpush.msrb.mxu1 %v703_v55  ;;  %v736_v55 = vld [vmem:[%s5732_s5 + $0x220] sm:$0xff] }
  0xd3   : > { %2473 = vmatmul.msk.f32.gmra.mxu1 %vm397_vm0, %v517_v53  ;;  %v701_v53 = vld [vmem:[%s5732_s5 + $0x108] sm:$0xff]  ;;  %v523_v61 = vmax.f32 %v500_v52, 0.0 }
  0xd4   : > { %890 = vmatpush.msrb.mxu3 %v701_v53  ;;  %1021 = vmatpush.msrb.mxu1 %v695_v60  ;;  %v753_v52 = vld [vmem:[%s5732_s5 + $0x2a8] sm:$0xff]  ;;  %v3048_v53 = vld [vmem:[%s5732_s5 + $0x2f0] sm:$0xff] }
  0xd6   : > { %v484_v62 = vpop.f32.mrf.mxu0  ;;  %891 = vmatpush.msrb.mxu3 %v693_v58  ;;  %1022 = vmatpush.msrb.mxu1 %v687_v1  ;;  %v728_v1 = vld [vmem:[%s5732_s5 + $0x1e0] sm:$0xff] }
  0xd7   : > { %v485_v63 = vadd.f32 %v2708_v32, %v484_v62  ;;  %v684_v62 = vld [vmem:[%s5732_s5 + $0x80] sm:$0xff] }
  0xd8   : > { %827 = vmatpush.msrb.mxu2 %v684_v62  ;;  %1023 = vmatpush.msrb.mxu1 %v679_v5  ;;  %v3071_v62 = vld [vmem:[%s5732_s5 + $0x2b0] sm:$0xff] }
  0xd9   : > { %v518_v0 = vmax.f32 %v485_v63, 0.0  ;;  %v685_v63 = vld [vmem:[%s5732_s5 + $0x88] sm:$0xff]  ;;  %v3093_v5 = vld [vmem:[%s5732_s5 + $0x270] sm:$0xff] }
  0xda   : > { %892 = vmatpush.msrb.mxu3 %v685_v63  ;;  %828 = vmatpush.msrb.mxu2 %v676_v2  ;;  %v747_v63 = vld [vmem:[%s5732_s5 + $0x278] sm:$0xff]  ;;  %v737_v2 = vld [vmem:[%s5732_s5 + $0x228] sm:$0xff] }
  0xdb   : > { %2474 = vmatmul.msk.f32.gmra.mxu1 %vm397_vm0, %v518_v0  ;;  %v686_v0 = vld [vmem:[%s5732_s5 + $0x90] sm:$0xff] }
  0xdc   : > { %957 = vmatpush.msrb.mxu0 %v686_v0  ;;  %893 = vmatpush.msrb.mxu3 %v677_v3 }
  0xdd   : > { %829 = vmatpush.msrb.mxu2 %v668_v7  ;;  %1024 = vmatpush.msrb.mxu1 %v671_v10 }
  0xde   : > { %v487_v9 = vpop.f32.mrf.mxu0  ;;  %958 = vmatpush.msrb.mxu0 %v678_v4  ;;  %894 = vmatpush.msrb.mxu3 %v669_v8  ;;  %v720_v8 = vld [vmem:[%s5732_s5 + $0x1a0] sm:$0xff] }
  0xdf   : > { %v488_v11 = vadd.f32 %v2708_v32, %v487_v9  ;;  %v670_v9 = vld [vmem:[%s5732_s5 + $0x10] sm:$0xff]  ;;  %1074 = vmatpush.msra.mxu2 %v792_v14  ;;  %1269 = vmatpush.msra.mxu1 %v795_v21 }
  0xe0   : > { %959 = vmatpush.msrb.mxu0 %v670_v9  ;;  %v729_v9 = vld [vmem:[%s5732_s5 + $0x1e8] sm:$0xff] }
  0xe1   : > { %v519_v12 = vmax.f32 %v488_v11, 0.0  ;;  %v505_v11 = vpop.f32.mrf.mxu2  ;;  %1075 = vmatpush.msra.mxu2 %v784_v18  ;;  %1270 = vmatpush.msra.mxu1 %v787_v28  ;;  %v723_v18 = vld [vmem:[%s5732_s5 + $0x1b8] sm:$0xff]  ;;  %v696_v28 = vld [vmem:[%s5732_s5 + $0xe0] sm:$0xff] }
  0xe2   : > { %v506_v13 = vadd.f32 %v2708_v32, %v505_v11  ;;  %1204 = vmatpush.msra.mxu0 %v2960_v24 }
  0xe3   : > { %2475 = vmatmul.msk.f32.vlgmr.msra.gmra.mxu3 %vm397_vm0, %v519_v12  ;;  %v524_v12 = vmax.f32 %v503_v6, 0.0  ;;  %1271 = vmatpush.msra.mxu1 %v779_v36  ;;  %v739_v6 = vld [vmem:[%s5732_s5 + $0x238] sm:$0xff]  ;;  %v3176_v36 = vld [vmem:[%s5732_s5 + $0x170] sm:$0xff] }
  0xe4   : > { %v525_v15 = vmax.f32 %v506_v13, 0.0  ;;  %1139 = vmatpush.msra.mxu3 %v793_v19  ;;  %1205 = vmatpush.msra.mxu0 %v2982_v31  ;;  %v731_v13 = vld [vmem:[%s5732_s5 + $0x1f8] sm:$0xff]  ;;  %v704_v19 = vld [vmem:[%s5732_s5 + $0x120] sm:$0xff] }
  0xe5   : > { %1272 = vmatpush.msra.mxu1 %v771_v43 }
  0xe6   : > { %1206 = vmatpush.msra.mxu0 %v3004_v39 }
  0xe7   : > { %1273 = vmatpush.msra.mxu1 %v763_v50  ;;  %v689_v50 = vld [vmem:[%s5732_s5 + $0xa8] sm:$0xff] }
  0xe8   : > { %1207 = vmatpush.msra.mxu0 %v3026_v46 }
  0xe9   : > { %v508_v16 = vpop.f32.mrf.mxu2  ;;  %1274 = vmatpush.msra.mxu1 %v755_v54 }
  0xea   : > { %v509_v17 = vadd.f32 %v2708_v32, %v508_v16  ;;  %v776_v32 = vld [vmem:[%s5732_s5 + $0x360] sm:$0xff]  ;;  %1208 = vmatpush.msra.mxu0 %v3048_v53  ;;  %v721_v16 = vld [vmem:[%s5732_s5 + $0x1a8] sm:$0xff] }
  0xeb   : > { %2476 = vmatmul.msk.f32.gmra.mxu3 %vm397_vm0, %v520_v22  ;;  %v785_v22 = vld [vmem:[%s5732_s5 + $0x3a8] sm:$0xff]  ;;  %1076 = vmatpush.msra.mxu2 %v776_v32 }
  0xec   : > { %v526_v20 = vmax.f32 %v509_v17, 0.0  ;;  %1140 = vmatpush.msra.mxu3 %v785_v22  ;;  %1209 = vmatpush.msra.mxu0 %v3071_v62  ;;  %v3136_v17 = vld [vmem:[%s5732_s5 + $0x1f0] sm:$0xff] }
  0xed   : > { %1077 = vmatpush.msra.mxu2 %v768_v29  ;;  %1275 = vmatpush.msra.mxu1 %v747_v63  ;;  %v705_v29 = vld [vmem:[%s5732_s5 + $0x128] sm:$0xff] }
  0xee   : > { %1141 = vmatpush.msra.mxu3 %v777_v30  ;;  %1210 = vmatpush.msra.mxu0 %v3093_v5 }
  0xef   : > { %1078 = vmatpush.msra.mxu2 %v760_v37  ;;  %1276 = vmatpush.msra.mxu1 %v739_v6  ;;  %v707_v37 = vld [vmem:[%s5732_s5 + $0x138] sm:$0xff]  ;;  %v674_v6 = vld [vmem:[%s5732_s5 + $0x30] sm:$0xff] }
  0xf0   : > { %1142 = vmatpush.msra.mxu3 %v769_v38  ;;  %v688_v38 = vld [vmem:[%s5732_s5 + $0xa0] sm:$0xff] }
  0xf1   : > { %1079 = vmatpush.msra.mxu2 %v752_v44  ;;  %1277 = vmatpush.msra.mxu1 %v731_v13 }
  0xf2   : > { %1143 = vmatpush.msra.mxu3 %v761_v45  ;;  %v3198_v45 = vld [vmem:[%s5732_s5 + $0x130] sm:$0xff] }
  0xf3   : > { %2477 = vmatmul.msk.f32.gmra.mxu3 %vm397_vm0, %v521_v34  ;;  %1080 = vmatpush.msra.mxu2 %v744_v51 }
  0xf4   : > { %1144 = vmatpush.msra.mxu3 %v753_v52  ;;  %1278 = vmatpush.msra.mxu1 %v723_v18 }
  0xf5   : > { %1081 = vmatpush.msra.mxu2 %v736_v55  ;;  %v3220_v55 = vld [vmem:[%s5732_s5 + $0xf0] sm:$0xff] }
  0xf6   : > { %1145 = vmatpush.msra.mxu3 %v745_v56  ;;  %v691_v56 = vld [vmem:[%s5732_s5 + $0xb8] sm:$0xff] }
  0xf7   : > { %1082 = vmatpush.msra.mxu2 %v728_v1  ;;  %v682_v1 = vld [vmem:[%s5732_s5 + $0x70] sm:$0xff] }
  0xf8   : > { %1146 = vmatpush.msra.mxu3 %v737_v2  ;;  %v683_v2 = vld [vmem:[%s5732_s5 + $0x78] sm:$0xff] }
  0xf9   : > { %1083 = vmatpush.msra.mxu2 %v720_v8 }
  0xfa   : > { %1147 = vmatpush.msra.mxu3 %v729_v9 }
  0xfb   : > { %2478 = vmatmul.msk.f32.gmra.mxu3 %vm397_vm0, %v522_v49 }
  0xfc   : > { %1148 = vmatpush.msra.mxu3 %v721_v16 }
 0x103   : > { %2479 = vmatmul.msk.f32.gmra.mxu3 %vm397_vm0, %v523_v61 }
 0x10b   : > { %2480 = vmatmul.msk.f32.gmra.mxu3 %vm397_vm0, %v524_v12  ;;  %v3115_v12 = vld [vmem:[%s5732_s5 + $0x230] sm:$0xff] }
 0x10c   : > { %1211 = vmatpush.msra.mxu0 %v3115_v12 }
 0x10e   : > { %1212 = vmatpush.msra.mxu0 %v3136_v17 }
 0x113   : > { %2481 = vmatmul.msk.f32.gmra.mxu3 %vm397_vm0, %v525_v15  ;;  %v712_v15 = vld [vmem:[%s5732_s5 + $0x160] sm:$0xff] }
 0x114   : > { %1084 = vmatpush.msra.mxu2 %v712_v15 }
 0x116   : > { %1085 = vmatpush.msra.mxu2 %v704_v19 }
 0x118   : > { %1086 = vmatpush.msra.mxu2 %v696_v28 }
 0x11a   : > { %1087 = vmatpush.msra.mxu2 %v688_v38 }
 0x11b   : > { %2482 = vmatmul.msk.f32.gmra.mxu3 %vm397_vm0, %v526_v20  ;;  %v713_v20 = vld [vmem:[%s5732_s5 + $0x168] sm:$0xff] }
 0x11c   : > { %1149 = vmatpush.msra.mxu3 %v713_v20 }
 0x11e   : > { %1150 = vmatpush.msra.mxu3 %v705_v29 }
 0x120   : > { %v604_v25 = vpop.f32.mrf.mxu1 }
 0x121   : > { %v605_v26 = vadd.f32 %v2955_v23, %v604_v25  ;;  %v3154_v25 = vld [vmem:[%s5732_s5 + $0x1b0] sm:$0xff] }
 0x122   : > { %1213 = vmatpush.msra.mxu0 %v3154_v25 }
 0x123   : > { %v2964_v27 = vmax.f32 %v605_v26, 0.0  ;;  %v715_v26 = vld [vmem:[%s5732_s5 + $0x178] sm:$0xff] }
 0x124   : > { %1279 = vmatpush.msra.mxu1 %v715_v26  ;;  %1214 = vmatpush.msra.mxu0 %v3176_v36 }
 0x125   : > { %830 = vmatmul.f32.vlgmr.msrb.gmra.mxu2 %v2964_v27  ;;  %895 = vmatmul.f32.vlgmr.msrb.gmra.mxu3 %v2964_v27 }
 0x126   : > { %960 = vmatmul.f32.vlgmr.msrb.gmra.mxu0 %v2964_v27  ;;  %1025 = vmatmul.f32.vlgmr.msrb.gmra.mxu1 %v2964_v27 }
 0x127   : > { %1280 = vmatpush.msra.mxu1 %v707_v37  ;;  %1215 = vmatpush.msra.mxu0 %v3198_v45  ;;  %v3344_v37 = vld [vmem:[%s5733_s6] sm:$0xff] }
 0x128   : > { %v607_v33 = vpop.f32.mrf.mxu1  ;;  %5917 = vst [vmem:[#allocation2_spill] sm:$0xff] %v3344_v37 }
 0x129   : > { %v608_v34 = vadd.f32 %v2955_v23, %v607_v33  ;;  %1216 = vmatpush.msra.mxu0 %v3220_v55 }
 0x12b   : > { %v2986_v35 = vmax.f32 %v608_v34, 0.0 }
 0x12d   : > { %833 = vmatmul.f32.gmra.mxu2 %v2986_v35  ;;  %898 = vmatmul.f32.gmra.mxu3 %v2986_v35 }
 0x12e   : > { %963 = vmatmul.f32.gmra.mxu0 %v2986_v35  ;;  %1028 = vmatmul.f32.gmra.mxu1 %v2986_v35 }
 0x130   : > { %v610_v40 = vpop.f32.mrf.mxu1 }
 0x131   : > { %v611_v41 = vadd.f32 %v2955_v23, %v610_v40  ;;  %v697_v40 = vld [vmem:[%s5732_s5 + $0xe8] sm:$0xff] }
 0x132   : > { %1151 = vmatpush.msra.mxu3 %v697_v40  ;;  %v3358_v40 = vperm.slane %v3344_v37, 3 }
 0x133   : > { %v3008_v42 = vmax.f32 %v611_v41, 0.0 }
 0x134   : > { %1152 = vmatpush.msra.mxu3 %v689_v50 }
 0x135   : > { %836 = vmatmul.f32.gmra.mxu2 %v3008_v42  ;;  %901 = vmatmul.f32.gmra.mxu3 %v3008_v42 }
 0x136   : > { %966 = vmatmul.f32.gmra.mxu0 %v3008_v42  ;;  %1031 = vmatmul.f32.gmra.mxu1 %v3008_v42 }
 0x138   : > { %v613_v47 = vpop.f32.mrf.mxu1 }
 0x139   : > { %v614_v48 = vadd.f32 %v2955_v23, %v613_v47  ;;  %v699_v47 = vld [vmem:[%s5732_s5 + $0xf8] sm:$0xff] }
 0x13a   : > { %1281 = vmatpush.msra.mxu1 %v699_v47 }
 0x13b   : > { %v3030_v49 = vmax.f32 %v614_v48, 0.0  ;;  %v680_v48 = vld [vmem:[%s5732_s5 + $0x60] sm:$0xff] }
 0x13c   : > { %1088 = vmatpush.msra.mxu2 %v680_v48  ;;  %1282 = vmatpush.msra.mxu1 %v691_v56  ;;  %v3370_v48 = vperm.slane %v3344_v37, 0 }
 0x13d   : > { %839 = vmatmul.f32.gmra.mxu2 %v3030_v49  ;;  %904 = vmatmul.f32.gmra.mxu3 %v3030_v49 }
 0x13e   : > { %969 = vmatmul.f32.gmra.mxu0 %v3030_v49  ;;  %1034 = vmatmul.f32.gmra.mxu1 %v3030_v49 }
 0x13f   : > { %1283 = vmatpush.msra.mxu1 %v683_v2 }
 0x140   : > { %v616_v57 = vpop.f32.mrf.mxu1 }
 0x141   : > { %v617_v58 = vadd.f32 %v2955_v23, %v616_v57 }
 0x143   : > { %v3061_v59 = vmax.f32 %v617_v58, 0.0  ;;  %v672_v58 = vld [vmem:[%s5732_s5 + $0x20] sm:$0xff] }
 0x144   : > { %1089 = vmatpush.msra.mxu2 %v672_v58 }
 0x145   : > { %842 = vmatmul.f32.gmra.mxu2 %v3061_v59  ;;  %907 = vmatmul.f32.gmra.mxu3 %v3061_v59 }
 0x146   : > { %972 = vmatmul.f32.gmra.mxu0 %v3061_v59  ;;  %1037 = vmatmul.f32.gmra.mxu1 %v3061_v59 }
 0x147   : > { %2503 = vmatpush.msrb.mxu2 %v2960_v24  ;;  %v675_v24 = vld [vmem:[%s5732_s5 + $0x38] sm:$0xff] }
 0x148   : > { %v619_v60 = vpop.f32.mrf.mxu1  ;;  %1284 = vmatpush.msra.mxu1 %v675_v24 }
 0x149   : > { %v620_v61 = vadd.f32 %v2955_v23, %v619_v60  ;;  %v681_v60 = vld [vmem:[%s5732_s5 + $0x68] sm:$0xff]  ;;  %2504 = vmatpush.msrb.mxu2 %v2982_v31 }
 0x14a   : > { %1153 = vmatpush.msra.mxu3 %v681_v60 }
 0x14b   : > { %v3077_v0 = vmax.f32 %v620_v61, 0.0  ;;  %v690_v61 = vld [vmem:[%s5732_s5 + $0xb0] sm:$0xff]  ;;  %2505 = vmatpush.msrb.mxu2 %v3004_v39 }
 0x14c   : > { %1217 = vmatpush.msra.mxu0 %v690_v61 }
 0x14d   : > { %845 = vmatmul.f32.gmra.mxu2 %v3077_v0  ;;  %910 = vmatmul.f32.gmra.mxu3 %v3077_v0 }
 0x14e   : > { %975 = vmatmul.f32.gmra.mxu0 %v3077_v0  ;;  %1040 = vmatmul.f32.gmra.mxu1 %v3077_v0 }
 0x14f   : > { %1218 = vmatpush.msra.mxu0 %v682_v1  ;;  %2506 = vmatpush.msrb.mxu2 %v3026_v46 }
 0x150   : > { %v622_v3 = vpop.f32.mrf.mxu1 }
 0x151   : > { %v623_v4 = vadd.f32 %v2955_v23, %v622_v3  ;;  %1219 = vmatpush.msra.mxu0 %v674_v6  ;;  %2507 = vmatpush.msrb.mxu2 %v3048_v53 }
 0x153   : > { %v3099_v7 = vmax.f32 %v623_v4, 0.0  ;;  %v673_v4 = vld [vmem:[%s5732_s5 + $0x28] sm:$0xff]  ;;  %2508 = vmatpush.msrb.mxu2 %v3071_v62 }
 0x154   : > { %1154 = vmatpush.msra.mxu3 %v673_v4 }
 0x155   : > { %848 = vmatmul.f32.gmra.mxu2 %v3099_v7  ;;  %913 = vmatmul.f32.gmra.mxu3 %v3099_v7 }
 0x156   : > { %978 = vmatmul.f32.gmra.mxu0 %v3099_v7  ;;  %1043 = vmatmul.f32.gmra.mxu1 %v3099_v7 }
 0x157   : > { %2509 = vmatpush.msrb.mxu2 %v3093_v5 }
 0x158   : > { %v625_v10 = vpop.f32.mrf.mxu1 }
 0x159   : > { %v626_v11 = vadd.f32 %v2955_v23, %v625_v10  ;;  %2510 = vmatpush.msrb.mxu2 %v3115_v12 }
 0x15b   : > { %v3121_v14 = vmax.f32 %v626_v11, 0.0  ;;  %2511 = vmatpush.msrb.mxu2 %v3136_v17 }
 0x15d   : > { %851 = vmatmul.f32.gmra.mxu2 %v3121_v14  ;;  %916 = vmatmul.f32.gmra.mxu3 %v3121_v14 }
 0x15e   : > { %981 = vmatmul.f32.gmra.mxu0 %v3121_v14  ;;  %1046 = vmatmul.f32.gmra.mxu1 %v3121_v14 }
 0x15f   : > { %2512 = vmatpush.msrb.mxu2 %v3154_v25 }
 0x161   : > { %2513 = vmatpush.msrb.mxu2 %v3176_v36 }
 0x163   : > { %2514 = vmatpush.msrb.mxu2 %v3198_v45 }
 0x165   : > { %2515 = vmatpush.msrb.mxu2 %v3220_v55 }
 0x166   : > { %v628_v21 = vpop.f32.mrf.mxu3 }
 0x167   : > { %v629_v32 = vadd.f32 %v2955_v23, %v628_v21  ;;  %2516 = vmatpush.msrb.mxu2 %v690_v61 }
 0x169   : > { %v3149_v22 = vmax.f32 %v629_v32, 0.0  ;;  %2517 = vmatpush.msrb.mxu2 %v682_v1 }
 0x16b   : > { %854 = vmatmul.f32.gmra.mxu2 %v3149_v22  ;;  %919 = vmatmul.f32.gmra.mxu3 %v3149_v22 }
 0x16c   : > { %984 = vmatmul.f32.gmra.mxu0 %v3149_v22  ;;  %1049 = vmatmul.f32.gmra.mxu1 %v3149_v22 }
 0x16d   : > { %2518 = vmatpush.msrb.mxu2 %v674_v6 }
 0x16e   : > { %v631_v30 = vpop.f32.mrf.mxu3 }
 0x16f   : > { %v632_v33 = vadd.f32 %v2955_v23, %v631_v30 }
 0x171   : > { %v3171_v34 = vmax.f32 %v632_v33, 0.0 }
 0x173   : > { %857 = vmatmul.f32.gmra.mxu2 %v3171_v34  ;;  %922 = vmatmul.f32.gmra.mxu3 %v3171_v34 }
 0x174   : > { %987 = vmatmul.f32.gmra.mxu0 %v3171_v34  ;;  %1052 = vmatmul.f32.gmra.mxu1 %v3171_v34 }
 0x176   : > { %v634_v41 = vpop.f32.mrf.mxu3 }
 0x177   : > { %v635_v43 = vadd.f32 %v2955_v23, %v634_v41 }
 0x179   : > { %v3193_v44 = vmax.f32 %v635_v43, 0.0 }
 0x17b   : > { %860 = vmatmul.f32.gmra.mxu2 %v3193_v44  ;;  %925 = vmatmul.f32.gmra.mxu3 %v3193_v44 }
 0x17c   : > { %990 = vmatmul.f32.gmra.mxu0 %v3193_v44  ;;  %1055 = vmatmul.f32.gmra.mxu1 %v3193_v44 }
 0x17e   : > { %v637_v51 = vpop.f32.mrf.mxu3 }
 0x17f   : > { %v638_v52 = vadd.f32 %v2955_v23, %v637_v51 }
 0x181   : > { %v3215_v54 = vmax.f32 %v638_v52, 0.0  ;;  %v3383_v52 = vperm.slane %v3344_v37, 1 }
 0x183   : > { %863 = vmatmul.f32.gmra.mxu2 %v3215_v54  ;;  %928 = vmatmul.f32.gmra.mxu3 %v3215_v54 }
 0x184   : > { %993 = vmatmul.f32.gmra.mxu0 %v3215_v54  ;;  %1058 = vmatmul.f32.gmra.mxu1 %v3215_v54 }
 0x186   : > { %v640_v57 = vpop.f32.mrf.mxu3 }
 0x187   : > { %v641_v63 = vadd.f32 %v2955_v23, %v640_v57 }
 0x189   : > { %v3247_v3 = vmax.f32 %v641_v63, 0.0 }
 0x18b   : > { %866 = vmatmul.f32.gmra.mxu2 %v3247_v3  ;;  %931 = vmatmul.f32.gmra.mxu3 %v3247_v3 }
 0x18c   : > { %996 = vmatmul.f32.gmra.mxu0 %v3247_v3  ;;  %1061 = vmatmul.f32.gmra.mxu1 %v3247_v3 }
 0x18e   : > { %v643_v8 = vpop.f32.mrf.mxu3 }
 0x18f   : > { %v644_v31 = vadd.f32 %v2955_v23, %v643_v8 }
 0x191   : > { %v3266_v9 = vmax.f32 %v644_v31, 0.0 }
 0x193   : > { %869 = vmatmul.f32.gmra.mxu2 %v3266_v9  ;;  %934 = vmatmul.f32.gmra.mxu3 %v3266_v9 }
 0x194   : > { %999 = vmatmul.f32.gmra.mxu0 %v3266_v9  ;;  %1064 = vmatmul.f32.gmra.mxu1 %v3266_v9 }
 0x196   : > { %v646_v10 = vpop.f32.mrf.mxu3 }
 0x197   : > { %v647_v39 = vadd.f32 %v2955_v23, %v646_v10 }
 0x199   : > { %v3276_v46 = vmax.f32 %v647_v39, 0.0 }
 0x19b   : > { %872 = vmatmul.f32.gmra.mxu2 %v3276_v46  ;;  %937 = vmatmul.f32.gmra.mxu3 %v3276_v46 }
 0x19c   : > { %1002 = vmatmul.f32.gmra.mxu0 %v3276_v46  ;;  %1067 = vmatmul.f32.gmra.mxu1 %v3276_v46 }
 0x19e   : > { %v649_v53 = vpop.f32.mrf.mxu3 }
 0x19f   : > { %v650_v62 = vadd.f32 %v2955_v23, %v649_v53 }
 0x1a1   : > { %v3286_v5 = vmax.f32 %v650_v62, 0.0 }
 0x1a3   : > { %v3289_v11 = vpop.f32.mrf.mxu0  ;;  %v3291_v12 = vpop.f32.mrf.mxu1  ;;  %875 = vmatmul.f32.gmra.mxu2 %v3286_v5  ;;  %940 = vmatmul.f32.gmra.mxu3 %v3286_v5 }
 0x1a4   : > { %1005 = vmatmul.f32.gmra.mxu0 %v3286_v5  ;;  %1070 = vmatmul.f32.gmra.mxu1 %v3286_v5  ;;  %v3377_v50 = vadd.f32 %v3291_v12, %v3358_v40 }
 0x1a6   : > { %v5738_v2 = vmax.f32 %v3377_v50, 0.0 }
 0x1a8   : > { %v3299_v23 = vpop.f32.mrf.mxu2  ;;  %v3301_v13 = vpop.f32.mrf.mxu3 }
 0x1a9   : > { %v3403_v63 = vadd.f32 %v3299_v23, %v3370_v48 }
 0x1ab   : > { %v964_v15 = vpop.f32.mrf.mxu0  ;;  %v1029_v16 = vpop.f32.mrf.mxu1  ;;  %1090 = vmatmul.f32.vlgmr.msra.gmra.mxu2 %v2964_v27  ;;  %1155 = vmatmul.f32.vlgmr.msra.gmra.mxu3 %v2964_v27  ;;  %v5743_v12 = vmax.f32 %v3403_v63, 0.0 }
 0x1ac   : > { %1220 = vmatmul.f32.vlgmr.msra.gmra.mxu0 %v2964_v27  ;;  %1285 = vmatmul.f32.vlgmr.msra.gmra.mxu1 %v2964_v27 }
 0x1b0   : > { %v3307_v17 = vpop.f32.mrf.mxu2  ;;  %v3309_v18 = vpop.f32.mrf.mxu3 }
 0x1b1   : > { %v3409_v4 = vadd.f32 %v3307_v17, %v3370_v48  ;;  %v3421_v8 = vadd.f32 %v3309_v18, %v3383_v52 }
 0x1b3   : > { %v967_v19 = vpop.f32.mrf.mxu0  ;;  %v1032_v20 = vpop.f32.mrf.mxu1  ;;  %1093 = vmatmul.f32.gmra.mxu2 %v2986_v35  ;;  %1158 = vmatmul.f32.gmra.mxu3 %v2986_v35  ;;  %5918 = vst [vmem:[#allocation3_spill] sm:$0xff] %v3409_v4  ;;  %v5742_v18 = vmax.f32 %v3409_v4, 0.0 }
 0x1b4   : > { %1223 = vmatmul.f32.gmra.mxu0 %v2986_v35  ;;  %1288 = vmatmul.f32.gmra.mxu1 %v2986_v35  ;;  %v3386_v55 = vadd.f32 %v1032_v20, %v3358_v40  ;;  %5920 = vst [vmem:[#allocation5_spill] sm:$0xff] %v3421_v8 }
 0x1b6   : > { %v5736_v31 = vmax.f32 %v3386_v55, 0.0 }
 0x1b8   : > { %v3315_v21 = vpop.f32.mrf.mxu2  ;;  %v3317_v32 = vpop.f32.mrf.mxu3 }
 0x1b9   : > { %v3433_v53 = vadd.f32 %v3315_v21, %v3370_v48 }
 0x1bb   : > { %v970_v27 = vpop.f32.mrf.mxu0  ;;  %v1035_v25 = vpop.f32.mrf.mxu1  ;;  %1096 = vmatmul.f32.gmra.mxu2 %v3008_v42  ;;  %1161 = vmatmul.f32.gmra.mxu3 %v3008_v42  ;;  %5921 = vst [vmem:[#allocation6_spill] sm:$0xff] %v3433_v53 }
 0x1bc   : > { %1226 = vmatmul.f32.gmra.mxu0 %v3008_v42  ;;  %1291 = vmatmul.f32.gmra.mxu1 %v3008_v42  ;;  %v3425_v10 = vadd.f32 %v1035_v25, %v3358_v40 }
 0x1c0   : > { %v3323_v26 = vpop.f32.mrf.mxu2  ;;  %v3325_v28 = vpop.f32.mrf.mxu3 }
 0x1c3   : > { %v973_v29 = vpop.f32.mrf.mxu0  ;;  %v1038_v35 = vpop.f32.mrf.mxu1  ;;  %1099 = vmatmul.f32.gmra.mxu2 %v3030_v49  ;;  %1164 = vmatmul.f32.gmra.mxu3 %v3030_v49 }
 0x1c4   : > { %1229 = vmatmul.f32.gmra.mxu0 %v3030_v49  ;;  %1294 = vmatmul.f32.gmra.mxu1 %v3030_v49 }
 0x1c8   : > { %v3331_v30 = vpop.f32.mrf.mxu2  ;;  %v3333_v33 = vpop.f32.mrf.mxu3 }
 0x1cb   : > { %1102 = vmatmul.f32.gmra.mxu2 %v3061_v59  ;;  %1167 = vmatmul.f32.gmra.mxu3 %v3061_v59  ;;  %v976_v42 = vpop.f32.mrf.mxu0  ;;  %v3339_v36 = vpop.f32.mrf.mxu1 }
 0x1cc   : > { %1232 = vmatmul.f32.gmra.mxu0 %v3061_v59  ;;  %1297 = vmatmul.f32.gmra.mxu1 %v3061_v59  ;;  %v3355_v59 = vperm.slane %v3344_v37, 2 }
 0x1ce   : > { %v3363_v45 = vadd.f32 %v964_v15, %v3355_v59  ;;  %v3367_v47 = vadd.f32 %v3289_v11, %v3355_v59  ;;  %v3380_v51 = vadd.f32 %v967_v19, %v3355_v59  ;;  %v3392_v57 = vadd.f32 %v970_v27, %v3355_v59 }
 0x1cf   : > { %v3413_v24 = vadd.f32 %v973_v29, %v3355_v59  ;;  %v3437_v11 = vadd.f32 %v976_v42, %v3355_v59  ;;  %v3449_v15 = vadd.f32 %v1038_v35, %v3358_v40  ;;  %v5746_v29 = vmax.f32 %v3425_v10, 0.0 }
 0x1d0   : > { %v3346_v49 = vpop.f32.mrf.mxu2  ;;  %v3348_v38 = vpop.f32.mrf.mxu3  ;;  %v5741_v56 = vmax.f32 %v3363_v45, 0.0  ;;  %v5753_v61 = vmax.f32 %v3367_v47, 0.0  ;;  %v5740_v6 = vmax.f32 %v3380_v51, 0.0  ;;  %v5739_v62 = vmax.f32 %v3392_v57, 0.0 }
 0x1d1   : > { %v5749_v20 = vmax.f32 %v3413_v24, 0.0  ;;  %v5747_v35 = vmax.f32 %v3433_v53, 0.0  ;;  %v5972_v4 = vmax.f32 %v3380_v51, 0.0 }
 0x1d2   : > { %v1504_v39 = vmax.f32 %v5753_v61, %v5741_v56 }
 0x1d3   : > { %1105 = vmatmul.f32.gmra.mxu2 %v3077_v0  ;;  %1170 = vmatmul.f32.gmra.mxu3 %v3077_v0  ;;  %v979_v41 = vpop.f32.mrf.mxu0  ;;  %v3360_v43 = vpop.f32.mrf.mxu1 }
 0x1d4   : > { %1235 = vmatmul.f32.gmra.mxu0 %v3077_v0  ;;  %1300 = vmatmul.f32.gmra.mxu1 %v3077_v0  ;;  %v3373_v0 = vadd.f32 %v1029_v16, %v3358_v40  ;;  %v1505_v19 = vmax.f32 %v1504_v39, %v5740_v6  ;;  %v3456_v21 = vadd.f32 %v979_v41, %v3355_v59  ;;  %v5748_v41 = vmax.f32 %v3437_v11, 0.0 }
 0x1d6   : > { %v5737_v1 = vmax.f32 %v3373_v0, 0.0  ;;  %v1506_v42 = vmax.f32 %v1505_v19, %v5739_v62  ;;  %v5751_v19 = vmax.f32 %v3449_v15, 0.0 }
 0x1d8   : > { %v3394_v58 = vpop.f32.mrf.mxu2  ;;  %v3396_v60 = vpop.f32.mrf.mxu3  ;;  %v1525_v23 = vmax.f32 %v5738_v2, %v5737_v1  ;;  %v3481_v1 = vadd.f32 %v3325_v28, %v3383_v52  ;;  %v3492_v2 = vadd.f32 %v3339_v36, %v3358_v40  ;;  %v3507_v36 = vadd.f32 %v3333_v33, %v3383_v52 }
 0x1d9   : > { %v3562_v61 = vadd.f32 %v3396_v60, %v3383_v52 }
 0x1da   : > { %v1526_v25 = vmax.f32 %v1525_v23, %v5736_v31  ;;  %v3477_v31 = vadd.f32 %v3323_v26, %v3370_v48  ;;  %5924 = vst [vmem:[#allocation9_spill] sm:$0xff] %v3481_v1  ;;  %v5752_v26 = vmax.f32 %v3456_v21, 0.0  ;;  %v5756_v33 = vmax.f32 %v3481_v1, 0.0 }
 0x1db   : > { %1108 = vmatmul.f32.gmra.mxu2 %v3099_v7  ;;  %1173 = vmatmul.f32.gmra.mxu3 %v3099_v7  ;;  %v982_v16 = vpop.f32.mrf.mxu0  ;;  %v1047_v17 = vpop.f32.mrf.mxu1  ;;  %5926 = vst [vmem:[#allocation11_spill] sm:$0xff] %v3507_v36 }
 0x1dc   : > { %1238 = vmatmul.f32.gmra.mxu0 %v3099_v7  ;;  %1303 = vmatmul.f32.gmra.mxu1 %v3099_v7  ;;  %v3417_v7 = vadd.f32 %v3301_v13, %v3383_v52  ;;  %v3446_v13 = vadd.f32 %v3317_v32, %v3383_v52  ;;  %v5744_v32 = vmax.f32 %v3421_v8, 0.0  ;;  %v3470_v39 = vadd.f32 %v982_v16, %v3355_v59 }
 0x1dd   : > { %5923 = vst [vmem:[#allocation8_spill] sm:$0xff] %v3477_v31  ;;  %v1462_v16 = vmax.f32 %v5743_v12, %v5742_v18  ;;  %v1527_v56 = vmax.f32 %v1526_v25, %v5746_v29  ;;  %v3503_v18 = vadd.f32 %v3331_v30, %v3370_v48 }
 0x1de   : > { %5919 = vst [vmem:[#allocation4_spill] sm:$0xff] %v3417_v7  ;;  %v5745_v27 = vmax.f32 %v3417_v7, 0.0  ;;  %v5750_v23 = vmax.f32 %v3446_v13, 0.0  ;;  %v5754_v25 = vmax.f32 %v3470_v39, 0.0  ;;  %v5978_v37 = vmax.f32 %v3470_v39, 0.0 }
 0x1df   : > { %5922 = vst [vmem:[#allocation7_spill] sm:$0xff] %v3446_v13  ;;  %v1528_v29 = vmax.f32 %v1527_v56, %v5751_v19  ;;  %v3537_v56 = vadd.f32 %v3346_v49, %v3370_v48  ;;  %v3541_v19 = vadd.f32 %v3348_v38, %v3383_v52  ;;  %v3558_v38 = vadd.f32 %v3394_v58, %v3370_v48 }
 0x1e0   : > { %v852_v62 = vpop.f32.mrf.mxu2  ;;  %v917_v6 = vpop.f32.mrf.mxu3  ;;  %v1483_v28 = vmax.f32 %v5745_v27, %v5744_v32  ;;  %5925 = vst [vmem:[#allocation10_spill] sm:$0xff] %v3503_v18  ;;  %v3515_v32 = vadd.f32 %v3360_v43, %v3358_v40  ;;  %v5755_v27 = vmax.f32 %v3477_v31, 0.0 }
 0x1e1   : > { %5927 = vst [vmem:[#allocation12_spill] sm:$0xff] %v3537_v56  ;;  %v3574_v60 = vadd.f32 %v852_v62, %v3370_v48 }
 0x1e2   : > { %v1484_v30 = vmax.f32 %v1483_v28, %v5750_v23  ;;  %v5759_v28 = vmax.f32 %v3503_v18, 0.0  ;;  %5928 = vst [vmem:[#allocation13_spill] sm:$0xff] %v3541_v19  ;;  %v3577_v23 = vadd.f32 %v917_v6, %v3383_v52 }
 0x1e3   : > { %1111 = vmatmul.f32.gmra.mxu2 %v3121_v14  ;;  %1176 = vmatmul.f32.gmra.mxu3 %v3121_v14  ;;  %5929 = vst [vmem:[#allocation14_spill] sm:$0xff] %v3558_v38 }
 0x1e4   : > { %1241 = vmatmul.f32.gmra.mxu0 %v3121_v14  ;;  %1306 = vmatmul.f32.gmra.mxu1 %v3121_v14  ;;  %v1507_v14 = vmax.f32 %v1506_v42, %v5749_v20  ;;  %v1463_v42 = vmax.f32 %v1462_v16, %v5747_v35  ;;  %5930 = vst [vmem:[#allocation15_spill] sm:$0xff] %v3562_v61 }
 0x1e5   : > { %5931 = vst [vmem:[#allocation16_spill] sm:$0xff] %v3574_v60 }
 0x1e6   : > { %v1508_v12 = vmax.f32 %v1507_v14, %v5748_v41  ;;  %v5757_v14 = vmax.f32 %v3492_v2, 0.0  ;;  %v3528_v41 = vadd.f32 %v1047_v17, %v3358_v40  ;;  %v1464_v49 = vmax.f32 %v1463_v42, %v5755_v27  ;;  %5932 = vst [vmem:[#allocation17_spill] sm:$0xff] %v3577_v23 }
 0x1e8   : > { %v1509_v43 = vmax.f32 %v1508_v12, %v5752_v26 }
 0x1e9   : > { %v985_v16 = vpop.f32.mrf.mxu0  ;;  %v1050_v35 = vpop.f32.mrf.mxu1 }
 0x1ea   : > { %v3531_v20 = vadd.f32 %v985_v16, %v3355_v59  ;;  %v1510_v17 = vmax.f32 %v1509_v43, %v5754_v25  ;;  %v3550_v26 = vadd.f32 %v1050_v35, %v3358_v40  ;;  %v1485_v43 = vmax.f32 %v1484_v30, %v5756_v33 }
 0x1eb   : > { %1114 = vmatmul.f32.gmra.mxu2 %v3149_v22  ;;  %1179 = vmatmul.f32.gmra.mxu3 %v3149_v22  ;;  %v1529_v35 = vmax.f32 %v1528_v29, %v5757_v14  ;;  %v1465_v29 = vmax.f32 %v1464_v49, %v5759_v28  ;;  %v5933_v30 = vmax.f32 %v3507_v36, 0.0  ;;  %v5937_v28 = vmax.f32 %v3528_v41, 0.0 }
 0x1ec   : > { %v5758_v16 = vmax.f32 %v3531_v20, 0.0  ;;  %1244 = vmatmul.f32.gmra.mxu0 %v3149_v22  ;;  %1309 = vmatmul.f32.gmra.mxu1 %v3149_v22  ;;  %v5981_v51 = vmax.f32 %v3531_v20, 0.0 }
 0x1ed   : > { %v1486_v33 = vmax.f32 %v1485_v43, %v5933_v30 }
 0x1ee   : > { %v1511_v22 = vmax.f32 %v1510_v17, %v5758_v16  ;;  %v855_v42 = vpop.f32.mrf.mxu2  ;;  %v920_v27 = vpop.f32.mrf.mxu3  ;;  %v5934_v17 = vmax.f32 %v3515_v32, 0.0 }
 0x1ef   : > { %v3589_v62 = vadd.f32 %v855_v42, %v3370_v48  ;;  %v3592_v6 = vadd.f32 %v920_v27, %v3383_v52  ;;  %v5939_v42 = vmax.f32 %v3541_v19, 0.0 }
 0x1f0   : > { %v1530_v14 = vmax.f32 %v1529_v35, %v5934_v17  ;;  %v5938_v17 = vmax.f32 %v3537_v56, 0.0 }
 0x1f1   : > { %5935 = vst [vmem:[#allocation18_spill] sm:$0xff] %v3589_v62  ;;  %v988_v25 = vpop.f32.mrf.mxu0  ;;  %v1053_v49 = vpop.f32.mrf.mxu1  ;;  %v1487_v58 = vmax.f32 %v1486_v33, %v5939_v42  ;;  %v5941_v33 = vmax.f32 %v3558_v38, 0.0  ;;  %v5768_v16 = vmax.f32 %v3589_v62, 0.0  ;;  %v5766_v27 = vmax.f32 %v3592_v6, 0.0 }
 0x1f2   : > { %5936 = vst [vmem:[#allocation19_spill] sm:$0xff] %v3592_v6  ;;  %v1531_v43 = vmax.f32 %v1530_v14, %v5937_v28  ;;  %v3597_v30 = vadd.f32 %v988_v25, %v3355_v59  ;;  %v3600_v35 = vadd.f32 %v1053_v49, %v3358_v40  ;;  %v1466_v12 = vmax.f32 %v1465_v29, %v5938_v17 }
 0x1f3   : > { %1117 = vmatmul.f32.gmra.mxu2 %v3171_v34  ;;  %1182 = vmatmul.f32.gmra.mxu3 %v3171_v34  ;;  %v5940_v25 = vmax.f32 %v3550_v26, 0.0  ;;  %v5942_v17 = vmax.f32 %v3562_v61, 0.0  ;;  %v5971_v62 = vmax.f32 %v3363_v45, 0.0 }
 0x1f4   : > { %v5764_v28 = vmax.f32 %v3597_v30, 0.0  ;;  %v5763_v49 = vmax.f32 %v3600_v35, 0.0  ;;  %1247 = vmatmul.f32.gmra.mxu0 %v3171_v34  ;;  %1312 = vmatmul.f32.gmra.mxu1 %v3171_v34  ;;  %v1467_v29 = vmax.f32 %v1466_v12, %v5941_v33  ;;  %v5943_v34 = vmax.f32 %v3574_v60, 0.0 }
 0x1f5   : > { %v1532_v14 = vmax.f32 %v1531_v43, %v5940_v25  ;;  %v1488_v42 = vmax.f32 %v1487_v58, %v5942_v17  ;;  %v5944_v12 = vmax.f32 %v3577_v23, 0.0 }
 0x1f6   : > { %v1512_v43 = vmax.f32 %v1511_v22, %v5764_v28  ;;  %v858_v19 = vpop.f32.mrf.mxu2  ;;  %v923_v36 = vpop.f32.mrf.mxu3  ;;  %v1468_v1 = vmax.f32 %v1467_v29, %v5943_v34 }
 0x1f7   : > { %v1533_v25 = vmax.f32 %v1532_v14, %v5763_v49  ;;  %v1489_v33 = vmax.f32 %v1488_v42, %v5944_v12  ;;  %v3631_v58 = vadd.f32 %v858_v19, %v3370_v48  ;;  %v3634_v17 = vadd.f32 %v923_v36, %v3383_v52 }
 0x1f8   : > { %v1469_v22 = vmax.f32 %v1468_v1, %v5768_v16 }
 0x1f9   : > { %5945 = vst [vmem:[#allocation20_spill] sm:$0xff] %v3631_v58  ;;  %v1490_v14 = vmax.f32 %v1489_v33, %v5766_v27  ;;  %v5767_v49 = vmax.f32 %v3631_v58, 0.0  ;;  %v5765_v28 = vmax.f32 %v3634_v17, 0.0  ;;  %v991_v29 = vpop.f32.mrf.mxu0  ;;  %v1056_v34 = vpop.f32.mrf.mxu1 }
 0x1fa   : > { %5946 = vst [vmem:[#allocation21_spill] sm:$0xff] %v3634_v17  ;;  %v3643_v42 = vadd.f32 %v991_v29, %v3355_v59  ;;  %v3646_v19 = vadd.f32 %v1056_v34, %v3358_v40 }
 0x1fb   : > { %v1470_v36 = vmax.f32 %v1469_v22, %v5767_v49  ;;  %v1491_v1 = vmax.f32 %v1490_v14, %v5765_v28  ;;  %1120 = vmatmul.f32.gmra.mxu2 %v3193_v44  ;;  %1185 = vmatmul.f32.gmra.mxu3 %v3193_v44 }
 0x1fc   : > { %v5774_v12 = vmax.f32 %v3643_v42, 0.0  ;;  %v5771_v33 = vmax.f32 %v3646_v19, 0.0  ;;  %1250 = vmatmul.f32.gmra.mxu0 %v3193_v44  ;;  %1315 = vmatmul.f32.gmra.mxu1 %v3193_v44 }
 0x1fe   : > { %v1513_v29 = vmax.f32 %v1512_v43, %v5774_v12  ;;  %v1534_v22 = vmax.f32 %v1533_v25, %v5771_v33  ;;  %v861_v34 = vpop.f32.mrf.mxu2  ;;  %v926_v14 = vpop.f32.mrf.mxu3 }
 0x1ff   : > { %v3663_v28 = vadd.f32 %v861_v34, %v3370_v48  ;;  %v3666_v27 = vadd.f32 %v926_v14, %v3383_v52 }
 0x201   : > { %5947 = vst [vmem:[#allocation22_spill] sm:$0xff] %v3663_v28  ;;  %v5773_v49 = vmax.f32 %v3663_v28, 0.0  ;;  %v5772_v16 = vmax.f32 %v3666_v27, 0.0  ;;  %v994_v23 = vpop.f32.mrf.mxu0  ;;  %v1059_v44 = vpop.f32.mrf.mxu1 }
 0x202   : > { %5948 = vst [vmem:[#allocation23_spill] sm:$0xff] %v3666_v27  ;;  %v3671_v61 = vadd.f32 %v994_v23, %v3355_v59  ;;  %v3674_v43 = vadd.f32 %v1059_v44, %v3358_v40 }
 0x203   : > { %v1471_v25 = vmax.f32 %v1470_v36, %v5773_v49  ;;  %v1492_v34 = vmax.f32 %v1491_v1, %v5772_v16  ;;  %1123 = vmatmul.f32.gmra.mxu2 %v3215_v54  ;;  %1188 = vmatmul.f32.gmra.mxu3 %v3215_v54 }
 0x204   : > { %v5781_v14 = vmax.f32 %v3671_v61, 0.0  ;;  %v5778_v33 = vmax.f32 %v3674_v43, 0.0  ;;  %1253 = vmatmul.f32.gmra.mxu0 %v3215_v54  ;;  %1318 = vmatmul.f32.gmra.mxu1 %v3215_v54  ;;  %v5990_v20 = vmax.f32 %v3671_v61, 0.0 }
 0x206   : > { %v1514_v23 = vmax.f32 %v1513_v29, %v5781_v14  ;;  %v1535_v36 = vmax.f32 %v1534_v22, %v5778_v33  ;;  %v864_v44 = vpop.f32.mrf.mxu2  ;;  %v929_v1 = vpop.f32.mrf.mxu3 }
 0x207   : > { %v3691_v16 = vadd.f32 %v864_v44, %v3370_v48  ;;  %v3694_v49 = vadd.f32 %v929_v1, %v3383_v52 }
 0x209   : > { %5949 = vst [vmem:[#allocation24_spill] sm:$0xff] %v3691_v16  ;;  %v5780_v12 = vmax.f32 %v3691_v16, 0.0  ;;  %v5779_v27 = vmax.f32 %v3694_v49, 0.0  ;;  %v997_v17 = vpop.f32.mrf.mxu0  ;;  %v1062_v54 = vpop.f32.mrf.mxu1 }
 0x20a   : > { %5950 = vst [vmem:[#allocation25_spill] sm:$0xff] %v3694_v49  ;;  %v3699_v6 = vadd.f32 %v997_v17, %v3355_v59  ;;  %v3702_v29 = vadd.f32 %v1062_v54, %v3358_v40 }
 0x20b   : > { %v1472_v22 = vmax.f32 %v1471_v25, %v5780_v12  ;;  %v1493_v44 = vmax.f32 %v1492_v34, %v5779_v27  ;;  %1126 = vmatmul.f32.gmra.mxu2 %v3247_v3  ;;  %1191 = vmatmul.f32.gmra.mxu3 %v3247_v3 }
 0x20c   : > { %v5788_v1 = vmax.f32 %v3699_v6, 0.0  ;;  %v5785_v33 = vmax.f32 %v3702_v29, 0.0  ;;  %1256 = vmatmul.f32.gmra.mxu0 %v3247_v3  ;;  %1321 = vmatmul.f32.gmra.mxu1 %v3247_v3 }
 0x20e   : > { %v1515_v17 = vmax.f32 %v1514_v23, %v5788_v1  ;;  %v1536_v25 = vmax.f32 %v1535_v36, %v5785_v33  ;;  %v867_v54 = vpop.f32.mrf.mxu2  ;;  %v932_v34 = vpop.f32.mrf.mxu3 }
 0x20f   : > { %v3719_v27 = vadd.f32 %v867_v54, %v3370_v48  ;;  %v3722_v12 = vadd.f32 %v932_v34, %v3383_v52 }
 0x211   : > { %5951 = vst [vmem:[#allocation26_spill] sm:$0xff] %v3719_v27  ;;  %v5787_v14 = vmax.f32 %v3719_v27, 0.0  ;;  %v5786_v49 = vmax.f32 %v3722_v12, 0.0  ;;  %v1000_v13 = vpop.f32.mrf.mxu0  ;;  %v1065_v3 = vpop.f32.mrf.mxu1 }
 0x212   : > { %5952 = vst [vmem:[#allocation27_spill] sm:$0xff] %v3722_v12  ;;  %v3727_v8 = vadd.f32 %v1000_v13, %v3355_v59  ;;  %v3730_v23 = vadd.f32 %v1065_v3, %v3358_v40 }
 0x213   : > { %v1473_v36 = vmax.f32 %v1472_v22, %v5787_v14  ;;  %v1494_v54 = vmax.f32 %v1493_v44, %v5786_v49  ;;  %1129 = vmatmul.f32.gmra.mxu2 %v3266_v9  ;;  %1194 = vmatmul.f32.gmra.mxu3 %v3266_v9 }
 0x214   : > { %v5795_v34 = vmax.f32 %v3727_v8, 0.0  ;;  %v5792_v33 = vmax.f32 %v3730_v23, 0.0  ;;  %1259 = vmatmul.f32.gmra.mxu0 %v3266_v9  ;;  %1324 = vmatmul.f32.gmra.mxu1 %v3266_v9 }
 0x216   : > { %v1516_v13 = vmax.f32 %v1515_v17, %v5795_v34  ;;  %v1537_v22 = vmax.f32 %v1536_v25, %v5792_v33  ;;  %v870_v3 = vpop.f32.mrf.mxu2  ;;  %v935_v44 = vpop.f32.mrf.mxu3 }
 0x217   : > { %v3747_v49 = vadd.f32 %v870_v3, %v3370_v48  ;;  %v3750_v14 = vadd.f32 %v935_v44, %v3383_v52 }
 0x219   : > { %5953 = vst [vmem:[#allocation28_spill] sm:$0xff] %v3747_v49  ;;  %v5794_v1 = vmax.f32 %v3747_v49, 0.0  ;;  %v5793_v12 = vmax.f32 %v3750_v14, 0.0  ;;  %v1003_v7 = vpop.f32.mrf.mxu0  ;;  %v1068_v9 = vpop.f32.mrf.mxu1 }
 0x21a   : > { %5954 = vst [vmem:[#allocation29_spill] sm:$0xff] %v3750_v14  ;;  %v3755_v60 = vadd.f32 %v1003_v7, %v3355_v59  ;;  %v3758_v17 = vadd.f32 %v1068_v9, %v3358_v40 }
 0x21b   : > { %v1474_v25 = vmax.f32 %v1473_v36, %v5794_v1  ;;  %v1495_v3 = vmax.f32 %v1494_v54, %v5793_v12  ;;  %1132 = vmatmul.f32.gmra.mxu2 %v3276_v46  ;;  %1197 = vmatmul.f32.gmra.mxu3 %v3276_v46 }
 0x21c   : > { %v5802_v44 = vmax.f32 %v3755_v60, 0.0  ;;  %v5799_v33 = vmax.f32 %v3758_v17, 0.0  ;;  %1262 = vmatmul.f32.gmra.mxu0 %v3276_v46  ;;  %1327 = vmatmul.f32.gmra.mxu1 %v3276_v46  ;;  %v5999_v61 = vmax.f32 %v3755_v60, 0.0 }
 0x21e   : > { %v1517_v7 = vmax.f32 %v1516_v13, %v5802_v44  ;;  %v1538_v36 = vmax.f32 %v1537_v22, %v5799_v33  ;;  %v873_v9 = vpop.f32.mrf.mxu2  ;;  %v938_v54 = vpop.f32.mrf.mxu3 }
 0x21f   : > { %v3775_v12 = vadd.f32 %v873_v9, %v3370_v48  ;;  %v3778_v1 = vadd.f32 %v938_v54, %v3383_v52 }
 0x221   : > { %5955 = vst [vmem:[#allocation30_spill] sm:$0xff] %v3775_v12  ;;  %v5801_v34 = vmax.f32 %v3775_v12, 0.0  ;;  %v5800_v14 = vmax.f32 %v3778_v1, 0.0  ;;  %v1006_v38 = vpop.f32.mrf.mxu0  ;;  %v1071_v46 = vpop.f32.mrf.mxu1 }
 0x222   : > { %5956 = vst [vmem:[#allocation31_spill] sm:$0xff] %v3778_v1  ;;  %v3783_v56 = vadd.f32 %v1006_v38, %v3355_v59  ;;  %v3786_v13 = vadd.f32 %v1071_v46, %v3358_v40  ;;  %v1630_v38 = vlaneseq }
 0x223   : > { %v1475_v22 = vmax.f32 %v1474_v25, %v5801_v34  ;;  %v1496_v9 = vmax.f32 %v1495_v3, %v5800_v14  ;;  %1135 = vmatmul.f32.gmra.mxu2 %v3286_v5  ;;  %1200 = vmatmul.f32.gmra.mxu3 %v3286_v5 }
 0x224   : > { %v1456_v54 = vmax.f32 %v3783_v56, 0.0  ;;  %v5806_v33 = vmax.f32 %v3786_v13, 0.0  ;;  %1330 = vmatmul.f32.gmra.mxu1 %v3286_v5  ;;  %v3803_v1 = vshrl.u32 %v1630_v38, 7 }
 0x226   : > { %v1518_v59 = vmax.f32 %v1517_v7, %v1456_v54  ;;  %v1539_v40 = vmax.f32 %v1538_v36, %v5806_v33  ;;  %v876_v46 = vpop.f32.mrf.mxu2  ;;  %v941_v18 = vpop.f32.mrf.mxu3  ;;  %v3819_v38 = vadd.s32 24, %v3803_v1  ;;  %v3842_v49 = vadd.s32 80, %v3803_v1 }
 0x227   : > { %v3800_v25 = vadd.f32 %v876_v46, %v3370_v48  ;;  %v3808_v31 = vadd.f32 %v941_v18, %v3383_v52  ;;  %v3822_v52 = vadd.s32 32, %v3803_v1 }
 0x228   : > { %v1519_v3 = vrot.slane %v1518_v59, 4  ;;  %v1540_v14 = vrot.slane %v1539_v40, 4  ;;  %5962 = vst [vmem:[#allocation37_spill] sm:$0xff] %v3842_v49 }
 0x229   : > { %5957 = vst [vmem:[#allocation32_spill] sm:$0xff] %v3800_v25  ;;  %v5808_v34 = vmax.f32 %v3800_v25, 0.0  ;;  %v5812_v33 = vmax.f32 %v3808_v31, 0.0  ;;  %v3839_v25 = vadd.s32 72, %v3803_v1 }
 0x22a   : > { %v1520_v44 = vmax.f32 %v1518_v59, %v1519_v3  ;;  %v1541_v56 = vmax.f32 %v1539_v40, %v1540_v14  ;;  %5958 = vst [vmem:[#allocation33_spill] sm:$0xff] %v3808_v31  ;;  %v3813_v59 = vadd.s32 8, %v3803_v1  ;;  %v3816_v14 = vadd.s32 16, %v3803_v1 }
 0x22b   : > { %v1476_v7 = vmax.f32 %v1475_v22, %v5808_v34  ;;  %1265 = vmatmul.f32.vlgmr.msrb.gmra.mxu2 %v3286_v5  ;;  %v3825_v5 = vadd.s32 40, %v3803_v1  ;;  %v1497_v18 = vmax.f32 %v1496_v9, %v5812_v33  ;;  %v3836_v34 = vadd.s32 64, %v3803_v1  ;;  %5961 = vst [vmem:[#allocation36_spill] sm:$0xff] %v3839_v25 }
 0x22c   : > { %v1521_v36 = vrot.slane %v1520_v44, 2  ;;  %v1542_v48 = vrot.slane %v1541_v56, 2  ;;  %v3847_v9 = vadd.s32 88, %v3803_v1  ;;  %v5820_v33 = vmov -inf  }
 0x22d   : > { %v1477_v46 = vrot.slane %v1476_v7, 4  ;;  %5960 = vst [vmem:[#allocation35_spill] sm:$0xff] %v3836_v34  ;;  %v3862_v27 = vperm.slane %v5820_v33, 2  ;;  %v1498_v53 = vrot.slane %v1497_v18, 4 }
 0x22e   : > { %v1522_v12 = vmax.f32 %v1520_v44, %v1521_v36  ;;  %v3830_v44 = vadd.s32 48, %v3803_v1  ;;  %v1543_v40 = vmax.f32 %v1541_v56, %v1542_v48  ;;  %v3833_v36 = vadd.s32 56, %v3803_v1  ;;  %5963 = vst [vmem:[#allocation38_spill] sm:$0xff] %v3847_v9 }
 0x22f   : > { %v1478_v3 = vmax.f32 %v1476_v7, %v1477_v46  ;;  %v3850_v56 = vadd.s32 96, %v3803_v1  ;;  %v3853_v7 = vadd.s32 104, %v3803_v1  ;;  %v3856_v48 = vadd.s32 112, %v3803_v1 }
 0x230   : > { %v1523_v22 = vrot.slane %v1522_v12, 1  ;;  %5959 = vst [vmem:[#allocation34_spill] sm:$0xff] %v3833_v36  ;;  %v3859_v46 = vadd.s32 120, %v3803_v1  ;;  %v1544_v28 = vrot.slane %v1543_v40, 1  ;;  %v3974_v16 = vmax.f32 %v1497_v18, %v1498_v53 }
 0x231   : > { %5964 = vst [vmem:[#allocation39_spill] sm:$0xff] %v3850_v56  ;;  %v1479_v58 = vrot.slane %v1478_v3, 2 }
 0x232   : > { %v3844_v31 = vmax.f32 %v1522_v12, %v1523_v22  ;;  %5965 = vst [vmem:[#allocation40_spill] sm:$0xff] %v3853_v7  ;;  %v3865_v12 = vperm.slane %v5820_v33, 3  ;;  %v5968_v22 = vmax.f32 %v3367_v47, 0.0  ;;  %v5975_v47 = vmax.f32 %v3392_v57, 0.0 }
 0x233   : > { %5966 = vst [vmem:[#allocation41_spill] sm:$0xff] %v3856_v48  ;;  %v5984_v57 = vmax.f32 %v3597_v30, 0.0  ;;  %v5993_v30 = vmax.f32 %v3699_v6, 0.0  ;;  %v6002_v6 = vmov 0 }
 0x234   : > { %5967 = vst [vmem:[#allocation42_spill] sm:$0xff] %v3859_v46  ;;  %vm3870_vm1 = vcmp.eq.f32.partialorder %v5968_v22, %v3844_v31  ;;  %vm1675_vm2 = vcmp.eq.f32.partialorder %v5971_v62, %v3844_v31  ;;  %vm3880_vm3 = vcmp.eq.f32.partialorder %v5972_v4, %v3844_v31  ;;  %vm3887_vm4 = vcmp.eq.f32.partialorder %v5975_v47, %v3844_v31 }
 0x235   : > { %vm3894_vm5 = vcmp.eq.f32.partialorder %v5978_v37, %v3844_v31  ;;  %vm3901_vm6 = vcmp.eq.f32.partialorder %v5981_v51, %v3844_v31  ;;  %vm3908_vm7 = vcmp.eq.f32.partialorder %v5984_v57, %v3844_v31  ;;  %v5987_v37 = vmax.f32 %v3643_v42, 0.0 }
 0x236   : > { %vm3922_vm9 = vcmp.eq.f32.partialorder %v5990_v20, %v3844_v31  ;;  %vm3929_vm10 = vcmp.eq.f32.partialorder %v5993_v30, %v3844_v31  ;;  %v5996_v42 = vmax.f32 %v3727_v8, 0.0  ;;  %vm3943_vm12 = vcmp.eq.f32.partialorder %v5999_v61, %v3844_v31 }
 0x237   : > { %vm3915_vm8 = vcmp.eq.f32.partialorder %v5987_v37, %v3844_v31  ;;  %v6000_v37 = vmov 0  ;;  %vm3948_vm13 = vcmp.eq.f32.partialorder %v1456_v54, %v3844_v31  ;;  %v6004_v20 = vmax.f32 %v3413_v24, 0.0 }
 0x238   : > { %vm3936_vm11 = vcmp.eq.f32.partialorder %v5996_v42, %v3844_v31  ;;  %v6001_v37 = vsel %vm3943_vm12, 4294967295, %v6000_v37  ;;  %v6003_v6 = vsel %vm3948_vm13, 4294967295, %v6002_v6  ;;  %v6005_v8 = vmax.f32 %v3437_v11, 0.0 }
 0x239   : > { %vm1699_vm14 = vcmp.eq.f32.partialorder %v6004_v20, %v3844_v31  ;;  %v1795_v60 = vsel %vm3870_vm1, %v3803_v1, 2147483647  ;;  %v1803_v30 = vsel %vm1675_vm2, %v3813_v59, 2147483647  ;;  %v6006_v54 = vmax.f32 %v3456_v21, 0.0 }
 0x23a   : > { %vm1707_vm15 = vcmp.eq.f32.partialorder %v6005_v8, %v3844_v31  ;;  %vm1999_vm12 = vcmp.lt.s32.totalorder %v1795_v60, %v1803_v30  ;;  %v3965_v42 = vmax.f32 %v1543_v40, %v1544_v28  ;;  %v3967_v61 = vmax.f32 %v1478_v3, %v1479_v58 }
 0x23b   : > { %vm1715_vm0 = vcmp.eq.f32.partialorder %v6006_v54, %v3844_v31  ;;  %v1811_v24 = vsel %vm3880_vm3, %v3816_v14, 2147483647  ;;  %v2000_v11 = vsel %vm1999_vm12, %v1795_v60, %v1803_v30  ;;  %vm5823_vm13 = vcmp.gt.f32.partialorder %v3844_v31, %v3862_v27 }
 0x23c   : > { %v1819_v21 = vsel %vm3887_vm4, %v3819_v38, 2147483647  ;;  %v1827_v20 = vsel %vm1699_vm14, %v3822_v52, 2147483647  ;;  %v1835_v28 = vsel %vm1707_vm15, %v3825_v5, 2147483647  ;;  %vm2001_vm1 = vcmp.lt.s32.totalorder %v2000_v11, %v1811_v24 }
 0x23d   : > { %v1843_v58 = vsel %vm1715_vm0, %v3830_v44, 2147483647  ;;  %v1851_v33 = vsel %vm3894_vm5, %v3833_v36, 2147483647  ;;  %v1859_v53 = vsel %vm3901_vm6, %v3836_v34, 2147483647  ;;  %v2002_v18 = vsel %vm2001_vm1, %v2000_v11, %v1811_v24 }
 0x23e   : > { %v1867_v40 = vsel %vm3908_vm7, %v3839_v25, 2147483647  ;;  %v1875_v3 = vsel %vm3915_vm8, %v3842_v49, 2147483647  ;;  %vm2003_vm2 = vcmp.lt.s32.totalorder %v2002_v18, %v1819_v21  ;;  %v3999_v22 = vsel %vm5823_vm13, %v3844_v31, %v3862_v27 }
 0x23f   : > { %v4004_v45 = vsel %vm3922_vm9, %v3847_v9, 2147483647  ;;  %v4009_v4 = vsel %vm3929_vm10, %v3850_v56, 2147483647  ;;  %v4014_v62 = vsel %vm3936_vm11, %v3853_v7, 2147483647  ;;  %v2004_v39 = vsel %vm2003_vm2, %v2002_v18, %v1819_v21 }
 0x240   : > { %vm6007_vm3 = vnez %v6001_v37  ;;  %vm6008_vm4 = vnez %v6003_v6  ;;  %vm2005_vm5 = vcmp.lt.s32.totalorder %v2004_v39, %v1827_v20  ;;  %v6009_v51 = vmax.f32 %v3377_v50, 0.0 }
 0x241   : > { %v4019_v8 = vsel %vm6007_vm3, %v3856_v48, 2147483647  ;;  %v4024_v47 = vsel %vm6008_vm4, %v3859_v46, 2147483647  ;;  %v2006_v57 = vsel %vm2005_vm5, %v2004_v39, %v1827_v20  ;;  %v2315_v30 = vrot.slane %v3999_v22, 6 }
 0x242   : > { %vm4029_vm6 = vcmp.eq.f32.partialorder %v6009_v51, %v3965_v42  ;;  %v6012_v37 = vmax.f32 %v3373_v0, 0.0  ;;  %v6015_v6 = vmax.f32 %v3550_v26, 0.0  ;;  %vm2007_vm9 = vcmp.lt.s32.totalorder %v2006_v57, %v1835_v28 }
 0x243   : > { %v6018_v50 = vmax.f32 %v3600_v35, 0.0  ;;  %v6021_v0 = vmax.f32 %v3646_v19, 0.0  ;;  %v6024_v26 = vmax.f32 %v3674_v43, 0.0  ;;  %v2008_v18 = vsel %vm2007_vm9, %v2006_v57, %v1835_v28 }
 0x244   : > { %vm4037_vm7 = vcmp.eq.f32.partialorder %v6012_v37, %v3965_v42  ;;  %vm4044_vm8 = vcmp.eq.f32.partialorder %v6015_v6, %v3965_v42  ;;  %v6027_v35 = vmax.f32 %v3386_v55, 0.0  ;;  %v6030_v19 = vmax.f32 %v3702_v29, 0.0 }
 0x245   : > { %vm4051_vm10 = vcmp.eq.f32.partialorder %v6018_v50, %v3965_v42  ;;  %vm4058_vm11 = vcmp.eq.f32.partialorder %v6021_v0, %v3965_v42  ;;  %vm4065_vm12 = vcmp.eq.f32.partialorder %v6024_v26, %v3965_v42  ;;  %v6033_v43 = vmax.f32 %v3730_v23, 0.0 }
 0x246   : > { %vm4072_vm14 = vcmp.eq.f32.partialorder %v6027_v35, %v3965_v42  ;;  %vm4079_vm15 = vcmp.eq.f32.partialorder %v6030_v19, %v3965_v42  ;;  %vm2009_vm2 = vcmp.lt.s32.totalorder %v2008_v18, %v1843_v58  ;;  %v6036_v55 = vmax.f32 %v3425_v10, 0.0 }
 0x247   : > { %vm4086_vm0 = vcmp.eq.f32.partialorder %v6033_v43, %v3965_v42  ;;  %v6037_v29 = vmax.f32 %v3758_v17, 0.0  ;;  %v6038_v28 = vmov 0  ;;  %v6040_v23 = vmax.f32 %v3786_v13, 0.0 }
 0x248   : > { %vm1692_vm3 = vcmp.eq.f32.partialorder %v6036_v55, %v3965_v42  ;;  %v6041_v57 = vmov 0  ;;  %v2010_v37 = vsel %vm2009_vm2, %v2008_v18, %v1843_v58  ;;  %v6043_v6 = vmax.f32 %v3449_v15, 0.0 }
 0x249   : > { %vm4096_vm4 = vcmp.eq.f32.partialorder %v6037_v29, %v3965_v42  ;;  %vm4103_vm5 = vcmp.eq.f32.partialorder %v6040_v23, %v3965_v42  ;;  %v6044_v10 = vmax.f32 %v3492_v2, 0.0  ;;  %v6045_v17 = vmax.f32 %v3515_v32, 0.0 }
 0x24a   : > { %v6039_v28 = vsel %vm4096_vm4, 4294967295, %v6038_v28  ;;  %v6042_v57 = vsel %vm4103_vm5, 4294967295, %v6041_v57  ;;  %vm1700_vm9 = vcmp.eq.f32.partialorder %v6043_v6, %v3965_v42  ;;  %vm2011_vm4 = vcmp.lt.s32.totalorder %v2010_v37, %v1851_v33 }
 0x24b   : > { %vm1708_vm13 = vcmp.eq.f32.partialorder %v6044_v10, %v3965_v42  ;;  %vm1716_vm1 = vcmp.eq.f32.partialorder %v6045_v17, %v3965_v42  ;;  %v5825_v50 = vmov 0   ;;  %v6046_v58 = vmax.f32 %v3528_v41, 0.0 }
 0x24c   : > { %v4117_v13 = vperm.slane %v5825_v50, 2  ;;  %v1796_v15 = vsel %vm4029_vm6, %v3803_v1, 2147483647  ;;  %v2012_v0 = vsel %vm2011_vm4, %v2010_v37, %v1851_v33  ;;  %v1804_v2 = vsel %vm4037_vm7, %v3813_v59, 2147483647 }
 0x24d   : > { %vm1724_vm2 = vcmp.eq.f32.partialorder %v6046_v58, %v3965_v42  ;;  %v1812_v32 = vsel %vm4072_vm14, %v3816_v14, 2147483647  ;;  %v1820_v26 = vsel %vm1692_vm3, %v3819_v38, 2147483647  ;;  %vm2013_vm5 = vcmp.lt.s32.totalorder %v2012_v0, %v1859_v53 }
 0x24e   : > { %v1828_v18 = vsel %vm1700_vm9, %v3822_v52, 2147483647  ;;  %v1836_v41 = vsel %vm1708_vm13, %v3825_v5, 2147483647  ;;  %v1844_v35 = vsel %vm1716_vm1, %v3830_v44, 2147483647  ;;  %v2014_v60 = vsel %vm2013_vm5, %v2012_v0, %v1859_v53 }
 0x24f   : > { %v1852_v33 = vsel %vm1724_vm2, %v3833_v36, 2147483647  ;;  %v4139_v54 = vsel %vm4044_vm8, %v3836_v34, 2147483647  ;;  %v4144_v22 = vsel %vm4051_vm10, %v3839_v25, 2147483647  ;;  %vm2015_vm6 = vcmp.lt.s32.totalorder %v2014_v60, %v1867_v40 }
 0x250   : > { %vm2038_vm7 = vcmp.lt.s32.totalorder %v1796_v15, %v1804_v2  ;;  %vm5824_vm13 = vcmp.gt.f32.partialorder %v3965_v42, %v3865_v12  ;;  %v1481_v19 = vrot.slane %v3967_v61, 1  ;;  %v2016_v53 = vsel %vm2015_vm6, %v2014_v60, %v1867_v40 }
 0x251   : > { %v4152_v43 = vsel %vm4058_vm11, %v3842_v49, 2147483647  ;;  %v2039_v24 = vsel %vm2038_vm7, %v1796_v15, %v1804_v2  ;;  %v2301_v11 = vsel %vm5824_vm13, %v3965_v42, %v3865_v12  ;;  %vm2017_vm8 = vcmp.lt.s32.totalorder %v2016_v53, %v1875_v3  ;;  %v6056_v2 = vld [vmem:[#allocation3_spill] sm:$0xff] }
 0x252   : > { %v4162_v55 = vsel %vm4065_vm12, %v3847_v9, 2147483647  ;;  %vm2040_vm10 = vcmp.lt.s32.totalorder %v2039_v24, %v1812_v32  ;;  %v2316_v40 = vrot.slane %v2301_v11, 5  ;;  %v2018_v29 = vsel %vm2017_vm8, %v2016_v53, %v1875_v3  ;;  %v6064_v53 = vld [vmem:[#allocation6_spill] sm:$0xff] }
 0x253   : > { %v4167_v21 = vsel %vm4079_vm15, %v3850_v56, 2147483647  ;;  %v2041_v23 = vsel %vm2040_vm10, %v2039_v24, %v1812_v32  ;;  %v4170_v37 = vmax.f32 %v3967_v61, %v1481_v19  ;;  %vm2019_vm11 = vcmp.lt.s32.totalorder %v2018_v29, %v4004_v45 }
 0x254   : > { %v4176_v20 = vsel %vm4086_vm0, %v3853_v7, 2147483647  ;;  %vm2042_vm12 = vcmp.lt.s32.totalorder %v2041_v23, %v1820_v26  ;;  %vm6047_vm14 = vcmask 1042434   ;;  %v2020_v3 = vsel %vm2019_vm11, %v2018_v29, %v4004_v45 }
 0x255   : > { %v4179_v6 = vsel %vm6047_vm14, %v2315_v30, %v2316_v40  ;;  %vm6048_vm15 = vnez %v6039_v28  ;;  %vm6049_vm1 = vnez %v6042_v57  ;;  %v2043_v10 = vsel %vm2042_vm12, %v2041_v23, %v1820_v26  ;;  %v6055_v57 = vld [vmem:[#allocation2_spill] sm:$0xff]  ;;  %v6068_v40 = vld [vmem:[#allocation20_spill] sm:$0xff] }
 0x256   : > { %v4185_v39 = vsel %vm6048_vm15, %v3856_v48, 2147483647  ;;  %v4190_v61 = vsel %vm6049_vm1, %v3859_v46, 2147483647  ;;  %vm2021_vm0 = vcmp.lt.s32.totalorder %v2020_v3, %v4009_v4  ;;  %vm2044_vm3 = vcmp.lt.s32.totalorder %v2043_v10, %v1828_v18 }
 0x257   : > { %v6050_v51 = vmov -inf   ;;  %v1500_v30 = vrot.slane %v3974_v16, 2  ;;  %v2022_v45 = vsel %vm2021_vm0, %v2020_v3, %v4009_v4  ;;  %v2045_v58 = vsel %vm2044_vm3, %v2043_v10, %v1828_v18  ;;  %v6060_v4 = vld [vmem:[#allocation18_spill] sm:$0xff]  ;;  %v6076_v10 = vld [vmem:[#allocation24_spill] sm:$0xff] }
 0x258   : > { %v4194_v17 = vperm.slane %v6050_v51, 0  ;;  %v6052_v28 = vmax.f32 %v3403_v63, 0.0  ;;  %v4206_v0 = vperm.slane %v6055_v57, 6  ;;  %vm2023_vm5 = vcmp.lt.s32.totalorder %v2022_v45, %v4014_v62 }
 0x259   : > { %vm2046_vm9 = vcmp.lt.s32.totalorder %v2045_v58, %v1836_v41  ;;  %v6057_v32 = vmax.f32 %v6056_v2, 0.0  ;;  %v6061_v63 = vmax.f32 %v6060_v4, 0.0  ;;  %v2024_v60 = vsel %vm2023_vm5, %v2022_v45, %v4014_v62  ;;  %v6072_v62 = vld [vmem:[#allocation22_spill] sm:$0xff] }
 0x25a   : > { %6051 = vst [vmem:[#allocation43_spill] sm:$0xff] %v4194_v17  ;;  %vm4201_vm4 = vcmp.eq.f32.partialorder %v6052_v28, %v4170_v37  ;;  %v2047_v19 = vsel %vm2046_vm9, %v2045_v58, %v1836_v41  ;;  %v6065_v24 = vmax.f32 %v6064_v53, 0.0  ;;  %v6069_v29 = vmax.f32 %v6068_v40, 0.0  ;;  %v6080_v2 = vld [vmem:[#allocation26_spill] sm:$0xff] }
 0x25b   : > { %vm4212_vm2 = vcmp.eq.f32.partialorder %v6057_v32, %v4170_v37  ;;  %vm4219_vm6 = vcmp.eq.f32.partialorder %v6061_v63, %v4170_v37  ;;  %vm2025_vm10 = vcmp.lt.s32.totalorder %v2024_v60, %v4019_v8  ;;  %vm2048_vm11 = vcmp.lt.s32.totalorder %v2047_v19, %v1844_v35  ;;  %v6084_v63 = vld [vmem:[#allocation28_spill] sm:$0xff] }
 0x25c   : > { %vm4227_vm7 = vcmp.eq.f32.partialorder %v6065_v24, %v4170_v37  ;;  %vm4234_vm8 = vcmp.eq.f32.partialorder %v6069_v29, %v4170_v37  ;;  %v6073_v41 = vmax.f32 %v6072_v62, 0.0  ;;  %v6077_v45 = vmax.f32 %v6076_v10, 0.0  ;;  %v6096_v10 = vld [vmem:[#allocation8_spill] sm:$0xff] }
 0x25d   : > { %v2026_v28 = vsel %vm2025_vm10, %v2024_v60, %v4019_v8  ;;  %v2049_v57 = vsel %vm2048_vm11, %v2047_v19, %v1844_v35  ;;  %v6081_v32 = vmax.f32 %v6080_v2, 0.0  ;;  %v6085_v53 = vmax.f32 %v6084_v63, 0.0  ;;  %v6088_v8 = vld [vmem:[#allocation30_spill] sm:$0xff]  ;;  %v6092_v19 = vld [vmem:[#allocation32_spill] sm:$0xff] }
 0x25e   : > { %vm4242_vm12 = vcmp.eq.f32.partialorder %v6073_v41, %v4170_v37  ;;  %vm4249_vm14 = vcmp.eq.f32.partialorder %v6077_v45, %v4170_v37  ;;  %v6086_v24 = vmov 0  ;;  %vm2027_vm0 = vcmp.lt.s32.totalorder %v2026_v28, %v4024_v47 }
 0x25f   : > { %vm4257_vm15 = vcmp.eq.f32.partialorder %v6081_v32, %v4170_v37  ;;  %vm4264_vm1 = vcmp.eq.f32.partialorder %v6085_v53, %v4170_v37  ;;  %vm2050_vm3 = vcmp.lt.s32.totalorder %v2049_v57, %v1852_v33  ;;  %v6089_v35 = vmax.f32 %v6088_v8, 0.0  ;;  %v6100_v32 = vld [vmem:[#allocation10_spill] sm:$0xff] }
 0x260   : > { %v6087_v24 = vsel %vm4264_vm1, 4294967295, %v6086_v24  ;;  %v6090_v60 = vmov 0  ;;  %v6093_v40 = vmax.f32 %v6092_v19, 0.0  ;;  %v6094_v29 = vmov 0 }
 0x261   : > { %vm4272_vm5 = vcmp.eq.f32.partialorder %v6089_v35, %v4170_v37  ;;  %v2028_v62 = vsel %vm2027_vm0, %v2026_v28, %v4024_v47  ;;  %v2051_v41 = vsel %vm2050_vm3, %v2049_v57, %v1852_v33  ;;  %v6097_v45 = vmax.f32 %v6096_v10, 0.0  ;;  %v6104_v47 = vld [vmem:[#allocation12_spill] sm:$0xff]  ;;  %v6108_v57 = vld [vmem:[#allocation14_spill] sm:$0xff] }
 0x262   : > { %v6091_v60 = vsel %vm4272_vm5, 4294967295, %v6090_v60  ;;  %vm4279_vm9 = vcmp.eq.f32.partialorder %v6093_v40, %v4170_v37  ;;  %v6101_v63 = vmax.f32 %v6100_v32, 0.0  ;;  %v2029_v8 = vrot.slane %v2028_v62, 4 }
 0x263   : > { %v6095_v29 = vsel %vm4279_vm9, 4294967295, %v6094_v29  ;;  %vm4287_vm10 = vcmp.eq.f32.partialorder %v6097_v45, %v4170_v37  ;;  %vm2052_vm13 = vcmp.lt.s32.totalorder %v2051_v41, %v4139_v54  ;;  %v6105_v33 = vmax.f32 %v6104_v47, 0.0  ;;  %v6112_v45 = vld [vmem:[#allocation16_spill] sm:$0xff] }
 0x264   : > { %vm4294_vm11 = vcmp.eq.f32.partialorder %v6101_v63, %v4170_v37  ;;  %v6109_v35 = vmax.f32 %v6108_v57, 0.0  ;;  %v2053_v40 = vsel %vm2052_vm13, %v2051_v41, %v4139_v54  ;;  %v4315_v10 = vperm.slane %v5825_v50, 3  ;;  %v4380_v63 = vpop.f32.mrf.mxu3 }
 0x265   : > { %vm4302_vm0 = vcmp.eq.f32.partialorder %v6105_v33, %v4170_v37  ;;  %v6113_v32 = vmax.f32 %v6112_v45, 0.0  ;;  %v1793_v47 = vsel %vm4201_vm4, %v3803_v1, 2147483647  ;;  %v4327_v33 = vpop.f32.mrf.mxu1  ;;  %vm2030_vm5 = vcmp.lt.s32.totalorder %v2028_v62, %v2029_v8 }
 0x266   : > { %vm4309_vm3 = vcmp.eq.f32.partialorder %v6109_v35, %v4170_v37  ;;  %vm2054_vm1 = vcmp.lt.s32.totalorder %v2053_v40, %v4144_v22  ;;  %v1801_v54 = vsel %vm4212_vm2, %v3813_v59, 2147483647  ;;  %v1809_v41 = vsel %vm4227_vm7, %v3816_v14, 2147483647 }
 0x267   : > { %vm4320_vm9 = vcmp.eq.f32.partialorder %v6113_v32, %v4170_v37  ;;  %v2031_v57 = vsel %vm2030_vm5, %v2028_v62, %v2029_v8  ;;  %v2055_v35 = vsel %vm2054_vm1, %v2053_v40, %v4144_v22  ;;  %v1817_v15 = vsel %vm4287_vm10, %v3819_v38, 2147483647  ;;  %v1221_v8 = vpop.f32.mrf.mxu0  ;;  %v4378_v40 = vpop.f32.mrf.mxu2 }
 0x268   : > { %v1825_v45 = vsel %vm4294_vm11, %v3822_v52, 2147483647  ;;  %v2032_v32 = vrot.slane %v2031_v57, 2  ;;  %vm2056_vm13 = vcmp.lt.s32.totalorder %v2055_v35, %v4152_v43  ;;  %v1833_v26 = vsel %vm4302_vm0, %v3825_v5, 2147483647 }
 0x269   : > { %v1841_v11 = vsel %vm4309_vm3, %v3830_v44, 2147483647  ;;  %v2057_v22 = vsel %vm2056_vm13, %v2055_v35, %v4152_v43  ;;  %v4354_v62 = vsel %vm4320_vm9, %v3833_v36, 2147483647  ;;  %v4359_v2 = vsel %vm4219_vm6, %v3836_v34, 2147483647 }
 0x26a   : > { %v4364_v53 = vsel %vm4234_vm8, %v3839_v25, 2147483647  ;;  %vm2033_vm4 = vcmp.lt.s32.totalorder %v2031_v57, %v2032_v32  ;;  %vm2058_vm2 = vcmp.lt.s32.totalorder %v2057_v22, %v4162_v55  ;;  %v4370_v43 = vsel %vm4242_vm12, %v3842_v49, 2147483647 }
 0x26b   : > { %vm1921_vm7 = vcmp.lt.s32.totalorder %v1793_v47, %v1801_v54  ;;  %v2034_v28 = vsel %vm2033_vm4, %v2031_v57, %v2032_v32  ;;  %v2059_v18 = vsel %vm2058_vm2, %v2057_v22, %v4162_v55  ;;  %v4376_v19 = vsel %vm4249_vm14, %v3847_v9, 2147483647 }
 0x26c   : > { %v1922_v23 = vsel %vm1921_vm7, %v1793_v47, %v1801_v54  ;;  %v2035_v35 = vrot.slane %v2034_v28, 1  ;;  %vm2060_vm6 = vcmp.lt.s32.totalorder %v2059_v18, %v4167_v21  ;;  %v1501_v3 = vmax.f32 %v3974_v16, %v1500_v30 }
 0x26d   : > { %vm1923_vm8 = vcmp.lt.s32.totalorder %v1922_v23, %v1809_v41  ;;  %v2061_v55 = vsel %vm2060_vm6, %v2059_v18, %v4167_v21  ;;  %v4390_v58 = vsel %vm4257_vm15, %v3850_v56, 2147483647  ;;  %vm6116_vm12 = vnez %v6087_v24  ;;  %v4397_v57 = vpop.f32.mrf.mxu1 }
 0x26e   : > { %v4395_v47 = vsel %vm6116_vm12, %v3853_v7, 2147483647  ;;  %v1924_v54 = vsel %vm1923_vm8, %v1922_v23, %v1809_v41  ;;  %vm2036_vm14 = vcmp.lt.s32.totalorder %v2034_v28, %v2035_v35  ;;  %vm2062_vm1 = vcmp.lt.s32.totalorder %v2061_v55, %v4176_v20  ;;  %v6121_v23 = vld [vmem:[#allocation4_spill] sm:$0xff] }
 0x26f   : > { %vm1925_vm5 = vcmp.lt.s32.totalorder %v1924_v54, %v1817_v15  ;;  %v1502_v16 = vrot.slane %v1501_v3, 1  ;;  %v2037_v30 = vsel %vm2036_vm14, %v2034_v28, %v2035_v35  ;;  %v2063_v21 = vsel %vm2062_vm1, %v2061_v55, %v4176_v20  ;;  %v4439_v22 = vpop.f32.mrf.mxu2  ;;  %v4441_v28 = vpop.f32.mrf.mxu3  ;;  %v6125_v55 = vld [vmem:[#allocation5_spill] sm:$0xff] }
 0x270   : > { %v1926_v32 = vsel %vm1925_vm5, %v1924_v54, %v1817_v15  ;;  %vm5835_vm15 = vcmp.gt.f32.partialorder %v4170_v37, %v4194_v17  ;;  %vm6117_vm9 = vcmp.gt.f32.partialorder %v3844_v31, %v3862_v27  ;;  %vm2064_vm10 = vcmp.lt.s32.totalorder %v2063_v21, %v4185_v39 }
 0x271   : > { %v4407_v4 = vsel %vm6117_vm9, %v2037_v30, %v4117_v13  ;;  %vm1927_vm11 = vcmp.lt.s32.totalorder %v1926_v32, %v1825_v45  ;;  %v4410_v24 = vmax.f32 %v1501_v3, %v1502_v16  ;;  %v2065_v41 = vsel %vm2064_vm10, %v2063_v21, %v4185_v39  ;;  %v6129_v30 = vld [vmem:[#allocation7_spill] sm:$0xff] }
 0x272   : > { %vm6118_vm0 = vnez %v6091_v60  ;;  %vm6119_vm3 = vnez %v6095_v29  ;;  %v1928_v31 = vsel %vm1927_vm11, %v1926_v32, %v1825_v45  ;;  %vm2066_vm13 = vcmp.lt.s32.totalorder %v2065_v41, %v4190_v61 }
 0x273   : > { %v4416_v20 = vsel %vm6118_vm0, %v3856_v48, 2147483647  ;;  %v4421_v15 = vsel %vm6119_vm3, %v3859_v46, 2147483647  ;;  %vm1929_vm4 = vcmp.lt.s32.totalorder %v1928_v31, %v1833_v26  ;;  %v4429_v27 = vsel %vm5835_vm15, %v4170_v37, %v4194_v17 }
 0x274   : > { %v4432_v13 = vperm.slane %v6050_v51, 1  ;;  %v2067_v60 = vsel %vm2066_vm13, %v2065_v41, %v4190_v61  ;;  %v1930_v29 = vsel %vm1929_vm4, %v1928_v31, %v1833_v26  ;;  %v4437_v45 = vadd.f32 %v1221_v8, %v4206_v0  ;;  %v4457_v8 = vpop.f32.mrf.mxu0  ;;  %v6133_v41 = vld [vmem:[#allocation9_spill] sm:$0xff] }
 0x275   : > { %v2068_v18 = vrot.slane %v2067_v60, 4  ;;  %vm1931_vm2 = vcmp.lt.s32.totalorder %v1930_v29, %v1841_v11  ;;  %v6122_v35 = vmax.f32 %v6121_v23, 0.0  ;;  %v6126_v61 = vmax.f32 %v6125_v55, 0.0 }
 0x276   : > { %6120 = vst [vmem:[#allocation2_spill] sm:$0xff] %v4437_v45  ;;  %v1932_v54 = vsel %vm1931_vm2, %v1930_v29, %v1841_v11  ;;  %v4460_v16 = vperm.slane %v5825_v50, 0  ;;  %v6130_v21 = vmax.f32 %v6129_v30, 0.0  ;;  %v6134_v31 = vmax.f32 %v6133_v41, 0.0  ;;  %v6137_v11 = vld [vmem:[#allocation19_spill] sm:$0xff] }
 0x277   : > { %vm4446_vm7 = vcmp.eq.f32.partialorder %v6122_v35, %v4410_v24  ;;  %vm4453_vm6 = vcmp.eq.f32.partialorder %v6126_v61, %v4410_v24  ;;  %v4476_v35 = vpop.f32.mrf.mxu1  ;;  %vm2069_vm14 = vcmp.lt.s32.totalorder %v2067_v60, %v2068_v18  ;;  %vm1933_vm1 = vcmp.lt.s32.totalorder %v1932_v54, %v4354_v62  ;;  %v6141_v61 = vld [vmem:[#allocation21_spill] sm:$0xff]  ;;  %v6145_v50 = vld [vmem:[#allocation23_spill] sm:$0xff] }
 0x278   : > { %vm4465_vm8 = vcmp.eq.f32.partialorder %v6130_v21, %v4410_v24  ;;  %vm4472_vm12 = vcmp.eq.f32.partialorder %v6134_v31, %v4410_v24  ;;  %v6138_v29 = vmax.f32 %v6137_v11, 0.0  ;;  %v6142_v30 = vmax.f32 %v6141_v61, 0.0  ;;  %v6149_v11 = vld [vmem:[#allocation25_spill] sm:$0xff] }
 0x279   : > { %v2070_v41 = vsel %vm2069_vm14, %v2067_v60, %v2068_v18  ;;  %v1934_v31 = vsel %vm1933_vm1, %v1932_v54, %v4354_v62  ;;  %v6146_v39 = vmax.f32 %v6145_v50, 0.0  ;;  %v6153_v60 = vld [vmem:[#allocation27_spill] sm:$0xff]  ;;  %v6155_v18 = vmov 0  ;;  %v6157_v50 = vld [vmem:[#allocation29_spill] sm:$0xff] }
 0x27a   : > { %vm4482_vm5 = vcmp.eq.f32.partialorder %v6138_v29, %v4410_v24  ;;  %vm4489_vm9 = vcmp.eq.f32.partialorder %v6142_v30, %v4410_v24  ;;  %v6150_v29 = vmax.f32 %v6149_v11, 0.0  ;;  %v2071_v61 = vrot.slane %v2070_v41, 2  ;;  %v6162_v11 = vld [vmem:[#allocation11_spill] sm:$0xff] }
 0x27b   : > { %vm4497_vm10 = vcmp.eq.f32.partialorder %v6146_v39, %v4410_v24  ;;  %vm1935_vm0 = vcmp.lt.s32.totalorder %v1934_v31, %v4359_v2  ;;  %v6154_v62 = vmax.f32 %v6153_v60, 0.0  ;;  %v6158_v39 = vmax.f32 %v6157_v50, 0.0  ;;  %v6166_v60 = vld [vmem:[#allocation31_spill] sm:$0xff]  ;;  %v6171_v50 = vld [vmem:[#allocation33_spill] sm:$0xff] }
 0x27c   : > { %vm4504_vm11 = vcmp.eq.f32.partialorder %v6150_v29, %v4410_v24  ;;  %v6159_v54 = vmov 0  ;;  %v1936_v30 = vsel %vm1935_vm0, %v1934_v31, %v4359_v2  ;;  %v6163_v29 = vmax.f32 %v6162_v11, 0.0  ;;  %v6176_v2 = vld [vmem:[#allocation13_spill] sm:$0xff]  ;;  %v4605_v48 = vpop.f32.mrf.mxu0 }
 0x27d   : > { %vm4512_vm3 = vcmp.eq.f32.partialorder %v6154_v62, %v4410_v24  ;;  %vm4519_vm13 = vcmp.eq.f32.partialorder %v6158_v39, %v4410_v24  ;;  %v6167_v62 = vmax.f32 %v6166_v60, 0.0  ;;  %v6168_v7 = vmov 0 }
 0x27e   : > { %v6156_v18 = vsel %vm4512_vm3, 4294967295, %v6155_v18  ;;  %v6160_v54 = vsel %vm4519_vm13, 4294967295, %v6159_v54  ;;  %vm4527_vm4 = vcmp.eq.f32.partialorder %v6163_v29, %v4410_v24  ;;  %v6172_v39 = vmax.f32 %v6171_v50, 0.0  ;;  %v6180_v29 = vld [vmem:[#allocation15_spill] sm:$0xff] }
 0x27f   : > { %6161 = vst [vmem:[#allocation3_spill] sm:$0xff] %v6160_v54  ;;  %vm4534_vm2 = vcmp.eq.f32.partialorder %v6167_v62, %v4410_v24  ;;  %v6173_v54 = vmov 0  ;;  %vm2072_vm1 = vcmp.lt.s32.totalorder %v2070_v41, %v2071_v61  ;;  %vm1937_vm0 = vcmp.lt.s32.totalorder %v1936_v30, %v4364_v53  ;;  %v4592_v26 = vpop.f32.mrf.mxu1 }
 0x280   : > { %v6169_v7 = vsel %vm4534_vm2, 4294967295, %v6168_v7  ;;  %vm4541_vm14 = vcmp.eq.f32.partialorder %v6172_v39, %v4410_v24  ;;  %v6177_v31 = vmax.f32 %v6176_v2, 0.0  ;;  %v6181_v60 = vmax.f32 %v6180_v29, 0.0  ;;  %v4571_v29 = vpop.f32.mrf.mxu2 }
 0x281   : > { %6170 = vst [vmem:[#allocation18_spill] sm:$0xff] %v6169_v7  ;;  %v6174_v54 = vsel %vm4541_vm14, 4294967295, %v6173_v54  ;;  %vm2283_vm13 = vcmask 1040384   ;;  %v2073_v50 = vsel %vm2072_vm1, %v2070_v41, %v2071_v61  ;;  %v1938_v39 = vsel %vm1937_vm0, %v1936_v30, %v4364_v53 }
 0x282   : > { %6175 = vst [vmem:[#allocation6_spill] sm:$0xff] %v6174_v54  ;;  %vm4549_vm15 = vcmp.eq.f32.partialorder %v6177_v31, %v4410_v24  ;;  %vm4556_vm2 = vcmp.eq.f32.partialorder %v6181_v60, %v4410_v24  ;;  %v6184_v54 = vld [vmem:[#allocation17_spill] sm:$0xff]  ;;  %v1794_v31 = vsel %vm4446_vm7, %v3803_v1, 2147483647  ;;  %vm2287_vm3 = vcmask 1041408   ;;  %v4573_v60 = vpop.f32.mrf.mxu3 }
 0x283   : > { %v6185_v7 = vmax.f32 %v6184_v54, 0.0  ;;  %v2074_v17 = vrot.slane %v2073_v50, 1  ;;  %vm1939_vm1 = vcmp.lt.s32.totalorder %v1938_v39, %v4370_v43  ;;  %v1802_v53 = vsel %vm4453_vm6, %v3813_v59, 2147483647 }
 0x284   : > { %v1940_v41 = vsel %vm1939_vm1, %v1938_v39, %v4370_v43  ;;  %v1818_v3 = vsel %vm4472_vm12, %v3819_v38, 2147483647  ;;  %v1826_v61 = vsel %vm4527_vm4, %v3822_v52, 2147483647  ;;  %v1834_v54 = vsel %vm4549_vm15, %v3825_v5, 2147483647 }
 0x285   : > { %vm4564_vm14 = vcmp.eq.f32.partialorder %v6185_v7, %v4410_v24  ;;  %v1810_v7 = vsel %vm4465_vm8, %v3816_v14, 2147483647  ;;  %vm2075_vm7 = vcmp.lt.s32.totalorder %v2073_v50, %v2074_v17  ;;  %vm1941_vm6 = vcmp.lt.s32.totalorder %v1940_v41, %v4376_v19 }
 0x286   : > { %v4598_v43 = vsel %vm4556_vm2, %v3830_v44, 2147483647  ;;  %v4603_v32 = vsel %vm4564_vm14, %v3833_v36, 2147483647  ;;  %v2076_v23 = vsel %vm2075_vm7, %v2073_v50, %v2074_v17  ;;  %v1942_v30 = vsel %vm1941_vm6, %v1940_v41, %v4376_v19 }
 0x287   : > { %v4611_v11 = vsel %vm4482_vm5, %v3836_v34, 2147483647  ;;  %v4616_v62 = vsel %vm4489_vm9, %v3839_v25, 2147483647  ;;  %vm6188_vm15 = vcmp.gt.f32.partialorder %v3965_v42, %v3865_v12  ;;  %vm1943_vm8 = vcmp.lt.s32.totalorder %v1942_v30, %v4390_v58 }
 0x288   : > { %v2271_v39 = vsel %vm6188_vm15, %v2076_v23, %v4315_v10  ;;  %v4626_v17 = vsel %vm4497_vm10, %v3842_v49, 2147483647  ;;  %v4631_v19 = vsel %vm4504_vm11, %v3847_v9, 2147483647  ;;  %v1944_v21 = vsel %vm1943_vm8, %v1942_v30, %v4390_v58  ;;  %v4653_v2 = vpop.f32.mrf.mxu2 }
 0x289   : > { %v2278_v55 = vrot.slane %v2271_v39, 5  ;;  %vm1960_vm12 = vcmp.lt.s32.totalorder %v1794_v31, %v1802_v53  ;;  %vm2252_vm5 = vcmp.gt.f32.partialorder %v4410_v24, %v4432_v13  ;;  %vm1945_vm9 = vcmp.lt.s32.totalorder %v1944_v21, %v4395_v47  ;;  %v4670_v39 = vpop.f32.mrf.mxu1 }
 0x28a   : > { %vm6189_vm4 = vnez %v6156_v18  ;;  %v1961_v42 = vsel %vm1960_vm12, %v1794_v31, %v1802_v53  ;;  %v2299_v46 = vsel %vm2252_vm5, %v4410_v24, %v4432_v13  ;;  %v6190_v51 = vrot.slane %v4407_v4, 6  ;;  %v4655_v18 = vpop.f32.mrf.mxu3  ;;  %v2547_v53 = vld [vmem:[%s5733_s6] sm:$0xff] }
 0x28b   : > { %v4640_v12 = vsel %vm6189_vm4, %v3850_v56, 2147483647  ;;  %vm6191_vm10 = vcmask 1042434   ;;  %v1946_v58 = vsel %vm1945_vm9, %v1944_v21, %v4395_v47  ;;  %vm1962_vm11 = vcmp.lt.s32.totalorder %v1961_v42, %v1810_v7 }
 0x28c   : > { %v4650_v10 = vsel %vm6191_vm10, %v6190_v51, %v2278_v55  ;;  %v2314_v50 = vrot.slane %v2299_v46, 7  ;;  %vm1947_vm2 = vcmp.lt.s32.totalorder %v1946_v58, %v4416_v20  ;;  %v1963_v31 = vsel %vm1962_vm11, %v1961_v42, %v1810_v7 }
 0x28d   : > { %v4661_v41 = vperm.slane %v2547_v53, 7  ;;  %v4663_v4 = vperm.slane %v2547_v53, 4  ;;  %v1948_v23 = vsel %vm1947_vm2, %v1946_v58, %v4416_v20  ;;  %vm1964_vm14 = vcmp.lt.s32.totalorder %v1963_v31, %v1818_v3 }
 0x28e   : > { %v2321_v47 = vsel %vm2283_vm13, %v4429_v27, %v2314_v50  ;;  %v4668_v30 = vperm.slane %v2547_v53, 5  ;;  %vm1949_vm0 = vcmp.lt.s32.totalorder %v1948_v23, %v4421_v15  ;;  %v1965_v7 = vsel %vm1964_vm14, %v1963_v31, %v1818_v3 }
 0x28f   : > { %v4675_v55 = vsel %vm2287_vm3, %v2321_v47, %v4179_v6  ;;  %v4679_v21 = vadd.f32 %v4327_v33, %v4661_v41  ;;  %v1950_v20 = vsel %vm1949_vm0, %v1948_v23, %v4421_v15  ;;  %vm1966_vm1 = vcmp.lt.s32.totalorder %v1965_v7, %v1826_v61  ;;  %v1230_v33 = vpop.f32.mrf.mxu0 }
 0x290   : > { %6192 = vst [vmem:[#allocation20_spill] sm:$0xff] %v4675_v55  ;;  %v4684_v27 = vadd.f32 %v4378_v40, %v4663_v4  ;;  %v4688_v42 = vadd.f32 %v4380_v63, %v4668_v30  ;;  %v1951_v3 = vrot.slane %v1950_v20, 4  ;;  %v1967_v46 = vsel %vm1966_vm1, %v1965_v7, %v1826_v61  ;;  %v1103_v23 = vpop.f32.mrf.mxu2 }
 0x291   : > { %v5840_v6 = vmax.f32 %v4437_v45, 0.0  ;;  %v4693_v51 = vadd.f32 %v4457_v8, %v4206_v0  ;;  %vm1968_vm7 = vcmp.lt.s32.totalorder %v1967_v46, %v1834_v54  ;;  %v5842_v15 = vmax.f32 %v4679_v21, 0.0 }
 0x292   : > { %6193 = vst [vmem:[#allocation22_spill] sm:$0xff] %v4684_v27  ;;  %v5846_v58 = vmax.f32 %v4684_v27, 0.0  ;;  %v4699_v40 = vadd.f32 %v4397_v57, %v4661_v41  ;;  %vm1952_vm6 = vcmp.lt.s32.totalorder %v1950_v20, %v1951_v3  ;;  %v1969_v63 = vsel %vm1968_vm7, %v1967_v46, %v1834_v54  ;;  %v4709_v47 = vpop.f32.mrf.mxu3  ;;  %v4730_v46 = vpop.f32.mrf.mxu1 }
 0x293   : > { %6194 = vst [vmem:[#allocation24_spill] sm:$0xff] %v4688_v42  ;;  %v5839_v50 = vmax.f32 %v4693_v51, 0.0  ;;  %v1953_v31 = vsel %vm1952_vm6, %v1950_v20, %v1951_v3  ;;  %vm1970_vm15 = vcmp.lt.s32.totalorder %v1969_v63, %v4598_v43  ;;  %v4707_v53 = vadd.f32 %v4439_v22, %v4663_v4 }
 0x294   : > { %6195 = vst [vmem:[#allocation26_spill] sm:$0xff] %v4693_v51  ;;  %v5841_v8 = vmax.f32 %v4699_v40, 0.0  ;;  %v1954_v57 = vrot.slane %v1953_v31, 2  ;;  %v1971_v7 = vsel %vm1970_vm15, %v1969_v63, %v4598_v43  ;;  %v4718_v20 = vadd.f32 %v4441_v28, %v4668_v30 }
 0x295   : > { %6196 = vst [vmem:[#allocation28_spill] sm:$0xff] %v4707_v53  ;;  %v1588_v54 = vmax.f32 %v5840_v6, %v5839_v50  ;;  %vm1972_vm8 = vcmp.lt.s32.totalorder %v1971_v7, %v4603_v32  ;;  %v5843_v3 = vmax.f32 %v4707_v53, 0.0  ;;  %v4728_v43 = vadd.f32 %v4605_v48, %v4206_v0 }
 0x296   : > { %6197 = vst [vmem:[#allocation30_spill] sm:$0xff] %v4718_v20  ;;  %v1609_v22 = vmax.f32 %v5842_v15, %v5841_v8  ;;  %vm1955_vm12 = vcmp.lt.s32.totalorder %v1953_v31, %v1954_v57  ;;  %v1973_v63 = vsel %vm1972_vm8, %v1971_v7, %v4603_v32  ;;  %v5844_v28 = vmax.f32 %v4718_v20, 0.0 }
 0x297   : > { %6198 = vst [vmem:[#allocation32_spill] sm:$0xff] %v4728_v43  ;;  %v4736_v50 = vadd.f32 %v4476_v35, %v4661_v41  ;;  %v1956_v6 = vsel %vm1955_vm12, %v1953_v31, %v1954_v57  ;;  %vm1974_vm9 = vcmp.lt.s32.totalorder %v1973_v63, %v4611_v11  ;;  %v1546_v48 = vmax.f32 %v5846_v58, %v5843_v3 }
 0x298   : > { %v5845_v8 = vmax.f32 %v4728_v43, 0.0  ;;  %v1957_v15 = vrot.slane %v1956_v6, 1  ;;  %v1975_v61 = vsel %vm1974_vm9, %v1973_v63, %v4611_v11  ;;  %v6199_v32 = vmax.f32 %v4688_v42, 0.0 }
 0x299   : > { %v5847_v35 = vmax.f32 %v4736_v50, 0.0  ;;  %vm1976_vm4 = vcmp.lt.s32.totalorder %v1975_v61, %v4616_v62  ;;  %v4755_v57 = vadd.f32 %v4571_v29, %v4663_v4  ;;  %v4759_v3 = vadd.f32 %v4573_v60, %v4668_v30  ;;  %v1106_v60 = vpop.f32.mrf.mxu2 }
 0x29a   : > { %v1567_v7 = vmax.f32 %v6199_v32, %v5844_v28  ;;  %v1589_v31 = vmax.f32 %v1588_v54, %v5845_v8  ;;  %vm1958_vm10 = vcmp.lt.s32.totalorder %v1956_v6, %v1957_v15  ;;  %v1977_v11 = vsel %vm1976_vm4, %v1975_v61, %v4616_v62  ;;  %v4767_v28 = vpop.f32.mrf.mxu0  ;;  %v4772_v58 = vpop.f32.mrf.mxu3  ;;  %v6203_v62 = vld [vmem:[#allocation43_spill] sm:$0xff] }
 0x29b   : > { %6200 = vst [vmem:[#allocation8_spill] sm:$0xff] %v4755_v57  ;;  %v1610_v63 = vmax.f32 %v1609_v22, %v5847_v35  ;;  %v4765_v32 = vadd.f32 %v1230_v33, %v4206_v0  ;;  %v1959_v54 = vsel %vm1958_vm10, %v1956_v6, %v1957_v15  ;;  %vm1978_vm11 = vcmp.lt.s32.totalorder %v1977_v11, %v4626_v17 }
 0x29c   : > { %6201 = vst [vmem:[#allocation10_spill] sm:$0xff] %v4759_v3  ;;  %v5850_v29 = vmax.f32 %v4755_v57, 0.0  ;;  %v5849_v8 = vmax.f32 %v4759_v3, 0.0  ;;  %vm6204_vm2 = vcmp.gt.f32.partialorder %v4170_v37, %v6203_v62  ;;  %v1979_v33 = vsel %vm1978_vm11, %v1977_v11, %v4626_v17 }
 0x29d   : > { %6202 = vst [vmem:[#allocation12_spill] sm:$0xff] %v4765_v32  ;;  %v4778_v61 = vsel %vm6204_vm2, %v1959_v54, %v4460_v16  ;;  %v5848_v22 = vmax.f32 %v4765_v32, 0.0  ;;  %v4784_v6 = vadd.f32 %v4592_v26, %v4661_v41  ;;  %vm1980_vm14 = vcmp.lt.s32.totalorder %v1979_v33, %v4631_v19  ;;  %v4795_v16 = vpop.f32.mrf.mxu1  ;;  %v6207_v54 = vld [vmem:[#allocation40_spill] sm:$0xff] }
 0x29e   : > { %v1547_v15 = vmax.f32 %v1546_v48, %v5850_v29  ;;  %v1568_v35 = vmax.f32 %v1567_v7, %v5849_v8  ;;  %v4793_v37 = vadd.f32 %v4653_v2, %v4663_v4  ;;  %v1981_v17 = vsel %vm1980_vm14, %v1979_v33, %v4631_v19  ;;  %v6208_v7 = vld [vmem:[#allocation3_spill] sm:$0xff]  ;;  %v6212_v8 = vld [vmem:[#allocation18_spill] sm:$0xff] }
 0x29f   : > { %v4800_v26 = vmax.f32 %v1589_v31, %v5848_v22  ;;  %v5852_v11 = vmax.f32 %v4784_v6, 0.0  ;;  %v4805_v48 = vadd.f32 %v4655_v18, %v4668_v30  ;;  %vm6209_vm0 = vnez %v6208_v7  ;;  %v6211_v7 = vld [vmem:[#allocation41_spill] sm:$0xff] }
 0x2a0   : > { %6205 = vst [vmem:[#allocation14_spill] sm:$0xff] %v4793_v37  ;;  %v1898_v62 = vsel %vm6209_vm0, %v6207_v54, 2147483647  ;;  %vm1982_vm1 = vcmp.lt.s32.totalorder %v1981_v17, %v4640_v12  ;;  %v5853_v2 = vmax.f32 %v4793_v37, 0.0  ;;  %v4814_v19 = vadd.f32 %v4670_v39, %v4661_v41 }
 0x2a1   : > { %6206 = vst [vmem:[#allocation16_spill] sm:$0xff] %v4805_v48  ;;  %v1983_v31 = vsel %vm1982_vm1, %v1981_v17, %v4640_v12  ;;  %v1611_v33 = vmax.f32 %v1610_v63, %v5852_v11  ;;  %v5854_v18 = vmax.f32 %v4805_v48, 0.0  ;;  %v4821_v22 = vadd.f32 %v1103_v23, %v4663_v4  ;;  %v1109_v17 = vpop.f32.mrf.mxu2 }
 0x2a2   : > { %vm6213_vm7 = vnez %v6212_v8  ;;  %vm1984_vm6 = vcmp.lt.s32.totalorder %v1983_v31, %v1898_v62  ;;  %v1548_v55 = vmax.f32 %v1547_v15, %v5853_v2  ;;  %v5856_v39 = vmax.f32 %v4814_v19, 0.0  ;;  %v4838_v11 = vpop.f32.mrf.mxu3  ;;  %v6215_v15 = vld [vmem:[#allocation42_spill] sm:$0xff]  ;;  %v4846_v43 = vpop.f32.mrf.mxu0 }
 0x2a3   : > { %6210 = vst [vmem:[#allocation4_spill] sm:$0xff] %v4821_v22  ;;  %v1906_v29 = vsel %vm6213_vm7, %v6211_v7, 2147483647  ;;  %v1985_v32 = vsel %vm1984_vm6, %v1983_v31, %v1898_v62  ;;  %v1569_v12 = vmax.f32 %v1568_v35, %v5854_v18  ;;  %v5858_v63 = vmax.f32 %v4821_v22, 0.0  ;;  %v6216_v2 = vld [vmem:[#allocation6_spill] sm:$0xff] }
 0x2a4   : > { %v4834_v23 = vadd.f32 %v4709_v47, %v4668_v30  ;;  %vm1986_vm15 = vcmp.lt.s32.totalorder %v1985_v32, %v1906_v29  ;;  %v1612_v8 = vmax.f32 %v1611_v33, %v5856_v39  ;;  %vm6217_vm8 = vnez %v6216_v2 }
 0x2a5   : > { %v1914_v62 = vsel %vm6217_vm8, %v6215_v15, 2147483647  ;;  %v1987_v31 = vsel %vm1986_vm15, %v1985_v32, %v1906_v29  ;;  %v1549_v35 = vmax.f32 %v1548_v55, %v5858_v63  ;;  %v4849_v47 = vadd.f32 %v1106_v60, %v4663_v4  ;;  %v1307_v33 = vpop.f32.mrf.mxu1 }
 0x2a6   : > { %6214 = vst [vmem:[#allocation5_spill] sm:$0xff] %v4834_v23  ;;  %v5862_v18 = vmax.f32 %v4834_v23, 0.0  ;;  %vm1988_vm12 = vcmp.lt.s32.totalorder %v1987_v31, %v1914_v62  ;;  %v4913_v9 = vadd.f32 %v1109_v17, %v4663_v4 }
 0x2a7   : > { %6218 = vst [vmem:[#allocation7_spill] sm:$0xff] %v4849_v47  ;;  %v1989_v39 = vsel %vm1988_vm12, %v1987_v31, %v1914_v62  ;;  %v5865_v32 = vmax.f32 %v4849_v47, 0.0 }
 0x2a8   : > { %v4853_v51 = vmax.f32 %v1569_v12, %v5862_v18  ;;  %v1990_v2 = vrot.slane %v1989_v39, 4  ;;  %v6219_v12 = vmov 0   ;;  %6222 = vst [vmem:[#allocation21_spill] sm:$0xff] %v4913_v9 }
 0x2a9   : > { %v4858_v55 = vmax.f32 %v1549_v35, %v5865_v32  ;;  %v1112_v45 = vpop.f32.mrf.mxu2  ;;  %v2261_v18 = vperm.slane %v6219_v12, 1 }
 0x2aa   : > { %vm1991_vm9 = vcmp.lt.s32.totalorder %v1989_v39, %v1990_v2  ;;  %v1177_v48 = vpop.f32.mrf.mxu3  ;;  %v4860_v62 = vpop.f32.mrf.mxu0 }
 0x2ab   : > { %v1992_v29 = vsel %vm1991_vm9, %v1989_v39, %v1990_v2 }
 0x2ac   : > { %v1993_v63 = vrot.slane %v1992_v29, 2 }
 0x2ad   : > { %v1310_v60 = vpop.f32.mrf.mxu1 }
 0x2ae   : > { %vm1994_vm4 = vcmp.lt.s32.totalorder %v1992_v29, %v1993_v63  ;;  %v4898_v49 = vadd.f32 %v1310_v60, %v4661_v41 }
 0x2af   : > { %v1995_v3 = vsel %vm1994_vm4, %v1992_v29, %v1993_v63 }
 0x2b0   : > { %v1996_v31 = vrot.slane %v1995_v3, 1 }
 0x2b1   : > { %v1115_v35 = vpop.f32.mrf.mxu2 }
 0x2b2   : > { %vm1997_vm10 = vcmp.lt.s32.totalorder %v1995_v3, %v1996_v31  ;;  %v1180_v32 = vpop.f32.mrf.mxu3  ;;  %v4872_v29 = vpop.f32.mrf.mxu0 }
 0x2b3   : > { %v1998_v23 = vsel %vm1997_vm10, %v1995_v3, %v1996_v31  ;;  %v4957_v36 = vadd.f32 %v1180_v32, %v4668_v30 }
 0x2b4   : > { %v2269_v20 = vsel %vm2252_vm5, %v1998_v23, %v2261_v18 }
 0x2b5   : > { %v2276_v39 = vrot.slane %v2269_v20, 7  ;;  %v1313_v2 = vpop.f32.mrf.mxu1  ;;  %6228 = vst [vmem:[#allocation27_spill] sm:$0xff] %v4957_v36 }
 0x2b7   : > { %v2284_v42 = vsel %vm2283_vm13, %v4778_v61, %v2276_v39 }
 0x2b8   : > { %v4870_v63 = vsel %vm2287_vm3, %v2284_v42, %v4650_v10  ;;  %v4884_v10 = vadd.f32 %v4730_v46, %v4661_v41  ;;  %v4888_v42 = vadd.f32 %v4795_v16, %v4661_v41  ;;  %v4902_v46 = vadd.f32 %v4772_v58, %v4668_v30 }
 0x2b9   : > { %6220 = vst [vmem:[#allocation9_spill] sm:$0xff] %v4870_v63  ;;  %v1118_v12 = vpop.f32.mrf.mxu2  ;;  %v4892_v63 = vadd.f32 %v1307_v33, %v4661_v41  ;;  %v4908_v33 = vadd.f32 %v1313_v2, %v4661_v41  ;;  %v4927_v2 = vadd.f32 %v1112_v45, %v4663_v4  ;;  %v6226_v45 = vmax.f32 %v4898_v49, 0.0 }
 0x2ba   : > { %v1183_v15 = vpop.f32.mrf.mxu3  ;;  %v4874_v31 = vpop.f32.mrf.mxu0  ;;  %v5880_v39 = vmax.f32 %v4884_v10, 0.0  ;;  %6221 = vst [vmem:[#allocation19_spill] sm:$0xff] %v4902_v46  ;;  %v6223_v60 = vmax.f32 %v4888_v42, 0.0 }
 0x2bb   : > { %v5883_v34 = vmax.f32 %v4892_v63, 0.0  ;;  %v4974_v32 = vadd.f32 %v1183_v15, %v4668_v30 }
 0x2bc   : > { %v1613_v16 = vmax.f32 %v1612_v8, %v5880_v39  ;;  %v4924_v39 = vadd.f32 %v4838_v11, %v4668_v30  ;;  %v4940_v8 = vadd.f32 %v1115_v35, %v4663_v4  ;;  %v4954_v35 = vadd.f32 %v1118_v12, %v4663_v4 }
 0x2bd   : > { %v1316_v3 = vpop.f32.mrf.mxu1  ;;  %6231 = vst [vmem:[#allocation29_spill] sm:$0xff] %v4974_v32 }
 0x2be   : > { %v1614_v22 = vmax.f32 %v1613_v16, %v6223_v60  ;;  %v4919_v37 = vadd.f32 %v1316_v3, %v4661_v41  ;;  %6225 = vst [vmem:[#allocation25_spill] sm:$0xff] %v4924_v39  ;;  %v4937_v60 = vadd.f32 %v1177_v48, %v4668_v30  ;;  %v6234_v15 = vmax.f32 %v4924_v39, 0.0 }
 0x2c0   : > { %6224 = vst [vmem:[#allocation23_spill] sm:$0xff] %v4919_v37  ;;  %v1615_v17 = vmax.f32 %v1614_v22, %v5883_v34 }
 0x2c1   : > { %v1121_v24 = vpop.f32.mrf.mxu2 }
 0x2c2   : > { %v4876_v13 = vpop.f32.mrf.mxu3  ;;  %v4880_v7 = vpop.f32.mrf.mxu0  ;;  %v1616_v53 = vmax.f32 %v1615_v17, %v6226_v45  ;;  %v6229_v17 = vmax.f32 %v4908_v33, 0.0  ;;  %v4971_v57 = vadd.f32 %v1121_v24, %v4663_v4 }
 0x2c4   : > { %v1617_v45 = vmax.f32 %v1616_v53, %v6229_v17  ;;  %v6232_v53 = vmax.f32 %v4919_v37, 0.0 }
 0x2c5   : > { %v1319_v18 = vpop.f32.mrf.mxu1 }
 0x2c6   : > { %v4933_v16 = vadd.f32 %v1319_v18, %v4661_v41  ;;  %v6227_v18 = vmax.f32 %v4902_v46, 0.0  ;;  %v1618_v17 = vmax.f32 %v1617_v45, %v6232_v53  ;;  %v6238_v45 = vmax.f32 %v4937_v60, 0.0 }
 0x2c8   : > { %v1571_v3 = vmax.f32 %v4853_v51, %v6227_v18  ;;  %v6230_v51 = vmax.f32 %v4913_v9, 0.0  ;;  %v6235_v53 = vmax.f32 %v4933_v16, 0.0 }
 0x2c9   : > { %v1124_v20 = vpop.f32.mrf.mxu2 }
 0x2ca   : > { %v4878_v23 = vpop.f32.mrf.mxu3  ;;  %v4910_v47 = vpop.f32.mrf.mxu0  ;;  %v1551_v18 = vmax.f32 %v4858_v55, %v6230_v51  ;;  %v6233_v55 = vmax.f32 %v4927_v2, 0.0  ;;  %v4988_v24 = vadd.f32 %v1124_v20, %v4663_v4  ;;  %v1572_v12 = vmax.f32 %v1571_v3, %v6234_v15 }
 0x2cb   : > { %v1619_v9 = vmax.f32 %v1618_v17, %v6235_v53 }
 0x2cc   : > { %v1552_v51 = vmax.f32 %v1551_v18, %v6233_v55  ;;  %v5001_v55 = vadd.f32 %v4876_v13, %v4668_v30  ;;  %v1573_v48 = vmax.f32 %v1572_v12, %v6238_v45  ;;  %v6241_v45 = vmax.f32 %v4957_v36, 0.0 }
 0x2cd   : > { %v1322_v61 = vpop.f32.mrf.mxu1 }
 0x2ce   : > { %v4946_v34 = vadd.f32 %v1322_v61, %v4661_v41  ;;  %6237 = vst [vmem:[#allocation11_spill] sm:$0xff] %v5001_v55  ;;  %v1574_v17 = vmax.f32 %v1573_v48, %v6241_v45 }
 0x2d0   : > { %v6239_v53 = vmax.f32 %v4946_v34, 0.0 }
 0x2d1   : > { %v1127_v54 = vpop.f32.mrf.mxu2 }
 0x2d2   : > { %v4894_v56 = vpop.f32.mrf.mxu3  ;;  %v4978_v61 = vpop.f32.mrf.mxu0  ;;  %v5004_v20 = vadd.f32 %v1127_v54, %v4663_v4  ;;  %v5017_v54 = vadd.f32 %v4878_v23, %v4668_v30 }
 0x2d3   : > { %v5038_v36 = vadd.f32 %v4894_v56, %v4668_v30 }
 0x2d5   : > { %v1325_v25 = vpop.f32.mrf.mxu1 }
 0x2d6   : > { %v4963_v22 = vadd.f32 %v1325_v25, %v4661_v41  ;;  %v1620_v25 = vmax.f32 %v1619_v9, %v6239_v53 }
 0x2d8   : > { %v6242_v9 = vmax.f32 %v4963_v22, 0.0 }
 0x2d9   : > { %v1130_v11 = vpop.f32.mrf.mxu2 }
 0x2da   : > { %v1195_v58 = vpop.f32.mrf.mxu3  ;;  %v5020_v39 = vadd.f32 %v1130_v11, %v4663_v4  ;;  %v1621_v53 = vmax.f32 %v1620_v25, %v6242_v9  ;;  %v1257_v23 = vpop.f32.mrf.mxu0 }
 0x2db   : > { %v5050_v13 = vadd.f32 %v1195_v58, %v4668_v30 }
 0x2dd   : > { %v1328_v27 = vpop.f32.mrf.mxu1 }
 0x2de   : > { %v4982_v46 = vadd.f32 %v1328_v27, %v4661_v41  ;;  %v6236_v27 = vmax.f32 %v4940_v8, 0.0 }
 0x2e0   : > { %v1553_v37 = vmax.f32 %v1552_v51, %v6236_v27  ;;  %v6240_v27 = vmax.f32 %v4954_v35, 0.0  ;;  %v6244_v48 = vmax.f32 %v4982_v46, 0.0 }
 0x2e1   : > { %v1133_v3 = vpop.f32.mrf.mxu2 }
 0x2e2   : > { %v1198_v15 = vpop.f32.mrf.mxu3  ;;  %v1554_v18 = vmax.f32 %v1553_v37, %v6240_v27  ;;  %v6243_v37 = vmax.f32 %v4971_v57, 0.0  ;;  %v5034_v11 = vadd.f32 %v1133_v3, %v4663_v4  ;;  %v1622_v25 = vmax.f32 %v1621_v53, %v6244_v48 }
 0x2e3   : > { %v5056_v53 = vadd.f32 %v4767_v28, %v4206_v0  ;;  %v5072_v28 = vadd.f32 %v4846_v43, %v4206_v0  ;;  %v5086_v43 = vadd.f32 %v4860_v62, %v4206_v0 }
 0x2e4   : > { %v1555_v27 = vmax.f32 %v1554_v18, %v6243_v37  ;;  %v6246_v18 = vmax.f32 %v4988_v24, 0.0 }
 0x2e5   : > { %v1331_v12 = vpop.f32.mrf.mxu1  ;;  %6247 = vst [vmem:[#allocation31_spill] sm:$0xff] %v5056_v53 }
 0x2e6   : > { %v5027_v51 = vadd.f32 %v1331_v12, %v4661_v41  ;;  %v6245_v12 = vmax.f32 %v4974_v32, 0.0  ;;  %v1556_v9 = vmax.f32 %v1555_v27, %v6246_v18  ;;  %v6249_v27 = vmax.f32 %v5004_v20, 0.0  ;;  %6252 = vst [vmem:[#allocation33_spill] sm:$0xff] %v5086_v43 }
 0x2e7   : > { %v5065_v32 = vadd.f32 %v1198_v15, %v4668_v30  ;;  %v5896_v18 = vmax.f32 %v5050_v13, 0.0 }
 0x2e8   : > { %v5893_v41 = vmax.f32 %v5027_v51, 0.0  ;;  %v1575_v45 = vmax.f32 %v1574_v17, %v6245_v12  ;;  %v6248_v17 = vmax.f32 %v5001_v55, 0.0  ;;  %v1557_v12 = vmax.f32 %v1556_v9, %v6249_v27 }
 0x2e9   : > { %v1136_v3 = vpop.f32.mrf.mxu2 }
 0x2ea   : > { %v1623_v56 = vmax.f32 %v1622_v25, %v5893_v41  ;;  %v1576_v48 = vmax.f32 %v1575_v45, %v6248_v17  ;;  %v1201_v37 = vpop.f32.mrf.mxu3  ;;  %v5068_v41 = vadd.f32 %v1136_v3, %v4663_v4  ;;  %v6250_v45 = vmax.f32 %v5017_v54, 0.0 }
 0x2eb   : > { %v6251_v17 = vmax.f32 %v5020_v39, 0.0  ;;  %v5081_v55 = vadd.f32 %v1201_v37, %v4668_v30  ;;  %v6253_v3 = vmax.f32 %v5034_v11, 0.0  ;;  %v5096_v30 = vadd.f32 %v4872_v29, %v4206_v0  ;;  %v1260_v29 = vpop.f32.mrf.mxu0 }
 0x2ec   : > { %v1624_v25 = vrot.slane %v1623_v56, 4  ;;  %v1577_v9 = vmax.f32 %v1576_v48, %v6250_v45  ;;  %v5895_v15 = vmax.f32 %v5068_v41, 0.0  ;;  %v6254_v45 = vmax.f32 %v5038_v36, 0.0 }
 0x2ed   : > { %v1558_v27 = vmax.f32 %v1557_v12, %v6251_v17  ;;  %v5902_v17 = vmax.f32 %v5065_v32, 0.0  ;;  %6255 = vst [vmem:[#allocation13_spill] sm:$0xff] %v5096_v30 }
 0x2ee   : > { %v1625_v58 = vmax.f32 %v1623_v56, %v1624_v25  ;;  %v1578_v12 = vmax.f32 %v1577_v9, %v6254_v45  ;;  %v6256_v9 = vmax.f32 %v5056_v53, 0.0  ;;  %v5900_v45 = vmax.f32 %v5086_v43, 0.0 }
 0x2ef   : > { %v1559_v48 = vmax.f32 %v1558_v27, %v6253_v3  ;;  %v5901_v27 = vmax.f32 %v5081_v55, 0.0  ;;  %v5109_v25 = vadd.f32 %v4874_v31, %v4206_v0 }
 0x2f0   : > { %v1626_v56 = vrot.slane %v1625_v58, 2  ;;  %v1579_v62 = vmax.f32 %v1578_v12, %v5896_v18  ;;  %v1591_v3 = vmax.f32 %v4800_v26, %v6256_v9  ;;  %v6258_v12 = vmax.f32 %v5072_v28, 0.0 }
 0x2f1   : > { %v1560_v37 = vmax.f32 %v1559_v48, %v5895_v15  ;;  %6257 = vst [vmem:[#allocation15_spill] sm:$0xff] %v5109_v25  ;;  %v5118_v18 = vadd.f32 %v4880_v7, %v4206_v0  ;;  %v6262_v7 = vmax.f32 %v4699_v40, 0.0 }
 0x2f2   : > { %v1627_v4 = vmax.f32 %v1625_v58, %v1626_v56  ;;  %v1580_v48 = vmax.f32 %v1579_v62, %v5902_v17  ;;  %v1592_v58 = vmax.f32 %v1591_v3, %v6258_v12  ;;  %v5898_v56 = vmax.f32 %v5096_v30, 0.0  ;;  %v6348_v30 = vld [vmem:[#allocation21_spill] sm:$0xff] }
 0x2f3   : > { %6259 = vst [vmem:[#allocation17_spill] sm:$0xff] %v5118_v18  ;;  %v1561_v26 = vrot.slane %v1560_v37, 4  ;;  %v5899_v62 = vmax.f32 %v5109_v25, 0.0  ;;  %v5129_v3 = vadd.f32 %v4910_v47, %v4206_v0  ;;  %v6261_v12 = vmax.f32 %v4679_v21, 0.0 }
 0x2f4   : > { %v1628_v15 = vrot.slane %v1627_v4, 1  ;;  %v1581_v31 = vmax.f32 %v1580_v48, %v5901_v27  ;;  %v1593_v53 = vmax.f32 %v1592_v58, %v5900_v45  ;;  %v6266_v48 = vmax.f32 %v4784_v6, 0.0 }
 0x2f5   : > { %6260 = vst [vmem:[#allocation43_spill] sm:$0xff] %v5129_v3  ;;  %v5903_v40 = vmax.f32 %v5118_v18, 0.0  ;;  %v6269_v58 = vmax.f32 %v4814_v19, 0.0  ;;  %v5163_v6 = vadd.f32 %v4978_v61, %v4206_v0  ;;  %v5183_v17 = vadd.f32 %v1260_v29, %v4206_v0 }
 0x2f6   : > { %v5120_v9 = vmax.f32 %v1627_v4, %v1628_v15  ;;  %v6263_v15 = vmax.f32 %v4736_v50, 0.0  ;;  %v1594_v21 = vmax.f32 %v1593_v53, %v5898_v56  ;;  %v5905_v53 = vmax.f32 %v5129_v3, 0.0  ;;  %v1263_v56 = vpop.f32.mrf.mxu0  ;;  %v6327_v3 = vld [vmem:[#allocation24_spill] sm:$0xff] }
 0x2f7   : > { %6272 = vst [vmem:[#allocation3_spill] sm:$0xff] %v5163_v6  ;;  %v5189_v61 = vadd.f32 %v1263_v56, %v4206_v0  ;;  %v6279_v56 = vmax.f32 %v4892_v63, 0.0  ;;  %v6328_v18 = vmax.f32 %v6327_v3, 0.0  ;;  %v6349_v43 = vmax.f32 %v6348_v30, 0.0 }
 0x2f8   : > { %vm1672_vm3 = vcmp.eq.f32.partialorder %v6261_v12, %v5120_v9  ;;  %vm1680_vm13 = vcmp.eq.f32.partialorder %v6262_v7, %v5120_v9  ;;  %vm5140_vm5 = vcmp.eq.f32.partialorder %v6263_v15, %v5120_v9  ;;  %vm5147_vm11 = vcmp.eq.f32.partialorder %v6266_v48, %v5120_v9  ;;  %6274 = vst [vmem:[#allocation6_spill] sm:$0xff] %v5183_v17 }
 0x2f9   : > { %vm5157_vm2 = vcmp.eq.f32.partialorder %v6269_v58, %v5120_v9  ;;  %v1562_v12 = vmax.f32 %v1560_v37, %v1561_v26  ;;  %v1582_v7 = vrot.slane %v1581_v31, 4  ;;  %v1595_v15 = vmax.f32 %v1594_v21, %v5899_v62  ;;  %6275 = vst [vmem:[#allocation44_spill] sm:$0xff] %v5189_v61 }
 0x2fa   : > { %v5169_v48 = vadd.f32 %v1257_v23, %v4206_v0  ;;  %v1800_v19 = vsel %vm1672_vm3, %v3803_v1, 2147483647  ;;  %v1808_v58 = vsel %vm1680_vm13, %v3813_v59, 2147483647  ;;  %v1816_v21 = vsel %vm5140_vm5, %v3816_v14, 2147483647 }
 0x2fb   : > { %v1596_v37 = vmax.f32 %v1595_v15, %v5903_v40  ;;  %vm2194_vm14 = vcmp.lt.s32.totalorder %v1800_v19, %v1808_v58  ;;  %v1563_v26 = vrot.slane %v1562_v12, 2  ;;  %v1583_v45 = vmax.f32 %v1581_v31, %v1582_v7 }
 0x2fc   : > { %6273 = vst [vmem:[#allocation18_spill] sm:$0xff] %v5169_v48  ;;  %v2195_v62 = vsel %vm2194_vm14, %v1800_v19, %v1808_v58  ;;  %v5904_v27 = vmax.f32 %v5169_v48, 0.0  ;;  %v1824_v15 = vsel %vm5147_vm11, %v3819_v38, 2147483647  ;;  %v6276_v31 = vmax.f32 %v4884_v10, 0.0 }
 0x2fd   : > { %v1597_v23 = vmax.f32 %v1596_v37, %v5905_v53  ;;  %vm2196_vm0 = vcmp.lt.s32.totalorder %v2195_v62, %v1816_v21  ;;  %v1564_v4 = vmax.f32 %v1562_v12, %v1563_v26  ;;  %v6277_v7 = vmax.f32 %v5163_v6, 0.0 }
 0x2fe   : > { %v2197_v40 = vsel %vm2196_vm0, %v2195_v62, %v1816_v21  ;;  %vm1712_vm1 = vcmp.eq.f32.partialorder %v6276_v31, %v5120_v9  ;;  %v1832_v29 = vsel %vm5157_vm2, %v3822_v52, 2147483647  ;;  %v1584_v47 = vrot.slane %v1583_v45, 2 }
 0x2ff   : > { %vm2198_vm7 = vcmp.lt.s32.totalorder %v2197_v40, %v1824_v15  ;;  %v1598_v19 = vmax.f32 %v1597_v23, %v6277_v7  ;;  %v6278_v62 = vmax.f32 %v4888_v42, 0.0  ;;  %vm1728_vm15 = vcmp.eq.f32.partialorder %v6279_v56, %v5120_v9 }
 0x300   : > { %v2199_v58 = vsel %vm2198_vm7, %v2197_v40, %v1824_v15  ;;  %v1565_v10 = vrot.slane %v1564_v4, 1  ;;  %v5907_v37 = vmax.f32 %v5183_v17, 0.0  ;;  %v1840_v50 = vsel %vm1712_vm1, %v3825_v5, 2147483647  ;;  %v6283_v15 = vld [vmem:[#allocation34_spill] sm:$0xff] }
 0x301   : > { %vm1720_vm6 = vcmp.eq.f32.partialorder %v6278_v62, %v5120_v9  ;;  %vm2200_vm8 = vcmp.lt.s32.totalorder %v2199_v58, %v1832_v29  ;;  %v1599_v12 = vmax.f32 %v1598_v19, %v5904_v27  ;;  %v5906_v40 = vmax.f32 %v5189_v61, 0.0  ;;  %v6326_v61 = vld [vmem:[#allocation42_spill] sm:$0xff] }
 0x302   : > { %v2201_v26 = vsel %vm2200_vm8, %v2199_v58, %v1832_v29  ;;  %v6280_v42 = vmax.f32 %v4898_v49, 0.0  ;;  %v5217_v63 = vmax.f32 %v1564_v4, %v1565_v10  ;;  %v1848_v23 = vsel %vm1720_vm6, %v3830_v44, 2147483647  ;;  %v6284_v29 = vld [vmem:[#allocation22_spill] sm:$0xff]  ;;  %v6288_v49 = vld [vmem:[#allocation28_spill] sm:$0xff] }
 0x303   : > { %vm2202_vm9 = vcmp.lt.s32.totalorder %v2201_v26, %v1840_v50  ;;  %v1856_v31 = vsel %vm1728_vm15, %v6283_v15, 2147483647  ;;  %v1585_v19 = vmax.f32 %v1583_v45, %v1584_v47  ;;  %v6285_v58 = vmax.f32 %v6284_v29, 0.0  ;;  %v6292_v10 = vld [vmem:[#allocation8_spill] sm:$0xff] }
 0x304   : > { %vm5213_vm12 = vcmp.eq.f32.partialorder %v6280_v42, %v5120_v9  ;;  %v2203_v7 = vsel %vm2202_vm9, %v2201_v26, %v1840_v50  ;;  %v6289_v56 = vmax.f32 %v6288_v49, 0.0  ;;  %v6293_v42 = vmax.f32 %v6292_v10, 0.0  ;;  %v6296_v50 = vld [vmem:[#allocation14_spill] sm:$0xff]  ;;  %v6304_v10 = vld [vmem:[#allocation7_spill] sm:$0xff] }
 0x305   : > { %vm2204_vm4 = vcmp.lt.s32.totalorder %v2203_v7, %v1848_v23  ;;  %vm5224_vm10 = vcmp.eq.f32.partialorder %v6285_v58, %v5217_v63  ;;  %v6297_v26 = vmax.f32 %v6296_v50, 0.0  ;;  %v6300_v58 = vld [vmem:[#allocation4_spill] sm:$0xff]  ;;  %v6309_v50 = vld [vmem:[#allocation23_spill] sm:$0xff]  ;;  %v6359_v27 = vmax.f32 %v4971_v57, 0.0 }
 0x306   : > { %vm5231_vm3 = vcmp.eq.f32.partialorder %v6289_v56, %v5217_v63  ;;  %vm5238_vm13 = vcmp.eq.f32.partialorder %v6293_v42, %v5217_v63  ;;  %v2205_v47 = vsel %vm2204_vm4, %v2203_v7, %v1848_v23  ;;  %v6301_v49 = vmax.f32 %v6300_v58, 0.0  ;;  %v6311_v58 = vld [vmem:[#allocation35_spill] sm:$0xff] }
 0x307   : > { %vm5245_vm5 = vcmp.eq.f32.partialorder %v6297_v26, %v5217_v63  ;;  %v6305_v42 = vmax.f32 %v6304_v10, 0.0  ;;  %v1600_v23 = vmax.f32 %v1599_v12, %v5907_v37  ;;  %v6308_v7 = vmax.f32 %v4908_v33, 0.0 }
 0x308   : > { %vm5252_vm11 = vcmp.eq.f32.partialorder %v6301_v49, %v5217_v63  ;;  %vm2206_vm0 = vcmp.lt.s32.totalorder %v2205_v47, %v1856_v31  ;;  %v6310_v26 = vmax.f32 %v6309_v50, 0.0  ;;  %v1864_v49 = vsel %vm5213_vm12, %v6311_v58, 2147483647 }
 0x309   : > { %vm5259_vm2 = vcmp.eq.f32.partialorder %v6305_v42, %v5217_v63  ;;  %vm1744_vm14 = vcmp.eq.f32.partialorder %v6308_v7, %v5120_v9  ;;  %v2207_v10 = vsel %vm2206_vm0, %v2205_v47, %v1856_v31  ;;  %v1586_v42 = vrot.slane %v1585_v19, 1  ;;  %v6317_v31 = vld [vmem:[#allocation36_spill] sm:$0xff] }
 0x30a   : > { %vm1752_vm1 = vcmp.eq.f32.partialorder %v6310_v26, %v5120_v9  ;;  %v5276_v53 = vmax.f32 %v1600_v23, %v5906_v40  ;;  %v6312_v12 = vmax.f32 %v4933_v16, 0.0  ;;  %vm2208_vm6 = vcmp.lt.s32.totalorder %v2207_v10, %v1864_v49 }
 0x30b   : > { %v6313_v33 = vmax.f32 %v4946_v34, 0.0  ;;  %v6314_v7 = vmax.f32 %v4963_v22, 0.0  ;;  %v1872_v47 = vsel %vm1744_vm14, %v6317_v31, 2147483647  ;;  %v2209_v23 = vsel %vm2208_vm6, %v2207_v10, %v1864_v49  ;;  %v6320_v34 = vld [vmem:[#allocation37_spill] sm:$0xff] }
 0x30c   : > { %vm1760_vm7 = vcmp.eq.f32.partialorder %v6312_v12, %v5120_v9  ;;  %v6318_v50 = vmax.f32 %v4982_v46, 0.0  ;;  %v6319_v16 = vmax.f32 %v5027_v51, 0.0  ;;  %v1880_v26 = vsel %vm1752_vm1, %v6320_v34, 2147483647  ;;  %v1266_v46 = vpop.f32.mrf.mxu2 }
 0x30d   : > { %vm1768_vm15 = vcmp.eq.f32.partialorder %v6313_v33, %v5120_v9  ;;  %vm5287_vm8 = vcmp.eq.f32.partialorder %v6314_v7, %v5120_v9  ;;  %vm2210_vm4 = vcmp.lt.s32.totalorder %v2209_v23, %v1872_v47  ;;  %v1797_v22 = vsel %vm5224_vm10, %v3803_v1, 2147483647  ;;  %v6321_v33 = vld [vmem:[#allocation38_spill] sm:$0xff] }
 0x30e   : > { %vm1784_vm12 = vcmp.eq.f32.partialorder %v6318_v50, %v5120_v9  ;;  %vm1792_vm9 = vcmp.eq.f32.partialorder %v6319_v16, %v5120_v9  ;;  %v2211_v12 = vsel %vm2210_vm4, %v2209_v23, %v1872_v47  ;;  %v1805_v49 = vsel %vm5231_vm3, %v3813_v59, 2147483647  ;;  %v6322_v50 = vld [vmem:[#allocation39_spill] sm:$0xff]  ;;  %v6324_v47 = vld [vmem:[#allocation40_spill] sm:$0xff]  ;;  %v6325_v23 = vld [vmem:[#allocation41_spill] sm:$0xff] }
 0x30f   : > { %v5305_v10 = vmax.f32 %v1585_v19, %v1586_v42  ;;  %v1888_v7 = vsel %vm1760_vm7, %v6321_v33, 2147483647  ;;  %v1896_v51 = vsel %vm1768_vm15, %v6322_v50, 2147483647  ;;  %vm2212_vm14 = vcmp.lt.s32.totalorder %v2211_v12, %v1880_v26 }
 0x310   : > { %v6323_v16 = vmov -inf   ;;  %v1904_v62 = vsel %vm5287_vm8, %v6324_v47, 2147483647  ;;  %v1912_v37 = vsel %vm1784_vm12, %v6325_v23, 2147483647  ;;  %v2213_v17 = vsel %vm2212_vm14, %v2211_v12, %v1880_v26  ;;  %v6331_v26 = vld [vmem:[#allocation30_spill] sm:$0xff] }
 0x311   : > { %v5310_v40 = vperm.slane %v6323_v16, 7  ;;  %v1920_v4 = vsel %vm1792_vm9, %v6326_v61, 2147483647  ;;  %vm2214_vm10 = vcmp.lt.s32.totalorder %v2213_v17, %v1888_v7  ;;  %vm2077_vm3 = vcmp.lt.s32.totalorder %v1797_v22, %v1805_v49 }
 0x312   : > { %v5318_v19 = vperm.slane %v6323_v16, 4  ;;  %v5321_v42 = vadd.f32 %v1266_v46, %v4206_v0  ;;  %v2215_v48 = vsel %vm2214_vm10, %v2213_v17, %v1888_v7  ;;  %v1813_v6 = vsel %vm5238_vm13, %v3816_v14, 2147483647  ;;  %v6339_v7 = vld [vmem:[#allocation16_spill] sm:$0xff] }
 0x313   : > { %v2078_v21 = vsel %vm2077_vm3, %v1797_v22, %v1805_v49  ;;  %vm5329_vm0 = vcmp.eq.f32.partialorder %v6328_v18, %v5305_v10  ;;  %vm2216_vm1 = vcmp.lt.s32.totalorder %v2215_v48, %v1896_v51  ;;  %v6332_v12 = vmax.f32 %v6331_v26, 0.0  ;;  %v6335_v22 = vld [vmem:[#allocation10_spill] sm:$0xff] }
 0x314   : > { %vm2079_vm7 = vcmp.lt.s32.totalorder %v2078_v21, %v1813_v6  ;;  %v5341_v17 = vperm.slane %v6323_v16, 5  ;;  %v2217_v45 = vsel %vm2216_vm1, %v2215_v48, %v1896_v51  ;;  %v1821_v18 = vsel %vm5245_vm5, %v3819_v38, 2147483647  ;;  %v6343_v48 = vld [vmem:[#allocation5_spill] sm:$0xff] }
 0x315   : > { %vm5336_vm6 = vcmp.eq.f32.partialorder %v6332_v12, %v5305_v10  ;;  %v2080_v3 = vsel %vm2079_vm7, %v2078_v21, %v1813_v6  ;;  %v6336_v49 = vmax.f32 %v6335_v22, 0.0  ;;  %vm2218_vm15 = vcmp.lt.s32.totalorder %v2217_v45, %v1904_v62 }
 0x316   : > { %vm2081_vm8 = vcmp.lt.s32.totalorder %v2080_v3, %v1821_v18  ;;  %v6340_v26 = vmax.f32 %v6339_v7, 0.0  ;;  %v6344_v29 = vmax.f32 %v6343_v48, 0.0  ;;  %v6345_v6 = vmov 0 }
 0x317   : > { %vm5349_vm13 = vcmp.eq.f32.partialorder %v6336_v49, %v5305_v10  ;;  %v2219_v51 = vsel %vm2218_vm15, %v2217_v45, %v1904_v62  ;;  %v1829_v21 = vsel %vm5252_vm11, %v3822_v52, 2147483647  ;;  %v2082_v22 = vsel %vm2081_vm8, %v2080_v3, %v1821_v18 }
 0x318   : > { %vm5356_vm12 = vcmp.eq.f32.partialorder %v6340_v26, %v5305_v10  ;;  %vm5363_vm5 = vcmp.eq.f32.partialorder %v6344_v29, %v5305_v10  ;;  %v1460_v49 = vmax.f32 %v5321_v42, 0.0  ;;  %vm2220_vm9 = vcmp.lt.s32.totalorder %v2219_v51, %v1912_v37 }
 0x319   : > { %v6346_v6 = vsel %vm5363_vm5, 4294967295, %v6345_v6  ;;  %v6347_v7 = vmov 0   ;;  %vm1717_vm4 = vcmp.eq.f32.partialorder %v6349_v43, %v5217_v63  ;;  %vm2083_vm14 = vcmp.lt.s32.totalorder %v2082_v22, %v1829_v21 }
 0x31a   : > { %v5372_v26 = vperm.slane %v6347_v7, 7  ;;  %v2221_v48 = vsel %vm2220_vm9, %v2219_v51, %v1912_v37  ;;  %v6350_v62 = vmax.f32 %v4927_v2, 0.0  ;;  %v1837_v56 = vsel %vm5259_vm2, %v3825_v5, 2147483647 }
 0x31b   : > { %v2084_v18 = vsel %vm2083_vm14, %v2082_v22, %v1829_v21  ;;  %vm2222_vm11 = vcmp.lt.s32.totalorder %v2221_v48, %v1920_v4  ;;  %v6353_v3 = vmax.f32 %v4940_v8, 0.0  ;;  %v6356_v2 = vmax.f32 %v4954_v35, 0.0 }
 0x31c   : > { %vm5380_vm10 = vcmp.eq.f32.partialorder %v6350_v62, %v5217_v63  ;;  %vm2085_vm7 = vcmp.lt.s32.totalorder %v2084_v18, %v1837_v56  ;;  %v2223_v37 = vsel %vm2222_vm11, %v2221_v48, %v1920_v4  ;;  %vm5404_vm2 = vcmp.eq.f32.partialorder %v6359_v27, %v5217_v63 }
 0x31d   : > { %vm5390_vm3 = vcmp.eq.f32.partialorder %v6353_v3, %v5217_v63  ;;  %vm5397_vm1 = vcmp.eq.f32.partialorder %v6356_v2, %v5217_v63  ;;  %v1845_v8 = vsel %vm1717_vm4, %v3830_v44, 2147483647  ;;  %v2086_v51 = vsel %vm2085_vm7, %v2084_v18, %v1837_v56 }
 0x31e   : > { %v2224_v21 = vrot.slane %v2223_v37, 4  ;;  %v6362_v35 = vmax.f32 %v4988_v24, 0.0  ;;  %vm2087_vm8 = vcmp.lt.s32.totalorder %v2086_v51, %v1845_v8  ;;  %v6365_v57 = vmax.f32 %v5004_v20, 0.0 }
 0x31f   : > { %v6368_v48 = vmax.f32 %v5020_v39, 0.0  ;;  %v1853_v62 = vsel %vm5380_vm10, %v6283_v15, 2147483647  ;;  %v2088_v56 = vsel %vm2087_vm8, %v2086_v51, %v1845_v8  ;;  %vm2289_vm11 = vcmask 1044484  }
 0x320   : > { %vm5412_vm15 = vcmp.eq.f32.partialorder %v6362_v35, %v5217_v63  ;;  %vm5421_vm14 = vcmp.eq.f32.partialorder %v6365_v57, %v5217_v63  ;;  %vm2225_vm7 = vcmp.lt.s32.totalorder %v2223_v37, %v2224_v21  ;;  %v1861_v20 = vsel %vm5390_vm3, %v6311_v58, 2147483647  ;;  %v6378_v57 = vld [vmem:[#allocation19_spill] sm:$0xff] }
 0x321   : > { %vm5428_vm4 = vcmp.eq.f32.partialorder %v6368_v48, %v5217_v63  ;;  %v1869_v18 = vsel %vm5397_vm1, %v6317_v31, 2147483647  ;;  %vm2089_vm9 = vcmp.lt.s32.totalorder %v2088_v56, %v1853_v62  ;;  %v2226_v39 = vsel %vm2225_vm7, %v2223_v37, %v2224_v21  ;;  %v6386_v48 = vld [vmem:[#allocation27_spill] sm:$0xff] }
 0x322   : > { %vm2258_vm5 = vcmp.gt.f32.partialorder %v5120_v9, %v5310_v40  ;;  %v6371_v45 = vmax.f32 %v5034_v11, 0.0  ;;  %v1877_v43 = vsel %vm5404_vm2, %v6320_v34, 2147483647  ;;  %v2090_v2 = vsel %vm2089_vm9, %v2088_v56, %v1853_v62 }
 0x323   : > { %vm6374_vm3 = vcmp.gt.f32.partialorder %v5217_v63, %v5318_v19  ;;  %v2227_v37 = vrot.slane %v2226_v39, 2  ;;  %v1885_v11 = vsel %vm5412_vm15, %v6321_v33, 2147483647  ;;  %v1893_v27 = vsel %vm5421_vm14, %v6322_v50, 2147483647 }
 0x324   : > { %vm5446_vm10 = vcmp.eq.f32.partialorder %v6371_v45, %v5217_v63  ;;  %v2302_v30 = vsel %vm6374_vm3, %v5217_v63, %v5318_v19  ;;  %vm2091_vm1 = vcmp.lt.s32.totalorder %v2090_v2, %v1861_v20  ;;  %v6375_v29 = vmax.f32 %v5068_v41, 0.0 }
 0x325   : > { %v1901_v51 = vsel %vm5428_vm4, %v6324_v47, 2147483647  ;;  %v2092_v21 = vsel %vm2091_vm1, %v2090_v2, %v1861_v20  ;;  %v1798_v35 = vsel %vm5329_vm0, %v3803_v1, 2147483647  ;;  %v1806_v22 = vsel %vm5336_vm6, %v3813_v59, 2147483647 }
 0x326   : > { %vm5467_vm2 = vcmp.eq.f32.partialorder %v6375_v29, %v5217_v63  ;;  %vm2228_vm15 = vcmp.lt.s32.totalorder %v2226_v39, %v2227_v37  ;;  %vm2093_vm8 = vcmp.lt.s32.totalorder %v2092_v21, %v1869_v18  ;;  %v2317_v41 = vrot.slane %v2302_v30, 4 }
 0x327   : > { %v6379_v4 = vmax.f32 %v6378_v57, 0.0  ;;  %v2229_v24 = vsel %vm2228_vm15, %v2226_v39, %v2227_v37  ;;  %v2094_v62 = vsel %vm2093_vm8, %v2092_v21, %v1869_v18  ;;  %v1814_v25 = vsel %vm5349_vm13, %v3816_v14, 2147483647 }
 0x328   : > { %v1822_v0 = vsel %vm5356_vm12, %v3819_v38, 2147483647  ;;  %v2230_v56 = vrot.slane %v2229_v24, 1  ;;  %vm2095_vm0 = vcmp.lt.s32.totalorder %v2094_v62, %v1877_v43  ;;  %vm2116_vm6 = vcmp.lt.s32.totalorder %v1798_v35, %v1806_v22 }
 0x329   : > { %vm5483_vm9 = vcmp.eq.f32.partialorder %v6379_v4, %v5305_v10  ;;  %vm2256_vm14 = vcmp.gt.f32.partialorder %v5305_v10, %v5341_v17  ;;  %v2096_v20 = vsel %vm2095_vm0, %v2094_v62, %v1877_v43  ;;  %v2117_v45 = vsel %vm2116_vm6, %v1798_v35, %v1806_v22 }
 0x32a   : > { %v2303_v18 = vsel %vm2256_vm14, %v5305_v10, %v5341_v17  ;;  %v1602_v46 = vmax.f32 %v5276_v53, %v1460_v49  ;;  %vm2231_vm13 = vcmp.lt.s32.totalorder %v2229_v24, %v2230_v56  ;;  %vm2097_vm12 = vcmp.lt.s32.totalorder %v2096_v20, %v1885_v11  ;;  %v6434_v17 = vld [vmem:[#allocation18_spill] sm:$0xff] }
 0x32b   : > { %vm2118_vm4 = vcmp.lt.s32.totalorder %v2117_v45, %v1814_v25  ;;  %v2318_v12 = vrot.slane %v2303_v18, 3  ;;  %v2232_v39 = vsel %vm2231_vm13, %v2229_v24, %v2230_v56  ;;  %v2098_v2 = vsel %vm2097_vm12, %v2096_v20, %v1885_v11  ;;  %v6388_v20 = vld [vmem:[#allocation29_spill] sm:$0xff] }
 0x32c   : > { %v2119_v30 = vsel %vm2118_vm4, %v2117_v45, %v1814_v25  ;;  %v1603_v37 = vrot.slane %v1602_v46, 4  ;;  %v5507_v43 = vsel %vm2258_vm5, %v2232_v39, %v5372_v26  ;;  %vm2099_vm7 = vcmp.lt.s32.totalorder %v2098_v2, %v1893_v27  ;;  %v6383_v26 = vld [vmem:[#allocation25_spill] sm:$0xff]  ;;  %v6390_v39 = vld [vmem:[#allocation11_spill] sm:$0xff] }
 0x32d   : > { %vm2120_vm3 = vcmp.lt.s32.totalorder %v2119_v30, %v1822_v0  ;;  %v5510_v29 = vsel %vm2289_vm11, %v2317_v41, %v2318_v12  ;;  %v2100_v53 = vsel %vm2099_vm7, %v2098_v2, %v1893_v27  ;;  %vm6382_vm1 = vnez %v6346_v6 }
 0x32e   : > { %v1830_v21 = vsel %vm6382_vm1, %v3822_v52, 2147483647  ;;  %v2121_v35 = vsel %vm2120_vm3, %v2119_v30, %v1822_v0  ;;  %v1604_v11 = vmax.f32 %v1602_v46, %v1603_v37  ;;  %v1909_v22 = vsel %vm5446_vm10, %v6325_v23, 2147483647 }
 0x32f   : > { %vm2101_vm15 = vcmp.lt.s32.totalorder %v2100_v53, %v1901_v51  ;;  %v6384_v57 = vmax.f32 %v6383_v26, 0.0  ;;  %vm2122_vm0 = vcmp.lt.s32.totalorder %v2121_v35, %v1830_v21  ;;  %v1838_v27 = vsel %vm5483_vm9, %v3825_v5, 2147483647 }
 0x330   : > { %v2102_v4 = vsel %vm2101_vm15, %v2100_v53, %v1901_v51  ;;  %v2123_v41 = vsel %vm2122_vm0, %v2121_v35, %v1830_v21  ;;  %v1605_v6 = vrot.slane %v1604_v11, 2  ;;  %v1917_v24 = vsel %vm5467_vm2, %v6326_v61, 2147483647 }
 0x331   : > { %vm1718_vm8 = vcmp.eq.f32.partialorder %v6384_v57, %v5305_v10  ;;  %vm2103_vm6 = vcmp.lt.s32.totalorder %v2102_v4, %v1909_v22  ;;  %v6385_v3 = vmax.f32 %v4937_v60, 0.0  ;;  %vm2124_vm13 = vcmp.lt.s32.totalorder %v2123_v41, %v1838_v27 }
 0x332   : > { %v2104_v62 = vsel %vm2103_vm6, %v2102_v4, %v1909_v22  ;;  %v1846_v25 = vsel %vm1718_vm8, %v3830_v44, 2147483647  ;;  %v2125_v51 = vsel %vm2124_vm13, %v2123_v41, %v1838_v27  ;;  %v1606_v0 = vmax.f32 %v1604_v11, %v1605_v6  ;;  %v6397_v4 = vld [vmem:[#allocation2_spill] sm:$0xff] }
 0x333   : > { %vm1726_vm10 = vcmp.eq.f32.partialorder %v6385_v3, %v5305_v10  ;;  %vm2105_vm12 = vcmp.lt.s32.totalorder %v2104_v62, %v1917_v24  ;;  %v6387_v56 = vmax.f32 %v6386_v48, 0.0  ;;  %v6389_v8 = vmax.f32 %v6388_v20, 0.0  ;;  %v6401_v6 = vld [vmem:[#allocation26_spill] sm:$0xff] }
 0x334   : > { %vm2126_vm4 = vcmp.lt.s32.totalorder %v2125_v51, %v1846_v25  ;;  %v2106_v45 = vsel %vm2105_vm12, %v2104_v62, %v1917_v24  ;;  %v1854_v60 = vsel %vm1726_vm10, %v6283_v15, 2147483647  ;;  %v1607_v46 = vrot.slane %v1606_v0, 1  ;;  %v6405_v62 = vld [vmem:[#allocation32_spill] sm:$0xff] }
 0x335   : > { %vm1734_vm9 = vcmp.eq.f32.partialorder %v6387_v56, %v5305_v10  ;;  %vm1742_vm2 = vcmp.eq.f32.partialorder %v6389_v8, %v5305_v10  ;;  %v2127_v18 = vsel %vm2126_vm4, %v2125_v51, %v1846_v25  ;;  %v2107_v12 = vrot.slane %v2106_v45, 4  ;;  %v6421_v56 = vld [vmem:[#allocation33_spill] sm:$0xff] }
 0x336   : > { %vm2128_vm7 = vcmp.lt.s32.totalorder %v2127_v18, %v1854_v60  ;;  %v6391_v2 = vmax.f32 %v6390_v39, 0.0  ;;  %v1862_v37 = vsel %vm1734_vm9, %v6311_v58, 2147483647  ;;  %v5546_v21 = vmax.f32 %v1606_v0, %v1607_v46  ;;  %v6409_v0 = vld [vmem:[#allocation12_spill] sm:$0xff] }
 0x337   : > { %v2129_v53 = vsel %vm2128_vm7, %v2127_v18, %v1854_v60  ;;  %vm2108_vm1 = vcmp.lt.s32.totalorder %v2106_v45, %v2107_v12  ;;  %v6394_v35 = vmax.f32 %v5017_v54, 0.0  ;;  %v1870_v22 = vsel %vm1742_vm2, %v6317_v31, 2147483647 }
 0x338   : > { %vm5541_vm3 = vcmp.eq.f32.partialorder %v6391_v2, %v5305_v10  ;;  %vm2130_vm8 = vcmp.lt.s32.totalorder %v2129_v53, %v1862_v37  ;;  %v2109_v26 = vsel %vm2108_vm1, %v2106_v45, %v2107_v12  ;;  %v6398_v27 = vmax.f32 %v6397_v4, 0.0 }
 0x339   : > { %vm5551_vm15 = vcmp.eq.f32.partialorder %v6394_v35, %v5305_v10  ;;  %v2131_v57 = vsel %vm2130_vm8, %v2129_v53, %v1862_v37  ;;  %v6402_v24 = vmax.f32 %v6401_v6, 0.0  ;;  %v2110_v3 = vrot.slane %v2109_v26, 2 }
 0x33a   : > { %vm5559_vm0 = vcmp.eq.f32.partialorder %v6398_v27, %v5546_v21  ;;  %vm2132_vm10 = vcmp.lt.s32.totalorder %v2131_v57, %v1870_v22  ;;  %v6406_v25 = vmax.f32 %v6405_v62, 0.0  ;;  %v6410_v48 = vmax.f32 %v6409_v0, 0.0 }
 0x33b   : > { %vm5566_vm6 = vcmp.eq.f32.partialorder %v6402_v24, %v5546_v21  ;;  %v1878_v20 = vsel %vm5541_vm3, %v6320_v34, 2147483647  ;;  %v2133_v8 = vsel %vm2132_vm10, %v2131_v57, %v1870_v22  ;;  %vm2111_vm9 = vcmp.lt.s32.totalorder %v2109_v26, %v2110_v3 }
 0x33c   : > { %vm5573_vm13 = vcmp.eq.f32.partialorder %v6406_v25, %v5546_v21  ;;  %vm5580_vm12 = vcmp.eq.f32.partialorder %v6410_v48, %v5546_v21  ;;  %v6413_v45 = vmax.f32 %v5038_v36, 0.0  ;;  %vm2134_vm4 = vcmp.lt.s32.totalorder %v2133_v8, %v1878_v20 }
 0x33d   : > { %v2112_v60 = vsel %vm2111_vm9, %v2109_v26, %v2110_v3  ;;  %v1886_v18 = vsel %vm5551_vm15, %v6321_v33, 2147483647  ;;  %v2135_v46 = vsel %vm2134_vm4, %v2133_v8, %v1878_v20  ;;  %v2264_v39 = vperm.slane %v6347_v7, 4 }
 0x33e   : > { %vm1766_vm2 = vcmp.eq.f32.partialorder %v6413_v45, %v5305_v10  ;;  %v2113_v12 = vrot.slane %v2112_v60, 1  ;;  %v6414_v2 = vmax.f32 %v5050_v13, 0.0  ;;  %vm2136_vm3 = vcmp.lt.s32.totalorder %v2135_v46, %v1886_v18 }
 0x33f   : > { %v6415_v30 = vmax.f32 %v5065_v32, 0.0  ;;  %v1894_v36 = vsel %vm1766_vm2, %v6322_v50, 2147483647  ;;  %v2137_v37 = vsel %vm2136_vm3, %v2135_v46, %v1886_v18  ;;  %v2305_v53 = vsel %vm2258_vm5, %v5120_v9, %v5310_v40 }
 0x340   : > { %vm1774_vm7 = vcmp.eq.f32.partialorder %v6414_v2, %v5305_v10  ;;  %vm2114_vm8 = vcmp.lt.s32.totalorder %v2112_v60, %v2113_v12  ;;  %vm2138_vm10 = vcmp.lt.s32.totalorder %v2137_v37, %v1894_v36  ;;  %vm6416_vm15 = vcmp.gt.f32.partialorder %v5217_v63, %v5318_v19 }
 0x341   : > { %vm1782_vm1 = vcmp.eq.f32.partialorder %v6415_v30, %v5305_v10  ;;  %v2115_v35 = vsel %vm2114_vm8, %v2112_v60, %v2113_v12  ;;  %v1902_v13 = vsel %vm1774_vm7, %v6324_v47, 2147483647  ;;  %v2139_v11 = vsel %vm2138_vm10, %v2137_v37, %v1894_v36  ;;  %v6423_v60 = vld [vmem:[#allocation20_spill] sm:$0xff] }
 0x342   : > { %v5610_v32 = vsel %vm6416_vm15, %v2115_v35, %v2264_v39  ;;  %v6417_v22 = vmax.f32 %v5081_v55, 0.0  ;;  %v1910_v26 = vsel %vm1782_vm1, %v6325_v23, 2147483647  ;;  %vm2140_vm2 = vcmp.lt.s32.totalorder %v2139_v11, %v1902_v13  ;;  %v6428_v35 = vld [vmem:[#allocation17_spill] sm:$0xff] }
 0x343   : > { %v2141_v57 = vsel %vm2140_vm2, %v2139_v11, %v1902_v13  ;;  %v1799_v9 = vsel %vm5559_vm0, %v3803_v1, 2147483647  ;;  %v1807_v40 = vsel %vm5566_vm6, %v3813_v59, 2147483647  ;;  %v5623_v63 = vperm.slane %v6323_v16, 6  ;;  %v6418_v16 = vld [vmem:[#allocation31_spill] sm:$0xff] }
 0x344   : > { %vm1790_vm9 = vcmp.eq.f32.partialorder %v6417_v22, %v5305_v10  ;;  %vm2142_vm5 = vcmp.lt.s32.totalorder %v2141_v57, %v1910_v26  ;;  %v2320_v4 = vrot.slane %v2305_v53, 1  ;;  %vm2155_vm7 = vcmp.lt.s32.totalorder %v1799_v9, %v1807_v40 }
 0x345   : > { %v1918_v55 = vsel %vm1790_vm9, %v6326_v61, 2147483647  ;;  %v2143_v19 = vsel %vm2142_vm5, %v2141_v57, %v1910_v26  ;;  %vm2291_vm3 = vcmask 1046534   ;;  %v1815_v1 = vsel %vm5573_vm13, %v3816_v14, 2147483647 }
 0x346   : > { %vm2144_vm4 = vcmp.lt.s32.totalorder %v2143_v19, %v1918_v55  ;;  %v2156_v41 = vsel %vm2155_vm7, %v1799_v9, %v1807_v40  ;;  %vm2257_vm0 = vcmp.gt.f32.partialorder %v5546_v21, %v5623_v63  ;;  %v6419_v6 = vmax.f32 %v6418_v16, 0.0  ;;  %v6430_v9 = vld [vmem:[#allocation43_spill] sm:$0xff] }
 0x347   : > { %v2145_v27 = vsel %vm2144_vm4, %v2143_v19, %v1918_v55  ;;  %vm2157_vm1 = vcmp.lt.s32.totalorder %v2156_v41, %v1815_v1  ;;  %v2304_v24 = vsel %vm2257_vm0, %v5546_v21, %v5623_v63  ;;  %v1823_v14 = vsel %vm5580_vm12, %v3819_v38, 2147483647 }
 0x348   : > { %v2146_v59 = vrot.slane %v2145_v27, 4  ;;  %vm1703_vm6 = vcmp.eq.f32.partialorder %v6419_v6, %v5546_v21  ;;  %v2158_v54 = vsel %vm2157_vm1, %v2156_v41, %v1815_v1  ;;  %vm2293_vm13 = vcmask 1045508  }
 0x349   : > { %v2319_v3 = vrot.slane %v2304_v24, 2  ;;  %v6420_v62 = vmax.f32 %v5072_v28, 0.0  ;;  %vm2159_vm15 = vcmp.lt.s32.totalorder %v2158_v54, %v1823_v14  ;;  %vm2295_vm9 = vcmask 1043456  }
 0x34a   : > { %vm2147_vm8 = vcmp.lt.s32.totalorder %v2145_v27, %v2146_v59  ;;  %v1831_v51 = vsel %vm1703_vm6, %v3822_v52, 2147483647  ;;  %v2160_v0 = vsel %vm2159_vm15, %v2158_v54, %v1823_v14  ;;  %v6422_v20 = vmax.f32 %v6421_v56, 0.0  ;;  %v6424_v52 = vld [vmem:[#allocation13_spill] sm:$0xff]  ;;  %v6438_v14 = vld [vmem:[#allocation44_spill] sm:$0xff] }
 0x34b   : > { %vm1711_vm10 = vcmp.eq.f32.partialorder %v6420_v62, %v5546_v21  ;;  %v2148_v25 = vsel %vm2147_vm8, %v2145_v27, %v2146_v59  ;;  %v2325_v38 = vsel %vm2291_vm3, %v2319_v3, %v2320_v4  ;;  %vm2161_vm2 = vcmp.lt.s32.totalorder %v2160_v0, %v1831_v51  ;;  %v6432_v4 = vld [vmem:[#allocation3_spill] sm:$0xff] }
 0x34c   : > { %v2149_v48 = vrot.slane %v2148_v25, 2  ;;  %vm1719_vm12 = vcmp.eq.f32.partialorder %v6422_v20, %v5546_v21  ;;  %v2326_v28 = vsel %vm2293_vm13, %v5510_v29, %v2325_v38  ;;  %v1839_v8 = vsel %vm1711_vm10, %v3825_v5, 2147483647  ;;  %v6426_v5 = vld [vmem:[#allocation15_spill] sm:$0xff] }
 0x34d   : > { %v2162_v45 = vsel %vm2161_vm2, %v2160_v0, %v1831_v51  ;;  %v2327_v18 = vsel %vm2295_vm9, %v6423_v60, %v2326_v28  ;;  %v6425_v46 = vmax.f32 %v6424_v52, 0.0  ;;  %v1847_v39 = vsel %vm1719_vm12, %v3830_v44, 2147483647 }
 0x34e   : > { %vm2150_vm5 = vcmp.lt.s32.totalorder %v2148_v25, %v2149_v48  ;;  %vm2163_vm7 = vcmp.lt.s32.totalorder %v2162_v45, %v1839_v8  ;;  %2329 = vst [vmem:[%s358_s12] sm:$0xff] %v2327_v18  ;;  %v2265_v29 = vperm.slane %v6347_v7, 5  ;;  %v6427_v36 = vmax.f32 %v6426_v5, 0.0 }
 0x34f   : > { %vm1727_vm4 = vcmp.eq.f32.partialorder %v6425_v46, %v5546_v21  ;;  %v2151_v12 = vsel %vm2150_vm5, %v2148_v25, %v2149_v48  ;;  %v2164_v2 = vsel %vm2163_vm7, %v2162_v45, %v1839_v8  ;;  %v6429_v13 = vmax.f32 %v6428_v35, 0.0  ;;  %v6440_v45 = vld [vmem:[#allocation9_spill] sm:$0xff] }
 0x350   : > { %v2152_v30 = vrot.slane %v2151_v12, 1  ;;  %vm1735_vm6 = vcmp.eq.f32.partialorder %v6427_v36, %v5546_v21  ;;  %vm2165_vm1 = vcmp.lt.s32.totalorder %v2164_v2, %v1847_v39  ;;  %v1855_v37 = vsel %vm1727_vm4, %v6283_v15, 2147483647 }
 0x351   : > { %v2166_v53 = vsel %vm2165_vm1, %v2164_v2, %v1847_v39  ;;  %vm1743_vm10 = vcmp.eq.f32.partialorder %v6429_v13, %v5546_v21  ;;  %v2279_v44 = vrot.slane %v5610_v32, 4  ;;  %v1863_v22 = vsel %vm1735_vm6, %v6311_v58, 2147483647 }
 0x352   : > { %vm2153_vm8 = vcmp.lt.s32.totalorder %v2151_v12, %v2152_v30  ;;  %vm2167_vm15 = vcmp.lt.s32.totalorder %v2166_v53, %v1855_v37  ;;  %v6431_v15 = vmax.f32 %v6430_v9, 0.0  ;;  %v1871_v55 = vsel %vm1743_vm10, %v6317_v31, 2147483647  ;;  %v6436_v31 = vld [vmem:[#allocation6_spill] sm:$0xff] }
 0x353   : > { %v2154_v11 = vsel %vm2153_vm8, %v2151_v12, %v2152_v30  ;;  %v2168_v26 = vsel %vm2167_vm15, %v2166_v53, %v1855_v37  ;;  %v6433_v32 = vmax.f32 %v6432_v4, 0.0  ;;  %v6435_v1 = vmax.f32 %v6434_v17, 0.0 }
 0x354   : > { %v2273_v57 = vsel %vm2256_vm14, %v2154_v11, %v2265_v29  ;;  %vm1751_vm12 = vcmp.eq.f32.partialorder %v6431_v15, %v5546_v21  ;;  %vm2169_vm2 = vcmp.lt.s32.totalorder %v2168_v26, %v1863_v22  ;;  %v6437_v16 = vmax.f32 %v6436_v31, 0.0 }
 0x355   : > { %v2280_v40 = vrot.slane %v2273_v57, 3  ;;  %v2170_v19 = vsel %vm2169_vm2, %v2168_v26, %v1863_v22  ;;  %vm1759_vm5 = vcmp.eq.f32.partialorder %v6433_v32, %v5546_v21  ;;  %v1879_v27 = vsel %vm1751_vm12, %v6320_v34, 2147483647 }
 0x356   : > { %vm2171_vm4 = vcmp.lt.s32.totalorder %v2170_v19, %v1871_v55  ;;  %vm1767_vm14 = vcmp.eq.f32.partialorder %v6435_v1, %v5546_v21  ;;  %v1887_v41 = vsel %vm1759_vm5, %v6321_v33, 2147483647  ;;  %vm1775_vm6 = vcmp.eq.f32.partialorder %v6437_v16, %v5546_v21 }
 0x357   : > { %v2290_v58 = vsel %vm2289_vm11, %v2279_v44, %v2280_v40  ;;  %v2172_v10 = vsel %vm2171_vm4, %v2170_v19, %v1871_v55  ;;  %v1895_v6 = vsel %vm1767_vm14, %v6322_v50, 2147483647  ;;  %v6439_v34 = vmax.f32 %v6438_v14, 0.0 }
 0x358   : > { %vm2173_vm7 = vcmp.lt.s32.totalorder %v2172_v10, %v1879_v27  ;;  %v1903_v54 = vsel %vm1775_vm6, %v6324_v47, 2147483647  ;;  %vm1791_vm10 = vcmp.eq.f32.partialorder %v1460_v49, %v5546_v21  ;;  %v2266_v42 = vperm.slane %v6347_v7, 6 }
 0x359   : > { %v2174_v59 = vsel %vm2173_vm7, %v2172_v10, %v1879_v27  ;;  %vm1783_vm11 = vcmp.eq.f32.partialorder %v6439_v34, %v5546_v21  ;;  %v1919_v50 = vsel %vm1791_vm10, %v6326_v61, 2147483647  ;;  %v2282_v61 = vrot.slane %v5507_v43, 1 }
 0x35a   : > { %vm2175_vm1 = vcmp.lt.s32.totalorder %v2174_v59, %v1887_v41  ;;  %v1911_v33 = vsel %vm1783_vm11, %v6325_v23, 2147483647 }
 0x35b   : > { %v2176_v24 = vsel %vm2175_vm1, %v2174_v59, %v1887_v41 }
 0x35c   : > { %vm2177_vm8 = vcmp.lt.s32.totalorder %v2176_v24, %v1895_v6 }
 0x35d   : > { %v2178_v3 = vsel %vm2177_vm8, %v2176_v24, %v1895_v6 }
 0x35e   : > { %vm2179_vm15 = vcmp.lt.s32.totalorder %v2178_v3, %v1903_v54 }
 0x35f   : > { %v2180_v62 = vsel %vm2179_vm15, %v2178_v3, %v1903_v54 }
 0x360   : > { %vm2181_vm12 = vcmp.lt.s32.totalorder %v2180_v62, %v1911_v33 }
 0x361   : > { %v2182_v25 = vsel %vm2181_vm12, %v2180_v62, %v1911_v33 }
 0x362   : > { %vm2183_vm2 = vcmp.lt.s32.totalorder %v2182_v25, %v1919_v50 }
 0x363   : > { %v2184_v51 = vsel %vm2183_vm2, %v2182_v25, %v1919_v50 }
 0x364   : > { %v2185_v0 = vrot.slane %v2184_v51, 4 }
 0x366   : > { %vm2186_vm5 = vcmp.lt.s32.totalorder %v2184_v51, %v2185_v0 }
 0x367   : > { %v2187_v38 = vsel %vm2186_vm5, %v2184_v51, %v2185_v0 }
 0x368   : > { %v2188_v47 = vrot.slane %v2187_v38, 2 }
 0x36a   : > { %vm2189_vm4 = vcmp.lt.s32.totalorder %v2187_v38, %v2188_v47 }
 0x36b   : > { %v2190_v48 = vsel %vm2189_vm4, %v2187_v38, %v2188_v47 }
 0x36c   : > { %v2191_v56 = vrot.slane %v2190_v48, 1 }
 0x36e   : > { %vm2192_vm14 = vcmp.lt.s32.totalorder %v2190_v48, %v2191_v56 }
 0x36f   : > { %v2193_v49 = vsel %vm2192_vm14, %v2190_v48, %v2191_v56 }
 0x370   : > { %v2274_v23 = vsel %vm2257_vm0, %v2193_v49, %v2266_v42 }
 0x371   : > { %v2281_v20 = vrot.slane %v2274_v23, 2 }
 0x373   : > { %v2292_v28 = vsel %vm2291_vm3, %v2281_v20, %v2282_v61 }
 0x374   : > { %v2294_v8 = vsel %vm2293_vm13, %v2290_v58, %v2292_v28 }
 0x375   : > { %v2296_v7 = vsel %vm2295_vm9, %v6440_v45, %v2294_v8 }
 0x376   : > { %2297 = vst [vmem:[%s362_s15] sm:$0xff] %v2296_v7 }
 0x377 PF: > { %s19_s29 = sadd.s32 1, %s2570_s29   ;;  %s6441_s27 = smov %s2566_s28 }
 0x378   : > { %p16_p5 = scmp.ge.s32.totalorder %s19_s29, 4   ;;  %s6442_s28 = smov %s6444_s30 }
 0x37a   :  { %18 = sbr.rel (!%p16_p5) target bundleno = 2 (0x2), region = 97 }

// kernel: seg_head_forward.9
= control target key start
LH: loop header
LB: loop body
LE: loop exit
PB: predicated region body
PF: predicated region fallthrough
CT: control target
= control target key end

     0   :  { %s2126_s30 = smov 0   ;;  %s2128_s10 = smov 0   ;;  %s3736_s0 = inlined_call_operand.vmem [shape: f32[2,128,64], index: 0, kind: input, shape index: {}]   ;;  %s3737_s1 = inlined_call_operand.vmem [shape: f32[2,64,512], index: 1, kind: input, shape index: {}]   ;;  %s3738_s2 = inlined_call_operand.vmem [shape: f32[2,1,512], index: 2, kind: input, shape index: {}]   ;;  %s3739_s3 = inlined_call_operand.vmem [shape: f32[512,256], index: 3, kind: input, shape index: {}]   ;;  %s3740_s4 = inlined_call_operand.vmem [shape: f32[1,256], index: 4, kind: input, shape index: {}]   ;;  %s3741_s5 = inlined_call_operand.vmem [shape: f32[256,128], index: 5, kind: input, shape index: {}]   ;;  %s3742_s6 = inlined_call_operand.vmem [shape: f32[1,128], index: 6, kind: input, shape index: {}]   ;;  %s3743_s7 = inlined_call_operand.vmem [shape: f32[128,2], index: 7, kind: input, shape index: {}]   ;;  %s3744_s8 = inlined_call_operand.vmem [shape: f32[1,2], index: 8, kind: input, shape index: {}]   ;;  %s3745_s9 = inlined_call_operand.vmem [shape: f32[2,128,2], index: 9, kind: output, shape index: {}]  }
   0x1   :  { %s2130_s11 = smov 0  }
   0x2 LB: > { %s31_s12 = sadd.s32 1, %s2070_s10  ;;  %p1925_p0 = scmp.ge.s32.totalorder %s2074_s11, 1  ;;  %s2074_s11 = sphi %s2130_s11, %s19_s11   ;;  %s2070_s10 = sphi %s2128_s10, %s3878_s10   ;;  %s2066_s30 = sphi %s2126_s30, %s3877_s30  }
   0x3   : > { %p33_p1 = scmp.ge.s32.totalorder %s31_s12, 2  ;;  %p327_p2 = scmp.lt.s32.totalorder %s2074_s11, 3 }
   0x5   : > { %s3880_s12 = smov (%p33_p1, %s31_s12), 0  ;;  %p328_p3 = pnand %p1925_p0, %p327_p2 }
   0x7   : > { %331 = sbr.rel (%p328_p3) target bundleno = 914 (0x392), region = 56 }
   0xc   : > { %p381_p4 = scmp.lt.s32.totalorder %s2066_s30, 1  ;;  %vm467_vm0 = vcmask 523264   ;;  %v870_v45 = vld [vmem:[%s3739_s3 + $0xf0] sm:$0xff]  ;;  %v868_v46 = vld [vmem:[%s3739_s3 + $0xe0] sm:$0xff]  ;;  %vm1793_vm1 = vcmask 15360  }
   0xd   : > { %v866_v47 = vld [vmem:[%s3739_s3 + $0xd0] sm:$0xff]  ;;  %v864_v50 = vld [vmem:[%s3739_s3 + $0xc0] sm:$0xff] }
   0xe   : > { %s3882_s30 = smov (!%p381_p4, %s2066_s30), 1  ;;  %v966_v49 = vld [vmem:[%s3739_s3 + $0x3f0] sm:$0xff]  ;;  %v860_v52 = vld [vmem:[%s3739_s3 + $0xa0] sm:$0xff] }
   0xf   : > { %s2000_s13 = sshll.u32 %s3882_s30, 8  ;;  %s1999_s17 = sshll.u32 %s3882_s30, 7  ;;  %v862_v51 = vld [vmem:[%s3739_s3 + $0xb0] sm:$0xff]  ;;  %v964_v55 = vld [vmem:[%s3739_s3 + $0x3e0] sm:$0xff] }
  0x10   : > { %s2150_s16 = scalar_lea.vmem %s3737_s1, %s2000_s13  ;;  %s2168_s20 = scalar_lea.vmem %s3736_s0, %s1999_s17  ;;  %v858_v53 = vld [vmem:[%s3739_s3 + $0x90] sm:$0xff]  ;;  %v856_v56 = vld [vmem:[%s3739_s3 + $0x80] sm:$0xff] }
  0x11   : > { %v453_v0 = vld [vmem:[%s2150_s16 + $0xe0] sm:$0xff]  ;;  %v454_v4 = vld [vmem:[%s2150_s16 + $0xe8] sm:$0xff]  ;;  %v456_v15 = vld [vmem:[%s2150_s16 + $0xf8] sm:$0xff]  ;;  %s3693_s18 = scalar_lea.vmem %s3745_s9, %s1999_s17 }
  0x12   : > { %v449_v1 = vld [vmem:[%s2150_s16 + $0xc0] sm:$0xff]  ;;  %524 = vmatpush.msra.mxu0 %v453_v0  ;;  %2002 = vmatpush.msra.mxu3 %v453_v0  ;;  %v450_v6 = vld [vmem:[%s2150_s16 + $0xc8] sm:$0xff]  ;;  %v452_v16 = vld [vmem:[%s2150_s16 + $0xd8] sm:$0xff] }
  0x13   : > { %v445_v2 = vld [vmem:[%s2150_s16 + $0xa0] sm:$0xff]  ;;  %2010 = vmatpush.msra.mxu1 %v454_v4  ;;  %v446_v8 = vld [vmem:[%s2150_s16 + $0xa8] sm:$0xff]  ;;  %v448_v18 = vld [vmem:[%s2150_s16 + $0xb8] sm:$0xff] }
  0x14   : > { %525 = vmatpush.msra.mxu0 %v449_v1  ;;  %2003 = vmatpush.msra.mxu3 %v449_v1  ;;  %v441_v3 = vld [vmem:[%s2150_s16 + $0x80] sm:$0xff]  ;;  %v442_v10 = vld [vmem:[%s2150_s16 + $0x88] sm:$0xff]  ;;  %v444_v20 = vld [vmem:[%s2150_s16 + $0x98] sm:$0xff] }
  0x15   : > { %v437_v5 = vld [vmem:[%s2150_s16 + $0x60] sm:$0xff]  ;;  %2011 = vmatpush.msra.mxu1 %v450_v6  ;;  %v438_v14 = vld [vmem:[%s2150_s16 + $0x68] sm:$0xff]  ;;  %v2203_v24 = vld [vmem:[%s2168_s20 + $0x10] sm:$0xff] }
  0x16   : > { %526 = vmatpush.msra.mxu0 %v445_v2  ;;  %2004 = vmatpush.msra.mxu3 %v445_v2  ;;  %v433_v7 = vld [vmem:[%s2150_s16 + $0x40] sm:$0xff]  ;;  %v434_v17 = vld [vmem:[%s2150_s16 + $0x48] sm:$0xff]  ;;  %v2206_v25 = vld [vmem:[%s2168_s20 + $0x30] sm:$0xff] }
  0x17   : > { %v429_v9 = vld [vmem:[%s2150_s16 + $0x20] sm:$0xff]  ;;  %2012 = vmatpush.msra.mxu1 %v446_v8  ;;  %v430_v19 = vld [vmem:[%s2150_s16 + $0x28] sm:$0xff]  ;;  %v440_v26 = vld [vmem:[%s2150_s16 + $0x78] sm:$0xff] }
  0x18   : > { %527 = vmatpush.msra.mxu0 %v441_v3  ;;  %2005 = vmatpush.msra.mxu3 %v441_v3  ;;  %v425_v11 = vld [vmem:[%s2150_s16] sm:$0xff]  ;;  %v2190_v21 = vld [vmem:[%s2168_s20 + $0x8] sm:$0xff]  ;;  %v455_v27 = vld [vmem:[%s2150_s16 + $0xf0] sm:$0xff] }
  0x19   : > { %2013 = vmatpush.msra.mxu1 %v442_v10  ;;  %v2173_v12 = vld [vmem:[%s2168_s20] sm:$0xff]  ;;  %v2193_v22 = vld [vmem:[%s2168_s20 + $0x28] sm:$0xff]  ;;  %v451_v28 = vld [vmem:[%s2150_s16 + $0xd0] sm:$0xff]  ;;  %2018 = vmatpush.msra.mxu2 %v455_v27 }
  0x1a   : > { %528 = vmatpush.msra.mxu0 %v437_v5  ;;  %2006 = vmatpush.msra.mxu3 %v437_v5  ;;  %v2176_v13 = vld [vmem:[%s2168_s20 + $0x20] sm:$0xff]  ;;  %v426_v23 = vld [vmem:[%s2150_s16 + $0x8] sm:$0xff]  ;;  %v447_v29 = vld [vmem:[%s2150_s16 + $0xb0] sm:$0xff] }
  0x1b   : > { %2014 = vmatpush.msra.mxu1 %v438_v14  ;;  %v443_v30 = vld [vmem:[%s2150_s16 + $0x90] sm:$0xff]  ;;  %2019 = vmatpush.msra.mxu2 %v451_v28  ;;  %v2220_v31 = vld [vmem:[%s2168_s20 + $0x18] sm:$0xff]  ;;  %v2237_v38 = vld [vmem:[%s2168_s20 + $0x40] sm:$0xff] }
  0x1c   : > { %529 = vmatpush.msra.mxu0 %v433_v7  ;;  %2007 = vmatpush.msra.mxu3 %v433_v7  ;;  %v2223_v32 = vld [vmem:[%s2168_s20 + $0x38] sm:$0xff]  ;;  %v439_v33 = vld [vmem:[%s2150_s16 + $0x70] sm:$0xff]  ;;  %v2248_v39 = vld [vmem:[%s2168_s20 + $0x48] sm:$0xff] }
  0x1d   : > { %2015 = vmatpush.msra.mxu1 %v434_v17  ;;  %2020 = vmatpush.msra.mxu2 %v447_v29  ;;  %v435_v34 = vld [vmem:[%s2150_s16 + $0x50] sm:$0xff]  ;;  %v436_v35 = vld [vmem:[%s2150_s16 + $0x58] sm:$0xff]  ;;  %v2283_v44 = vld [vmem:[%s2168_s20 + $0x60] sm:$0xff] }
  0x1e   : > { %530 = vmatpush.msra.mxu0 %v429_v9  ;;  %2008 = vmatpush.msra.mxu3 %v429_v9  ;;  %v431_v36 = vld [vmem:[%s2150_s16 + $0x30] sm:$0xff]  ;;  %v432_v40 = vld [vmem:[%s2150_s16 + $0x38] sm:$0xff]  ;;  %v2303_v48 = vld [vmem:[%s2168_s20 + $0x68] sm:$0xff] }
  0x1f   : > { %2016 = vmatpush.msra.mxu1 %v430_v19  ;;  %2021 = vmatpush.msra.mxu2 %v443_v30  ;;  %v427_v37 = vld [vmem:[%s2150_s16 + $0x10] sm:$0xff]  ;;  %v428_v42 = vld [vmem:[%s2150_s16 + $0x18] sm:$0xff]  ;;  %v852_v58 = vld [vmem:[%s3739_s3 + $0x60] sm:$0xff] }
  0x20   : > { %531 = vmatpush.msra.mxu0 %v425_v11  ;;  %2009 = vmatpush.msra.mxu3 %v425_v11  ;;  %v2260_v41 = vld [vmem:[%s2168_s20 + $0x50] sm:$0xff]  ;;  %v2272_v43 = vld [vmem:[%s2168_s20 + $0x58] sm:$0xff]  ;;  %v848_v62 = vld [vmem:[%s3739_s3 + $0x40] sm:$0xff] }
  0x21   : > { %1933 = vmatmul.msk.f32.vlgmr.msra.gmra.mxu0 %vm467_vm0, %v2173_v12  ;;  %1937 = vmatmul.msk.f32.vlgmr.msra.gmra.mxu3 %vm467_vm0, %v2176_v13  ;;  %v2329_v54 = vld [vmem:[%s2168_s20 + $0x70] sm:$0xff]  ;;  %v2355_v60 = vld [vmem:[%s2168_s20 + $0x78] sm:$0xff]  ;;  %v844_v0 = vld [vmem:[%s3739_s3 + $0x20] sm:$0xff]  ;;  %s1930_s20 = sshll.u32 %s3882_s30, 2 }
  0x22   : > { %719 = vmatpush.msrb.mxu3 %v456_v15  ;;  %589 = vmatpush.msrb.mxu0 %v454_v4  ;;  %v854_v57 = vld [vmem:[%s3739_s3 + $0x70] sm:$0xff]  ;;  %v960_v2 = vld [vmem:[%s3739_s3 + $0x3c0] sm:$0xff]  ;;  %s398_s29 = scalar_lea.vmem %s3738_s2, %s1930_s20 }
  0x23   : > { %2017 = vmatpush.msra.mxu1 %v426_v23  ;;  %2022 = vmatpush.msra.mxu2 %v439_v33  ;;  %v850_v59 = vld [vmem:[%s3739_s3 + $0x50] sm:$0xff]  ;;  %v840_v3 = vld [vmem:[%s3739_s3] sm:$0xff] }
  0x24   : > { %720 = vmatpush.msrb.mxu3 %v452_v16  ;;  %590 = vmatpush.msrb.mxu0 %v450_v6  ;;  %v962_v61 = vld [vmem:[%s3739_s3 + $0x3d0] sm:$0xff]  ;;  %v900_v5 = vld [vmem:[%s3739_s3 + $0x1e0] sm:$0xff] }
  0x25   : > { %1953 = vmatmul.msk.f32.vlgmr.msra.gmra.mxu1 %vm467_vm0, %v2176_v13  ;;  %2023 = vmatpush.msra.mxu2 %v435_v34  ;;  %v846_v63 = vld [vmem:[%s3739_s3 + $0x30] sm:$0xff]  ;;  %v896_v9 = vld [vmem:[%s3739_s3 + $0x1c0] sm:$0xff] }
  0x26   : > { %591 = vmatpush.msrb.mxu0 %v446_v8  ;;  %721 = vmatpush.msrb.mxu3 %v448_v18  ;;  %v842_v1 = vld [vmem:[%s3739_s3 + $0x10] sm:$0xff]  ;;  %v932_v11 = vld [vmem:[%s3739_s3 + $0x2e0] sm:$0xff] }
  0x27   : > { %2024 = vmatpush.msra.mxu2 %v431_v36  ;;  %v902_v4 = vld [vmem:[%s3739_s3 + $0x1f0] sm:$0xff]  ;;  %v956_v15 = vld [vmem:[%s3739_s3 + $0x3a0] sm:$0xff] }
  0x28   : > { %592 = vmatpush.msrb.mxu0 %v442_v10  ;;  %722 = vmatpush.msrb.mxu3 %v444_v20  ;;  %v934_v6 = vld [vmem:[%s3739_s3 + $0x2f0] sm:$0xff]  ;;  %v888_v16 = vld [vmem:[%s3739_s3 + $0x180] sm:$0xff] }
  0x29   : > { %1934 = vmatmul.msk.f32.gmra.mxu0 %vm467_vm0, %v2190_v21  ;;  %1938 = vmatmul.msk.f32.gmra.mxu3 %vm467_vm0, %v2193_v22  ;;  %v898_v7 = vld [vmem:[%s3739_s3 + $0x1d0] sm:$0xff] }
  0x2a   : > { %593 = vmatpush.msrb.mxu0 %v438_v14  ;;  %723 = vmatpush.msrb.mxu3 %v440_v26  ;;  %v958_v8 = vld [vmem:[%s3739_s3 + $0x3b0] sm:$0xff]  ;;  %v880_v26 = vld [vmem:[%s3739_s3 + $0x140] sm:$0xff] }
  0x2b   : > { %2025 = vmatpush.msra.mxu2 %v427_v37  ;;  %1039 = vmatpush.msrb.mxu1 %v902_v4  ;;  %v894_v10 = vld [vmem:[%s3739_s3 + $0x1b0] sm:$0xff]  ;;  %v908_v4 = vld [vmem:[%s3739_s3 + $0x220] sm:$0xff] }
  0x2c   : > { %594 = vmatpush.msrb.mxu0 %v434_v17  ;;  %724 = vmatpush.msrb.mxu3 %v436_v35  ;;  %v890_v14 = vld [vmem:[%s3739_s3 + $0x190] sm:$0xff] }
  0x2d   : > { %1954 = vmatmul.msk.f32.gmra.mxu1 %vm467_vm0, %v2193_v22  ;;  %1969 = vmatmul.msk.f32.vlgmr.msra.gmra.mxu2 %vm467_vm0, %v2176_v13  ;;  %v930_v17 = vld [vmem:[%s3739_s3 + $0x2d0] sm:$0xff] }
  0x2e   : > { %595 = vmatpush.msrb.mxu0 %v430_v19  ;;  %725 = vmatpush.msrb.mxu3 %v432_v40  ;;  %v886_v18 = vld [vmem:[%s3739_s3 + $0x170] sm:$0xff]  ;;  %v884_v19 = vld [vmem:[%s3739_s3 + $0x160] sm:$0xff] }
  0x2f   : > { %1040 = vmatpush.msrb.mxu1 %v900_v5  ;;  %1104 = vmatpush.msrb.mxu2 %v934_v6  ;;  %v882_v20 = vld [vmem:[%s3739_s3 + $0x150] sm:$0xff]  ;;  %v924_v40 = vld [vmem:[%s3739_s3 + $0x2a0] sm:$0xff] }
  0x30   : > { %596 = vmatpush.msrb.mxu0 %v426_v23  ;;  %726 = vmatpush.msrb.mxu3 %v428_v42  ;;  %v928_v23 = vld [vmem:[%s3739_s3 + $0x2c0] sm:$0xff]  ;;  %v926_v35 = vld [vmem:[%s3739_s3 + $0x2b0] sm:$0xff] }
  0x31   : > { %1935 = vmatmul.msk.f32.gmra.mxu0 %vm467_vm0, %v2203_v24  ;;  %1939 = vmatmul.msk.f32.gmra.mxu3 %vm467_vm0, %v2206_v25 }
  0x32   : > { %654 = vmatpush.msra.mxu0 %v455_v27  ;;  %1169 = vmatpush.msra.mxu3 %v966_v49  ;;  %v922_v49 = vld [vmem:[%s3739_s3 + $0x290] sm:$0xff] }
  0x33   : > { %1041 = vmatpush.msrb.mxu1 %v898_v7  ;;  %1105 = vmatpush.msrb.mxu2 %v932_v11  ;;  %v906_v7 = vld [vmem:[%s3739_s3 + $0x210] sm:$0xff]  ;;  %v904_v11 = vld [vmem:[%s3739_s3 + $0x200] sm:$0xff] }
  0x34   : > { %655 = vmatpush.msra.mxu0 %v451_v28  ;;  %1170 = vmatpush.msra.mxu3 %v964_v55  ;;  %v878_v28 = vld [vmem:[%s3739_s3 + $0x130] sm:$0xff]  ;;  %v948_v55 = vld [vmem:[%s3739_s3 + $0x360] sm:$0xff] }
  0x35   : > { %1955 = vmatmul.msk.f32.gmra.mxu1 %vm467_vm0, %v2206_v25  ;;  %1970 = vmatmul.msk.f32.gmra.mxu2 %vm467_vm0, %v2193_v22 }
  0x36   : > { %656 = vmatpush.msra.mxu0 %v447_v29  ;;  %1171 = vmatpush.msra.mxu3 %v962_v61  ;;  %v876_v29 = vld [vmem:[%s3739_s3 + $0x120] sm:$0xff]  ;;  %v914_v61 = vld [vmem:[%s3739_s3 + $0x250] sm:$0xff] }
  0x37   : > { %1042 = vmatpush.msrb.mxu1 %v896_v9  ;;  %1106 = vmatpush.msrb.mxu2 %v930_v17 }
  0x38   : > { %657 = vmatpush.msra.mxu0 %v443_v30  ;;  %1172 = vmatpush.msra.mxu3 %v960_v2 }
  0x39   : > { %1936 = vmatmul.msk.f32.gmra.mxu0 %vm467_vm0, %v2220_v31  ;;  %1940 = vmatmul.msk.f32.gmra.mxu3 %vm467_vm0, %v2223_v32 }
  0x3a   : > { %658 = vmatpush.msra.mxu0 %v439_v33  ;;  %1173 = vmatpush.msra.mxu3 %v958_v8  ;;  %v874_v33 = vld [vmem:[%s3739_s3 + $0x110] sm:$0xff] }
  0x3b   : > { %1043 = vmatpush.msrb.mxu1 %v894_v10  ;;  %1107 = vmatpush.msrb.mxu2 %v928_v23  ;;  %v944_v10 = vld [vmem:[%s3739_s3 + $0x340] sm:$0xff] }
  0x3c   : > { %659 = vmatpush.msra.mxu0 %v435_v34  ;;  %1174 = vmatpush.msra.mxu3 %v956_v15 }
  0x3d   : > { %1956 = vmatmul.msk.f32.gmra.mxu1 %vm467_vm0, %v2223_v32  ;;  %1971 = vmatmul.msk.f32.gmra.mxu2 %vm467_vm0, %v2206_v25 }
  0x3e   : > { %660 = vmatpush.msra.mxu0 %v431_v36  ;;  %v952_v36 = vld [vmem:[%s3739_s3 + $0x380] sm:$0xff]  ;;  %1108 = vmatpush.msrb.mxu2 %v926_v35 }
  0x40   : > { %661 = vmatpush.msra.mxu0 %v427_v37  ;;  %v872_v37 = vld [vmem:[%s3739_s3 + $0x100] sm:$0xff]  ;;  %1109 = vmatpush.msrb.mxu2 %v924_v40 }
  0x41   : > { %1941 = vmatmul.msk.f32.gmra.mxu3 %vm467_vm0, %v2237_v38  ;;  %1949 = vmatmul.msk.f32.vlgmr.msrb.gmra.mxu0 %vm467_vm0, %v2173_v12 }
  0x42   : > { %974 = vmatpush.msrb.mxu0 %v870_v45  ;;  %1110 = vmatpush.msrb.mxu2 %v922_v49 }
  0x44   : > { %975 = vmatpush.msrb.mxu0 %v868_v46 }
  0x45   : > { %1957 = vmatmul.msk.f32.gmra.mxu1 %vm467_vm0, %v2237_v38  ;;  %1972 = vmatmul.msk.f32.gmra.mxu2 %vm467_vm0, %v2223_v32 }
  0x46   : > { %976 = vmatpush.msrb.mxu0 %v866_v47  ;;  %v950_v47 = vld [vmem:[%s3739_s3 + $0x370] sm:$0xff] }
  0x48   : > { %977 = vmatpush.msrb.mxu0 %v864_v50 }
  0x49   : > { %1942 = vmatmul.msk.f32.gmra.mxu3 %vm467_vm0, %v2248_v39  ;;  %1950 = vmatmul.msk.f32.gmra.mxu0 %vm467_vm0, %v2190_v21 }
  0x4a   : > { %978 = vmatpush.msrb.mxu0 %v862_v51 }
  0x4c   : > { %979 = vmatpush.msrb.mxu0 %v860_v52 }
  0x4d   : > { %1958 = vmatmul.msk.f32.gmra.mxu1 %vm467_vm0, %v2248_v39  ;;  %1973 = vmatmul.msk.f32.gmra.mxu2 %vm467_vm0, %v2237_v38 }
  0x4e   : > { %980 = vmatpush.msrb.mxu0 %v858_v53  ;;  %v920_v53 = vld [vmem:[%s3739_s3 + $0x280] sm:$0xff] }
  0x4f   : > { %1111 = vmatpush.msrb.mxu2 %v920_v53 }
  0x50   : > { %981 = vmatpush.msrb.mxu0 %v856_v56  ;;  %v918_v56 = vld [vmem:[%s3739_s3 + $0x270] sm:$0xff] }
  0x51   : > { %1943 = vmatmul.msk.f32.gmra.mxu3 %vm467_vm0, %v2260_v41  ;;  %1951 = vmatmul.msk.f32.gmra.mxu0 %vm467_vm0, %v2203_v24 }
  0x52   : > { %982 = vmatpush.msrb.mxu0 %v854_v57  ;;  %1112 = vmatpush.msrb.mxu2 %v918_v56  ;;  %v916_v57 = vld [vmem:[%s3739_s3 + $0x260] sm:$0xff] }
  0x53   : > { %v936_v56 = vld [vmem:[%s3739_s3 + $0x300] sm:$0xff] }
  0x54   : > { %983 = vmatpush.msrb.mxu0 %v852_v58  ;;  %1113 = vmatpush.msrb.mxu2 %v916_v57 }
  0x55   : > { %1959 = vmatmul.msk.f32.gmra.mxu1 %vm467_vm0, %v2260_v41  ;;  %1974 = vmatmul.msk.f32.gmra.mxu2 %vm467_vm0, %v2248_v39 }
  0x56   : > { %984 = vmatpush.msrb.mxu0 %v850_v59  ;;  %1114 = vmatpush.msrb.mxu2 %v914_v61 }
  0x58   : > { %985 = vmatpush.msrb.mxu0 %v848_v62 }
  0x59   : > { %1944 = vmatmul.msk.f32.gmra.mxu3 %vm467_vm0, %v2272_v43  ;;  %1952 = vmatmul.msk.f32.gmra.mxu0 %vm467_vm0, %v2220_v31 }
  0x5a   : > { %986 = vmatpush.msrb.mxu0 %v846_v63  ;;  %v946_v63 = vld [vmem:[%s3739_s3 + $0x350] sm:$0xff] }
  0x5c   : > { %987 = vmatpush.msrb.mxu0 %v844_v0  ;;  %v912_v0 = vld [vmem:[%s3739_s3 + $0x240] sm:$0xff] }
  0x5d   : > { %1960 = vmatmul.msk.f32.gmra.mxu1 %vm467_vm0, %v2272_v43  ;;  %1975 = vmatmul.msk.f32.gmra.mxu2 %vm467_vm0, %v2260_v41 }
  0x5e   : > { %988 = vmatpush.msrb.mxu0 %v842_v1  ;;  %1115 = vmatpush.msrb.mxu2 %v912_v0 }
  0x60   : > { %989 = vmatpush.msrb.mxu0 %v840_v3 }
  0x61   : > { %1945 = vmatmul.msk.f32.gmra.mxu3 %vm467_vm0, %v2283_v44  ;;  %1965 = vmatmul.msk.f32.vlgmr.msra.gmra.mxu0 %vm467_vm0, %v2173_v12 }
  0x65   : > { %1961 = vmatmul.msk.f32.gmra.mxu1 %vm467_vm0, %v2283_v44  ;;  %1976 = vmatmul.msk.f32.gmra.mxu2 %vm467_vm0, %v2272_v43 }
  0x69   : > { %1946 = vmatmul.msk.f32.gmra.mxu3 %vm467_vm0, %v2303_v48  ;;  %1966 = vmatmul.msk.f32.gmra.mxu0 %vm467_vm0, %v2190_v21 }
  0x6d   : > { %1962 = vmatmul.msk.f32.gmra.mxu1 %vm467_vm0, %v2303_v48  ;;  %1977 = vmatmul.msk.f32.gmra.mxu2 %vm467_vm0, %v2283_v44 }
  0x71   : > { %1947 = vmatmul.msk.f32.gmra.mxu3 %vm467_vm0, %v2329_v54  ;;  %1967 = vmatmul.msk.f32.gmra.mxu0 %vm467_vm0, %v2203_v24 }
  0x75   : > { %1963 = vmatmul.msk.f32.gmra.mxu1 %vm467_vm0, %v2329_v54  ;;  %1978 = vmatmul.msk.f32.gmra.mxu2 %vm467_vm0, %v2303_v48 }
  0x79   : > { %1948 = vmatmul.msk.f32.gmra.mxu3 %vm467_vm0, %v2355_v60  ;;  %1968 = vmatmul.msk.f32.gmra.mxu0 %vm467_vm0, %v2220_v31 }
  0x7d   : > { %1964 = vmatmul.msk.f32.gmra.mxu1 %vm467_vm0, %v2355_v60  ;;  %1979 = vmatmul.msk.f32.gmra.mxu2 %vm467_vm0, %v2329_v54 }
  0x81   : > { %1981 = vmatmul.msk.f32.vlgmr.msrb.gmra.mxu3 %vm467_vm0, %v2173_v12  ;;  %v892_v12 = vld [vmem:[%s3739_s3 + $0x1a0] sm:$0xff] }
  0x82   : > { %1044 = vmatpush.msrb.mxu1 %v892_v12 }
  0x84   : > { %1045 = vmatpush.msrb.mxu1 %v890_v14 }
  0x85   : > { %1980 = vmatmul.msk.f32.gmra.mxu2 %vm467_vm0, %v2355_v60 }
  0x86   : > { %1046 = vmatpush.msrb.mxu1 %v888_v16 }
  0x88   : > { %1047 = vmatpush.msrb.mxu1 %v886_v18 }
  0x89   : > { %1982 = vmatmul.msk.f32.gmra.mxu3 %vm467_vm0, %v2190_v21  ;;  %v2452_v21 = vld [vmem:[%s398_s29] sm:$0xf] }
  0x8a   : > { %1048 = vmatpush.msrb.mxu1 %v884_v19  ;;  %v2466_v27 = vperm.slane %v2452_v21, 0  ;;  %v2551_v1 = vperm.slane %v2452_v21, 1  ;;  %v942_v19 = vld [vmem:[%s3739_s3 + $0x330] sm:$0xff] }
  0x8c   : > { %1049 = vmatpush.msrb.mxu1 %v882_v20 }
  0x8e   : > { %1050 = vmatpush.msrb.mxu1 %v880_v26 }
  0x90   : > { %1051 = vmatpush.msrb.mxu1 %v878_v28 }
  0x91   : > { %1983 = vmatmul.msk.f32.gmra.mxu3 %vm467_vm0, %v2203_v24  ;;  %v954_v24 = vld [vmem:[%s3739_s3 + $0x390] sm:$0xff] }
  0x92   : > { %1175 = vmatpush.msra.mxu3 %v954_v24  ;;  %1052 = vmatpush.msrb.mxu1 %v876_v29 }
  0x94   : > { %1053 = vmatpush.msrb.mxu1 %v874_v33  ;;  %1176 = vmatpush.msra.mxu3 %v952_v36 }
  0x96   : > { %1054 = vmatpush.msrb.mxu1 %v872_v37  ;;  %1177 = vmatpush.msra.mxu3 %v950_v47 }
  0x98   : > { %1178 = vmatpush.msra.mxu3 %v948_v55 }
  0x99   : > { %1984 = vmatmul.msk.f32.gmra.mxu3 %vm467_vm0, %v2220_v31 }
  0x9a   : > { %1179 = vmatpush.msra.mxu3 %v946_v63 }
  0x9c   : > { %1180 = vmatpush.msra.mxu3 %v944_v10  ;;  %v935_v10 = vld [vmem:[%s3739_s3 + $0x2f8] sm:$0xff] }
  0x9e   : > { %v533_v30 = vpop.f32.mrf.mxu0  ;;  %1181 = vmatpush.msra.mxu3 %v942_v19  ;;  %v865_v19 = vld [vmem:[%s3739_s3 + $0xc8] sm:$0xff] }
  0x9f   : > { %v2477_v31 = vadd.f32 %v533_v30, %v2466_v27  ;;  %v940_v30 = vld [vmem:[%s3739_s3 + $0x320] sm:$0xff] }
  0xa0   : > { %1182 = vmatpush.msra.mxu3 %v940_v30  ;;  %v863_v30 = vld [vmem:[%s3739_s3 + $0xb8] sm:$0xff] }
  0xa1   : > { %v776_v34 = vmax.f32 %v2477_v31, 0.0  ;;  %1985 = vmatmul.msk.f32.gmra.mxu3 %vm467_vm0, %v2176_v13 }
  0xa2   : > { %v610_v12 = vpop.f32.mrf.mxu1 }
  0xa3   : > { %990 = vmatmul.f32.vlgmr.msrb.gmra.mxu0 %v776_v34  ;;  %v2634_v47 = vadd.f32 %v610_v12, %v2551_v1 }
  0xa4   : > { %v545_v13 = vpop.f32.mrf.mxu3 }
  0xa5   : > { %v2557_v3 = vadd.f32 %v545_v13, %v2466_v27  ;;  %v3763_v55 = vmax.f32 %v2634_v47, 0.0 }
  0xa6   : > { %v536_v42 = vpop.f32.mrf.mxu0 }
  0xa7   : > { %v2500_v45 = vadd.f32 %v536_v42, %v2466_v27  ;;  %v792_v9 = vmax.f32 %v2557_v3, 0.0  ;;  %v938_v42 = vld [vmem:[%s3739_s3 + $0x310] sm:$0xff] }
  0xa8   : > { %1183 = vmatpush.msra.mxu3 %v938_v42 }
  0xa9   : > { %1986 = vmatmul.msk.f32.gmra.mxu3 %vm467_vm0, %v2193_v22  ;;  %v780_v46 = vmax.f32 %v2500_v45, 0.0  ;;  %v917_v45 = vld [vmem:[%s3739_s3 + $0x268] sm:$0xff] }
  0xaa   : > { %v613_v23 = vpop.f32.mrf.mxu1  ;;  %1184 = vmatpush.msra.mxu3 %v936_v56 }
  0xab   : > { %993 = vmatmul.f32.gmra.mxu0 %v780_v46  ;;  %v2660_v61 = vadd.f32 %v613_v23, %v2551_v1 }
  0xac   : > { %v548_v50 = vpop.f32.mrf.mxu3 }
  0xad   : > { %v2583_v14 = vadd.f32 %v548_v50, %v2466_v27 }
  0xae   : > { %v539_v51 = vpop.f32.mrf.mxu0 }
  0xaf   : > { %v2514_v52 = vadd.f32 %v539_v51, %v2466_v27  ;;  %v3785_v17 = vmax.f32 %v2583_v14, 0.0 }
  0xb0   : > { %v2662_v63 = vpop.f32.mrf.mxu2 }
  0xb1   : > { %1987 = vmatmul.msk.f32.gmra.mxu3 %vm467_vm0, %v2206_v25  ;;  %v784_v22 = vmax.f32 %v2514_v52, 0.0 }
  0xb2   : > { %v616_v36 = vpop.f32.mrf.mxu1 }
  0xb3   : > { %996 = vmatmul.f32.gmra.mxu0 %v784_v22 }
  0xb4   : > { %v551_v25 = vpop.f32.mrf.mxu3 }
  0xb5   : > { %v2600_v24 = vadd.f32 %v551_v25, %v2466_v27 }
  0xb6   : > { %v542_v58 = vpop.f32.mrf.mxu0 }
  0xb7   : > { %v2534_v59 = vadd.f32 %v542_v58, %v2466_v27  ;;  %v3776_v28 = vmax.f32 %v2600_v24, 0.0 }
  0xb8   : > { %v2717_v42 = vpop.f32.mrf.mxu2 }
  0xb9   : > { %1988 = vmatmul.msk.f32.gmra.mxu3 %vm467_vm0, %v2223_v32  ;;  %v788_v62 = vmax.f32 %v2534_v59, 0.0  ;;  %v910_v32 = vld [vmem:[%s3739_s3 + $0x230] sm:$0xff]  ;;  %v909_v59 = vld [vmem:[%s3739_s3 + $0x228] sm:$0xff] }
  0xba   : > { %1116 = vmatpush.msrb.mxu2 %v910_v32  ;;  %v619_v25 = vpop.f32.mrf.mxu1 }
  0xbb   : > { %999 = vmatmul.f32.gmra.mxu0 %v788_v62 }
  0xbc   : > { %v554_v2 = vpop.f32.mrf.mxu3  ;;  %1117 = vmatpush.msrb.mxu2 %v908_v4  ;;  %v869_v4 = vld [vmem:[%s3739_s3 + $0xe8] sm:$0xff] }
  0xbd   : > { %v2617_v35 = vadd.f32 %v554_v2, %v2466_v27 }
  0xbe   : > { %v598_v5 = vpop.f32.mrf.mxu0  ;;  %1118 = vmatpush.msrb.mxu2 %v906_v7  ;;  %v3753_v7 = vmax.f32 %v2660_v61, 0.0 }
  0xbf   : > { %v2563_v6 = vadd.f32 %v598_v5, %v2551_v1  ;;  %v3770_v13 = vmax.f32 %v2617_v35, 0.0 }
  0xc0   : > { %1119 = vmatpush.msrb.mxu2 %v904_v11  ;;  %v867_v11 = vld [vmem:[%s3739_s3 + $0xd8] sm:$0xff] }
  0xc1   : > { %v777_v8 = vmax.f32 %v2563_v6, 0.0  ;;  %1989 = vmatmul.msk.f32.gmra.mxu3 %vm467_vm0, %v2237_v38 }
  0xc2   : > { %1364 = vmatpush.msra.mxu2 %v935_v10 }
  0xc3   : > { %1002 = vmatmul.f32.gmra.mxu0 %v792_v9  ;;  %1055 = vmatmul.f32.vlgmr.msrb.gmra.mxu1 %v777_v8 }
  0xc4   : > { %v557_v38 = vpop.f32.mrf.mxu3 }
  0xc5   : > { %v2642_v50 = vadd.f32 %v557_v38, %v2466_v27 }
  0xc6   : > { %v601_v15 = vpop.f32.mrf.mxu0 }
  0xc7   : > { %v2586_v16 = vadd.f32 %v601_v15, %v2551_v1  ;;  %v3764_v58 = vmax.f32 %v2642_v50, 0.0  ;;  %v967_v15 = vld [vmem:[%s3739_s3 + $0x3f8] sm:$0xff] }
  0xc8   : > { %1429 = vmatpush.msrb.mxu3 %v967_v15  ;;  %v857_v15 = vld [vmem:[%s3739_s3 + $0x88] sm:$0xff] }
  0xc9   : > { %1990 = vmatmul.msk.f32.gmra.mxu3 %vm467_vm0, %v2248_v39  ;;  %v3781_v18 = vmax.f32 %v2586_v16, 0.0 }
  0xcb   : > { %1005 = vmatmul.f32.gmra.mxu0 %v3785_v17  ;;  %1058 = vmatmul.f32.gmra.mxu1 %v3781_v18 }
  0xcc   : > { %v560_v20 = vpop.f32.mrf.mxu3 }
  0xcd   : > { %v2672_v32 = vadd.f32 %v560_v20, %v2466_v27  ;;  %v622_v20 = vpop.f32.mrf.mxu1 }
  0xce   : > { %v604_v39 = vpop.f32.mrf.mxu0 }
  0xcf   : > { %v2603_v26 = vadd.f32 %v604_v39, %v2551_v1  ;;  %v3757_v12 = vmax.f32 %v2672_v32, 0.0  ;;  %v903_v39 = vld [vmem:[%s3739_s3 + $0x1f8] sm:$0xff] }
  0xd0   : > { %1299 = vmatpush.msra.mxu1 %v903_v39 }
  0xd1   : > { %1991 = vmatmul.msk.f32.gmra.mxu3 %vm467_vm0, %v2260_v41  ;;  %v3772_v29 = vmax.f32 %v2603_v26, 0.0 }
  0xd3   : > { %1008 = vmatmul.f32.gmra.mxu0 %v3776_v28  ;;  %1061 = vmatmul.f32.gmra.mxu1 %v3772_v29  ;;  %v873_v28 = vld [vmem:[%s3739_s3 + $0x108] sm:$0xff] }
  0xd4   : > { %v563_v33 = vpop.f32.mrf.mxu3 }
  0xd5   : > { %v625_v39 = vpop.f32.mrf.mxu1 }
  0xd6   : > { %v607_v41 = vpop.f32.mrf.mxu0 }
  0xd7   : > { %v2620_v37 = vadd.f32 %v607_v41, %v2551_v1  ;;  %v2715_v41 = vadd.f32 %v563_v33, %v2466_v27  ;;  %v859_v33 = vld [vmem:[%s3739_s3 + $0x98] sm:$0xff] }
  0xd9   : > { %1992 = vmatmul.msk.f32.gmra.mxu3 %vm467_vm0, %v2272_v43  ;;  %v3769_v40 = vmax.f32 %v2620_v37, 0.0  ;;  %v2637_v43 = vperm.slane %v2452_v21, 2 }
  0xdb   : > { %1011 = vmatmul.f32.gmra.mxu0 %v3770_v13  ;;  %1064 = vmatmul.f32.gmra.mxu1 %v3769_v40  ;;  %v923_v40 = vld [vmem:[%s3739_s3 + $0x298] sm:$0xff]  ;;  %v881_v13 = vld [vmem:[%s3739_s3 + $0x148] sm:$0xff] }
  0xdc   : > { %v2639_v49 = vpop.f32.mrf.mxu3 }
  0xde   : > { %v663_v51 = vpop.f32.mrf.mxu0 }
  0xdf   : > { %v2645_v53 = vadd.f32 %v663_v51, %v2637_v43  ;;  %v861_v51 = vld [vmem:[%s3739_s3 + $0xa8] sm:$0xff] }
  0xe1   : > { %v3762_v57 = vmax.f32 %v2645_v53, 0.0  ;;  %1993 = vmatmul.msk.f32.gmra.mxu3 %vm467_vm0, %v2283_v44  ;;  %v871_v44 = vld [vmem:[%s3739_s3 + $0xf8] sm:$0xff] }
  0xe2   : > { %1234 = vmatpush.msra.mxu0 %v871_v44 }
  0xe3   : > { %1014 = vmatmul.f32.gmra.mxu0 %v3764_v58  ;;  %1067 = vmatmul.f32.gmra.mxu1 %v3763_v55  ;;  %v889_v55 = vld [vmem:[%s3739_s3 + $0x188] sm:$0xff] }
  0xe4   : > { %1120 = vmatmul.f32.vlgmr.msrb.gmra.mxu2 %v3762_v57  ;;  %v2666_v0 = vpop.f32.mrf.mxu3  ;;  %1235 = vmatpush.msra.mxu0 %v869_v4  ;;  %v3751_v4 = vmax.f32 %v2715_v41, 0.0  ;;  %v925_v57 = vld [vmem:[%s3739_s3 + $0x2a8] sm:$0xff] }
  0xe6   : > { %v666_v2 = vpop.f32.mrf.mxu0  ;;  %1236 = vmatpush.msra.mxu0 %v867_v11  ;;  %v965_v11 = vld [vmem:[%s3739_s3 + $0x3e8] sm:$0xff] }
  0xe7   : > { %v2678_v5 = vadd.f32 %v666_v2, %v2637_v43  ;;  %v933_v2 = vld [vmem:[%s3739_s3 + $0x2e8] sm:$0xff]  ;;  %1430 = vmatpush.msrb.mxu3 %v965_v11 }
  0xe8   : > { %1237 = vmatpush.msra.mxu0 %v865_v19  ;;  %1365 = vmatpush.msra.mxu2 %v933_v2  ;;  %v853_v2 = vld [vmem:[%s3739_s3 + $0x68] sm:$0xff] }
  0xe9   : > { %1994 = vmatmul.msk.f32.gmra.mxu3 %vm467_vm0, %v2303_v48  ;;  %v3752_v38 = vmax.f32 %v2678_v5, 0.0  ;;  %v2702_v48 = vadd.f32 %v616_v36, %v2551_v1 }
  0xea   : > { %1238 = vmatpush.msra.mxu0 %v863_v30  ;;  %v901_v30 = vld [vmem:[%s3739_s3 + $0x1e8] sm:$0xff] }
  0xeb   : > { %1017 = vmatmul.f32.gmra.mxu0 %v3757_v12  ;;  %1070 = vmatmul.f32.gmra.mxu1 %v3753_v7  ;;  %v3747_v44 = vmax.f32 %v2702_v48, 0.0  ;;  %v841_v7 = vld [vmem:[%s3739_s3 + $0x8] sm:$0xff] }
  0xec   : > { %1123 = vmatmul.f32.gmra.mxu2 %v3752_v38  ;;  %v2706_v23 = vpop.f32.mrf.mxu3  ;;  %1239 = vmatpush.msra.mxu0 %v861_v51  ;;  %v2761_v51 = vadd.f32 %v2639_v49, %v2466_v27  ;;  %v851_v49 = vld [vmem:[%s3739_s3 + $0x58] sm:$0xff]  ;;  %v961_v38 = vld [vmem:[%s3739_s3 + $0x3c8] sm:$0xff] }
  0xed   : > { %1300 = vmatpush.msra.mxu1 %v901_v30 }
  0xee   : > { %v669_v36 = vpop.f32.mrf.mxu0  ;;  %1240 = vmatpush.msra.mxu0 %v859_v33  ;;  %v3750_v30 = vmax.f32 %v2761_v51, 0.0 }
  0xef   : > { %v2723_v56 = vadd.f32 %v669_v36, %v2637_v43  ;;  %v855_v36 = vld [vmem:[%s3739_s3 + $0x78] sm:$0xff] }
  0xf0   : > { %1241 = vmatpush.msra.mxu0 %v857_v15  ;;  %v2770_v15 = vpop.f32.mrf.mxu2 }
  0xf1   : > { %1995 = vmatmul.msk.f32.gmra.mxu3 %vm467_vm0, %v2329_v54  ;;  %v3746_v10 = vmax.f32 %v2723_v56, 0.0  ;;  %v2747_v54 = vadd.f32 %v619_v25, %v2551_v1 }
  0xf2   : > { %1242 = vmatpush.msra.mxu0 %v855_v36 }
  0xf3   : > { %1020 = vmatmul.f32.gmra.mxu0 %v3751_v4  ;;  %1073 = vmatmul.f32.gmra.mxu1 %v3747_v44  ;;  %v3749_v11 = vmax.f32 %v2747_v54, 0.0  ;;  %v849_v44 = vld [vmem:[%s3739_s3 + $0x48] sm:$0xff] }
  0xf4   : > { %1126 = vmatmul.f32.gmra.mxu2 %v3746_v10  ;;  %v2751_v19 = vpop.f32.mrf.mxu3  ;;  %v931_v10 = vld [vmem:[%s3739_s3 + $0x2d8] sm:$0xff]  ;;  %1243 = vmatpush.msra.mxu0 %v853_v2  ;;  %v2801_v2 = vadd.f32 %v2662_v63, %v2637_v43  ;;  %v845_v63 = vld [vmem:[%s3739_s3 + $0x28] sm:$0xff] }
  0xf5   : > { %1366 = vmatpush.msra.mxu2 %v931_v10 }
  0xf6   : > { %v672_v25 = vpop.f32.mrf.mxu0  ;;  %1244 = vmatpush.msra.mxu0 %v851_v49  ;;  %v899_v49 = vld [vmem:[%s3739_s3 + $0x1d8] sm:$0xff] }
  0xf7   : > { %v2767_v33 = vadd.f32 %v672_v25, %v2637_v43  ;;  %v963_v25 = vld [vmem:[%s3739_s3 + $0x3d8] sm:$0xff]  ;;  %1301 = vmatpush.msra.mxu1 %v899_v49 }
  0xf8   : > { %1431 = vmatpush.msrb.mxu3 %v963_v25  ;;  %1245 = vmatpush.msra.mxu0 %v849_v44  ;;  %v847_v25 = vld [vmem:[%s3739_s3 + $0x38] sm:$0xff]  ;;  %v684_v4 = vpop.f32.mrf.mxu2 }
  0xf9   : > { %1996 = vmatmul.msk.f32.gmra.mxu3 %vm467_vm0, %v2355_v60  ;;  %v3748_v36 = vmax.f32 %v2767_v33, 0.0  ;;  %v2793_v60 = vadd.f32 %v622_v20, %v2551_v1  ;;  %v2811_v20 = vadd.f32 %v2666_v0, %v2466_v27  ;;  %v843_v0 = vld [vmem:[%s3739_s3 + $0x18] sm:$0xff] }
  0xfa   : > { %1246 = vmatpush.msra.mxu0 %v847_v25  ;;  %v2826_v25 = vperm.slane %v2452_v21, 3  ;;  %1432 = vmatpush.msrb.mxu3 %v961_v38  ;;  %v2839_v21 = vadd.f32 %v625_v39, %v2551_v1  ;;  %v897_v38 = vld [vmem:[%s3739_s3 + $0x1c8] sm:$0xff] }
  0xfb   : > { %1023 = vmatmul.f32.gmra.mxu0 %v3750_v30  ;;  %1076 = vmatmul.f32.gmra.mxu1 %v3749_v11  ;;  %v3755_v44 = vmax.f32 %v2793_v60, 0.0  ;;  %v929_v11 = vld [vmem:[%s3739_s3 + $0x2c8] sm:$0xff]  ;;  %v3754_v30 = vmax.f32 %v2801_v2, 0.0  ;;  %v3756_v49 = vmax.f32 %v2811_v20, 0.0 }
  0xfc   : > { %1129 = vmatmul.f32.gmra.mxu2 %v3748_v36  ;;  %v2797_v10 = vpop.f32.mrf.mxu3  ;;  %v628_v36 = vpop.f32.mrf.mxu1  ;;  %1247 = vmatpush.msra.mxu0 %v845_v63  ;;  %v2845_v63 = vadd.f32 %v2717_v42, %v2637_v43 }
  0xfd   : > { %1367 = vmatpush.msra.mxu2 %v929_v11  ;;  %1302 = vmatpush.msra.mxu1 %v897_v38 }
  0xfe   : > { %1248 = vmatpush.msra.mxu0 %v843_v0  ;;  %v2852_v0 = vadd.f32 %v2706_v23, %v2466_v27  ;;  %v3760_v42 = vmax.f32 %v2845_v63, 0.0  ;;  %v959_v23 = vld [vmem:[%s3739_s3 + $0x3b8] sm:$0xff] }
  0xff   : > { %1433 = vmatpush.msrb.mxu3 %v959_v23  ;;  %v895_v23 = vld [vmem:[%s3739_s3 + $0x1b8] sm:$0xff] }
 0x100   : > { %1249 = vmatpush.msra.mxu0 %v841_v7  ;;  %v927_v7 = vld [vmem:[%s3739_s3 + $0x2b8] sm:$0xff]  ;;  %v3759_v12 = vmax.f32 %v2852_v0, 0.0  ;;  %v687_v38 = vpop.f32.mrf.mxu2  ;;  %1303 = vmatpush.msra.mxu1 %v895_v23 }
 0x101   : > { %1368 = vmatpush.msra.mxu2 %v927_v7 }
 0x103   : > { %1026 = vmatmul.f32.gmra.mxu0 %v3756_v49  ;;  %1079 = vmatmul.f32.gmra.mxu1 %v3755_v44  ;;  %v3761_v44 = vmax.f32 %v2839_v21, 0.0 }
 0x104   : > { %1132 = vmatmul.f32.gmra.mxu2 %v3754_v30  ;;  %v728_v11 = vpop.f32.mrf.mxu3  ;;  %v631_v49 = vpop.f32.mrf.mxu1 }
 0x105   : > { %v2855_v39 = vadd.f32 %v728_v11, %v2826_v25  ;;  %v2874_v11 = vadd.f32 %v628_v36, %v2551_v1  ;;  %1369 = vmatpush.msra.mxu2 %v925_v57  ;;  %v2918_v57 = vadd.f32 %v631_v49, %v2551_v1 }
 0x107   : > { %v3758_v30 = vmax.f32 %v2855_v39, 0.0  ;;  %1370 = vmatpush.msra.mxu2 %v923_v40 }
 0x108   : > { %v690_v49 = vpop.f32.mrf.mxu2 }
 0x109   : > { %1185 = vmatmul.f32.vlgmr.msra.gmra.mxu3 %v3758_v30  ;;  %v2880_v30 = vadd.f32 %v2770_v15, %v2637_v43  ;;  %v3767_v15 = vmax.f32 %v2874_v11, 0.0 }
 0x10b   : > { %1029 = vmatmul.f32.gmra.mxu0 %v3759_v12  ;;  %1082 = vmatmul.f32.gmra.mxu1 %v3761_v44  ;;  %v2887_v12 = vadd.f32 %v2751_v19, %v2466_v27  ;;  %v3768_v19 = vmax.f32 %v2880_v30, 0.0 }
 0x10c   : > { %1135 = vmatmul.f32.gmra.mxu2 %v3760_v42  ;;  %v731_v7 = vpop.f32.mrf.mxu3  ;;  %v893_v42 = vld [vmem:[%s3739_s3 + $0x1a8] sm:$0xff]  ;;  %v634_v58 = vpop.f32.mrf.mxu1 }
 0x10d   : > { %v2890_v36 = vadd.f32 %v731_v7, %v2826_v25  ;;  %1304 = vmatpush.msra.mxu1 %v893_v42  ;;  %v891_v7 = vld [vmem:[%s3739_s3 + $0x198] sm:$0xff]  ;;  %v3766_v23 = vmax.f32 %v2887_v12, 0.0  ;;  %v957_v42 = vld [vmem:[%s3739_s3 + $0x3a8] sm:$0xff]  ;;  %v2961_v40 = vadd.f32 %v634_v58, %v2551_v1 }
 0x10e   : > { %1434 = vmatpush.msrb.mxu3 %v957_v42  ;;  %v887_v42 = vld [vmem:[%s3739_s3 + $0x178] sm:$0xff]  ;;  %v877_v58 = vld [vmem:[%s3739_s3 + $0x128] sm:$0xff] }
 0x10f   : > { %v3765_v44 = vmax.f32 %v2890_v36, 0.0  ;;  %1305 = vmatpush.msra.mxu1 %v891_v7 }
 0x111   : > { %1188 = vmatmul.f32.gmra.mxu3 %v3765_v44  ;;  %v2923_v44 = vadd.f32 %v684_v4, %v2637_v43  ;;  %1306 = vmatpush.msra.mxu1 %v889_v55  ;;  %v3774_v55 = vmax.f32 %v2918_v57, 0.0 }
 0x113   : > { %1032 = vmatmul.f32.gmra.mxu0 %v3766_v23  ;;  %1085 = vmatmul.f32.gmra.mxu1 %v3767_v15  ;;  %v2930_v23 = vadd.f32 %v2797_v10, %v2466_v27  ;;  %v3773_v27 = vmax.f32 %v2923_v44, 0.0  ;;  %v883_v10 = vld [vmem:[%s3739_s3 + $0x158] sm:$0xff] }
 0x114   : > { %1138 = vmatmul.f32.gmra.mxu2 %v3768_v19  ;;  %v734_v7 = vpop.f32.mrf.mxu3  ;;  %1307 = vmatpush.msra.mxu1 %v887_v42  ;;  %v885_v19 = vld [vmem:[%s3739_s3 + $0x168] sm:$0xff]  ;;  %v955_v42 = vld [vmem:[%s3739_s3 + $0x398] sm:$0xff]  ;;  %v637_v29 = vpop.f32.mrf.mxu1 }
 0x115   : > { %v2933_v15 = vadd.f32 %v734_v7, %v2826_v25  ;;  %v3775_v7 = vmax.f32 %v2930_v23, 0.0  ;;  %1435 = vmatpush.msrb.mxu3 %v955_v42 }
 0x116   : > { %1308 = vmatpush.msra.mxu1 %v885_v19 }
 0x117   : > { %v3771_v4 = vmax.f32 %v2933_v15, 0.0 }
 0x118   : > { %1309 = vmatpush.msra.mxu1 %v883_v10  ;;  %v879_v10 = vld [vmem:[%s3739_s3 + $0x138] sm:$0xff] }
 0x119   : > { %1191 = vmatmul.f32.gmra.mxu3 %v3771_v4  ;;  %v2966_v4 = vadd.f32 %v687_v38, %v2637_v43  ;;  %v693_v38 = vpop.f32.mrf.mxu2 }
 0x11a   : > { %1310 = vmatpush.msra.mxu1 %v881_v13  ;;  %v921_v13 = vld [vmem:[%s3739_s3 + $0x288] sm:$0xff] }
 0x11b   : > { %1035 = vmatmul.f32.gmra.mxu0 %v3775_v7  ;;  %1088 = vmatmul.f32.gmra.mxu1 %v3774_v55  ;;  %v3778_v55 = vmax.f32 %v2961_v40, 0.0  ;;  %v3779_v7 = vmax.f32 %v2966_v4, 0.0 }
 0x11c   : > { %1141 = vmatmul.f32.gmra.mxu2 %v3773_v27  ;;  %v737_v19 = vpop.f32.mrf.mxu3  ;;  %1311 = vmatpush.msra.mxu1 %v879_v10  ;;  %v953_v10 = vld [vmem:[%s3739_s3 + $0x388] sm:$0xff] }
 0x11d   : > { %v2972_v42 = vadd.f32 %v737_v19, %v2826_v25  ;;  %1371 = vmatpush.msra.mxu2 %v921_v13  ;;  %v875_v19 = vld [vmem:[%s3739_s3 + $0x118] sm:$0xff]  ;;  %1436 = vmatpush.msrb.mxu3 %v953_v10  ;;  %v640_v10 = vpop.f32.mrf.mxu1 }
 0x11e   : > { %1312 = vmatpush.msra.mxu1 %v877_v58  ;;  %v2999_v58 = vadd.f32 %v637_v29, %v2551_v1 }
 0x11f   : > { %v3777_v27 = vmax.f32 %v2972_v42, 0.0 }
 0x120   : > { %1313 = vmatpush.msra.mxu1 %v875_v19  ;;  %v3782_v31 = vmax.f32 %v2999_v58, 0.0 }
 0x121   : > { %1194 = vmatmul.f32.gmra.mxu3 %v3777_v27  ;;  %v3004_v27 = vadd.f32 %v690_v49, %v2637_v43  ;;  %v696_v49 = vpop.f32.mrf.mxu2 }
 0x122   : > { %1314 = vmatpush.msra.mxu1 %v873_v28  ;;  %v951_v28 = vld [vmem:[%s3739_s3 + $0x378] sm:$0xff] }
 0x123   : > { %1091 = vmatmul.f32.gmra.mxu1 %v3778_v55  ;;  %1250 = vmatmul.f32.vlgmr.msra.gmra.mxu0 %v776_v34  ;;  %v919_v34 = vld [vmem:[%s3739_s3 + $0x278] sm:$0xff]  ;;  %v3783_v29 = vmax.f32 %v3004_v27, 0.0 }
 0x124   : > { %1144 = vmatmul.f32.gmra.mxu2 %v3779_v7  ;;  %v740_v13 = vpop.f32.mrf.mxu3  ;;  %1437 = vmatpush.msrb.mxu3 %v951_v28  ;;  %v3027_v7 = vadd.f32 %v640_v10, %v2551_v1 }
 0x125   : > { %v3007_v19 = vadd.f32 %v740_v13, %v2826_v25  ;;  %1372 = vmatpush.msra.mxu2 %v919_v34  ;;  %v3020_v13 = vpop.f32.mrf.mxu0  ;;  %v643_v10 = vpop.f32.mrf.mxu1 }
 0x127   : > { %v3780_v55 = vmax.f32 %v3007_v19, 0.0  ;;  %1373 = vmatpush.msra.mxu2 %v917_v45 }
 0x129   : > { %1197 = vmatmul.f32.gmra.mxu3 %v3780_v55  ;;  %v3032_v55 = vadd.f32 %v693_v38, %v2637_v43  ;;  %v949_v38 = vld [vmem:[%s3739_s3 + $0x368] sm:$0xff] }
 0x12a   : > { %1438 = vmatpush.msrb.mxu3 %v949_v38 }
 0x12b   : > { %1094 = vmatmul.f32.gmra.mxu1 %v3782_v31  ;;  %1253 = vmatmul.f32.gmra.mxu0 %v780_v46  ;;  %v3786_v31 = vmax.f32 %v3027_v7, 0.0  ;;  %v3791_v46 = vmax.f32 %v3032_v55, 0.0 }
 0x12c   : > { %1147 = vmatmul.f32.gmra.mxu2 %v3783_v29  ;;  %v743_v34 = vpop.f32.mrf.mxu3  ;;  %v699_v29 = vpop.f32.mrf.mxu2 }
 0x12d   : > { %v3035_v28 = vadd.f32 %v743_v34, %v2826_v25  ;;  %v3053_v34 = vadd.f32 %v643_v10, %v2551_v1  ;;  %v3060_v17 = vpop.f32.mrf.mxu0  ;;  %v913_v10 = vld [vmem:[%s3739_s3 + $0x248] sm:$0xff] }
 0x12f   : > { %v3784_v18 = vmax.f32 %v3035_v28, 0.0  ;;  %v3789_v52 = vmax.f32 %v3053_v34, 0.0 }
 0x131   : > { %1200 = vmatmul.f32.gmra.mxu3 %v3784_v18  ;;  %v3058_v18 = vadd.f32 %v696_v49, %v2637_v43  ;;  %v947_v49 = vld [vmem:[%s3739_s3 + $0x358] sm:$0xff] }
 0x132   : > { %1439 = vmatpush.msrb.mxu3 %v947_v49 }
 0x133   : > { %1097 = vmatmul.f32.gmra.mxu1 %v3786_v31  ;;  %1256 = vmatmul.f32.gmra.mxu0 %v784_v22  ;;  %v915_v22 = vld [vmem:[%s3739_s3 + $0x258] sm:$0xff]  ;;  %v3788_v1 = vmax.f32 %v3058_v18, 0.0 }
 0x134   : > { %1150 = vmatmul.f32.gmra.mxu2 %v3791_v46  ;;  %v746_v45 = vpop.f32.mrf.mxu3 }
 0x135   : > { %v3063_v38 = vadd.f32 %v746_v45, %v2826_v25  ;;  %1374 = vmatpush.msra.mxu2 %v915_v22  ;;  %v3086_v22 = vadd.f32 %v699_v29, %v2637_v43 }
 0x137   : > { %v3787_v31 = vmax.f32 %v3063_v38, 0.0  ;;  %1375 = vmatpush.msra.mxu2 %v913_v10  ;;  %v702_v10 = vpop.f32.mrf.mxu2  ;;  %v3794_v29 = vmax.f32 %v3086_v22, 0.0 }
 0x139   : > { %1203 = vmatmul.f32.gmra.mxu3 %v3787_v31  ;;  %v911_v31 = vld [vmem:[%s3739_s3 + $0x238] sm:$0xff] }
 0x13a   : > { %1376 = vmatpush.msra.mxu2 %v911_v31  ;;  %v945_v31 = vld [vmem:[%s3739_s3 + $0x348] sm:$0xff] }
 0x13b   : > { %1100 = vmatmul.f32.gmra.mxu1 %v3789_v52  ;;  %1259 = vmatmul.f32.gmra.mxu0 %v788_v62  ;;  %v3097_v62 = vpop.f32.mrf.mxu0  ;;  %v907_v52 = vld [vmem:[%s3739_s3 + $0x218] sm:$0xff] }
 0x13c   : > { %1153 = vmatmul.f32.gmra.mxu2 %v3788_v1  ;;  %v749_v45 = vpop.f32.mrf.mxu3  ;;  %1440 = vmatpush.msrb.mxu3 %v945_v31 }
 0x13d   : > { %v3092_v49 = vadd.f32 %v749_v45, %v2826_v25  ;;  %1377 = vmatpush.msra.mxu2 %v909_v59  ;;  %v905_v45 = vld [vmem:[%s3739_s3 + $0x208] sm:$0xff] }
 0x13f   : > { %3809 = vst [vmem:[#allocation2_spill] sm:$0xff] %v3092_v49  ;;  %v3790_v1 = vmax.f32 %v3092_v49, 0.0  ;;  %1378 = vmatpush.msra.mxu2 %v907_v52  ;;  %v3119_v52 = vadd.f32 %v702_v10, %v2637_v43  ;;  %v705_v46 = vpop.f32.mrf.mxu2  ;;  %v3812_v10 = vmax.f32 %v2586_v16, 0.0  ;;  %v941_v16 = vld [vmem:[%s3739_s3 + $0x328] sm:$0xff] }
 0x140   : > { %v3125_v49 = vpop.f32.mrf.mxu1 }
 0x141   : > { %1206 = vmatmul.f32.gmra.mxu3 %v3790_v1  ;;  %3810 = vst [vmem:[#allocation3_spill] sm:$0xff] %v3119_v52  ;;  %1379 = vmatpush.msra.mxu2 %v905_v45  ;;  %v3796_v3 = vmax.f32 %v3119_v52, 0.0 }
 0x143   : > { %1262 = vmatmul.f32.gmra.mxu0 %v792_v9  ;;  %1315 = vmatmul.f32.vlgmr.msra.gmra.mxu1 %v777_v8  ;;  %v3128_v6 = vpop.f32.mrf.mxu0  ;;  %v943_v8 = vld [vmem:[%s3739_s3 + $0x338] sm:$0xff]  ;;  %v3811_v9 = vmax.f32 %v2583_v14, 0.0 }
 0x144   : > { %1156 = vmatmul.f32.gmra.mxu2 %v3794_v29  ;;  %v752_v59 = vpop.f32.mrf.mxu3  ;;  %1441 = vmatpush.msrb.mxu3 %v943_v8 }
 0x145   : > { %v3122_v1 = vadd.f32 %v752_v59, %v2826_v25  ;;  %v3142_v59 = vadd.f32 %v705_v46, %v2637_v43 }
 0x146   : > { %1442 = vmatpush.msrb.mxu3 %v941_v16 }
 0x147   : > { %v3793_v31 = vmax.f32 %v3122_v1, 0.0  ;;  %v3803_v8 = vmax.f32 %v3142_v59, 0.0  ;;  %v708_v14 = vpop.f32.mrf.mxu2 }
 0x149   : > { %1209 = vmatmul.f32.gmra.mxu3 %v3793_v31 }
 0x14b   : > { %1265 = vmatmul.f32.gmra.mxu0 %v3811_v9  ;;  %1318 = vmatmul.f32.gmra.mxu1 %v3812_v10  ;;  %v3154_v9 = vpop.f32.mrf.mxu1  ;;  %v3156_v46 = vpop.f32.mrf.mxu0  ;;  %v3814_v10 = vmax.f32 %v2600_v24, 0.0  ;;  %v939_v24 = vld [vmem:[%s3739_s3 + $0x318] sm:$0xff] }
 0x14c   : > { %1159 = vmatmul.f32.gmra.mxu2 %v3796_v3  ;;  %v755_v45 = vpop.f32.mrf.mxu3  ;;  %v3165_v3 = vadd.f32 %v708_v14, %v2637_v43  ;;  %1443 = vmatpush.msrb.mxu3 %v939_v24  ;;  %v3817_v43 = vmax.f32 %v2620_v37, 0.0  ;;  %v3818_v37 = vmax.f32 %v2642_v50, 0.0  ;;  %v3819_v24 = vmax.f32 %v2634_v47, 0.0  ;;  %v1540_v50 = vld [vmem:[%s3741_s5 + $0x70] sm:$0xff] }
 0x14d   : > { %v3145_v31 = vadd.f32 %v755_v45, %v2826_v25  ;;  %v3815_v45 = vmax.f32 %v2603_v26, 0.0  ;;  %v3816_v26 = vmax.f32 %v2617_v35, 0.0  ;;  %v937_v35 = vld [vmem:[%s3739_s3 + $0x308] sm:$0xff] }
 0x14e   : > { %v3801_v52 = vmax.f32 %v3165_v3, 0.0  ;;  %1444 = vmatpush.msrb.mxu3 %v937_v35 }
 0x14f   : > { %3813 = vst [vmem:[#allocation4_spill] sm:$0xff] %v3145_v31  ;;  %v3795_v29 = vmax.f32 %v3145_v31, 0.0 }
 0x151   : > { %1212 = vmatmul.f32.gmra.mxu3 %v3795_v29 }
 0x153   : > { %1268 = vmatmul.f32.gmra.mxu0 %v3814_v10  ;;  %1321 = vmatmul.f32.gmra.mxu1 %v3815_v45  ;;  %v3185_v10 = vpop.f32.mrf.mxu0 }
 0x154   : > { %1162 = vmatmul.f32.gmra.mxu2 %v3803_v8  ;;  %v758_v29 = vpop.f32.mrf.mxu3  ;;  %v3828_v8 = vmax.f32 %v2723_v56, 0.0  ;;  %v1531_v56 = vld [vmem:[%s3741_s5 + $0x28] sm:$0xff] }
 0x155   : > { %v3168_v31 = vadd.f32 %v758_v29, %v2826_v25  ;;  %v3181_v29 = vpop.f32.mrf.mxu1 }
 0x157   : > { %v3799_v16 = vmax.f32 %v3168_v31, 0.0 }
 0x159   : > { %1215 = vmatmul.f32.gmra.mxu3 %v3799_v16 }
 0x15b   : > { %1271 = vmatmul.f32.gmra.mxu0 %v3816_v26  ;;  %1324 = vmatmul.f32.gmra.mxu1 %v3817_v43  ;;  %v3820_v26 = vmax.f32 %v2645_v53, 0.0  ;;  %v3213_v47 = vpop.f32.mrf.mxu0 }
 0x15c   : > { %1165 = vmatmul.f32.gmra.mxu2 %v3801_v52  ;;  %v761_v14 = vpop.f32.mrf.mxu3 }
 0x15d   : > { %v3188_v45 = vadd.f32 %v761_v14, %v2826_v25  ;;  %v1541_v14 = vld [vmem:[%s3741_s5 + $0x78] sm:$0xff]  ;;  %v3208_v52 = vpop.f32.mrf.mxu1 }
 0x15e   : > { %1562 = vmatpush.msrb.mxu0 %v1541_v14  ;;  %v3824_v14 = vmax.f32 %v2678_v5, 0.0 }
 0x15f   : > { %v3800_v16 = vmax.f32 %v3188_v45, 0.0 }
 0x160   : > { %1563 = vmatpush.msrb.mxu0 %v1540_v50 }
 0x161   : > { %1218 = vmatmul.f32.gmra.mxu3 %v3800_v16 }
 0x163   : > { %1274 = vmatmul.f32.gmra.mxu0 %v3818_v37  ;;  %1327 = vmatmul.f32.gmra.mxu1 %v3819_v24  ;;  %v1539_v37 = vld [vmem:[%s3741_s5 + $0x68] sm:$0xff]  ;;  %v1538_v24 = vld [vmem:[%s3741_s5 + $0x60] sm:$0xff] }
 0x164   : > { %1380 = vmatmul.f32.vlgmr.msra.gmra.mxu2 %v3820_v26  ;;  %v764_v43 = vpop.f32.mrf.mxu3  ;;  %1564 = vmatpush.msrb.mxu0 %v1539_v37  ;;  %v3822_v26 = vmax.f32 %v2672_v32, 0.0  ;;  %v1536_v32 = vld [vmem:[%s3741_s5 + $0x50] sm:$0xff] }
 0x165   : > { %v3206_v16 = vadd.f32 %v764_v43, %v2826_v25  ;;  %v3823_v43 = vmax.f32 %v2660_v61, 0.0  ;;  %v3244_v5 = vpop.f32.mrf.mxu1 }
 0x166   : > { %1565 = vmatpush.msrb.mxu0 %v1538_v24  ;;  %v1535_v24 = vld [vmem:[%s3741_s5 + $0x48] sm:$0xff] }
 0x167   : > { %3821 = vst [vmem:[#allocation5_spill] sm:$0xff] %v3206_v16  ;;  %v3802_v53 = vmax.f32 %v3206_v16, 0.0  ;;  %v3216_v35 = vpop.f32.mrf.mxu2 }
 0x169   : > { %1221 = vmatmul.f32.gmra.mxu3 %v3802_v53  ;;  %v1537_v53 = vld [vmem:[%s3741_s5 + $0x58] sm:$0xff] }
 0x16a   : > { %1566 = vmatpush.msrb.mxu0 %v1537_v53  ;;  %v1557_v53 = vld [vmem:[%s3741_s5 + $0xf8] sm:$0xff] }
 0x16b   : > { %1277 = vmatmul.f32.gmra.mxu0 %v3822_v26  ;;  %1330 = vmatmul.f32.gmra.mxu1 %v3823_v43  ;;  %v3249_v43 = vpop.f32.mrf.mxu0 }
 0x16c   : > { %1383 = vmatmul.f32.gmra.mxu2 %v3824_v14  ;;  %v767_v50 = vpop.f32.mrf.mxu3  ;;  %1567 = vmatpush.msrb.mxu0 %v1536_v32  ;;  %v1534_v14 = vld [vmem:[%s3741_s5 + $0x40] sm:$0xff]  ;;  %v3827_v32 = vmax.f32 %v2702_v48, 0.0 }
 0x16d   : > { %v3236_v37 = vadd.f32 %v767_v50, %v2826_v25  ;;  %1627 = vmatpush.msrb.mxu1 %v1557_v53  ;;  %v3826_v50 = vmax.f32 %v2715_v41, 0.0  ;;  %v1532_v41 = vld [vmem:[%s3741_s5 + $0x30] sm:$0xff] }
 0x16e   : > { %1568 = vmatpush.msrb.mxu0 %v1535_v24 }
 0x16f   : > { %3825 = vst [vmem:[#allocation6_spill] sm:$0xff] %v3236_v37  ;;  %v3804_v61 = vmax.f32 %v3236_v37, 0.0  ;;  %v3242_v26 = vpop.f32.mrf.mxu2  ;;  %v1533_v37 = vld [vmem:[%s3741_s5 + $0x38] sm:$0xff] }
 0x170   : > { %1569 = vmatpush.msrb.mxu0 %v1534_v14  ;;  %v3829_v14 = vmax.f32 %v2761_v51, 0.0  ;;  %v1528_v51 = vld [vmem:[%s3741_s5 + $0x10] sm:$0xff] }
 0x171   : > { %1224 = vmatmul.f32.gmra.mxu3 %v3804_v61 }
 0x172   : > { %1570 = vmatpush.msrb.mxu0 %v1533_v37  ;;  %v1530_v37 = vld [vmem:[%s3741_s5 + $0x20] sm:$0xff] }
 0x173   : > { %1280 = vmatmul.f32.gmra.mxu0 %v3826_v50  ;;  %1333 = vmatmul.f32.gmra.mxu1 %v3827_v32  ;;  %v3290_v53 = vpop.f32.mrf.mxu0  ;;  %v3830_v50 = vmax.f32 %v2747_v54, 0.0  ;;  %v3831_v32 = vmax.f32 %v2767_v33, 0.0  ;;  %v1527_v33 = vld [vmem:[%s3741_s5 + $0x8] sm:$0xff] }
 0x174   : > { %1386 = vmatmul.f32.gmra.mxu2 %v3828_v8  ;;  %v770_v61 = vpop.f32.mrf.mxu3  ;;  %1571 = vmatpush.msrb.mxu0 %v1532_v41  ;;  %v1556_v8 = vld [vmem:[%s3741_s5 + $0xf0] sm:$0xff] }
 0x175   : > { %v3269_v16 = vadd.f32 %v770_v61, %v2826_v25  ;;  %v3288_v61 = vpop.f32.mrf.mxu1  ;;  %1628 = vmatpush.msrb.mxu1 %v1556_v8 }
 0x176   : > { %1572 = vmatpush.msrb.mxu0 %v1531_v56 }
 0x177   : > { %v3807_v48 = vmax.f32 %v3269_v16, 0.0  ;;  %v3275_v24 = vpop.f32.mrf.mxu2 }
 0x178   : > { %1573 = vmatpush.msrb.mxu0 %v1530_v37  ;;  %v3832_v37 = vmax.f32 %v2811_v20, 0.0  ;;  %v1554_v20 = vld [vmem:[%s3741_s5 + $0xe0] sm:$0xff] }
 0x179   : > { %1227 = vmatmul.f32.gmra.mxu3 %v3807_v48  ;;  %v1529_v48 = vld [vmem:[%s3741_s5 + $0x18] sm:$0xff] }
 0x17a   : > { %1574 = vmatpush.msrb.mxu0 %v1529_v48  ;;  %v1526_v48 = vld [vmem:[%s3741_s5] sm:$0xff] }
 0x17b   : > { %1283 = vmatmul.f32.gmra.mxu0 %v3829_v14  ;;  %1336 = vmatmul.f32.gmra.mxu1 %v3830_v50  ;;  %v3833_v14 = vmax.f32 %v2793_v60, 0.0  ;;  %v3836_v60 = vmax.f32 %v2852_v0, 0.0  ;;  %v3839_v0 = vmax.f32 %v2890_v36, 0.0 }
 0x17c   : > { %1389 = vmatmul.f32.gmra.mxu2 %v3831_v32  ;;  %v773_v41 = vpop.f32.mrf.mxu3  ;;  %1575 = vmatpush.msrb.mxu0 %v1528_v51  ;;  %v3834_v32 = vmax.f32 %v2801_v2, 0.0  ;;  %v3838_v2 = vmax.f32 %v2845_v63, 0.0 }
 0x17d   : > { %v3302_v56 = vadd.f32 %v773_v41, %v2826_v25  ;;  %v1555_v25 = vld [vmem:[%s3741_s5 + $0xe8] sm:$0xff]  ;;  %v3325_v50 = vpop.f32.mrf.mxu1  ;;  %v3329_v41 = vpop.f32.mrf.mxu0 }
 0x17e   : > { %1576 = vmatpush.msrb.mxu0 %v1527_v33  ;;  %1629 = vmatpush.msrb.mxu1 %v1555_v25  ;;  %v3837_v33 = vmax.f32 %v2839_v21, 0.0  ;;  %v1553_v21 = vld [vmem:[%s3741_s5 + $0xd8] sm:$0xff] }
 0x17f   : > { %v3808_v54 = vmax.f32 %v3302_v56, 0.0  ;;  %v3308_v8 = vpop.f32.mrf.mxu2 }
 0x180   : > { %1577 = vmatpush.msrb.mxu0 %v1526_v48  ;;  %1630 = vmatpush.msrb.mxu1 %v1554_v20  ;;  %v3842_v20 = vmax.f32 %v2880_v30, 0.0  ;;  %v1552_v30 = vld [vmem:[%s3741_s5 + $0xd0] sm:$0xff] }
 0x181   : > { %1230 = vmatmul.f32.gmra.mxu3 %v3808_v54  ;;  %v3835_v54 = vmax.f32 %v2855_v39, 0.0 }
 0x182   : > { %1631 = vmatpush.msrb.mxu1 %v1553_v21 }
 0x183   : > { %1286 = vmatmul.f32.gmra.mxu0 %v3832_v37  ;;  %1339 = vmatmul.f32.gmra.mxu1 %v3833_v14  ;;  %v3840_v14 = vmax.f32 %v2887_v12, 0.0  ;;  %v3843_v12 = vmax.f32 %v2933_v15, 0.0 }
 0x184   : > { %1392 = vmatmul.f32.gmra.mxu2 %v3834_v32  ;;  %v3841_v32 = vmax.f32 %v2874_v11, 0.0  ;;  %1632 = vmatpush.msrb.mxu1 %v1552_v30 }
 0x185   : > { %v3344_v48 = vpop.f32.mrf.mxu1  ;;  %v3346_v37 = vpop.f32.mrf.mxu0 }
 0x187   : > { %v3331_v51 = vpop.f32.mrf.mxu2 }
 0x189   : > { %1445 = vmatmul.f32.vlgmr.msrb.gmra.mxu3 %v3835_v54  ;;  %v3353_v54 = vld [vmem:[%s3740_s4] sm:$0x3] }
 0x18a   : > { %v3361_v63 = vperm.slane %v3353_v54, 0 }
 0x18b   : > { %1289 = vmatmul.f32.gmra.mxu0 %v3836_v60  ;;  %1342 = vmatmul.f32.gmra.mxu1 %v3837_v33 }
 0x18c   : > { %1395 = vmatmul.f32.gmra.mxu2 %v3838_v2  ;;  %v1186_v25 = vpop.f32.mrf.mxu3  ;;  %v992_v36 = vadd.f32 %v3020_v13, %v3361_v63  ;;  %v3844_v13 = vmax.f32 %v2930_v23, 0.0  ;;  %v995_v15 = vadd.f32 %v3060_v17, %v3361_v63  ;;  %v1551_v23 = vld [vmem:[%s3741_s5 + $0xc8] sm:$0xff]  ;;  %v3848_v17 = vmax.f32 %v2961_v40, 0.0  ;;  %v1550_v40 = vld [vmem:[%s3741_s5 + $0xc0] sm:$0xff] }
 0x18d   : > { %v3373_v2 = vpop.f32.mrf.mxu1  ;;  %v3376_v21 = vpop.f32.mrf.mxu0  ;;  %1633 = vmatpush.msrb.mxu1 %v1551_v23 }
 0x18f   : > { %v3348_v39 = vpop.f32.mrf.mxu2  ;;  %1634 = vmatpush.msrb.mxu1 %v1550_v40 }
 0x191   : > { %1448 = vmatmul.f32.gmra.mxu3 %v3839_v0  ;;  %v1057_v0 = vadd.f32 %v3125_v49, %v992_v36  ;;  %v3846_v49 = vmax.f32 %v2923_v44, 0.0 }
 0x193   : > { %1292 = vmatmul.f32.gmra.mxu0 %v3840_v14  ;;  %1345 = vmatmul.f32.gmra.mxu1 %v3841_v32  ;;  %v1122_v11 = vadd.f32 %v3216_v35, %v1057_v0  ;;  %v3845_v14 = vmax.f32 %v2918_v57, 0.0  ;;  %v3847_v35 = vmax.f32 %v2972_v42, 0.0 }
 0x194   : > { %1398 = vmatmul.f32.gmra.mxu2 %v3842_v20  ;;  %v1189_v60 = vpop.f32.mrf.mxu3 }
 0x195   : > { %v1187_v20 = vadd.f32 %v1186_v25, %v1122_v11  ;;  %v3400_v57 = vpop.f32.mrf.mxu1  ;;  %v3403_v0 = vpop.f32.mrf.mxu0  ;;  %v998_v25 = vadd.f32 %v3097_v62, %v3361_v63 }
 0x197   : > { %v3371_v33 = vpop.f32.mrf.mxu2  ;;  %v1494_v30 = vmax.f32 %v1187_v20, 0.0 }
 0x199   : > { %1451 = vmatmul.f32.gmra.mxu3 %v3843_v12  ;;  %v1060_v12 = vadd.f32 %v3154_v9, %v995_v15  ;;  %v3849_v9 = vmax.f32 %v2966_v4, 0.0  ;;  %v3851_v15 = vmax.f32 %v2999_v58, 0.0  ;;  %v3853_v58 = vmax.f32 %v3035_v28, 0.0 }
 0x19a   : > { %v1004_v28 = vadd.f32 %v3156_v46, %v3361_v63  ;;  %v3858_v46 = vmax.f32 %v3058_v18, 0.0  ;;  %v1547_v18 = vld [vmem:[%s3741_s5 + $0xa8] sm:$0xff] }
 0x19b   : > { %1295 = vmatmul.f32.gmra.mxu0 %v3844_v13  ;;  %1348 = vmatmul.f32.gmra.mxu1 %v3845_v14  ;;  %v1125_v44 = vadd.f32 %v3242_v26, %v1060_v12  ;;  %v1063_v14 = vadd.f32 %v3181_v29, %v998_v25  ;;  %v3850_v26 = vmax.f32 %v3007_v19, 0.0  ;;  %v1001_v19 = vadd.f32 %v3128_v6, %v3361_v63 }
 0x19c   : > { %1401 = vmatmul.f32.gmra.mxu2 %v3846_v49  ;;  %v1192_v32 = vpop.f32.mrf.mxu3  ;;  %v3854_v6 = vmax.f32 %v3027_v7, 0.0  ;;  %v3856_v7 = vmax.f32 %v3063_v38, 0.0  ;;  %v1007_v38 = vadd.f32 %v3185_v10, %v3361_v63  ;;  %v3861_v10 = vmax.f32 %v3086_v22, 0.0 }
 0x19d   : > { %v1190_v11 = vadd.f32 %v1189_v60, %v1125_v44  ;;  %v1128_v4 = vadd.f32 %v3275_v24, %v1063_v14  ;;  %v3422_v62 = vpop.f32.mrf.mxu1  ;;  %v3852_v60 = vmax.f32 %v3004_v27, 0.0  ;;  %v3428_v20 = vpop.f32.mrf.mxu0  ;;  %v1066_v24 = vadd.f32 %v3208_v52, %v1001_v19  ;;  %v1549_v27 = vld [vmem:[%s3741_s5 + $0xb8] sm:$0xff] }
 0x19e   : > { %1635 = vmatpush.msrb.mxu1 %v1549_v27  ;;  %v3857_v14 = vmax.f32 %v3053_v34, 0.0  ;;  %v3859_v34 = vld [vmem:[#allocation2_spill] sm:$0xff]  ;;  %v3862_v27 = vmax.f32 %v3122_v1, 0.0  ;;  %v1013_v1 = vadd.f32 %v3249_v43, %v3361_v63  ;;  %v3867_v43 = vmax.f32 %v3142_v59, 0.0  ;;  %v1544_v59 = vld [vmem:[%s3741_s5 + $0x90] sm:$0xff] }
 0x19f   : > { %v3392_v36 = vpop.f32.mrf.mxu2  ;;  %v1496_v49 = vmax.f32 %v1190_v11, 0.0  ;;  %v1193_v12 = vadd.f32 %v1192_v32, %v1128_v4  ;;  %v1131_v23 = vadd.f32 %v3308_v8, %v1066_v24  ;;  %v3855_v32 = vmax.f32 %v3032_v55, 0.0  ;;  %v1548_v55 = vld [vmem:[%s3741_s5 + $0xb0] sm:$0xff] }
 0x1a0   : > { %v1069_v8 = vadd.f32 %v3244_v5, %v1004_v28  ;;  %1636 = vmatpush.msrb.mxu1 %v1548_v55  ;;  %v1072_v4 = vadd.f32 %v3288_v61, %v1007_v38  ;;  %v1010_v61 = vadd.f32 %v3213_v47, %v3361_v63  ;;  %v3863_v47 = vld [vmem:[#allocation3_spill] sm:$0xff]  ;;  %v1078_v28 = vadd.f32 %v3344_v48, %v1013_v1 }
 0x1a1   : > { %1454 = vmatmul.f32.gmra.mxu3 %v3847_v35  ;;  %v1498_v35 = vmax.f32 %v1193_v12, 0.0 }
 0x1a2   : > { %1637 = vmatpush.msrb.mxu1 %v1547_v18  ;;  %v1143_v55 = vadd.f32 %v3392_v36, %v1078_v28  ;;  %v3868_v36 = vmax.f32 %v3168_v31, 0.0  ;;  %v3873_v28 = vld [vmem:[#allocation6_spill] sm:$0xff] }
 0x1a3   : > { %1351 = vmatmul.f32.gmra.mxu1 %v3848_v17  ;;  %1578 = vmatmul.f32.vlgmr.msrb.gmra.mxu0 %v1494_v30 }
 0x1a4   : > { %1404 = vmatmul.f32.gmra.mxu2 %v3849_v9  ;;  %v1195_v42 = vpop.f32.mrf.mxu3 }
 0x1a5   : > { %v1196_v52 = vadd.f32 %v1195_v42, %v1131_v23  ;;  %v3443_v17 = vpop.f32.mrf.mxu1  ;;  %v3447_v9 = vpop.f32.mrf.mxu0  ;;  %v1134_v42 = vadd.f32 %v3331_v51, %v1069_v8 }
 0x1a7   : > { %v3411_v13 = vpop.f32.mrf.mxu2  ;;  %v1500_v11 = vmax.f32 %v1196_v52, 0.0 }
 0x1a9   : > { %1457 = vmatmul.f32.gmra.mxu3 %v3850_v26 }
 0x1ab   : > { %1354 = vmatmul.f32.gmra.mxu1 %v3851_v15  ;;  %1581 = vmatmul.f32.gmra.mxu0 %v1496_v49 }
 0x1ac   : > { %1407 = vmatmul.f32.gmra.mxu2 %v3852_v60  ;;  %v1198_v29 = vpop.f32.mrf.mxu3  ;;  %v3860_v60 = vmax.f32 %v3859_v34, 0.0  ;;  %v3869_v34 = vmax.f32 %v3165_v3, 0.0  ;;  %v1543_v3 = vld [vmem:[%s3741_s5 + $0x88] sm:$0xff] }
 0x1ad   : > { %v1199_v5 = vadd.f32 %v1198_v29, %v1134_v42  ;;  %v3466_v40 = vpop.f32.mrf.mxu1  ;;  %v3469_v15 = vpop.f32.mrf.mxu0  ;;  %v1137_v29 = vadd.f32 %v3348_v39, %v1072_v4  ;;  %v1546_v39 = vld [vmem:[%s3741_s5 + $0xa0] sm:$0xff] }
 0x1ae   : > { %1638 = vmatpush.msrb.mxu1 %v1546_v39  ;;  %v3871_v39 = vld [vmem:[#allocation5_spill] sm:$0xff] }
 0x1af   : > { %v3430_v30 = vpop.f32.mrf.mxu2  ;;  %v1502_v51 = vmax.f32 %v1199_v5, 0.0 }
 0x1b1   : > { %1460 = vmatmul.f32.gmra.mxu3 %v3853_v58 }
 0x1b3   : > { %1357 = vmatmul.f32.gmra.mxu1 %v3854_v6  ;;  %1584 = vmatmul.f32.gmra.mxu0 %v1498_v35  ;;  %v1075_v35 = vadd.f32 %v3325_v50, %v1010_v61 }
 0x1b4   : > { %1410 = vmatmul.f32.gmra.mxu2 %v3855_v32  ;;  %v1201_v44 = vpop.f32.mrf.mxu3  ;;  %v3864_v32 = vmax.f32 %v3863_v47, 0.0  ;;  %v1542_v47 = vld [vmem:[%s3741_s5 + $0x80] sm:$0xff] }
 0x1b5   : > { %v1202_v12 = vadd.f32 %v1201_v44, %v1137_v29  ;;  %v3489_v23 = vpop.f32.mrf.mxu1  ;;  %v1140_v22 = vadd.f32 %v3371_v33, %v1075_v35  ;;  %v3492_v6 = vpop.f32.mrf.mxu0  ;;  %v1545_v33 = vld [vmem:[%s3741_s5 + $0x98] sm:$0xff]  ;;  %v1022_v35 = vadd.f32 %v3346_v37, %v3361_v63 }
 0x1b6   : > { %1639 = vmatpush.msrb.mxu1 %v1545_v33 }
 0x1b7   : > { %v3449_v25 = vpop.f32.mrf.mxu2  ;;  %v1504_v58 = vmax.f32 %v1202_v12, 0.0 }
 0x1b8   : > { %1640 = vmatpush.msrb.mxu1 %v1544_v59 }
 0x1b9   : > { %1463 = vmatmul.f32.gmra.mxu3 %v3856_v7 }
 0x1ba   : > { %1641 = vmatpush.msrb.mxu1 %v1543_v3 }
 0x1bb   : > { %1360 = vmatmul.f32.gmra.mxu1 %v3857_v14  ;;  %1587 = vmatmul.f32.gmra.mxu0 %v1500_v11  ;;  %v3865_v11 = vld [vmem:[#allocation4_spill] sm:$0xff] }
 0x1bc   : > { %1413 = vmatmul.f32.gmra.mxu2 %v3858_v46  ;;  %v1204_v49 = vpop.f32.mrf.mxu3  ;;  %v3866_v7 = vmax.f32 %v3865_v11, 0.0  ;;  %1642 = vmatpush.msrb.mxu1 %v1542_v47 }
 0x1bd   : > { %v1205_v44 = vadd.f32 %v1204_v49, %v1140_v22  ;;  %v3507_v42 = vpop.f32.mrf.mxu1  ;;  %v3511_v46 = vpop.f32.mrf.mxu0  ;;  %v1016_v49 = vadd.f32 %v3290_v53, %v3361_v63  ;;  %v3872_v22 = vmax.f32 %v3871_v39, 0.0 }
 0x1bf   : > { %v3464_v26 = vpop.f32.mrf.mxu2  ;;  %v1506_v8 = vmax.f32 %v1205_v44, 0.0  ;;  %v1081_v38 = vadd.f32 %v3373_v2, %v1016_v49  ;;  %v1019_v2 = vadd.f32 %v3329_v41, %v3361_v63  ;;  %v3875_v49 = vmax.f32 %v3269_v16, 0.0 }
 0x1c1   : > { %1466 = vmatmul.f32.gmra.mxu3 %v3860_v60 }
 0x1c3   : > { %1590 = vmatmul.f32.gmra.mxu0 %v1502_v51  ;;  %v1146_v51 = vadd.f32 %v3411_v13, %v1081_v38  ;;  %v3870_v13 = vmax.f32 %v3188_v45, 0.0  ;;  %v1722_v38 = vld [vmem:[%s3743_s7 + $0x70] sm:$0xff] }
 0x1c4   : > { %1416 = vmatmul.f32.gmra.mxu2 %v3861_v10  ;;  %v1207_v19 = vpop.f32.mrf.mxu3  ;;  %v1084_v10 = vadd.f32 %v3400_v57, %v1019_v2  ;;  %v1087_v57 = vadd.f32 %v3422_v62, %v1022_v35  ;;  %v1025_v62 = vadd.f32 %v3376_v21, %v3361_v63 }
 0x1c5   : > { %v1208_v48 = vadd.f32 %v1207_v19, %v1143_v55  ;;  %v3526_v18 = vpop.f32.mrf.mxu1  ;;  %v3530_v31 = vpop.f32.mrf.mxu0 }
 0x1c6   : > { %v1149_v12 = vadd.f32 %v3430_v30, %v1084_v10  ;;  %v1090_v44 = vadd.f32 %v3443_v17, %v1025_v62  ;;  %v1028_v17 = vadd.f32 %v3403_v0, %v3361_v63 }
 0x1c7   : > { %v3481_v24 = vpop.f32.mrf.mxu2  ;;  %v1508_v4 = vmax.f32 %v1208_v48, 0.0 }
 0x1c9   : > { %1469 = vmatmul.f32.gmra.mxu3 %v3862_v27 }
 0x1cb   : > { %1593 = vmatmul.f32.gmra.mxu0 %v1504_v58 }
 0x1cc   : > { %1419 = vmatmul.f32.gmra.mxu2 %v3864_v32  ;;  %v1210_v50 = vpop.f32.mrf.mxu3  ;;  %v1152_v32 = vadd.f32 %v3449_v25, %v1087_v57  ;;  %v1723_v25 = vld [vmem:[%s3743_s7 + $0x78] sm:$0xff] }
 0x1cd   : > { %v1211_v60 = vadd.f32 %v1210_v50, %v1146_v51  ;;  %v1316_v58 = vpop.f32.mrf.mxu1  ;;  %v3544_v27 = vpop.f32.mrf.mxu0  ;;  %1728 = vmatpush.msrb.mxu2 %v1723_v25 }
 0x1cf   : > { %v3498_v52 = vpop.f32.mrf.mxu2  ;;  %v1510_v19 = vmax.f32 %v1211_v60, 0.0  ;;  %1729 = vmatpush.msrb.mxu2 %v1722_v38  ;;  %v3583_v60 = vperm.slane %v3353_v54, 1 }
 0x1d1   : > { %1472 = vmatmul.f32.gmra.mxu3 %v3866_v7  ;;  %v1155_v7 = vadd.f32 %v3464_v26, %v1090_v44 }
 0x1d3   : > { %1596 = vmatmul.f32.gmra.mxu0 %v1506_v8  ;;  %v3874_v8 = vmax.f32 %v3873_v28, 0.0 }
 0x1d4   : > { %1422 = vmatmul.f32.gmra.mxu2 %v3867_v43  ;;  %v1213_v14 = vpop.f32.mrf.mxu3 }
 0x1d5   : > { %v1214_v41 = vadd.f32 %v1213_v14, %v1149_v12  ;;  %v1319_v11 = vpop.f32.mrf.mxu1  ;;  %v3558_v33 = vpop.f32.mrf.mxu0  ;;  %v1093_v14 = vadd.f32 %v3466_v40, %v1028_v17  ;;  %v1031_v40 = vadd.f32 %v3428_v20, %v3361_v63 }
 0x1d7   : > { %v3515_v5 = vpop.f32.mrf.mxu2  ;;  %v1512_v45 = vmax.f32 %v1214_v41, 0.0  ;;  %v1158_v26 = vadd.f32 %v3481_v24, %v1093_v14  ;;  %v1096_v16 = vadd.f32 %v3489_v23, %v1031_v40  ;;  %v3876_v24 = vmax.f32 %v3302_v56, 0.0  ;;  %v1717_v14 = vld [vmem:[%s3743_s7 + $0x48] sm:$0xff] }
 0x1d8   : > { %v1034_v23 = vadd.f32 %v3447_v9, %v3361_v63  ;;  %v1252_v56 = vadd.f32 %v3492_v6, %v3583_v60  ;;  %v1037_v6 = vadd.f32 %v3469_v15, %v3361_v63 }
 0x1d9   : > { %1475 = vmatmul.f32.gmra.mxu3 %v3868_v36  ;;  %v1161_v2 = vadd.f32 %v3498_v52, %v1096_v16  ;;  %v1720_v52 = vld [vmem:[%s3743_s7 + $0x60] sm:$0xff] }
 0x1da   : > { %v1099_v12 = vadd.f32 %v3507_v42, %v1034_v23  ;;  %v1255_v42 = vadd.f32 %v3511_v46, %v3583_v60 }
 0x1db   : > { %1599 = vmatmul.f32.gmra.mxu0 %v1508_v4 }
 0x1dc   : > { %1425 = vmatmul.f32.gmra.mxu2 %v3869_v34  ;;  %v1216_v53 = vpop.f32.mrf.mxu3  ;;  %v1164_v41 = vadd.f32 %v3515_v5, %v1099_v12  ;;  %v1320_v47 = vadd.f32 %v1319_v11, %v1255_v42  ;;  %v1719_v5 = vld [vmem:[%s3743_s7 + $0x58] sm:$0xff] }
 0x1dd   : > { %v1217_v37 = vadd.f32 %v1216_v53, %v1152_v32  ;;  %v1322_v4 = vpop.f32.mrf.mxu1  ;;  %v3572_v59 = vpop.f32.mrf.mxu0  ;;  %v1721_v53 = vld [vmem:[%s3743_s7 + $0x68] sm:$0xff] }
 0x1de   : > { %1730 = vmatpush.msrb.mxu2 %v1721_v53 }
 0x1df   : > { %v3532_v29 = vpop.f32.mrf.mxu2  ;;  %v1514_v1 = vmax.f32 %v1217_v37, 0.0 }
 0x1e0   : > { %1731 = vmatpush.msrb.mxu2 %v1720_v52 }
 0x1e1   : > { %1478 = vmatmul.f32.gmra.mxu3 %v3870_v13 }
 0x1e2   : > { %1732 = vmatpush.msrb.mxu2 %v1719_v5 }
 0x1e3   : > { %1602 = vmatmul.f32.gmra.mxu0 %v1510_v19 }
 0x1e4   : > { %v1219_v61 = vpop.f32.mrf.mxu3 }
 0x1e5   : > { %v1220_v21 = vadd.f32 %v1219_v61, %v1155_v7  ;;  %v1325_v20 = vpop.f32.mrf.mxu1  ;;  %v3590_v13 = vpop.f32.mrf.mxu0  ;;  %v1317_v61 = vadd.f32 %v1316_v58, %v1252_v56 }
 0x1e7   : > { %v1381_v30 = vpop.f32.mrf.mxu2  ;;  %v1516_v48 = vmax.f32 %v1220_v21, 0.0 }
 0x1e8   : > { %v1382_v35 = vadd.f32 %v1381_v30, %v1317_v61  ;;  %v1270_v61 = vadd.f32 %v3590_v13, %v3583_v60  ;;  %v1713_v13 = vld [vmem:[%s3743_s7 + $0x28] sm:$0xff] }
 0x1e9   : > { %1481 = vmatmul.f32.gmra.mxu3 %v3872_v22  ;;  %v1102_v22 = vadd.f32 %v3526_v18, %v1037_v6  ;;  %v1258_v18 = vadd.f32 %v3530_v31, %v3583_v60  ;;  %v1261_v31 = vadd.f32 %v3544_v27, %v3583_v60  ;;  %v1716_v27 = vld [vmem:[%s3743_s7 + $0x40] sm:$0xff] }
 0x1eb   : > { %1605 = vmatmul.f32.gmra.mxu0 %v1512_v45  ;;  %v1167_v63 = vadd.f32 %v3532_v29, %v1102_v22  ;;  %v1326_v17 = vadd.f32 %v1325_v20, %v1261_v31 }
 0x1ec   : > { %v1222_v50 = vpop.f32.mrf.mxu3 }
 0x1ed   : > { %v1223_v51 = vadd.f32 %v1222_v50, %v1158_v26  ;;  %v1328_v39 = vpop.f32.mrf.mxu1  ;;  %v3602_v32 = vpop.f32.mrf.mxu0 }
 0x1ee   : > { %v1273_v42 = vadd.f32 %v3602_v32, %v3583_v60  ;;  %v1712_v32 = vld [vmem:[%s3743_s7 + $0x20] sm:$0xff] }
 0x1ef   : > { %v1384_v55 = vpop.f32.mrf.mxu2  ;;  %v1518_v34 = vmax.f32 %v1223_v51, 0.0  ;;  %v1264_v51 = vadd.f32 %v3558_v33, %v3583_v60  ;;  %v1715_v33 = vld [vmem:[%s3743_s7 + $0x38] sm:$0xff] }
 0x1f0   : > { %v1385_v15 = vadd.f32 %v1384_v55, %v1320_v47 }
 0x1f1   : > { %1484 = vmatmul.f32.gmra.mxu3 %v3874_v8  ;;  %v1718_v8 = vld [vmem:[%s3743_s7 + $0x50] sm:$0xff]  ;;  %v1329_v40 = vadd.f32 %v1328_v39, %v1264_v51 }
 0x1f2   : > { %1733 = vmatpush.msrb.mxu2 %v1718_v8 }
 0x1f3   : > { %1608 = vmatmul.f32.gmra.mxu0 %v1514_v1  ;;  %v1323_v1 = vadd.f32 %v1322_v4, %v1258_v18 }
 0x1f4   : > { %v1225_v43 = vpop.f32.mrf.mxu3  ;;  %1734 = vmatpush.msrb.mxu2 %v1717_v14 }
 0x1f5   : > { %v1226_v19 = vadd.f32 %v1225_v43, %v1161_v2  ;;  %v1331_v11 = vpop.f32.mrf.mxu1  ;;  %v3613_v7 = vpop.f32.mrf.mxu0  ;;  %v1267_v2 = vadd.f32 %v3572_v59, %v3583_v60 }
 0x1f6   : > { %1735 = vmatpush.msrb.mxu2 %v1716_v27 }
 0x1f7   : > { %v1387_v0 = vpop.f32.mrf.mxu2  ;;  %v1520_v54 = vmax.f32 %v1226_v19, 0.0  ;;  %v1332_v23 = vadd.f32 %v1331_v11, %v1267_v2 }
 0x1f8   : > { %v1388_v29 = vadd.f32 %v1387_v0, %v1323_v1  ;;  %1736 = vmatpush.msrb.mxu2 %v1715_v33 }
 0x1f9   : > { %1487 = vmatmul.f32.gmra.mxu3 %v3875_v49 }
 0x1fb   : > { %1611 = vmatmul.f32.gmra.mxu0 %v1516_v48 }
 0x1fc   : > { %v1228_v36 = vpop.f32.mrf.mxu3 }
 0x1fd   : > { %v1229_v57 = vadd.f32 %v1228_v36, %v1164_v41  ;;  %v1334_v49 = vpop.f32.mrf.mxu1  ;;  %v1278_v38 = vpop.f32.mrf.mxu0 }
 0x1fe   : > { %v1335_v41 = vadd.f32 %v1334_v49, %v1270_v61  ;;  %v1279_v11 = vadd.f32 %v1278_v38, %v3583_v60  ;;  %v1710_v38 = vld [vmem:[%s3743_s7 + $0x10] sm:$0xff] }
 0x1ff   : > { %v1390_v3 = vpop.f32.mrf.mxu2  ;;  %v1522_v50 = vmax.f32 %v1229_v57, 0.0 }
 0x200   : > { %v1391_v48 = vadd.f32 %v1390_v3, %v1326_v17 }
 0x201   : > { %1490 = vmatmul.f32.gmra.mxu3 %v3876_v24 }
 0x203   : > { %1614 = vmatmul.f32.gmra.mxu0 %v1518_v34 }
 0x204   : > { %v1231_v10 = vpop.f32.mrf.mxu3 }
 0x205   : > { %v1232_v37 = vadd.f32 %v1231_v10, %v1167_v63  ;;  %v1337_v53 = vpop.f32.mrf.mxu1  ;;  %v1281_v10 = vpop.f32.mrf.mxu0 }
 0x206   : > { %v1338_v39 = vadd.f32 %v1337_v53, %v1273_v42  ;;  %v1282_v17 = vadd.f32 %v1281_v10, %v3583_v60 }
 0x207   : > { %v1393_v30 = vpop.f32.mrf.mxu2  ;;  %v1524_v28 = vmax.f32 %v1232_v37, 0.0 }
 0x208   : > { %v1394_v16 = vadd.f32 %v1393_v30, %v1329_v40 }
 0x20b   : > { %1617 = vmatmul.f32.gmra.mxu0 %v1520_v54 }
 0x20c   : > { %v1446_v9 = vpop.f32.mrf.mxu3 }
 0x20d   : > { %v1447_v45 = vadd.f32 %v1446_v9, %v1382_v35  ;;  %v1340_v52 = vpop.f32.mrf.mxu1  ;;  %v1284_v59 = vpop.f32.mrf.mxu0  ;;  %v1714_v35 = vld [vmem:[%s3743_s7 + $0x30] sm:$0xff] }
 0x20e   : > { %1737 = vmatpush.msrb.mxu2 %v1714_v35 }
 0x20f   : > { %v1495_v58 = vmax.f32 %v1447_v45, 0.0  ;;  %v1396_v25 = vpop.f32.mrf.mxu2 }
 0x210   : > { %v1397_v56 = vadd.f32 %v1396_v25, %v1332_v23  ;;  %1738 = vmatpush.msrb.mxu2 %v1713_v13 }
 0x211   : > { %1643 = vmatmul.f32.vlgmr.msrb.gmra.mxu1 %v1495_v58 }
 0x212   : > { %1739 = vmatpush.msrb.mxu2 %v1712_v32 }
 0x213   : > { %1620 = vmatmul.f32.gmra.mxu0 %v1522_v50 }
 0x214   : > { %v1449_v46 = vpop.f32.mrf.mxu3 }
 0x215   : > { %v1450_v62 = vadd.f32 %v1449_v46, %v1385_v15  ;;  %v1343_v22 = vpop.f32.mrf.mxu1  ;;  %v1287_v47 = vpop.f32.mrf.mxu0  ;;  %v1276_v15 = vadd.f32 %v3613_v7, %v3583_v60  ;;  %v1711_v7 = vld [vmem:[%s3743_s7 + $0x18] sm:$0xff] }
 0x216   : > { %v1344_v25 = vadd.f32 %v1343_v22, %v1279_v11  ;;  %1740 = vmatpush.msrb.mxu2 %v1711_v7 }
 0x217   : > { %v1497_v44 = vmax.f32 %v1450_v62, 0.0  ;;  %v1399_v36 = vpop.f32.mrf.mxu2  ;;  %v1341_v37 = vadd.f32 %v1340_v52, %v1276_v15 }
 0x218   : > { %v1400_v57 = vadd.f32 %v1399_v36, %v1335_v41  ;;  %1741 = vmatpush.msrb.mxu2 %v1710_v38 }
 0x219   : > { %1646 = vmatmul.f32.gmra.mxu1 %v1497_v44 }
 0x21b   : > { %1623 = vmatmul.f32.gmra.mxu0 %v1524_v28 }
 0x21c   : > { %v1452_v55 = vpop.f32.mrf.mxu3 }
 0x21d   : > { %v1453_v43 = vadd.f32 %v1452_v55, %v1388_v29  ;;  %v1346_v18 = vpop.f32.mrf.mxu1  ;;  %v1290_v1 = vpop.f32.mrf.mxu0 }
 0x21f   : > { %v1499_v21 = vmax.f32 %v1453_v43, 0.0  ;;  %v1402_v20 = vpop.f32.mrf.mxu2 }
 0x220   : > { %v1403_v50 = vadd.f32 %v1402_v20, %v1338_v39  ;;  %v1288_v20 = vadd.f32 %v1287_v47, %v3583_v60 }
 0x221   : > { %1649 = vmatmul.f32.gmra.mxu1 %v1499_v21 }
 0x224   : > { %v1455_v26 = vpop.f32.mrf.mxu3 }
 0x225   : > { %v1456_v4 = vadd.f32 %v1455_v26, %v1391_v48  ;;  %v1349_v21 = vpop.f32.mrf.mxu1  ;;  %v1293_v14 = vpop.f32.mrf.mxu0  ;;  %v1347_v26 = vadd.f32 %v1346_v18, %v1282_v17 }
 0x226   : > { %v1294_v13 = vadd.f32 %v1293_v14, %v3583_v60 }
 0x227   : > { %v1501_v0 = vmax.f32 %v1456_v4, 0.0  ;;  %v1405_v9 = vpop.f32.mrf.mxu2 }
 0x228   : > { %v1406_v62 = vadd.f32 %v1405_v9, %v1341_v37 }
 0x229   : > { %1652 = vmatmul.f32.gmra.mxu1 %v1501_v0  ;;  %v1285_v0 = vadd.f32 %v1284_v59, %v3583_v60  ;;  %v1291_v59 = vadd.f32 %v1290_v1, %v3583_v60 }
 0x22c   : > { %v1458_v34 = vpop.f32.mrf.mxu3 }
 0x22d   : > { %v1459_v24 = vadd.f32 %v1458_v34, %v1394_v16  ;;  %v1352_v27 = vpop.f32.mrf.mxu1  ;;  %v1296_v16 = vpop.f32.mrf.mxu0  ;;  %v1350_v34 = vadd.f32 %v1349_v21, %v1285_v0 }
 0x22e   : > { %v1353_v33 = vadd.f32 %v1352_v27, %v1288_v20  ;;  %v1297_v15 = vadd.f32 %v1296_v16, %v3583_v60 }
 0x22f   : > { %v1503_v19 = vmax.f32 %v1459_v24, 0.0  ;;  %v1408_v5 = vpop.f32.mrf.mxu2  ;;  %v1709_v24 = vld [vmem:[%s3743_s7 + $0x8] sm:$0xff] }
 0x230   : > { %v1409_v55 = vadd.f32 %v1408_v5, %v1344_v25  ;;  %1742 = vmatpush.msrb.mxu2 %v1709_v24 }
 0x231   : > { %1655 = vmatmul.f32.gmra.mxu1 %v1503_v19 }
 0x234   : > { %v1461_v3 = vpop.f32.mrf.mxu3 }
 0x235   : > { %v1462_v12 = vadd.f32 %v1461_v3, %v1397_v56  ;;  %v1708_v56 = vld [vmem:[%s3743_s7] sm:$0xff]  ;;  %v1355_v3 = vpop.f32.mrf.mxu1 }
 0x236   : > { %1743 = vmatpush.msrb.mxu2 %v1708_v56  ;;  %v1356_v9 = vadd.f32 %v1355_v3, %v1291_v59 }
 0x237   : > { %v1505_v54 = vmax.f32 %v1462_v12, 0.0  ;;  %v1411_v8 = vpop.f32.mrf.mxu2  ;;  %v1579_v12 = vpop.f32.mrf.mxu0 }
 0x238   : > { %v1412_v4 = vadd.f32 %v1411_v8, %v1347_v26  ;;  %v3667_v8 = vld [vmem:[%s3742_s6] ss:$0 sm:$0xff] }
 0x239   : > { %1658 = vmatmul.f32.gmra.mxu1 %v1505_v54 }
 0x23c   : > { %v1464_v45 = vpop.f32.mrf.mxu3 }
 0x23d   : > { %v1465_v6 = vadd.f32 %v1464_v45, %v1400_v57  ;;  %v1358_v45 = vpop.f32.mrf.mxu1 }
 0x23e   : > { %v1359_v47 = vadd.f32 %v1358_v45, %v1294_v13 }
 0x23f   : > { %v1507_v58 = vmax.f32 %v1465_v6, 0.0  ;;  %v1414_v49 = vpop.f32.mrf.mxu2 }
 0x240   : > { %v1415_v2 = vadd.f32 %v1414_v49, %v1350_v34 }
 0x241   : > { %1661 = vmatmul.f32.gmra.mxu1 %v1507_v58  ;;  %v1582_v58 = vpop.f32.mrf.mxu0 }
 0x244   : > { %v1467_v30 = vpop.f32.mrf.mxu3 }
 0x245   : > { %v1468_v63 = vadd.f32 %v1467_v30, %v1403_v50 }
 0x247   : > { %v1509_v46 = vmax.f32 %v1468_v63, 0.0  ;;  %v1417_v53 = vpop.f32.mrf.mxu2  ;;  %v1361_v63 = vpop.f32.mrf.mxu1 }
 0x248   : > { %v1418_v61 = vadd.f32 %v1417_v53, %v1353_v33 }
 0x249   : > { %1664 = vmatmul.f32.gmra.mxu1 %v1509_v46  ;;  %v1585_v37 = vpop.f32.mrf.mxu0 }
 0x24a   : > { %v1586_v14 = vadd.f32 %v3667_v8, %v1585_v37 }
 0x24c   : > { %v1470_v44 = vpop.f32.mrf.mxu3 }
 0x24d   : > { %v1471_v28 = vadd.f32 %v1470_v44, %v1406_v62  ;;  %v1362_v62 = vadd.f32 %v1361_v63, %v1297_v15 }
 0x24f   : > { %v1511_v29 = vmax.f32 %v1471_v28, 0.0  ;;  %v1420_v54 = vpop.f32.mrf.mxu2 }
 0x250   : > { %v1421_v57 = vadd.f32 %v1420_v54, %v1356_v9 }
 0x251   : > { %1667 = vmatmul.f32.gmra.mxu1 %v1511_v29  ;;  %v1588_v11 = vpop.f32.mrf.mxu0  ;;  %v1580_v29 = vadd.f32 %v3667_v8, %v1579_v12 }
 0x254   : > { %v1473_v43 = vpop.f32.mrf.mxu3 }
 0x255   : > { %v1474_v31 = vadd.f32 %v1473_v43, %v1409_v55  ;;  %v1583_v43 = vadd.f32 %v3667_v8, %v1582_v58 }
 0x257   : > { %v1513_v48 = vmax.f32 %v1474_v31, 0.0  ;;  %v1423_v39 = vpop.f32.mrf.mxu2 }
 0x258   : > { %v1424_v50 = vadd.f32 %v1423_v39, %v1359_v47 }
 0x259   : > { %1670 = vmatmul.f32.gmra.mxu1 %v1513_v48  ;;  %v1591_v55 = vpop.f32.mrf.mxu0 }
 0x25a   : > { %v1592_v27 = vadd.f32 %v3667_v8, %v1591_v55 }
 0x25c   : > { %v1476_v36 = vpop.f32.mrf.mxu3 }
 0x25d   : > { %v1477_v51 = vadd.f32 %v1476_v36, %v1412_v4  ;;  %v1589_v4 = vadd.f32 %v3667_v8, %v1588_v11 }
 0x25f   : > { %v1515_v40 = vmax.f32 %v1477_v51, 0.0  ;;  %v1426_v32 = vpop.f32.mrf.mxu2 }
 0x260   : > { %v1427_v18 = vadd.f32 %v1426_v32, %v1362_v62 }
 0x261   : > { %1673 = vmatmul.f32.gmra.mxu1 %v1515_v40  ;;  %v1594_v48 = vpop.f32.mrf.mxu0 }
 0x264   : > { %v1479_v10 = vpop.f32.mrf.mxu3 }
 0x265   : > { %v1480_v19 = vadd.f32 %v1479_v10, %v1415_v2  ;;  %v1595_v2 = vadd.f32 %v3667_v8, %v1594_v48 }
 0x267   : > { %v1517_v23 = vmax.f32 %v1480_v19, 0.0 }
 0x269   : > { %1676 = vmatmul.f32.gmra.mxu1 %v1517_v23  ;;  %v1597_v0 = vpop.f32.mrf.mxu0 }
 0x26a   : > { %v1598_v33 = vadd.f32 %v3667_v8, %v1597_v0 }
 0x26c   : > { %v1482_v52 = vpop.f32.mrf.mxu3 }
 0x26d   : > { %v1483_v41 = vadd.f32 %v1482_v52, %v1418_v61 }
 0x26f   : > { %v1519_v35 = vmax.f32 %v1483_v41, 0.0 }
 0x271   : > { %1679 = vmatmul.f32.gmra.mxu1 %v1519_v35  ;;  %v1600_v53 = vpop.f32.mrf.mxu0 }
 0x272   : > { %v1601_v61 = vadd.f32 %v3667_v8, %v1600_v53 }
 0x274   : > { %v1485_v6 = vpop.f32.mrf.mxu3 }
 0x275   : > { %v1486_v42 = vadd.f32 %v1485_v6, %v1421_v57 }
 0x277   : > { %v1521_v22 = vmax.f32 %v1486_v42, 0.0 }
 0x279   : > { %1682 = vmatmul.f32.gmra.mxu1 %v1521_v22  ;;  %v1603_v23 = vpop.f32.mrf.mxu0 }
 0x27a   : > { %v1604_v35 = vadd.f32 %v3667_v8, %v1603_v23 }
 0x27c   : > { %v1488_v5 = vpop.f32.mrf.mxu3 }
 0x27d   : > { %v1489_v30 = vadd.f32 %v1488_v5, %v1424_v50 }
 0x27f   : > { %v1523_v46 = vmax.f32 %v1489_v30, 0.0 }
 0x281   : > { %1685 = vmatmul.f32.gmra.mxu1 %v1523_v46  ;;  %v1606_v54 = vpop.f32.mrf.mxu0 }
 0x282   : > { %v1607_v42 = vadd.f32 %v3667_v8, %v1606_v54 }
 0x284   : > { %v1491_v44 = vpop.f32.mrf.mxu3 }
 0x285   : > { %v1492_v1 = vadd.f32 %v1491_v44, %v1427_v18 }
 0x287   : > { %v1525_v28 = vmax.f32 %v1492_v1, 0.0 }
 0x289   : > { %1688 = vmatmul.f32.gmra.mxu1 %v1525_v28  ;;  %v1609_v45 = vpop.f32.mrf.mxu0 }
 0x28a   : > { %v1610_v47 = vadd.f32 %v3667_v8, %v1609_v45 }
 0x28e   : > { %v1644_v25 = vpop.f32.mrf.mxu1 }
 0x28f   : > { %v1645_v60 = vadd.f32 %v1644_v25, %v1580_v29 }
 0x291   : > { %v1692_v7 = vmax.f32 %v1645_v60, 0.0  ;;  %v1612_v22 = vpop.f32.mrf.mxu0 }
 0x292   : > { %v1613_v15 = vadd.f32 %v3667_v8, %v1612_v22 }
 0x293   : > { %1744 = vmatmul.f32.vlgmr.msrb.gmra.mxu2 %v1692_v7 }
 0x296   : > { %v1647_v31 = vpop.f32.mrf.mxu1 }
 0x297   : > { %v1648_v21 = vadd.f32 %v1647_v31, %v1583_v43 }
 0x299   : > { %v1693_v17 = vmax.f32 %v1648_v21, 0.0  ;;  %v1615_v63 = vpop.f32.mrf.mxu0 }
 0x29a   : > { %v1616_v62 = vadd.f32 %v3667_v8, %v1615_v63 }
 0x29b   : > { %1747 = vmatmul.f32.gmra.mxu2 %v1693_v17 }
 0x29e   : > { %v1650_v49 = vpop.f32.mrf.mxu1 }
 0x29f   : > { %v1651_v26 = vadd.f32 %v1650_v49, %v1586_v14 }
 0x2a1   : > { %v1694_v38 = vmax.f32 %v1651_v26, 0.0  ;;  %v1618_v18 = vpop.f32.mrf.mxu0 }
 0x2a2   : > { %v1619_v11 = vadd.f32 %v3667_v8, %v1618_v18 }
 0x2a3   : > { %1750 = vmatmul.f32.gmra.mxu2 %v1694_v38  ;;  %v2051_v38 = vld [vmem:[%s3744_s8] ss:$0 sm:$0xff] }
 0x2a6   : > { %v1653_v36 = vpop.f32.mrf.mxu1 }
 0x2a7   : > { %v1654_v51 = vadd.f32 %v1653_v36, %v1589_v4 }
 0x2a9   : > { %v1695_v40 = vmax.f32 %v1654_v51, 0.0  ;;  %v1621_v60 = vpop.f32.mrf.mxu0 }
 0x2aa   : > { %v1622_v55 = vadd.f32 %v3667_v8, %v1621_v60 }
 0x2ab   : > { %1753 = vmatmul.f32.gmra.mxu2 %v1695_v40 }
 0x2ae   : > { %v1656_v16 = vpop.f32.mrf.mxu1 }
 0x2af   : > { %v1657_v34 = vadd.f32 %v1656_v16, %v1592_v27 }
 0x2b1   : > { %v1696_v24 = vmax.f32 %v1657_v34, 0.0  ;;  %v1624_v17 = vpop.f32.mrf.mxu0 }
 0x2b2   : > { %v1625_v14 = vadd.f32 %v3667_v8, %v1624_v17 }
 0x2b3   : > { %1756 = vmatmul.f32.gmra.mxu2 %v1696_v24 }
 0x2b6   : > { %v1659_v10 = vpop.f32.mrf.mxu1 }
 0x2b7   : > { %v1660_v19 = vadd.f32 %v1659_v10, %v1595_v2 }
 0x2b9   : > { %v1697_v20 = vmax.f32 %v1660_v19, 0.0 }
 0x2bb   : > { %1759 = vmatmul.f32.gmra.mxu2 %v1697_v20 }
 0x2be   : > { %v1662_v56 = vpop.f32.mrf.mxu1 }
 0x2bf   : > { %v1663_v3 = vadd.f32 %v1662_v56, %v1598_v33 }
 0x2c1   : > { %v1698_v12 = vmax.f32 %v1663_v3, 0.0 }
 0x2c3   : > { %1762 = vmatmul.f32.gmra.mxu2 %v1698_v12 }
 0x2c6   : > { %v1665_v52 = vpop.f32.mrf.mxu1 }
 0x2c7   : > { %v1666_v41 = vadd.f32 %v1665_v52, %v1601_v61 }
 0x2c9   : > { %v1699_v59 = vmax.f32 %v1666_v41, 0.0 }
 0x2cb   : > { %1765 = vmatmul.f32.gmra.mxu2 %v1699_v59 }
 0x2ce   : > { %v1668_v9 = vpop.f32.mrf.mxu1 }
 0x2cf   : > { %v1669_v57 = vadd.f32 %v1668_v9, %v1604_v35 }
 0x2d1   : > { %v1700_v6 = vmax.f32 %v1669_v57, 0.0 }
 0x2d3   : > { %1768 = vmatmul.f32.gmra.mxu2 %v1700_v6 }
 0x2d6   : > { %v1671_v58 = vpop.f32.mrf.mxu1 }
 0x2d7   : > { %v1672_v39 = vadd.f32 %v1671_v58, %v1607_v42 }
 0x2d9   : > { %v1701_v13 = vmax.f32 %v1672_v39, 0.0 }
 0x2db   : > { %1771 = vmatmul.f32.gmra.mxu2 %v1701_v13 }
 0x2de   : > { %v1674_v50 = vpop.f32.mrf.mxu1 }
 0x2df   : > { %v1675_v5 = vadd.f32 %v1674_v50, %v1610_v47 }
 0x2e1   : > { %v1702_v30 = vmax.f32 %v1675_v5, 0.0 }
 0x2e3   : > { %1774 = vmatmul.f32.gmra.mxu2 %v1702_v30 }
 0x2e6   : > { %v1677_v46 = vpop.f32.mrf.mxu1 }
 0x2e7   : > { %v1678_v37 = vadd.f32 %v1677_v46, %v1613_v15 }
 0x2e9   : > { %v1703_v32 = vmax.f32 %v1678_v37, 0.0 }
 0x2eb   : > { %1777 = vmatmul.f32.gmra.mxu2 %v1703_v32 }
 0x2ee   : > { %v1680_v44 = vpop.f32.mrf.mxu1 }
 0x2ef   : > { %v1681_v1 = vadd.f32 %v1680_v44, %v1616_v62 }
 0x2f1   : > { %v1704_v28 = vmax.f32 %v1681_v1, 0.0 }
 0x2f3   : > { %1780 = vmatmul.f32.gmra.mxu2 %v1704_v28 }
 0x2f6   : > { %v1683_v29 = vpop.f32.mrf.mxu1 }
 0x2f7   : > { %v1684_v25 = vadd.f32 %v1683_v29, %v1619_v11 }
 0x2f9   : > { %v1705_v7 = vmax.f32 %v1684_v25, 0.0 }
 0x2fb   : > { %1783 = vmatmul.f32.gmra.mxu2 %v1705_v7 }
 0x2fe   : > { %v1686_v43 = vpop.f32.mrf.mxu1 }
 0x2ff   : > { %v1687_v31 = vadd.f32 %v1686_v43, %v1622_v55 }
 0x301   : > { %v1706_v21 = vmax.f32 %v1687_v31, 0.0 }
 0x303   : > { %1786 = vmatmul.f32.gmra.mxu2 %v1706_v21 }
 0x306   : > { %v1689_v48 = vpop.f32.mrf.mxu1 }
 0x307   : > { %v1690_v49 = vadd.f32 %v1689_v48, %v1625_v14 }
 0x309   : > { %v1707_v26 = vmax.f32 %v1690_v49, 0.0 }
 0x30b   : > { %1789 = vmatmul.f32.gmra.mxu2 %v1707_v26 }
 0x316   : > { %v1745_v8 = vpop.f32.mrf.mxu2 }
 0x317   : > { %v1746_v4 = vadd.f32 %v2051_v38, %v1745_v8 }
 0x319   : > { %1794 = vst.msk [vmem:[%s3693_s18] sm:$0xff] %vm1793_vm1, %v1746_v4 }
 0x31e   : > { %v1748_v36 = vpop.f32.mrf.mxu2 }
 0x31f   : > { %v1749_v51 = vadd.f32 %v2051_v38, %v1748_v36 }
 0x321   : > { %1795 = vst.msk [vmem:[%s3693_s18 + $0x8] sm:$0xff] %vm1793_vm1, %v1749_v51 }
 0x326   : > { %v1751_v0 = vpop.f32.mrf.mxu2 }
 0x327   : > { %v1752_v40 = vadd.f32 %v2051_v38, %v1751_v0 }
 0x329   : > { %1796 = vst.msk [vmem:[%s3693_s18 + $0x10] sm:$0xff] %vm1793_vm1, %v1752_v40 }
 0x32e   : > { %v1754_v27 = vpop.f32.mrf.mxu2 }
 0x32f   : > { %v1755_v16 = vadd.f32 %v2051_v38, %v1754_v27 }
 0x331   : > { %1797 = vst.msk [vmem:[%s3693_s18 + $0x18] sm:$0xff] %vm1793_vm1, %v1755_v16 }
 0x336   : > { %v1757_v34 = vpop.f32.mrf.mxu2 }
 0x337   : > { %v1758_v24 = vadd.f32 %v2051_v38, %v1757_v34 }
 0x339   : > { %1798 = vst.msk [vmem:[%s3693_s18 + $0x20] sm:$0xff] %vm1793_vm1, %v1758_v24 }
 0x33e   : > { %v1760_v53 = vpop.f32.mrf.mxu2 }
 0x33f   : > { %v1761_v2 = vadd.f32 %v2051_v38, %v1760_v53 }
 0x341   : > { %1799 = vst.msk [vmem:[%s3693_s18 + $0x28] sm:$0xff] %vm1793_vm1, %v1761_v2 }
 0x346   : > { %v1763_v10 = vpop.f32.mrf.mxu2 }
 0x347   : > { %v1764_v19 = vadd.f32 %v2051_v38, %v1763_v10 }
 0x349   : > { %1800 = vst.msk [vmem:[%s3693_s18 + $0x30] sm:$0xff] %vm1793_vm1, %v1764_v19 }
 0x34e   : > { %v1766_v20 = vpop.f32.mrf.mxu2 }
 0x34f   : > { %v1767_v23 = vadd.f32 %v2051_v38, %v1766_v20 }
 0x351   : > { %1801 = vst.msk [vmem:[%s3693_s18 + $0x38] sm:$0xff] %vm1793_vm1, %v1767_v23 }
 0x356   : > { %v1769_v33 = vpop.f32.mrf.mxu2 }
 0x357   : > { %v1770_v56 = vadd.f32 %v2051_v38, %v1769_v33 }
 0x359   : > { %1802 = vst.msk [vmem:[%s3693_s18 + $0x40] sm:$0xff] %vm1793_vm1, %v1770_v56 }
 0x35e   : > { %v1772_v3 = vpop.f32.mrf.mxu2 }
 0x35f   : > { %v1773_v12 = vadd.f32 %v2051_v38, %v1772_v3 }
 0x361   : > { %1803 = vst.msk [vmem:[%s3693_s18 + $0x48] sm:$0xff] %vm1793_vm1, %v1773_v12 }
 0x366   : > { %v1775_v61 = vpop.f32.mrf.mxu2 }
 0x367   : > { %v1776_v54 = vadd.f32 %v2051_v38, %v1775_v61 }
 0x369   : > { %1804 = vst.msk [vmem:[%s3693_s18 + $0x50] sm:$0xff] %vm1793_vm1, %v1776_v54 }
 0x36e   : > { %v1778_v52 = vpop.f32.mrf.mxu2 }
 0x36f   : > { %v1779_v41 = vadd.f32 %v2051_v38, %v1778_v52 }
 0x371   : > { %1805 = vst.msk [vmem:[%s3693_s18 + $0x58] sm:$0xff] %vm1793_vm1, %v1779_v41 }
 0x376   : > { %v1781_v59 = vpop.f32.mrf.mxu2 }
 0x377   : > { %v1782_v35 = vadd.f32 %v2051_v38, %v1781_v59 }
 0x379   : > { %1806 = vst.msk [vmem:[%s3693_s18 + $0x60] sm:$0xff] %vm1793_vm1, %v1782_v35 }
 0x37e   : > { %v1784_v9 = vpop.f32.mrf.mxu2 }
 0x37f   : > { %v1785_v57 = vadd.f32 %v2051_v38, %v1784_v9 }
 0x381   : > { %1807 = vst.msk [vmem:[%s3693_s18 + $0x68] sm:$0xff] %vm1793_vm1, %v1785_v57 }
 0x386   : > { %v1787_v45 = vpop.f32.mrf.mxu2 }
 0x387   : > { %v1788_v6 = vadd.f32 %v2051_v38, %v1787_v45 }
 0x389   : > { %1808 = vst.msk [vmem:[%s3693_s18 + $0x70] sm:$0xff] %vm1793_vm1, %v1788_v6 }
 0x38e   : > { %v1790_v42 = vpop.f32.mrf.mxu2 }
 0x38f   : > { %v1791_v58 = vadd.f32 %v2051_v38, %v1790_v42 }
 0x391   : > { %1809 = vst.msk [vmem:[%s3693_s18 + $0x78] sm:$0xff] %vm1793_vm1, %v1791_v58 }
 0x392 PF: > { %s19_s11 = sadd.s32 1, %s2074_s11   ;;  %s3877_s30 = smov %s2070_s10 }
 0x393   : > { %p16_p5 = scmp.ge.s32.totalorder %s19_s11, 4   ;;  %s3878_s10 = smov %s3880_s12 }
 0x395   :  { %18 = sbr.rel (!%p16_p5) target bundleno = 2 (0x2), region = 92 }

</bundles_post_ra>
